<compile_context>
chip_gen: v6e
topology: v6e:2x2x1
jax: 0.10.0
libtpu: 0.0.40
codegen_flags: <defaults>
</compile_context>

<pallas_src>
import functools

import jax
import jax.numpy as jnp
from jax import lax
from jax.experimental import pallas as pl
from jax.experimental.pallas import tpu as pltpu

LN_EPS = 1e-5


def _edge_selector_kernel(
    # per-batch-element inputs
    x_ref, a_ref, mask_bd_ref, mask_flat_ref, ped_ref, mask_row_ref, g_ref,
    # parameters (replicated across the grid, DMA'd once)
    lnn_g_ref, lnn_b_ref, lne_g_ref, lne_b_ref,
    w_nt_ref, w_e_ref, bqkv_ref, w1_ref, b1_ref, w2_ref, b2_ref,
    # packed output
    out_ref,
    *, nhead, head_dim, d_model, nnode, tau, hard):
  """One grid step = one batch element (time step); all target nodes at once."""
  e = 4 * d_model
  nn2 = nnode * nnode

  x = x_ref[0]                      # (nnode, d_model)
  a = a_ref[0]                      # (nn2, 2*d_model)   row = target*nnode + neighbor
  mask_bd = mask_bd_ref[0]          # (nn2, nn2)         block-diag(target) * mask2d
  mask_flat = mask_flat_ref[0]      # (nn2, 1)           mask[target, neighbor]
  ped = ped_ref[0]                  # (nnode, 1)         pedestrian validity
  mask_row = mask_row_ref[0]        # (nhead*nnode, nnode)  row = h*nnode + t
  g = g_ref[0]                      # (nhead*nnode, nnode)  gumbel noise, same layout

  # ---- node LayerNorm + pedestrian mask (target-invariant, computed once) ----
  mu = jnp.mean(x, axis=-1, keepdims=True)
  var = jnp.mean((x - mu) ** 2, axis=-1, keepdims=True)
  xn = ((x - mu) * lax.rsqrt(var + LN_EPS) * lnn_g_ref[...] + lnn_b_ref[...]) * ped

  # ---- edge LayerNorm + mask (all (target, neighbor) rows at once) ----
  amu = jnp.mean(a, axis=-1, keepdims=True)
  avar = jnp.mean((a - amu) ** 2, axis=-1, keepdims=True)
  an = ((a - amu) * lax.rsqrt(avar + LN_EPS) * lne_g_ref[...] + lne_b_ref[...]) * mask_flat

  # ---- hoisted QKV projection ----
  # feat[t, j] = [xn[j] | xn[t] | an[t, j]]; Wqkv is split along its K rows so the x
  # parts are projected once per node instead of once per (target, neighbor) pair.
  proj_nt = jnp.dot(xn, w_nt_ref[...], preferred_element_type=jnp.float32)   # (nnode, 6e)
  proj_n = proj_nt[:, :3 * e]                                                 # neighbor part
  proj_t = proj_nt[:, 3 * e:]                                                 # target part
  proj_e = jnp.dot(an, w_e_ref[...], preferred_element_type=jnp.float32) + bqkv_ref[...]
  qkv = (proj_e.reshape(nnode, nnode, 3 * e)
         + proj_n[None, :, :] + proj_t[:, None, :]).reshape(nn2, 3 * e)

  q = qkv[:, :e] * (head_dim ** -0.5)
  k = qkv[:, e:2 * e]
  v = qkv[:, 2 * e:3 * e]

  # ---- per-head masked attention over neighbors (all targets in one dense matmul) ----
  # Scores are computed for all (t,i)x(t',j) pairs; mask_bd zeroes the off-target
  # blocks, so the renormalized probabilities equal the per-target attention exactly
  # (up to the shared 1e-10 epsilon).
  att_heads = []
  for h in range(nhead):                         # nhead is small & static -> unrolled
    sl = slice(h * head_dim, (h + 1) * head_dim)
    qh, kh, vh = q[:, sl], k[:, sl], v[:, sl]
    s = lax.dot_general(qh, kh, (((1,), (1,)), ((), ())),
                        preferred_element_type=jnp.float32)                   # (nn2, nn2)
    s = s - jnp.max(s, axis=-1, keepdims=True)
    p = jnp.exp(s)
    p = p * pl.reciprocal(jnp.sum(p, axis=-1, keepdims=True), approx=True)
    p = p * mask_bd
    p = p * pl.reciprocal(jnp.sum(p, axis=-1, keepdims=True) + 1e-10, approx=True)
    att_heads.append(jnp.dot(p, vh, preferred_element_type=jnp.float32))      # (nn2, hd)

  # ---- score MLP batched across heads & targets: (nhead*nn2, hd) rows = (h, t, i) ----
  a_all = jnp.concatenate(att_heads, axis=0)                                  # (nhead*nn2, hd)
  h1 = jnp.maximum(
      jnp.dot(a_all, w1_ref[...], preferred_element_type=jnp.float32) + b1_ref[...], 0.)
  prod = (h1 * w2_ref[...]).reshape(nhead * nnode, nnode, head_dim)
  sc = jnp.sum(prod, axis=-1) + b2_ref[...]                                   # (nhead*nnode, nnode)

  # ---- edge multinomial: softmax over neighbors -> mask -> renormalize ----
  em = jnp.exp(sc - jnp.max(sc, axis=-1, keepdims=True))
  em = em * pl.reciprocal(jnp.sum(em, axis=-1, keepdims=True), approx=True)
  em = em * mask_row
  em = em / (jnp.sum(em, axis=-1, keepdims=True) + 1e-10)   # output-defining: exact

  # ---- gumbel-softmax sampling ----
  gl = (jnp.log(em + 1e-10) + g) * (1.0 / tau)
  y = jnp.exp(gl - jnp.max(gl, axis=-1, keepdims=True))
  y = y / jnp.sum(y, axis=-1, keepdims=True)                # output-defining: exact
  if hard:
    m = jnp.max(y, axis=-1, keepdims=True)
    col = lax.broadcasted_iota(jnp.int32, y.shape, 1)
    first = jnp.min(jnp.where(y >= m, col, nnode), axis=-1, keepdims=True)
    y = (col == first).astype(y.dtype)                      # straight-through forward

  # ---- pack both outputs into one lane-dense slab: (nhead, 2*nnode*nnode) = (4, 128) ----
  out_ref[0] = jnp.concatenate([em.reshape(nhead, nn2), y.reshape(nhead, nn2)], axis=-1)


def init_params(key, d_model, nhead):
  e = 4 * d_model
  hd = e // nhead
  k = jax.random.split(key, 8)
  s = 0.05
  return dict(
      nhead=nhead,
      norm_node_g=1.0 + 0.1 * jax.random.normal(k[6], (d_model,), jnp.float32),
      norm_node_b=0.1 * jax.random.normal(k[7], (d_model,), jnp.float32),
      norm_edge_g=jnp.ones((2 * d_model,), jnp.float32),
      norm_edge_b=jnp.zeros((2 * d_model,), jnp.float32),
      in_proj_weight=s * jax.random.normal(k[0], (3 * e, e), jnp.float32),
      in_proj_bias=s * jax.random.normal(k[1], (3 * e,), jnp.float32),
      linear1_w=s * jax.random.normal(k[2], (hd, hd), jnp.float32),
      linear1_b=s * jax.random.normal(k[3], (hd,), jnp.float32),
      linear2_w=s * jax.random.normal(k[4], (1, hd), jnp.float32),
      linear2_b=s * jax.random.normal(k[5], (1,), jnp.float32),
  )


def edge_selector_forward(params, x, A, attn_mask, gumbel_noise, tau=1.0, hard=False):
  bsz, nnode, d_model = x.shape
  nhead = int(params['nhead'])
  e = 4 * d_model
  head_dim = e // nhead
  nn2 = nnode * nnode
  f32 = jnp.float32

  # ---- layout plumbing (wrapper-side, cheap XLA) ----
  a_flat = jnp.transpose(A, (0, 2, 1, 3)).reshape(bsz, nn2, 2 * d_model)   # row = t*nnode+j
  mask_flat = attn_mask.reshape(bsz, nn2, 1)
  ped = (jnp.sum(attn_mask, -1, keepdims=True) > 0.).astype(f32)           # (bsz, nnode, 1)
  mask2d = attn_mask[:, :, :, None] * attn_mask[:, :, None, :]             # (b, t, i, j)
  eye_t = jnp.eye(nnode, dtype=f32)
  mask_bd = (mask2d[:, :, :, None, :] * eye_t[None, :, None, :, None]      # (b,t,i,t',j)
             ).reshape(bsz, nn2, nn2)
  mask_row = jnp.broadcast_to(attn_mask[:, None], (bsz, nhead, nnode, nnode)
                              ).reshape(bsz, nhead * nnode, nnode)
  g_hl = jnp.transpose(gumbel_noise, (0, 2, 1, 3)).reshape(bsz, nhead * nnode, nnode)

  # ---- parameter pre-transposition (kernel consumes (in, out) matrices) ----
  wt = params['in_proj_weight'].T                                          # (4d, 3e)
  w_nt = jnp.concatenate([wt[:d_model], wt[d_model:2 * d_model]], axis=1)  # (d, 6e)
  w_e = wt[2 * d_model:]                                                   # (2d, 3e)
  bqkv = params['in_proj_bias'].reshape(1, 3 * e)
  lnn_g = params['norm_node_g'].reshape(1, d_model)
  lnn_b = params['norm_node_b'].reshape(1, d_model)
  lne_g = params['norm_edge_g'].reshape(1, 2 * d_model)
  lne_b = params['norm_edge_b'].reshape(1, 2 * d_model)
  w1 = params['linear1_w'].T                                               # (hd, hd)
  b1 = params['linear1_b'].reshape(1, head_dim)
  w2 = params['linear2_w'].reshape(1, head_dim)
  b2 = params['linear2_b'].reshape(1, 1)

  kernel = functools.partial(
      _edge_selector_kernel, nhead=nhead, head_dim=head_dim, d_model=d_model,
      nnode=nnode, tau=float(tau), hard=bool(hard))

  def bspec(arr):
    n = arr.ndim - 1
    def imap(b):
      return (b,) + (0,) * n
    return pl.BlockSpec((1,) + arr.shape[1:], imap)

  def pspec(arr):
    n = arr.ndim
    def imap(b):
      return (0,) * n
    return pl.BlockSpec(arr.shape, imap)

  batch_inputs = [x, a_flat, mask_bd, mask_flat, ped, mask_row, g_hl]
  param_inputs = [lnn_g, lnn_b, lne_g, lne_b, w_nt, w_e, bqkv, w1, b1, w2, b2]
  in_specs = [bspec(arr) for arr in batch_inputs] + [pspec(arr) for arr in param_inputs]

  out = pl.pallas_call(
      kernel,
      out_shape=jax.ShapeDtypeStruct((bsz, nhead, 2 * nn2), f32),
      grid_spec=pltpu.PrefetchScalarGridSpec(
          num_scalar_prefetch=0,
          grid=(bsz,),
          in_specs=in_specs,
          out_specs=pl.BlockSpec((1, nhead, 2 * nn2), lambda b: (b, 0, 0))),
      compiler_params=pltpu.CompilerParams(dimension_semantics=("parallel",)),
  )(*batch_inputs, *param_inputs)

  em = out[:, :, :nn2].reshape(bsz, nhead, nnode, nnode).transpose(0, 2, 1, 3)
  se = out[:, :, nn2:].reshape(bsz, nhead, nnode, nnode).transpose(0, 2, 1, 3)
  return em, se


# ---------- pure-JAX reference (same semantics), used for verification ----------
def _layernorm(x, g, b, eps=LN_EPS):
  mu = jnp.mean(x, -1, keepdims=True)
  var = jnp.mean((x - mu) ** 2, -1, keepdims=True)
  return (x - mu) * lax.rsqrt(var + eps) * g + b


def edge_selector_ref(params, x, A, attn_mask, g_noise, tau=1.0, hard=False):
  bsz, nnode, d = x.shape
  nhead = int(params['nhead'])
  e = 4 * d
  hd = e // nhead
  ped = (jnp.sum(attn_mask, -1, keepdims=True) > 0).astype(jnp.float32)
  xn = _layernorm(x, params['norm_node_g'], params['norm_node_b']) * ped
  x_neighbor = jnp.broadcast_to(xn[:, :, None, :], (bsz, nnode, nnode, d))
  x_target = jnp.broadcast_to(xn[:, None, :, :], (bsz, nnode, nnode, d))
  An = _layernorm(A, params['norm_edge_g'], params['norm_edge_b'])
  An = An * jnp.transpose(attn_mask, (0, 2, 1))[..., None]
  Afull = jnp.concatenate([x_neighbor, x_target, An], -1)     # (b, neighbor, target, 4d)
  Aperm = jnp.transpose(Afull, (0, 2, 1, 3))                  # (b, target, neighbor, 4d)
  qkv = Aperm @ params['in_proj_weight'].T + params['in_proj_bias']
  q = qkv[..., :e] * (hd ** -0.5)
  k = qkv[..., e:2 * e]
  v = qkv[..., 2 * e:]
  split = lambda u: u.reshape(bsz, nnode, nnode, nhead, hd)
  qh, kh, vh = split(q), split(k), split(v)
  s = jnp.einsum('btihc,btjhc->bthij', qh, kh)
  p = jax.nn.softmax(s, axis=-1)
  mask2d = attn_mask[:, :, :, None] * attn_mask[:, :, None, :]
  p = p * mask2d[:, :, None]
  p = p / (jnp.sum(p, -1, keepdims=True) + 1e-10)
  a = jnp.einsum('bthij,btjhc->bthic', p, vh)
  h1 = jax.nn.relu(a @ params['linear1_w'].T + params['linear1_b'])
  sc = (h1 @ params['linear2_w'].T + params['linear2_b'])[..., 0]    # (b, t, h, i)
  em = jax.nn.softmax(sc, -1)
  em = em * attn_mask[:, :, None, :]
  em = em / (jnp.sum(em, -1, keepdims=True) + 1e-10)
  y = jax.nn.softmax((jnp.log(em + 1e-10) + g_noise) / tau, -1)
  if hard:
    y = jax.nn.one_hot(jnp.argmax(y, -1), nnode, dtype=y.dtype)
  return em, y


if __name__ == "__main__":
  key = jax.random.PRNGKey(0)
  bsz, nnode, d_model, nhead = 2, 8, 32, 4
  keys = jax.random.split(key, 5)
  params = init_params(keys[0], d_model, nhead)

  x = jax.random.normal(keys[1], (bsz, nnode, d_model), jnp.float32)
  A = jax.random.normal(keys[2], (bsz, nnode, nnode, 2 * d_model), jnp.float32)
  valid = jnp.array([[1, 1, 1, 1, 1, 1, 0, 0],
                     [1, 1, 1, 1, 1, 0, 0, 0]], jnp.float32)
  attn_mask = valid[:, :, None] * valid[:, None, :]           # (bsz, target, neighbor)
  gumbel_noise = jax.random.gumbel(keys[3], (bsz, nnode, nhead, nnode), jnp.float32)

  em, se = edge_selector_forward(params, x, A, attn_mask, gumbel_noise, tau=1.0, hard=False)
  jax.block_until_ready((em, se))

  em_r, se_r = edge_selector_ref(params, x, A, attn_mask, gumbel_noise, tau=1.0, hard=False)
  assert em.shape == (bsz, nnode, nhead, nnode) and se.shape == (bsz, nnode, nhead, nnode)
  assert jnp.allclose(em, em_r, atol=1e-3, rtol=1e-3), "edge_multinomial mismatch"
  assert jnp.allclose(se, se_r, atol=1e-3, rtol=1e-3), "sampled_edges mismatch"

  # also exercise the hard (one-hot, straight-through) sampling path
  _, se_hard = edge_selector_forward(params, x, A, attn_mask, gumbel_noise, tau=1.0, hard=True)
  jax.block_until_ready(se_hard)
  assert se_hard.shape == (bsz, nnode, nhead, nnode)

  print("KERNEL_OK")
</pallas_src>

<mosaic_0001>
module attributes {stable_mosaic.version = 11 : i64} {
  func.func @_edge_selector_kernel(%arg0: i32, %arg1: memref<1x8x32xf32, #tpu.memory_space<vmem>>, %arg2: memref<1x64x64xf32, #tpu.memory_space<vmem>>, %arg3: memref<1x64x64xf32, #tpu.memory_space<vmem>>, %arg4: memref<1x64x1xf32, #tpu.memory_space<vmem>>, %arg5: memref<1x8x1xf32, #tpu.memory_space<vmem>>, %arg6: memref<1x32x8xf32, #tpu.memory_space<vmem>>, %arg7: memref<1x32x8xf32, #tpu.memory_space<vmem>>, %arg8: memref<1x32xf32, #tpu.memory_space<vmem>>, %arg9: memref<1x32xf32, #tpu.memory_space<vmem>>, %arg10: memref<1x64xf32, #tpu.memory_space<vmem>>, %arg11: memref<1x64xf32, #tpu.memory_space<vmem>>, %arg12: memref<32x768xf32, #tpu.memory_space<vmem>>, %arg13: memref<64x384xf32, #tpu.memory_space<vmem>>, %arg14: memref<1x384xf32, #tpu.memory_space<vmem>>, %arg15: memref<32x32xf32, #tpu.memory_space<vmem>>, %arg16: memref<1x32xf32, #tpu.memory_space<vmem>>, %arg17: memref<1x32xf32, #tpu.memory_space<vmem>>, %arg18: memref<1x1xf32, #tpu.memory_space<vmem>>, %arg19: memref<1x4x128xf32, #tpu.memory_space<vmem>>) attributes {dimension_semantics = [#tpu.dimension_semantics<parallel>], iteration_bounds = array<i64: 2>, scalar_prefetch = 0 : i64, scratch_operands = 0 : i64, tpu.core_type = #tpu.core_type<tc>, window_params = [{transform_indices = @transform_0, window_bounds = array<i64: 1, 8, 32>}, {transform_indices = @transform_1, window_bounds = array<i64: 1, 64, 64>}, {transform_indices = @transform_2, window_bounds = array<i64: 1, 64, 64>}, {transform_indices = @transform_3, window_bounds = array<i64: 1, 64, 1>}, {transform_indices = @transform_4, window_bounds = array<i64: 1, 8, 1>}, {transform_indices = @transform_5, window_bounds = array<i64: 1, 32, 8>}, {transform_indices = @transform_6, window_bounds = array<i64: 1, 32, 8>}, {pipeline_mode = #tpu.pipeline_mode<synchronous>, transform_indices = @transform_7, window_bounds = array<i64: 1, 32>}, {pipeline_mode = #tpu.pipeline_mode<synchronous>, transform_indices = @transform_8, window_bounds = array<i64: 1, 32>}, {pipeline_mode = #tpu.pipeline_mode<synchronous>, transform_indices = @transform_9, window_bounds = array<i64: 1, 64>}, {pipeline_mode = #tpu.pipeline_mode<synchronous>, transform_indices = @transform_10, window_bounds = array<i64: 1, 64>}, {pipeline_mode = #tpu.pipeline_mode<synchronous>, transform_indices = @transform_11, window_bounds = array<i64: 32, 768>}, {pipeline_mode = #tpu.pipeline_mode<synchronous>, transform_indices = @transform_12, window_bounds = array<i64: 64, 384>}, {pipeline_mode = #tpu.pipeline_mode<synchronous>, transform_indices = @transform_13, window_bounds = array<i64: 1, 384>}, {pipeline_mode = #tpu.pipeline_mode<synchronous>, transform_indices = @transform_14, window_bounds = array<i64: 32, 32>}, {pipeline_mode = #tpu.pipeline_mode<synchronous>, transform_indices = @transform_15, window_bounds = array<i64: 1, 32>}, {pipeline_mode = #tpu.pipeline_mode<synchronous>, transform_indices = @transform_16, window_bounds = array<i64: 1, 32>}, {pipeline_mode = #tpu.pipeline_mode<synchronous>, transform_indices = @transform_17, window_bounds = array<i64: 1, 1>}, {transform_indices = @transform_18, window_bounds = array<i64: 1, 4, 128>}]} {
    %c0 = arith.constant 0 : index
    %c0_0 = arith.constant 0 : index
    %c0_1 = arith.constant 0 : index
    %0 = vector.load %arg1[%c0, %c0_0, %c0_1] : memref<1x8x32xf32, #tpu.memory_space<vmem>>, vector<1x8x32xf32>
    %1 = vector.shape_cast %0 : vector<1x8x32xf32> to vector<8x32xf32>
    %c0_2 = arith.constant 0 : index
    %c0_3 = arith.constant 0 : index
    %c0_4 = arith.constant 0 : index
    %2 = vector.load %arg2[%c0_2, %c0_3, %c0_4] : memref<1x64x64xf32, #tpu.memory_space<vmem>>, vector<1x64x64xf32>
    %3 = vector.shape_cast %2 : vector<1x64x64xf32> to vector<64x64xf32>
    %c0_5 = arith.constant 0 : index
    %c0_6 = arith.constant 0 : index
    %c0_7 = arith.constant 0 : index
    %4 = vector.load %arg3[%c0_5, %c0_6, %c0_7] : memref<1x64x64xf32, #tpu.memory_space<vmem>>, vector<1x64x64xf32>
    %5 = vector.shape_cast %4 : vector<1x64x64xf32> to vector<64x64xf32>
    %c0_8 = arith.constant 0 : index
    %c0_9 = arith.constant 0 : index
    %c0_10 = arith.constant 0 : index
    %6 = vector.load %arg4[%c0_8, %c0_9, %c0_10] : memref<1x64x1xf32, #tpu.memory_space<vmem>>, vector<1x64x1xf32>
    %7 = vector.shape_cast %6 : vector<1x64x1xf32> to vector<64x1xf32>
    %c0_11 = arith.constant 0 : index
    %c0_12 = arith.constant 0 : index
    %c0_13 = arith.constant 0 : index
    %8 = vector.load %arg5[%c0_11, %c0_12, %c0_13] : memref<1x8x1xf32, #tpu.memory_space<vmem>>, vector<1x8x1xf32>
    %9 = vector.shape_cast %8 : vector<1x8x1xf32> to vector<8x1xf32>
    %c0_14 = arith.constant 0 : index
    %c0_15 = arith.constant 0 : index
    %c0_16 = arith.constant 0 : index
    %10 = vector.load %arg6[%c0_14, %c0_15, %c0_16] : memref<1x32x8xf32, #tpu.memory_space<vmem>>, vector<1x32x8xf32>
    %11 = vector.shape_cast %10 : vector<1x32x8xf32> to vector<32x8xf32>
    %c0_17 = arith.constant 0 : index
    %c0_18 = arith.constant 0 : index
    %c0_19 = arith.constant 0 : index
    %12 = vector.load %arg7[%c0_17, %c0_18, %c0_19] : memref<1x32x8xf32, #tpu.memory_space<vmem>>, vector<1x32x8xf32>
    %13 = vector.shape_cast %12 : vector<1x32x8xf32> to vector<32x8xf32>
    %cst = arith.constant dense<0.000000e+00> : vector<8xf32>
    %14 = vector.multi_reduction <add>, %1, %cst [1] : vector<8x32xf32> to vector<8xf32>
    %15 = vector.shape_cast %14 : vector<8xf32> to vector<8x1xf32>
    %cst_20 = arith.constant 3.200000e+01 : f32
    %16 = vector.broadcast %cst_20 : f32 to vector<8x1xf32>
    %17 = arith.divf %15, %16 : vector<8x1xf32>
    %18 = vector.broadcast %17 : vector<8x1xf32> to vector<8x32xf32>
    %19 = arith.subf %1, %18 : vector<8x32xf32>
    %20 = arith.mulf %19, %19 : vector<8x32xf32>
    %cst_21 = arith.constant dense<0.000000e+00> : vector<8xf32>
    %21 = vector.multi_reduction <add>, %20, %cst_21 [1] : vector<8x32xf32> to vector<8xf32>
    %22 = vector.shape_cast %21 : vector<8xf32> to vector<8x1xf32>
    %cst_22 = arith.constant 3.200000e+01 : f32
    %23 = vector.broadcast %cst_22 : f32 to vector<8x1xf32>
    %24 = arith.divf %22, %23 : vector<8x1xf32>
    %25 = vector.broadcast %17 : vector<8x1xf32> to vector<8x32xf32>
    %26 = arith.subf %1, %25 : vector<8x32xf32>
    %cst_23 = arith.constant 9.99999974E-6 : f32
    %27 = vector.broadcast %cst_23 : f32 to vector<8x1xf32>
    %28 = arith.addf %24, %27 : vector<8x1xf32>
    %29 = math.rsqrt %28 : vector<8x1xf32>
    %30 = vector.broadcast %29 : vector<8x1xf32> to vector<8x32xf32>
    %31 = arith.mulf %26, %30 : vector<8x32xf32>
    %c0_24 = arith.constant 0 : index
    %c0_25 = arith.constant 0 : index
    %32 = vector.load %arg8[%c0_24, %c0_25] : memref<1x32xf32, #tpu.memory_space<vmem>>, vector<1x32xf32>
    %33 = vector.broadcast %32 : vector<1x32xf32> to vector<8x32xf32>
    %34 = arith.mulf %31, %33 : vector<8x32xf32>
    %c0_26 = arith.constant 0 : index
    %c0_27 = arith.constant 0 : index
    %35 = vector.load %arg9[%c0_26, %c0_27] : memref<1x32xf32, #tpu.memory_space<vmem>>, vector<1x32xf32>
    %36 = vector.broadcast %35 : vector<1x32xf32> to vector<8x32xf32>
    %37 = arith.addf %34, %36 : vector<8x32xf32>
    %38 = vector.broadcast %9 : vector<8x1xf32> to vector<8x32xf32>
    %39 = arith.mulf %37, %38 : vector<8x32xf32>
    %cst_28 = arith.constant dense<0.000000e+00> : vector<64xf32>
    %40 = vector.multi_reduction <add>, %3, %cst_28 [1] : vector<64x64xf32> to vector<64xf32>
    %41 = vector.shape_cast %40 : vector<64xf32> to vector<64x1xf32>
    %cst_29 = arith.constant 6.400000e+01 : f32
    %42 = vector.broadcast %cst_29 : f32 to vector<64x1xf32>
    %43 = arith.divf %41, %42 : vector<64x1xf32>
    %44 = vector.broadcast %43 : vector<64x1xf32> to vector<64x64xf32>
    %45 = arith.subf %3, %44 : vector<64x64xf32>
    %46 = arith.mulf %45, %45 : vector<64x64xf32>
    %cst_30 = arith.constant dense<0.000000e+00> : vector<64xf32>
    %47 = vector.multi_reduction <add>, %46, %cst_30 [1] : vector<64x64xf32> to vector<64xf32>
    %48 = vector.shape_cast %47 : vector<64xf32> to vector<64x1xf32>
    %cst_31 = arith.constant 6.400000e+01 : f32
    %49 = vector.broadcast %cst_31 : f32 to vector<64x1xf32>
    %50 = arith.divf %48, %49 : vector<64x1xf32>
    %51 = vector.broadcast %43 : vector<64x1xf32> to vector<64x64xf32>
    %52 = arith.subf %3, %51 : vector<64x64xf32>
    %cst_32 = arith.constant 9.99999974E-6 : f32
    %53 = vector.broadcast %cst_32 : f32 to vector<64x1xf32>
    %54 = arith.addf %50, %53 : vector<64x1xf32>
    %55 = math.rsqrt %54 : vector<64x1xf32>
    %56 = vector.broadcast %55 : vector<64x1xf32> to vector<64x64xf32>
    %57 = arith.mulf %52, %56 : vector<64x64xf32>
    %c0_33 = arith.constant 0 : index
    %c0_34 = arith.constant 0 : index
    %58 = vector.load %arg10[%c0_33, %c0_34] : memref<1x64xf32, #tpu.memory_space<vmem>>, vector<1x64xf32>
    %59 = vector.broadcast %58 : vector<1x64xf32> to vector<64x64xf32>
    %60 = arith.mulf %57, %59 : vector<64x64xf32>
    %c0_35 = arith.constant 0 : index
    %c0_36 = arith.constant 0 : index
    %61 = vector.load %arg11[%c0_35, %c0_36] : memref<1x64xf32, #tpu.memory_space<vmem>>, vector<1x64xf32>
    %62 = vector.broadcast %61 : vector<1x64xf32> to vector<64x64xf32>
    %63 = arith.addf %60, %62 : vector<64x64xf32>
    %64 = vector.broadcast %7 : vector<64x1xf32> to vector<64x64xf32>
    %65 = arith.mulf %63, %64 : vector<64x64xf32>
    %c0_37 = arith.constant 0 : index
    %c0_38 = arith.constant 0 : index
    %66 = vector.load %arg12[%c0_37, %c0_38] : memref<32x768xf32, #tpu.memory_space<vmem>>, vector<32x768xf32>
    %cst_39 = arith.constant dense<0.000000e+00> : vector<8x768xf32>
    %67 = tpu.matmul %39, %66, %cst_39 {dimension_numbers = #tpu.dot_dimension_numbers<[1], [0], [0], [1], [0, 0, 1, 1], [], []>} : vector<8x32xf32>, vector<32x768xf32>, vector<8x768xf32> -> vector<8x768xf32>
    %68 = vector.extract_strided_slice %67 {offsets = [0, 0], sizes = [8, 384], strides = [1, 1]} : vector<8x768xf32> to vector<8x384xf32>
    %69 = vector.extract_strided_slice %67 {offsets = [0, 384], sizes = [8, 384], strides = [1, 1]} : vector<8x768xf32> to vector<8x384xf32>
    %c0_40 = arith.constant 0 : index
    %c0_41 = arith.constant 0 : index
    %70 = vector.load %arg13[%c0_40, %c0_41] : memref<64x384xf32, #tpu.memory_space<vmem>>, vector<64x384xf32>
    %cst_42 = arith.constant dense<0.000000e+00> : vector<64x384xf32>
    %71 = tpu.matmul %65, %70, %cst_42 {dimension_numbers = #tpu.dot_dimension_numbers<[1], [0], [0], [1], [0, 0, 1, 1], [], []>} : vector<64x64xf32>, vector<64x384xf32>, vector<64x384xf32> -> vector<64x384xf32>
    %c0_43 = arith.constant 0 : index
    %c0_44 = arith.constant 0 : index
    %72 = vector.load %arg14[%c0_43, %c0_44] : memref<1x384xf32, #tpu.memory_space<vmem>>, vector<1x384xf32>
    %73 = vector.broadcast %72 : vector<1x384xf32> to vector<64x384xf32>
    %74 = arith.addf %71, %73 : vector<64x384xf32>
    %75 = vector.shape_cast %74 : vector<64x384xf32> to vector<8x8x384xf32>
    %76 = vector.shape_cast %68 : vector<8x384xf32> to vector<1x8x384xf32>
    %77 = vector.broadcast %76 : vector<1x8x384xf32> to vector<8x8x384xf32>
    %78 = arith.addf %75, %77 : vector<8x8x384xf32>
    %79 = vector.shape_cast %69 : vector<8x384xf32> to vector<8x1x384xf32>
    %80 = vector.broadcast %79 : vector<8x1x384xf32> to vector<8x8x384xf32>
    %81 = arith.addf %78, %80 : vector<8x8x384xf32>
    %82 = vector.shape_cast %81 : vector<8x8x384xf32> to vector<64x384xf32>
    %83 = vector.extract_strided_slice %82 {offsets = [0, 0], sizes = [64, 128], strides = [1, 1]} : vector<64x384xf32> to vector<64x128xf32>
    %cst_45 = arith.constant 0.176776692 : f32
    %84 = vector.broadcast %cst_45 : f32 to vector<64x128xf32>
    %85 = arith.mulf %83, %84 : vector<64x128xf32>
    %86 = vector.extract_strided_slice %82 {offsets = [0, 128], sizes = [64, 128], strides = [1, 1]} : vector<64x384xf32> to vector<64x128xf32>
    %87 = vector.extract_strided_slice %82 {offsets = [0, 256], sizes = [64, 128], strides = [1, 1]} : vector<64x384xf32> to vector<64x128xf32>
    %88 = vector.extract_strided_slice %85 {offsets = [0, 0], sizes = [64, 32], strides = [1, 1]} : vector<64x128xf32> to vector<64x32xf32>
    %89 = vector.extract_strided_slice %86 {offsets = [0, 0], sizes = [64, 32], strides = [1, 1]} : vector<64x128xf32> to vector<64x32xf32>
    %90 = vector.extract_strided_slice %87 {offsets = [0, 0], sizes = [64, 32], strides = [1, 1]} : vector<64x128xf32> to vector<64x32xf32>
    %cst_46 = arith.constant dense<0.000000e+00> : vector<64x64xf32>
    %91 = tpu.matmul %88, %89, %cst_46 {dimension_numbers = #tpu.dot_dimension_numbers<[1], [1], [0], [0], [0, 0, 1, 0], [], []>} : vector<64x32xf32>, vector<64x32xf32>, vector<64x64xf32> -> vector<64x64xf32>
    %cst_47 = arith.constant dense<0xFF800000> : vector<64xf32>
    %92 = vector.multi_reduction <maximumf>, %91, %cst_47 [1] : vector<64x64xf32> to vector<64xf32>
    %93 = vector.shape_cast %92 : vector<64xf32> to vector<64x1xf32>
    %94 = vector.broadcast %93 : vector<64x1xf32> to vector<64x64xf32>
    %95 = arith.subf %91, %94 : vector<64x64xf32>
    %96 = math.exp %95 : vector<64x64xf32>
    %cst_48 = arith.constant dense<0.000000e+00> : vector<64xf32>
    %97 = vector.multi_reduction <add>, %96, %cst_48 [1] : vector<64x64xf32> to vector<64xf32>
    %98 = vector.shape_cast %97 : vector<64xf32> to vector<64x1xf32>
    %99 = tpu.reciprocal %98 {approx = true} : vector<64x1xf32> -> vector<64x1xf32>
    %100 = vector.broadcast %99 : vector<64x1xf32> to vector<64x64xf32>
    %101 = arith.mulf %96, %100 : vector<64x64xf32>
    %102 = arith.mulf %101, %5 : vector<64x64xf32>
    %cst_49 = arith.constant dense<0.000000e+00> : vector<64xf32>
    %103 = vector.multi_reduction <add>, %102, %cst_49 [1] : vector<64x64xf32> to vector<64xf32>
    %104 = vector.shape_cast %103 : vector<64xf32> to vector<64x1xf32>
    %cst_50 = arith.constant 1.000000e-10 : f32
    %105 = vector.broadcast %cst_50 : f32 to vector<64x1xf32>
    %106 = arith.addf %104, %105 : vector<64x1xf32>
    %107 = tpu.reciprocal %106 {approx = true} : vector<64x1xf32> -> vector<64x1xf32>
    %108 = vector.broadcast %107 : vector<64x1xf32> to vector<64x64xf32>
    %109 = arith.mulf %102, %108 : vector<64x64xf32>
    %cst_51 = arith.constant dense<0.000000e+00> : vector<64x32xf32>
    %110 = tpu.matmul %109, %90, %cst_51 {dimension_numbers = #tpu.dot_dimension_numbers<[1], [0], [0], [1], [0, 0, 1, 1], [], []>} : vector<64x64xf32>, vector<64x32xf32>, vector<64x32xf32> -> vector<64x32xf32>
    %111 = vector.extract_strided_slice %85 {offsets = [0, 32], sizes = [64, 32], strides = [1, 1]} : vector<64x128xf32> to vector<64x32xf32>
    %112 = vector.extract_strided_slice %86 {offsets = [0, 32], sizes = [64, 32], strides = [1, 1]} : vector<64x128xf32> to vector<64x32xf32>
    %113 = vector.extract_strided_slice %87 {offsets = [0, 32], sizes = [64, 32], strides = [1, 1]} : vector<64x128xf32> to vector<64x32xf32>
    %cst_52 = arith.constant dense<0.000000e+00> : vector<64x64xf32>
    %114 = tpu.matmul %111, %112, %cst_52 {dimension_numbers = #tpu.dot_dimension_numbers<[1], [1], [0], [0], [0, 0, 1, 0], [], []>} : vector<64x32xf32>, vector<64x32xf32>, vector<64x64xf32> -> vector<64x64xf32>
    %cst_53 = arith.constant dense<0xFF800000> : vector<64xf32>
    %115 = vector.multi_reduction <maximumf>, %114, %cst_53 [1] : vector<64x64xf32> to vector<64xf32>
    %116 = vector.shape_cast %115 : vector<64xf32> to vector<64x1xf32>
    %117 = vector.broadcast %116 : vector<64x1xf32> to vector<64x64xf32>
    %118 = arith.subf %114, %117 : vector<64x64xf32>
    %119 = math.exp %118 : vector<64x64xf32>
    %cst_54 = arith.constant dense<0.000000e+00> : vector<64xf32>
    %120 = vector.multi_reduction <add>, %119, %cst_54 [1] : vector<64x64xf32> to vector<64xf32>
    %121 = vector.shape_cast %120 : vector<64xf32> to vector<64x1xf32>
    %122 = tpu.reciprocal %121 {approx = true} : vector<64x1xf32> -> vector<64x1xf32>
    %123 = vector.broadcast %122 : vector<64x1xf32> to vector<64x64xf32>
    %124 = arith.mulf %119, %123 : vector<64x64xf32>
    %125 = arith.mulf %124, %5 : vector<64x64xf32>
    %cst_55 = arith.constant dense<0.000000e+00> : vector<64xf32>
    %126 = vector.multi_reduction <add>, %125, %cst_55 [1] : vector<64x64xf32> to vector<64xf32>
    %127 = vector.shape_cast %126 : vector<64xf32> to vector<64x1xf32>
    %cst_56 = arith.constant 1.000000e-10 : f32
    %128 = vector.broadcast %cst_56 : f32 to vector<64x1xf32>
    %129 = arith.addf %127, %128 : vector<64x1xf32>
    %130 = tpu.reciprocal %129 {approx = true} : vector<64x1xf32> -> vector<64x1xf32>
    %131 = vector.broadcast %130 : vector<64x1xf32> to vector<64x64xf32>
    %132 = arith.mulf %125, %131 : vector<64x64xf32>
    %cst_57 = arith.constant dense<0.000000e+00> : vector<64x32xf32>
    %133 = tpu.matmul %132, %113, %cst_57 {dimension_numbers = #tpu.dot_dimension_numbers<[1], [0], [0], [1], [0, 0, 1, 1], [], []>} : vector<64x64xf32>, vector<64x32xf32>, vector<64x32xf32> -> vector<64x32xf32>
    %134 = vector.extract_strided_slice %85 {offsets = [0, 64], sizes = [64, 32], strides = [1, 1]} : vector<64x128xf32> to vector<64x32xf32>
    %135 = vector.extract_strided_slice %86 {offsets = [0, 64], sizes = [64, 32], strides = [1, 1]} : vector<64x128xf32> to vector<64x32xf32>
    %136 = vector.extract_strided_slice %87 {offsets = [0, 64], sizes = [64, 32], strides = [1, 1]} : vector<64x128xf32> to vector<64x32xf32>
    %cst_58 = arith.constant dense<0.000000e+00> : vector<64x64xf32>
    %137 = tpu.matmul %134, %135, %cst_58 {dimension_numbers = #tpu.dot_dimension_numbers<[1], [1], [0], [0], [0, 0, 1, 0], [], []>} : vector<64x32xf32>, vector<64x32xf32>, vector<64x64xf32> -> vector<64x64xf32>
    %cst_59 = arith.constant dense<0xFF800000> : vector<64xf32>
    %138 = vector.multi_reduction <maximumf>, %137, %cst_59 [1] : vector<64x64xf32> to vector<64xf32>
    %139 = vector.shape_cast %138 : vector<64xf32> to vector<64x1xf32>
    %140 = vector.broadcast %139 : vector<64x1xf32> to vector<64x64xf32>
    %141 = arith.subf %137, %140 : vector<64x64xf32>
    %142 = math.exp %141 : vector<64x64xf32>
    %cst_60 = arith.constant dense<0.000000e+00> : vector<64xf32>
    %143 = vector.multi_reduction <add>, %142, %cst_60 [1] : vector<64x64xf32> to vector<64xf32>
    %144 = vector.shape_cast %143 : vector<64xf32> to vector<64x1xf32>
    %145 = tpu.reciprocal %144 {approx = true} : vector<64x1xf32> -> vector<64x1xf32>
    %146 = vector.broadcast %145 : vector<64x1xf32> to vector<64x64xf32>
    %147 = arith.mulf %142, %146 : vector<64x64xf32>
    %148 = arith.mulf %147, %5 : vector<64x64xf32>
    %cst_61 = arith.constant dense<0.000000e+00> : vector<64xf32>
    %149 = vector.multi_reduction <add>, %148, %cst_61 [1] : vector<64x64xf32> to vector<64xf32>
    %150 = vector.shape_cast %149 : vector<64xf32> to vector<64x1xf32>
    %cst_62 = arith.constant 1.000000e-10 : f32
    %151 = vector.broadcast %cst_62 : f32 to vector<64x1xf32>
    %152 = arith.addf %150, %151 : vector<64x1xf32>
    %153 = tpu.reciprocal %152 {approx = true} : vector<64x1xf32> -> vector<64x1xf32>
    %154 = vector.broadcast %153 : vector<64x1xf32> to vector<64x64xf32>
    %155 = arith.mulf %148, %154 : vector<64x64xf32>
    %cst_63 = arith.constant dense<0.000000e+00> : vector<64x32xf32>
    %156 = tpu.matmul %155, %136, %cst_63 {dimension_numbers = #tpu.dot_dimension_numbers<[1], [0], [0], [1], [0, 0, 1, 1], [], []>} : vector<64x64xf32>, vector<64x32xf32>, vector<64x32xf32> -> vector<64x32xf32>
    %157 = vector.extract_strided_slice %85 {offsets = [0, 96], sizes = [64, 32], strides = [1, 1]} : vector<64x128xf32> to vector<64x32xf32>
    %158 = vector.extract_strided_slice %86 {offsets = [0, 96], sizes = [64, 32], strides = [1, 1]} : vector<64x128xf32> to vector<64x32xf32>
    %159 = vector.extract_strided_slice %87 {offsets = [0, 96], sizes = [64, 32], strides = [1, 1]} : vector<64x128xf32> to vector<64x32xf32>
    %cst_64 = arith.constant dense<0.000000e+00> : vector<64x64xf32>
    %160 = tpu.matmul %157, %158, %cst_64 {dimension_numbers = #tpu.dot_dimension_numbers<[1], [1], [0], [0], [0, 0, 1, 0], [], []>} : vector<64x32xf32>, vector<64x32xf32>, vector<64x64xf32> -> vector<64x64xf32>
    %cst_65 = arith.constant dense<0xFF800000> : vector<64xf32>
    %161 = vector.multi_reduction <maximumf>, %160, %cst_65 [1] : vector<64x64xf32> to vector<64xf32>
    %162 = vector.shape_cast %161 : vector<64xf32> to vector<64x1xf32>
    %163 = vector.broadcast %162 : vector<64x1xf32> to vector<64x64xf32>
    %164 = arith.subf %160, %163 : vector<64x64xf32>
    %165 = math.exp %164 : vector<64x64xf32>
    %cst_66 = arith.constant dense<0.000000e+00> : vector<64xf32>
    %166 = vector.multi_reduction <add>, %165, %cst_66 [1] : vector<64x64xf32> to vector<64xf32>
    %167 = vector.shape_cast %166 : vector<64xf32> to vector<64x1xf32>
    %168 = tpu.reciprocal %167 {approx = true} : vector<64x1xf32> -> vector<64x1xf32>
    %169 = vector.broadcast %168 : vector<64x1xf32> to vector<64x64xf32>
    %170 = arith.mulf %165, %169 : vector<64x64xf32>
    %171 = arith.mulf %170, %5 : vector<64x64xf32>
    %cst_67 = arith.constant dense<0.000000e+00> : vector<64xf32>
    %172 = vector.multi_reduction <add>, %171, %cst_67 [1] : vector<64x64xf32> to vector<64xf32>
    %173 = vector.shape_cast %172 : vector<64xf32> to vector<64x1xf32>
    %cst_68 = arith.constant 1.000000e-10 : f32
    %174 = vector.broadcast %cst_68 : f32 to vector<64x1xf32>
    %175 = arith.addf %173, %174 : vector<64x1xf32>
    %176 = tpu.reciprocal %175 {approx = true} : vector<64x1xf32> -> vector<64x1xf32>
    %177 = vector.broadcast %176 : vector<64x1xf32> to vector<64x64xf32>
    %178 = arith.mulf %171, %177 : vector<64x64xf32>
    %cst_69 = arith.constant dense<0.000000e+00> : vector<64x32xf32>
    %179 = tpu.matmul %178, %159, %cst_69 {dimension_numbers = #tpu.dot_dimension_numbers<[1], [0], [0], [1], [0, 0, 1, 1], [], []>} : vector<64x64xf32>, vector<64x32xf32>, vector<64x32xf32> -> vector<64x32xf32>
    %180 = tpu.concatenate %110, %133, %156, %179 in 0 : vector<64x32xf32>, vector<64x32xf32>, vector<64x32xf32>, vector<64x32xf32> -> vector<256x32xf32>
    %c0_70 = arith.constant 0 : index
    %c0_71 = arith.constant 0 : index
    %181 = vector.load %arg15[%c0_70, %c0_71] : memref<32x32xf32, #tpu.memory_space<vmem>>, vector<32x32xf32>
    %cst_72 = arith.constant dense<0.000000e+00> : vector<256x32xf32>
    %182 = tpu.matmul %180, %181, %cst_72 {dimension_numbers = #tpu.dot_dimension_numbers<[1], [0], [0], [1], [0, 0, 1, 1], [], []>} : vector<256x32xf32>, vector<32x32xf32>, vector<256x32xf32> -> vector<256x32xf32>
    %c0_73 = arith.constant 0 : index
    %c0_74 = arith.constant 0 : index
    %183 = vector.load %arg16[%c0_73, %c0_74] : memref<1x32xf32, #tpu.memory_space<vmem>>, vector<1x32xf32>
    %184 = vector.broadcast %183 : vector<1x32xf32> to vector<256x32xf32>
    %185 = arith.addf %182, %184 : vector<256x32xf32>
    %cst_75 = arith.constant 0.000000e+00 : f32
    %186 = vector.broadcast %cst_75 : f32 to vector<256x32xf32>
    %187 = arith.maximumf %185, %186 : vector<256x32xf32>
    %c0_76 = arith.constant 0 : index
    %c0_77 = arith.constant 0 : index
    %188 = vector.load %arg17[%c0_76, %c0_77] : memref<1x32xf32, #tpu.memory_space<vmem>>, vector<1x32xf32>
    %189 = vector.broadcast %188 : vector<1x32xf32> to vector<256x32xf32>
    %190 = arith.mulf %187, %189 : vector<256x32xf32>
    %191 = vector.shape_cast %190 : vector<256x32xf32> to vector<32x8x32xf32>
    %cst_78 = arith.constant dense<0.000000e+00> : vector<32x8xf32>
    %192 = vector.multi_reduction <add>, %191, %cst_78 [2] : vector<32x8x32xf32> to vector<32x8xf32>
    %c0_79 = arith.constant 0 : index
    %c0_80 = arith.constant 0 : index
    %193 = vector.load %arg18[%c0_79, %c0_80] : memref<1x1xf32, #tpu.memory_space<vmem>>, vector<1x1xf32>
    %194 = vector.broadcast %193 : vector<1x1xf32> to vector<32x8xf32>
    %195 = arith.addf %192, %194 : vector<32x8xf32>
    %cst_81 = arith.constant dense<0xFF800000> : vector<32xf32>
    %196 = vector.multi_reduction <maximumf>, %195, %cst_81 [1] : vector<32x8xf32> to vector<32xf32>
    %197 = vector.shape_cast %196 : vector<32xf32> to vector<32x1xf32>
    %198 = vector.broadcast %197 : vector<32x1xf32> to vector<32x8xf32>
    %199 = arith.subf %195, %198 : vector<32x8xf32>
    %200 = math.exp %199 : vector<32x8xf32>
    %cst_82 = arith.constant dense<0.000000e+00> : vector<32xf32>
    %201 = vector.multi_reduction <add>, %200, %cst_82 [1] : vector<32x8xf32> to vector<32xf32>
    %202 = vector.shape_cast %201 : vector<32xf32> to vector<32x1xf32>
    %203 = tpu.reciprocal %202 {approx = true} : vector<32x1xf32> -> vector<32x1xf32>
    %204 = vector.broadcast %203 : vector<32x1xf32> to vector<32x8xf32>
    %205 = arith.mulf %200, %204 : vector<32x8xf32>
    %206 = arith.mulf %205, %11 : vector<32x8xf32>
    %cst_83 = arith.constant dense<0.000000e+00> : vector<32xf32>
    %207 = vector.multi_reduction <add>, %206, %cst_83 [1] : vector<32x8xf32> to vector<32xf32>
    %208 = vector.shape_cast %207 : vector<32xf32> to vector<32x1xf32>
    %cst_84 = arith.constant 1.000000e-10 : f32
    %209 = vector.broadcast %cst_84 : f32 to vector<32x1xf32>
    %210 = arith.addf %208, %209 : vector<32x1xf32>
    %211 = vector.broadcast %210 : vector<32x1xf32> to vector<32x8xf32>
    %212 = arith.divf %206, %211 : vector<32x8xf32>
    %cst_85 = arith.constant 1.000000e-10 : f32
    %213 = vector.broadcast %cst_85 : f32 to vector<32x8xf32>
    %214 = arith.addf %212, %213 : vector<32x8xf32>
    %215 = math.log %214 : vector<32x8xf32>
    %216 = arith.addf %215, %13 : vector<32x8xf32>
    %cst_86 = arith.constant 1.000000e+00 : f32
    %217 = vector.broadcast %cst_86 : f32 to vector<32x8xf32>
    %218 = arith.mulf %216, %217 : vector<32x8xf32>
    %cst_87 = arith.constant dense<0xFF800000> : vector<32xf32>
    %219 = vector.multi_reduction <maximumf>, %218, %cst_87 [1] : vector<32x8xf32> to vector<32xf32>
    %220 = vector.shape_cast %219 : vector<32xf32> to vector<32x1xf32>
    %221 = vector.broadcast %220 : vector<32x1xf32> to vector<32x8xf32>
    %222 = arith.subf %218, %221 : vector<32x8xf32>
    %223 = math.exp %222 : vector<32x8xf32>
    %cst_88 = arith.constant dense<0.000000e+00> : vector<32xf32>
    %224 = vector.multi_reduction <add>, %223, %cst_88 [1] : vector<32x8xf32> to vector<32xf32>
    %225 = vector.shape_cast %224 : vector<32xf32> to vector<32x1xf32>
    %226 = vector.broadcast %225 : vector<32x1xf32> to vector<32x8xf32>
    %227 = arith.divf %223, %226 : vector<32x8xf32>
    %228 = vector.shape_cast %212 : vector<32x8xf32> to vector<4x64xf32>
    %229 = vector.shape_cast %227 : vector<32x8xf32> to vector<4x64xf32>
    %230 = tpu.concatenate %228, %229 in 1 : vector<4x64xf32>, vector<4x64xf32> -> vector<4x128xf32>
    %c0_89 = arith.constant 0 : index
    %c0_90 = arith.constant 0 : index
    %c0_91 = arith.constant 0 : index
    %231 = vector.load %arg19[%c0_89, %c0_90, %c0_91] : memref<1x4x128xf32, #tpu.memory_space<vmem>>, vector<1x4x128xf32>
    %232 = vector.shape_cast %231 : vector<1x4x128xf32> to vector<4x128xf32>
    %233 = vector.shape_cast %230 : vector<4x128xf32> to vector<1x4x128xf32>
    tpu.vector_store %arg19[%c0_89, %c0_90, %c0_91], %233 {strides = array<i32>} : memref<1x4x128xf32, #tpu.memory_space<vmem>>, vector<1x4x128xf32>,
    return
  }
  func.func @transform_0(%arg0: i32) -> (i32, i32, i32) {
    %c0_i32 = arith.constant 0 : i32
    %c0_i32_0 = arith.constant 0 : i32
    %c0_i32_1 = arith.constant 0 : i32
    return %arg0, %c0_i32, %c0_i32_0 : i32, i32, i32
  }
  func.func @transform_1(%arg0: i32) -> (i32, i32, i32) {
    %c0_i32 = arith.constant 0 : i32
    %c0_i32_0 = arith.constant 0 : i32
    %c0_i32_1 = arith.constant 0 : i32
    return %arg0, %c0_i32, %c0_i32_0 : i32, i32, i32
  }
  func.func @transform_2(%arg0: i32) -> (i32, i32, i32) {
    %c0_i32 = arith.constant 0 : i32
    %c0_i32_0 = arith.constant 0 : i32
    %c0_i32_1 = arith.constant 0 : i32
    return %arg0, %c0_i32, %c0_i32_0 : i32, i32, i32
  }
  func.func @transform_3(%arg0: i32) -> (i32, i32, i32) {
    %c0_i32 = arith.constant 0 : i32
    %c0_i32_0 = arith.constant 0 : i32
    %c0_i32_1 = arith.constant 0 : i32
    return %arg0, %c0_i32, %c0_i32_0 : i32, i32, i32
  }
  func.func @transform_4(%arg0: i32) -> (i32, i32, i32) {
    %c0_i32 = arith.constant 0 : i32
    %c0_i32_0 = arith.constant 0 : i32
    %c0_i32_1 = arith.constant 0 : i32
    return %arg0, %c0_i32, %c0_i32_0 : i32, i32, i32
  }
  func.func @transform_5(%arg0: i32) -> (i32, i32, i32) {
    %c0_i32 = arith.constant 0 : i32
    %c0_i32_0 = arith.constant 0 : i32
    %c0_i32_1 = arith.constant 0 : i32
    return %arg0, %c0_i32, %c0_i32_0 : i32, i32, i32
  }
  func.func @transform_6(%arg0: i32) -> (i32, i32, i32) {
    %c0_i32 = arith.constant 0 : i32
    %c0_i32_0 = arith.constant 0 : i32
    %c0_i32_1 = arith.constant 0 : i32
    return %arg0, %c0_i32, %c0_i32_0 : i32, i32, i32
  }
  func.func @transform_7(%arg0: i32) -> (i32, i32) {
    %c0_i32 = arith.constant 0 : i32
    %c0_i32_0 = arith.constant 0 : i32
    %c0_i32_1 = arith.constant 0 : i32
    return %c0_i32, %c0_i32_0 : i32, i32
  }
  func.func @transform_8(%arg0: i32) -> (i32, i32) {
    %c0_i32 = arith.constant 0 : i32
    %c0_i32_0 = arith.constant 0 : i32
    %c0_i32_1 = arith.constant 0 : i32
    return %c0_i32, %c0_i32_0 : i32, i32
  }
  func.func @transform_9(%arg0: i32) -> (i32, i32) {
    %c0_i32 = arith.constant 0 : i32
    %c0_i32_0 = arith.constant 0 : i32
    %c0_i32_1 = arith.constant 0 : i32
    return %c0_i32, %c0_i32_0 : i32, i32
  }
  func.func @transform_10(%arg0: i32) -> (i32, i32) {
    %c0_i32 = arith.constant 0 : i32
    %c0_i32_0 = arith.constant 0 : i32
    %c0_i32_1 = arith.constant 0 : i32
    return %c0_i32, %c0_i32_0 : i32, i32
  }
  func.func @transform_11(%arg0: i32) -> (i32, i32) {
    %c0_i32 = arith.constant 0 : i32
    %c0_i32_0 = arith.constant 0 : i32
    %c0_i32_1 = arith.constant 0 : i32
    return %c0_i32, %c0_i32_0 : i32, i32
  }
  func.func @transform_12(%arg0: i32) -> (i32, i32) {
    %c0_i32 = arith.constant 0 : i32
    %c0_i32_0 = arith.constant 0 : i32
    %c0_i32_1 = arith.constant 0 : i32
    return %c0_i32, %c0_i32_0 : i32, i32
  }
  func.func @transform_13(%arg0: i32) -> (i32, i32) {
    %c0_i32 = arith.constant 0 : i32
    %c0_i32_0 = arith.constant 0 : i32
    %c0_i32_1 = arith.constant 0 : i32
    return %c0_i32, %c0_i32_0 : i32, i32
  }
  func.func @transform_14(%arg0: i32) -> (i32, i32) {
    %c0_i32 = arith.constant 0 : i32
    %c0_i32_0 = arith.constant 0 : i32
    %c0_i32_1 = arith.constant 0 : i32
    return %c0_i32, %c0_i32_0 : i32, i32
  }
  func.func @transform_15(%arg0: i32) -> (i32, i32) {
    %c0_i32 = arith.constant 0 : i32
    %c0_i32_0 = arith.constant 0 : i32
    %c0_i32_1 = arith.constant 0 : i32
    return %c0_i32, %c0_i32_0 : i32, i32
  }
  func.func @transform_16(%arg0: i32) -> (i32, i32) {
    %c0_i32 = arith.constant 0 : i32
    %c0_i32_0 = arith.constant 0 : i32
    %c0_i32_1 = arith.constant 0 : i32
    return %c0_i32, %c0_i32_0 : i32, i32
  }
  func.func @transform_17(%arg0: i32) -> (i32, i32) {
    %c0_i32 = arith.constant 0 : i32
    %c0_i32_0 = arith.constant 0 : i32
    %c0_i32_1 = arith.constant 0 : i32
    return %c0_i32, %c0_i32_0 : i32, i32
  }
  func.func @transform_18(%arg0: i32) -> (i32, i32, i32) {
    %c0_i32 = arith.constant 0 : i32
    %c0_i32_0 = arith.constant 0 : i32
    %c0_i32_1 = arith.constant 0 : i32
    return %arg0, %c0_i32, %c0_i32_0 : i32, i32, i32
  }
}

</mosaic_0001>

<bundles_post_ra>
// kernel: tpu_custom_call.1
= control target key start
LH: loop header
LB: loop body
LE: loop exit
PB: predicated region body
PF: predicated region fallthrough
CT: control target
= control target key end

     0   :  { %s13594_s0 = inlined_call_operand.hbm [shape: f32[2,8,32], index: 0, kind: input, shape index: {}]   ;;  %s13595_s1 = inlined_call_operand.vmem [shape: f32[2,64,64], index: 1, kind: input, shape index: {}]   ;;  %s13596_s2 = inlined_call_operand.hbm [shape: f32[2,64,64], index: 2, kind: input, shape index: {}]   ;;  %s13597_s3 = inlined_call_operand.vmem [shape: f32[2,64,1], index: 3, kind: input, shape index: {}]   ;;  %s13598_s4 = inlined_call_operand.vmem [shape: f32[2,8,1], index: 4, kind: input, shape index: {}]   ;;  %s13599_s5 = inlined_call_operand.vmem [shape: f32[2,32,8], index: 5, kind: input, shape index: {}]   ;;  %s13600_s6 = inlined_call_operand.vmem [shape: f32[2,32,8], index: 6, kind: input, shape index: {}]   ;;  %s13601_s7 = inlined_call_operand.vmem [shape: f32[1,32], index: 7, kind: input, shape index: {}]   ;;  %s13602_s8 = inlined_call_operand.vmem [shape: f32[1,32], index: 8, kind: input, shape index: {}]   ;;  %s13603_s9 = inlined_call_operand.vmem [shape: f32[1,64], index: 9, kind: input, shape index: {}]   ;;  %s13604_s10 = inlined_call_operand.vmem [shape: f32[1,64], index: 10, kind: input, shape index: {}]   ;;  %s13605_s11 = inlined_call_operand.vmem [shape: f32[32,768], index: 11, kind: input, shape index: {}]   ;;  %s13606_s12 = inlined_call_operand.hbm [shape: f32[64,384], index: 12, kind: input, shape index: {}]   ;;  %s13607_s13 = inlined_call_operand.vmem [shape: f32[1,384], index: 13, kind: input, shape index: {}]   ;;  %s13608_s14 = inlined_call_operand.hbm [shape: f32[32,32], index: 14, kind: input, shape index: {}]   ;;  %s13609_s15 = inlined_call_operand.vmem [shape: f32[1,32], index: 15, kind: input, shape index: {}]   ;;  %s13610_s16 = inlined_call_operand.vmem [shape: f32[1,32], index: 16, kind: input, shape index: {}]   ;;  %s13611_s17 = inlined_call_operand.<no memory space> [shape: f32[1,1], index: 17, kind: input, shape index: {}]   ;;  %s13612_s18 = inlined_call_operand.hbm [shape: f32[2,4,128], index: 18, kind: output, shape index: {}]  }
   0x1   :  { %13704 = sst [smem:[#allocation61_spill]] %s13594_s0  ;;  %v23_v0 = vstv %s13611_s17 }
   0x2   :  { %13705 = sst [smem:[#allocation62_spill]] %s13595_s1  ;;  %24 = vst [vmem:[#allocation2] sm:$0x1] %v23_v0 }
   0x3   :  { %13706 = sst [smem:[#allocation63_spill]] %s13596_s2 }
   0x4   :  { %13707 = sst [smem:[#allocation64_spill]] %s13599_s5 }
   0x5   :  { %13708 = sst [smem:[#allocation65_spill]] %s13600_s6 }
   0x6   :  { %13709 = sst [smem:[#allocation66_spill]] %s13606_s12 }
   0x7   :  { %13710 = sst [smem:[#allocation67_spill]] %s13608_s14 }
   0x8   :  { %13711 = sst [smem:[#allocation68_spill]] %s13612_s18 }
   0x9   :  { %25 = vsyncpa [#allocation4], 0 }
   0xa   :  { %27 = vsyncpa [#allocation4 + $0x1], 0 }
   0xb   :  { %28 = vsyncpa [#allocation7], 0 }
   0xc   :  { %30 = vsyncpa [#allocation7 + $0x1], 0 }
   0xd   :  { %31 = vsyncpa [#allocation10], 0 }
   0xe   :  { %32 = vsyncpa [#allocation5], 0 }
   0xf   :  { %34 = vsyncpa [#allocation5 + $0x1], 0  ;;  %s9836_s29 = smov 0   ;;  %s9838_s30 = smov 0  }
  0x10   :  { %s9840_s0 = smov 0   ;;  %s9842_s19 = smov 0  }
  0x11 LB: > { %13712 = sst [smem:[#allocation17_spill]] %s9709_s29  ;;  %s9857_s17 = sadd.s32 4294967295, %s9721_s19   ;;  %s9721_s19 = sphi %s9842_s19, %s13889_s19   ;;  %s9717_s0 = sphi %s9840_s0, %s13891_s0   ;;  %s9713_s30 = sphi %s9838_s30, %s13893_s30   ;;  %s9709_s29 = sphi %s9836_s29, %s13892_s29  }
  0x12   : > { %13713 = sst [smem:[#allocation18_spill]] %s9717_s0  ;;  %s8223_s1 = sadd.s32 4294967294, %s9721_s19  }
  0x13   : > { %p60_p0 = scmp.ne.s32.totalorder %s9713_s30, %s9709_s29  ;;  %p13616_p1 = scmp.eq.s32.totalorder %s9857_s17, 0 }
  0x14   : > { %p477_p3 = scmp.eq.s32.totalorder %s8223_s1, 1  ;;  %p8224_p5 = scmp.ge.s32.totalorder %s9721_s19, 1 }
  0x15   : > { %p9866_p4 = por %p13616_p1, %p60_p0  ;;  %p484_p7 = scmp.lt.s32.totalorder %s9721_s19, 3 }
  0x16   : > { %p9871_p6 = por %p477_p3, %p60_p0  ;;  %s9723_s2 = smov [#allocation8]  }
  0x17   : > { %s13714_s20 = scalar_select %p9866_p4, 1, 0 }
  0x18   : > { %s13715_s21 = scalar_select %p9871_p6, 1, 0 }
  0x19   : > { %p9876_p8 = pnand %p8224_p5, %p484_p7  ;;  %s511_s23 = sshll.u32 %s9723_s2, 4  ;;  %s512_s23 = int_to_ptr.vmem [resolvable:$true] %s511_s23 }
  0x1a   : > { %13716 = sst [smem:[#allocation19_spill]] %s13715_s21  ;;  %s9724_s25 = smov [#allocation9]  }
  0x1b   : > { %p8921_p9 = pneg %p9876_p8  ;;  %s527_s26 = sshll.u32 %s9724_s25, 4  ;;  %s528_s26 = int_to_ptr.vmem [resolvable:$true] %s527_s26 }
  0x1c   : > { %s9548_s27 = scalar_lea.vmem %s512_s23, 3072  ;;  %p9556_p5 = scmp.lt.s32.totalorder %s512_s23, %s512_s23 }
  0x1d   : > { %p9885_p11 = pnand %p8921_p9, %p13616_p1  ;;  %p9549_p13 = scmp.ne.s32.totalorder %s512_s23, %s9548_s27 }
  0x1e   : > { %p9557_p7 = scmp.lt.s32.totalorder %s9548_s27, %s9548_s27 }
  0x1f   : > { %p9539_p12 = pneg %p9885_p11 }
  0x20   : > { %p9558_p10 = por %p9557_p7, %p9556_p5 }
  0x21   : > { %p9551_p0 = pnand %p9549_p13, %p9539_p12 }
  0x23   : > { %p9552_p3 = pneg %p9551_p0 }
  0x25   : > { %p9559_p9 = pnand %p9558_p10, %p9552_p3 }
  0x27   : > { %9562 = shalt.err (!%p9559_p9)
}
  0x28   : > { %s9725_s28 = smov 384   ;;  %s9726_s1 = smov 24  }
  0x29   : > { %s13719_s12 = sld [smem:[#allocation66_spill]]  ;;  %s9574_s21 = scalar_lea.vmem %s528_s26, 512 }
  0x2a   : > { %p9575_p1 = scmp.ne.s32.totalorder %s528_s26, %s9574_s21  ;;  %p9582_p2 = scmp.lt.s32.totalorder %s528_s26, %s528_s26 }
  0x2b   : > { %p9583_p6 = scmp.lt.s32.totalorder %s9574_s21, %s9574_s21 }
  0x2c   : > { %p9577_p13 = pnand %p9575_p1, %p9539_p12 }
  0x2d   : > { %p9584_p5 = por %p9583_p6, %p9582_p2 }
  0x2e   : > { %p9578_p0 = pneg %p9577_p13 }
  0x2f   : > { %8924 = dma.hbm_to_vmem [thread:$0]  (!%p9885_p11), %s13719_s12, 3072, %s512_s23, [#allocation7], %s9725_s28, %s9725_s28, %s9726_s1  }
  0x30   : > { %p9585_p10 = pnand %p9584_p5, %p9578_p0 }
  0x32   : > { %9588 = shalt.err (!%p9585_p10)
}
  0x33   : > { %s13617_s27 = smov 128   ;;  %s13618_s23 = smov 8  }
  0x34   : > { %s13720_s14 = sld [smem:[#allocation67_spill]]  ;;  %s9911_s1 = sadd.s32 1, %s9721_s19  }
  0x35   : > { %13721 = sst [smem:[#allocation20_spill]] %s9911_s1  ;;  %s44_s2 = ssub.s32 %s9721_s19, %s9911_s1 }
  0x36   : > { %p45_p1 = scmp.eq.s32.totalorder %s44_s2, 0  ;;  %s47_s25 = sadd.s32 1, %s9717_s0 }
  0x37   : > { %p54_p2 = scmp.ne.s32.totalorder %s9717_s0, %s9713_s30  ;;  %p55_p6 = scmp.eq.s32.totalorder %s9721_s19, 0 }
  0x38   : > { %s9920_s12 = scalar_select %p45_p1, %s9717_s0, %s47_s25  }
  0x39   : > { %p56_p12 = por %p55_p6, %p54_p2  ;;  %p13723_p3 = scmp.eq.s32.totalorder %s9857_s17, 1 }
  0x3a   : > { %8927 = dma.hbm_to_vmem [thread:$0]  (!%p9885_p11), %s13720_s14, 512, %s528_s26, [#allocation10], %s13617_s27, %s13617_s27, %s13618_s23  }
  0x3b   : > { %13722 = sst [smem:[#allocation21_spill]] %s9920_s12  ;;  %p9924_p7 = por %p13723_p3, %p54_p2 }
  0x3c   : > { %p8941_p9 = scmp.lt.s32.totalorder %s9721_s19, 2  ;;  %s9930_s21 = sand.u32 1, %s9717_s0  }
  0x3d   : > { %s13724_s24 = scalar_select %p9924_p7, 1, 0 }
  0x3e   : > { %s8228_s26 = sshll.u32 %s9930_s21, 3  ;;  %s8229_s28 = sshll.u32 %s9721_s19, 7 }
  0x3f   : > { %13725 = sst [smem:[#allocation22_spill]] %s13724_s24  ;;  %s554_s25 = scalar_lea.vmem [#allocation3], %s8228_s26 }
  0x40   : > { %s13726_s23 = sld [smem:[#allocation61_spill]]  ;;  %s561_s12 = sshll.u32 %s554_s25, 4  ;;  %s9939_s12 = int_to_ptr.vmem [resolvable:$true] %s561_s12 }
  0x41   : > { %p9941_p11 = pnand %p8941_p9, %p56_p12  ;;  %s551_s18 = scalar_lea.sflag [#allocation4], %s9930_s21 }
  0x43   : > { %p9591_p0 = pneg %p9941_p11 }
  0x46   : > { %s9937_s14 = scalar_lea.hbm %s13726_s23, %s8229_s28  ;;  %s9594_s28 = scalar_lea.hbm %s13726_s23, 256 }
  0x47   : > { %s9589_s24 = scalar_lea.hbm %s9937_s14, 128  ;;  %p9595_p1 = scmp.lt.s32.totalorder %s9937_s14, %s13726_s23 }
  0x48   : > { %p9590_p13 = scmp.ne.s32.totalorder %s9937_s14, %s9589_s24  ;;  %p9596_p2 = scmp.lt.s32.totalorder %s9594_s28, %s9589_s24 }
  0x4a   : > { %p9592_p5 = pnand %p9591_p0, %p9590_p13  ;;  %p9597_p6 = por %p9596_p2, %p9595_p1 }
  0x4c   : > { %p9593_p10 = pneg %p9592_p5 }
  0x4e   : > { %p9598_p12 = pnand %p9597_p6, %p9593_p10 }
  0x50   : > { %9601 = shalt.err (!%p9598_p12)
}
  0x51   : > { %s9602_s29 = scalar_lea.vmem %s9939_s12, 128  ;;  %s9729_s27 = smov [#allocation3]  }
  0x52   : > { %p9603_p3 = scmp.ne.s32.totalorder %s9939_s12, %s9602_s29  ;;  %s9607_s26 = sshll.u32 %s9729_s27, 4  ;;  %s9608_s26 = int_to_ptr.vmem [resolvable:$false] %s9607_s26 }
  0x53   : > { %s9609_s1 = scalar_lea.vmem %s9608_s26, 256  ;;  %p9610_p5 = scmp.lt.s32.totalorder %s9939_s12, %s9608_s26 }
  0x54   : > { %p9605_p9 = pnand %p9603_p3, %p9591_p0  ;;  %p9611_p7 = scmp.lt.s32.totalorder %s9609_s1, %s9602_s29 }
  0x56   : > { %p9606_p13 = pneg %p9605_p9  ;;  %p9612_p4 = por %p9611_p7, %p9610_p5 }
  0x58   : > { %p9613_p1 = pnand %p9612_p4, %p9606_p13 }
  0x5a   : > { %9616 = shalt.err (!%p9613_p1)
}
  0x5b   : > { %8931 = dma.hbm_to_vmem [thread:$0]  (!%p9941_p11), %s9937_s14, 128, %s9939_s12, %s551_s18  }
  0x5c   : > { %s13728_s24 = sshll.u32 %s9930_s21, 6  ;;  %s8406_s25 = sshll.u32 %s9721_s19, 10 }
  0x5d   : > { %s580_s28 = scalar_lea.vmem [#allocation6], %s13728_s24  ;;  %s13729_s1 = sld [smem:[#allocation63_spill]] }
  0x5e   : > { %s587_s2 = sshll.u32 %s580_s28, 4  ;;  %s13730_s23 = sand.u32 1, %s9721_s19   ;;  %s9974_s2 = int_to_ptr.vmem [resolvable:$true] %s587_s2 }
  0x5f   : > { %s577_s6 = scalar_lea.sflag [#allocation7], %s13730_s23 }
  0x63   : > { %s9980_s26 = scalar_lea.hbm %s13729_s1, %s8406_s25  ;;  %s9622_s18 = scalar_lea.hbm %s13729_s1, 2048 }
  0x64   : > { %s9617_s5 = scalar_lea.hbm %s9980_s26, 1024  ;;  %p9623_p2 = scmp.lt.s32.totalorder %s9980_s26, %s13729_s1 }
  0x65   : > { %p9618_p4 = scmp.ne.s32.totalorder %s9980_s26, %s9617_s5  ;;  %p9624_p6 = scmp.lt.s32.totalorder %s9622_s18, %s9617_s5 }
  0x67   : > { %p9620_p7 = pnand %p9618_p4, %p9591_p0  ;;  %p9625_p12 = por %p9624_p6, %p9623_p2 }
  0x69   : > { %p9621_p10 = pneg %p9620_p7 }
  0x6b   : > { %p9626_p3 = pnand %p9625_p12, %p9621_p10 }
  0x6d   : > { %9629 = shalt.err (!%p9626_p3)
}
  0x6e   : > { %s9630_s23 = scalar_lea.vmem %s9974_s2, 1024  ;;  %s9730_s28 = smov [#allocation6]  }
  0x6f   : > { %p9631_p9 = scmp.ne.s32.totalorder %s9974_s2, %s9630_s23  ;;  %s9635_s25 = sshll.u32 %s9730_s28, 4  ;;  %s9636_s25 = int_to_ptr.vmem [resolvable:$false] %s9635_s25 }
  0x70   : > { %s9637_s27 = scalar_lea.vmem %s9636_s25, 2048  ;;  %p9638_p1 = scmp.lt.s32.totalorder %s9974_s2, %s9636_s25 }
  0x71   : > { %p9633_p13 = pnand %p9631_p9, %p9591_p0  ;;  %p9639_p4 = scmp.lt.s32.totalorder %s9637_s27, %s9630_s23 }
  0x73   : > { %p9634_p5 = pneg %p9633_p13  ;;  %p9640_p7 = por %p9639_p4, %p9638_p1 }
  0x75   : > { %p9641_p2 = pnand %p9640_p7, %p9634_p5 }
  0x77   : > { %9644 = shalt.err (!%p9641_p2)
}
  0x78   : > { %s13731_s5 = smov 8   ;;  %s13732_s29 = smov 128  }
  0x79   : > { %8934 = dma.hbm_to_vmem [thread:$0]  (!%p9941_p11), %s9980_s26, 1024, %s9974_s2, %s577_s6, %s13732_s29, %s13732_s29, %s13731_s5  }
  0x7a   : > { %630 = sbr.rel (%p9876_p8) target bundleno = 6444 (0x192c), region = 92 }
  0x7f   : > { %s10012_s12 = sand.u32 1, %s9713_s30   ;;  %p13733_p0 = scmp.ne.s32.totalorder %s13714_s20, 0 }
  0x80   : > { %s8234_s14 = sshll.u32 %s10012_s12, 3  ;;  %s633_s18 = scalar_lea.sflag [#allocation4], %s10012_s12 }
  0x81   : > { %s636_s21 = scalar_lea.vmem [#allocation3], %s8234_s14 }
  0x82   : > { %9688 = dma.done.wait (%p13733_p0), %s633_s18, 128  }
  0x83   : > { %9690 = vsyncadd (%p13733_p0), %s633_s18, 4294967168  ;;  %s641_s6 = sand.u32 1, %s9857_s17   ;;  %s8235_s0 = sshll.u32 %s10012_s12, 6 }
  0x84   : > { %s642_s22 = scalar_lea.sflag [#allocation7], %s641_s6  ;;  %s10022_s2 = scalar_lea.vmem [#allocation6], %s8235_s0 }
  0x85   : > { %9692 = dma.done.wait (%p13733_p0), %s642_s22, 1024  }
  0x86   : > { %9694 = vsyncadd (%p13733_p0), %s642_s22, 4294966272  ;;  %p13734_p8 = scmp.eq.s32.totalorder %s9857_s17, 0 }
  0x88   : > { %9696 = dma.done.wait (%p13734_p8), [#allocation7], 3072   ;;  %p13735_p11 = pmov %p13734_p8 }
  0x89   : > { %p13736_p10 = pmov %p13734_p8 }
  0x8a   : > { %9698 = vsyncadd (%p13735_p11), [#allocation7], 4294964224 }
  0x8b   : > { %9700 = dma.done.wait (%p13736_p10), [#allocation10], 512   ;;  %p13737_p6 = pmov %p13734_p8 }
  0x8c   : > { %p735_p12 = scmp.lt.s32.totalorder %s9857_s17, 1  ;;  %vm793_vm0 = vcmask 261120   ;;  %s13738_s28 = sld [smem:[#allocation62_spill]]  ;;  %vm13702_vm1 = vcmask 523264   ;;  %v759_v1 = vld [vmem:[%s636_s21] sm:$0xff]  ;;  %v9731_v19 = vmov 0  }
  0x8d   : > { %9702 = vsyncadd (%p13737_p6), [#allocation10], 4294966784  ;;  %v794_v4 = vsel %vm793_vm0, %v759_v1, 0.0  ;;  %8990 = vset.pattern.permute.xlu1 %v9731_v19  ;;  %8989 = vset.pattern.permute.xlu0 %v9731_v19  ;;  %v1033_v44 = vld [vmem:[%s13605_s11 + $0x98] sm:$0xff]  ;;  %v1035_v45 = vld [vmem:[%s13605_s11 + $0xa8] sm:$0xff]  ;;  %s9734_s23 = smov 96  }
  0x8e   : > { %s10038_s26 = scalar_select %p735_p12, %s9857_s17, 1  ;;  %795 = vadd.xlane.f32.xlu0 %v794_v4  ;;  %1065 = vmatprep.subr.mxu0 %v1033_v44  ;;  %v1032_v46 = vld [vmem:[%s13605_s11 + $0x90] sm:$0xff]  ;;  %v1034_v47 = vld [vmem:[%s13605_s11 + $0xa0] sm:$0xff]  ;;  %v1027_v48 = vld [vmem:[%s13605_s11 + $0x68] sm:$0xff]  ;;  %vm4318_vm2 = vcmask 1041409   ;;  %vm4320_vm3 = vcmask 1042434  }
  0x8f   : > { %1136 = vmatprep.subr.mxu1 %v1035_v45  ;;  %1066 = vmatpush1.msra.mxu0 %v1032_v46  ;;  %v1029_v49 = vld [vmem:[%s13605_s11 + $0x78] sm:$0xff]  ;;  %v1026_v51 = vld [vmem:[%s13605_s11 + $0x60] sm:$0xff]  ;;  %v1028_v52 = vld [vmem:[%s13605_s11 + $0x70] sm:$0xff]  ;;  %vm4322_vm4 = vcmask 1043459   ;;  %vm4324_vm5 = vcmask 1044484   ;;  %vm4326_vm6 = vcmask 1045509  }
  0x90   : > { %s8407_s20 = sshll.u32 %s10038_s26, 6  ;;  %s8243_s14 = sshll.u32 %s10038_s26, 3  ;;  %1137 = vmatpush1.msra.mxu1 %v1034_v47  ;;  %1067 = vmatprep.subr.mxu0 %v1027_v48  ;;  %v1021_v54 = vld [vmem:[%s13605_s11 + $0x38] sm:$0xff]  ;;  %v1023_v55 = vld [vmem:[%s13605_s11 + $0x48] sm:$0xff]  ;;  %v1020_v56 = vld [vmem:[%s13605_s11 + $0x30] sm:$0xff]  ;;  %vm4328_vm7 = vcmask 1046534  }
  0x91   : > { %s10095_s29 = scalar_lea.vmem %s13597_s3, %s8407_s20  ;;  %s748_s6 = scalar_lea.vmem %s13598_s4, %s8243_s14  ;;  %1138 = vmatprep.subr.mxu1 %v1029_v49  ;;  %1068 = vmatpush1.msra.mxu0 %v1026_v51  ;;  %v1022_v57 = vld [vmem:[%s13605_s11 + $0x40] sm:$0xff]  ;;  %v1015_v58 = vld [vmem:[%s13605_s11 + $0x8] sm:$0xff]  ;;  %v1017_v59 = vld [vmem:[%s13605_s11 + $0x18] sm:$0xff]  ;;  %vm4330_vm8 = vcmask 1047559   ;;  %vm4357_vm9 = vcmask 64512   ;;  %vm7567_vm10 = vcmask 130112  }
  0x92   : > { %s739_s25 = scalar_lea.vmem %s13738_s28, %s8407_s20  ;;  %v776_v40 = vld [vmem:[%s10095_s29] sm:$0xff]  ;;  %v777_v41 = vld [vmem:[%s10095_s29 + $0x8] sm:$0xff]  ;;  %v778_v42 = vld [vmem:[%s10095_s29 + $0x10] sm:$0xff]  ;;  %1139 = vmatpush1.msra.mxu1 %v1028_v52  ;;  %1069 = vmatprep.subr.mxu0 %v1021_v54  ;;  %s9735_s28 = smov 64   ;;  %vm7574_vm11 = vcmask 195712   ;;  %vm7581_vm12 = vcmask 261312  }
  0x93   : > { %v761_v2 = vld [vmem:[%s739_s25 + $0x8] sm:$0xff]  ;;  %v760_v3 = vld [vmem:[%s739_s25] sm:$0xff]  ;;  %v762_v6 = vld [vmem:[%s739_s25 + $0x10] sm:$0xff]  ;;  %1140 = vmatprep.subr.mxu1 %v1023_v55  ;;  %1070 = vmatpush1.msra.mxu0 %v1020_v56  ;;  %s13769_s24 = sld [smem:[#allocation65_spill]]  ;;  %vm7588_vm13 = vcmask 326912   ;;  %vm7595_vm14 = vcmask 392512  }
  0x94   : > { %v834_v5 = vsel %vm13702_vm1, %v761_v2, 0.0  ;;  %v831_v7 = vsel %vm13702_vm1, %v760_v3, 0.0  ;;  %v837_v8 = vsel %vm13702_vm1, %v762_v6, 0.0  ;;  %v10050_v9 = vld [vmem:[%s739_s25 + $0x18] sm:$0xff]  ;;  %v10052_v10 = vld [vmem:[%s739_s25 + $0x20] sm:$0xff]  ;;  %v10058_v13 = vld [vmem:[%s739_s25 + $0x28] sm:$0xff]  ;;  %1141 = vmatpush1.msra.mxu1 %v1022_v57  ;;  %1071 = vmatprep.subr.mxu0 %v1015_v58 }
  0x95   : > { %835 = vadd.xlane.f32.xlu1 %v834_v5  ;;  %832 = vadd.xlane.f32.xlu0 %v831_v7  ;;  %v840_v11 = vsel %vm13702_vm1, %v10050_v9, 0.0  ;;  %v843_v12 = vsel %vm13702_vm1, %v10052_v10, 0.0  ;;  %v10060_v14 = vld [vmem:[%s739_s25 + $0x30] sm:$0xff]  ;;  %v846_v15 = vsel %vm13702_vm1, %v10058_v13, 0.0  ;;  %v10066_v17 = vld [vmem:[%s739_s25 + $0x38] sm:$0xff]  ;;  %v784_v43 = vld [vmem:[%s748_s6] sm:$0xff] }
  0x96   : > { %v849_v16 = vsel %vm13702_vm1, %v10060_v14, 0.0  ;;  %v852_v18 = vsel %vm13702_vm1, %v10066_v17, 0.0  ;;  %v779_v50 = vld [vmem:[%s10095_s29 + $0x18] sm:$0xff]  ;;  %v780_v53 = vld [vmem:[%s10095_s29 + $0x20] sm:$0xff]  ;;  %v781_v60 = vld [vmem:[%s10095_s29 + $0x28] sm:$0xff]  ;;  %1142 = vmatprep.subr.mxu1 %v1017_v59  ;;  %s9736_s25 = smov 32  }
  0x97   : > { %v1014_v61 = vld [vmem:[%s13605_s11] sm:$0xff]  ;;  %v782_v62 = vld [vmem:[%s10095_s29 + $0x30] sm:$0xff]  ;;  %v1037_v0 = vld [vmem:[%s13605_s11 + $0xb8] sm:$0xff]  ;;  %s13750_s6 = sld [smem:[#allocation64_spill]]  ;;  %vm7602_vm15 = vcmask 458112  }
  0x98   : > { %v1016_v63 = vld [vmem:[%s13605_s11 + $0x10] sm:$0xff]  ;;  %1072 = vmatpush1.msra.mxu0 %v1014_v61  ;;  %v8248_v45 = vld [vmem:[%s13601_s7] ss:$0 sm:$0xff]  ;;  %v1031_v57 = vld [vmem:[%s13605_s11 + $0x88] sm:$0xff] }
  0x99   : > { %838 = vadd.xlane.f32.xlu1 %v837_v8  ;;  %841 = vadd.xlane.f32.xlu0 %v840_v11  ;;  %v8249_v48 = vld [vmem:[%s13602_s8] ss:$0 sm:$0xff]  ;;  %v1273_v58 = vld [vmem:[#allocation8 + $0x98] sm:$0xff]  ;;  %v1272_v59 = vld [vmem:[#allocation8 + $0x90] sm:$0xff] }
  0x9a   : > { %1143 = vmatpush1.msra.mxu1 %v1016_v63  ;;  %1207 = vmatprep.subr.mxu0 %v1037_v0  ;;  %v10203_v54 = vld [vmem:[%s13603_s9] ss:$0 sm:$0xff]  ;;  %v1025_v61 = vld [vmem:[%s13605_s11 + $0x58] sm:$0xff]  ;;  %v1024_v0 = vld [vmem:[%s13605_s11 + $0x50] sm:$0xff] }
  0x9b   : > { %v1275_v56 = vld [vmem:[#allocation8 + $0xa8] sm:$0xff] }
  0x9c   : > { %v10223_v63 = vld [vmem:[%s13604_s10] ss:$0 sm:$0xff] }
  0x9d   : > { %844 = vadd.xlane.f32.xlu1 %v843_v12  ;;  %847 = vadd.xlane.f32.xlu0 %v846_v15 }
  0xa1   : > { %850 = vadd.xlane.f32.xlu1 %v849_v16  ;;  %853 = vadd.xlane.f32.xlu0 %v852_v18 }
 0x117   : > { %v796_v20 = vpop.xlane.xlu0 %795 }
 0x118   : > { %v798_v22 = vmul.f32 0.03125, %v796_v20 }
 0x11a   : > { %v10070_v24 = vsub.f32 %v759_v1, %v798_v22  ;;  %v1276_v1 = vld [vmem:[#allocation8 + $0xb0] sm:$0xff] }
 0x11b   : > { %1335 = vmatprep.subr.mxu1 %v1276_v1  ;;  %v1269_v1 = vld [vmem:[#allocation8 + $0x78] sm:$0xff] }
 0x11c   : > { %v800_v30 = vmul.f32 %v10070_v24, %v10070_v24 }
 0x11e   : > { %v836_v21 = vpop.xlane.xlu1 %835  ;;  %v833_v26 = vpop.xlane.xlu0 %832  ;;  %v801_v34 = vsel %vm793_vm0, %v800_v30, 0.0 }
 0x11f   : > { %v857_v23 = vmul.f32 0.015625, %v836_v21  ;;  %v856_v28 = vmul.f32 0.015625, %v833_v26  ;;  %802 = vadd.xlane.f32.xlu1 %v801_v34 }
 0x121   : > { %v10072_v25 = vsub.f32 %v761_v2, %v857_v23  ;;  %v10078_v32 = vsub.f32 %v760_v3, %v856_v28  ;;  %v9732_v2 = vmov 0.0  }
 0x122   : > { %v839_v27 = vpop.xlane.xlu1 %838  ;;  %1105 = vmatprep.mubr.f32.mxu0 %v9732_v2  ;;  %1176 = vmatprep.mubr.f32.mxu1 %v9732_v2  ;;  %v842_v3 = vpop.xlane.xlu0 %841 }
 0x123   : > { %v858_v29 = vmul.f32 0.015625, %v839_v27  ;;  %v873_v31 = vmul.f32 %v10072_v25, %v10072_v25  ;;  %v872_v36 = vmul.f32 %v10078_v32, %v10078_v32  ;;  %v859_v4 = vmul.f32 0.015625, %v842_v3  ;;  %v1019_v3 = vld [vmem:[%s13605_s11 + $0x28] sm:$0xff] }
 0x125   : > { %v10080_v33 = vsub.f32 %v762_v6, %v858_v29  ;;  %v883_v35 = vsel %vm13702_vm1, %v873_v31, 0.0  ;;  %v880_v38 = vsel %vm13702_vm1, %v872_v36, 0.0  ;;  %v10162_v6 = vsub.f32 %v10050_v9, %v859_v4  ;;  %v783_v31 = vld [vmem:[%s10095_s29 + $0x38] sm:$0xff]  ;;  %s8409_s29 = sshll.u32 %s10038_s26, 5  ;;  %s8238_s26 = sshll.u32 %s10012_s12, 2 }
 0x126   : > { %884 = vadd.xlane.f32.xlu1 %v883_v35  ;;  %881 = vadd.xlane.f32.xlu0 %v880_v38  ;;  %v845_v5 = vpop.xlane.xlu1 %844  ;;  %v848_v8 = vpop.xlane.xlu0 %847  ;;  %v1267_v4 = vld [vmem:[#allocation8 + $0x68] sm:$0xff]  ;;  %s11680_s0 = scalar_lea.vmem %s13750_s6, %s8409_s29  ;;  %s8038_s6 = scalar_lea.sflag [#allocation5], %s10012_s12 }
 0x127   : > { %v874_v37 = vmul.f32 %v10080_v33, %v10080_v33  ;;  %v860_v7 = vmul.f32 0.015625, %v845_v5  ;;  %v875_v12 = vmul.f32 %v10162_v6, %v10162_v6  ;;  %v861_v15 = vmul.f32 0.015625, %v848_v8  ;;  %v1018_v5 = vld [vmem:[%s13605_s11 + $0x20] sm:$0xff] }
 0x129   : > { %v886_v39 = vsel %vm13702_vm1, %v874_v37, 0.0  ;;  %v10165_v11 = vsub.f32 %v10052_v10, %v860_v7  ;;  %v889_v18 = vsel %vm13702_vm1, %v875_v12, 0.0  ;;  %v10171_v19 = vsub.f32 %v10058_v13, %v861_v15  ;;  %v1266_v12 = vld [vmem:[#allocation8 + $0x60] sm:$0xff]  ;;  %v1264_v15 = vld [vmem:[#allocation8 + $0x50] sm:$0xff] }
 0x12a   : > { %887 = vadd.xlane.f32.xlu0 %v886_v39  ;;  %v851_v16 = vpop.xlane.xlu1 %850  ;;  %v854_v21 = vpop.xlane.xlu0 %853 }
 0x12b   : > { %v862_v20 = vmul.f32 0.015625, %v851_v16  ;;  %v876_v9 = vmul.f32 %v10165_v11, %v10165_v11  ;;  %v877_v23 = vmul.f32 %v10171_v19, %v10171_v19  ;;  %v863_v26 = vmul.f32 0.015625, %v854_v21  ;;  %v1277_v16 = vld [vmem:[#allocation8 + $0xb8] sm:$0xff] }
 0x12c   : > { %v1261_v21 = vld [vmem:[#allocation8 + $0x38] sm:$0xff] }
 0x12d   : > { %v10176_v10 = vsub.f32 %v10060_v14, %v862_v20  ;;  %v892_v22 = vsel %vm13702_vm1, %v876_v9, 0.0  ;;  %v895_v13 = vsel %vm13702_vm1, %v877_v23, 0.0  ;;  %v10183_v27 = vsub.f32 %v10066_v17, %v863_v26  ;;  %v1274_v26 = vld [vmem:[#allocation8 + $0xa0] sm:$0xff] }
 0x12f   : > { %v878_v28 = vmul.f32 %v10176_v10, %v10176_v10  ;;  %v879_v14 = vmul.f32 %v10183_v27, %v10183_v27 }
 0x131   : > { %v898_v29 = vsel %vm13702_vm1, %v878_v28, 0.0  ;;  %v901_v30 = vsel %vm13702_vm1, %v879_v14, 0.0  ;;  %v1258_v28 = vld [vmem:[#allocation8 + $0x20] sm:$0xff]  ;;  %v1257_v14 = vld [vmem:[#allocation8 + $0x18] sm:$0xff] }
 0x137   : > { %968 = vperm.xlu1 %8990, %v776_v40  }
 0x13b   : > { %973 = vperm.xlu1 %8990, %v777_v41  }
 0x13f   : > { %978 = vperm.xlu1 %8990, %v778_v42  }
 0x140   : > { %826 = vperm.xlu0 %8989, %v784_v43  }
 0x143   : > { %983 = vperm.xlu1 %8990, %v779_v50  }
 0x144   : > { %988 = vperm.xlu0 %8989, %v780_v53  }
 0x147   : > { %993 = vperm.xlu1 %8990, %v781_v60  }
 0x148   : > { %998 = vperm.xlu0 %8989, %v782_v62   ;;  %v1270_v62 = vld [vmem:[#allocation8 + $0x80] sm:$0xff] }
 0x16b   : > { %890 = vadd.xlane.f32.xlu1 %v889_v18  ;;  %v1263_v18 = vld [vmem:[#allocation8 + $0x48] sm:$0xff] }
 0x16f   : > { %893 = vadd.xlane.f32.xlu1 %v892_v22 }
 0x173   : > { %896 = vadd.xlane.f32.xlu1 %v895_v13  ;;  %v1260_v13 = vld [vmem:[#allocation8 + $0x30] sm:$0xff] }
 0x177   : > { %899 = vadd.xlane.f32.xlu1 %v898_v29  ;;  %v1271_v29 = vld [vmem:[#allocation8 + $0x88] sm:$0xff] }
 0x17b   : > { %902 = vadd.xlane.f32.xlu1 %v901_v30 }
 0x18c   : > { %1003 = vperm.xlu1 %8990, %v783_v31   ;;  %v1255_v31 = vld [vmem:[#allocation8 + $0x8] sm:$0xff] }
 0x1a8   : > { %v803_v34 = vpop.xlane.xlu1 %802 }
 0x1a9   : > { %v804_v35 = vmul.f32 0.03125, %v803_v34  ;;  %v1268_v34 = vld [vmem:[#allocation8 + $0x70] sm:$0xff] }
 0x1ab   : > { %v805_v36 = vadd.f32 1e-05, %v804_v35  ;;  %v1254_v35 = vld [vmem:[#allocation8] sm:$0xff] }
 0x1ad   : > { %8991 = vrsqrt.f32 %v805_v36  ;;  %v1265_v36 = vld [vmem:[#allocation8 + $0x58] sm:$0xff] }
 0x1af   : > { %v882_v17 = vpop.xlane.xlu0 %881  ;;  %v885_v39 = vpop.xlane.xlu1 %884 }
 0x1b0   : > { %v904_v37 = vmul.f32 0.015625, %v882_v17  ;;  %v905_v40 = vmul.f32 0.015625, %v885_v39  ;;  %v1259_v39 = vld [vmem:[#allocation8 + $0x28] sm:$0xff] }
 0x1b2   : > { %v912_v38 = vadd.f32 1e-05, %v904_v37  ;;  %v913_v42 = vadd.f32 1e-05, %v905_v40 }
 0x1b3   : > { %v888_v41 = vpop.xlane.xlu0 %887  ;;  %v969_v20 = vpop.permute.xlu1 %968 }
 0x1b4   : > { %8993 = vrsqrt.f32 %v912_v38  ;;  %v906_v43 = vmul.f32 0.015625, %v888_v41 }
 0x1b5   : > { %8995 = vrsqrt.f32 %v913_v42  ;;  %v1256_v42 = vld [vmem:[#allocation8 + $0x10] sm:$0xff] }
 0x1b6   : > { %v914_v46 = vadd.f32 1e-05, %v906_v43 }
 0x1b7   : > { %v974_v38 = vpop.permute.xlu1 %973 }
 0x1b8   : > { %8997 = vrsqrt.f32 %v914_v46 }
 0x1ba   : > { %v8992_v44 = vpop.eup %8991 }
 0x1bb   : > { %v807_v47 = vmul.f32 %v8992_v44, %v10070_v24  ;;  %v827_v50 = vpop.permute.xlu0 %826  ;;  %v1036_v24 = vld [vmem:[%s13605_s11 + $0xb0] sm:$0xff]  ;;  %v979_v43 = vpop.permute.xlu1 %978 }
 0x1bd   : > { %v815_v49 = vmul.f32 %v8248_v45, %v807_v47 }
 0x1bf   : > { %v823_v52 = vadd.f32 %v8249_v48, %v815_v49  ;;  %v984_v45 = vpop.permute.xlu1 %983 }
 0x1c1   : > { %v8994_v51 = vpop.eup %8993  ;;  %v829_v55 = vmul.f32 %v827_v50, %v823_v52 }
 0x1c2   : > { %v928_v53 = vmul.f32 %v8994_v51, %v10078_v32  ;;  %v1030_v32 = vld [vmem:[%s13605_s11 + $0x80] sm:$0xff]  ;;  %v8996_v7 = vpop.eup %8995 }
 0x1c3   : > { %8252 = vmatmul.mubr.msk.f32.vlgmr.msra.gmra.mxu0 %vm793_vm0, %v829_v55  ;;  %8253 = vmatmul.mubr.msk.f32.vlgmr.msra.gmra.mxu1 %vm793_vm0, %v829_v55  ;;  %v929_v9 = vmul.f32 %v8996_v7, %v10072_v25  ;;  %v994_v46 = vpop.permute.xlu1 %993 }
 0x1c4   : > { %v943_v60 = vmul.f32 %v10203_v54, %v928_v53  ;;  %1208 = vmatpush1.msra.mxu0 %v1036_v24  ;;  %1336 = vmatpush1.msra.mxu1 %v1275_v56 }
 0x1c5   : > { %1209 = vmatprep.subr.mxu0 %v1031_v57  ;;  %1337 = vmatprep.subr.mxu1 %v1273_v58  ;;  %v8998_v22 = vpop.eup %8997  ;;  %v944_v25 = vmul.f32 %v10203_v54, %v929_v9 }
 0x1c6   : > { %1210 = vmatpush1.msra.mxu0 %v1030_v32  ;;  %1338 = vmatpush1.msra.mxu1 %v1272_v59  ;;  %v958_v8 = vadd.f32 %v10223_v63, %v943_v60  ;;  %v930_v30 = vmul.f32 %v8998_v22, %v10080_v33  ;;  %v1262_v33 = vld [vmem:[#allocation8 + $0x40] sm:$0xff] }
 0x1c7   : > { %1211 = vmatprep.subr.mxu0 %v1025_v61  ;;  %1339 = vmatprep.subr.mxu1 %v1270_v62  ;;  %v959_v17 = vadd.f32 %v10223_v63, %v944_v25  ;;  %v13629_v25 = vlaneseq }
 0x1c8   : > { %1212 = vmatpush1.msra.mxu0 %v1024_v0  ;;  %1340 = vmatpush1.msra.mxu1 %v1269_v1  ;;  %v1006_v23 = vmul.f32 %v969_v20, %v958_v8  ;;  %v945_v37 = vmul.f32 %v10203_v54, %v930_v30  ;;  %v9733_v30 = vmov 1966171168  }
 0x1c9   : > { %1213 = vmatprep.subr.mxu0 %v1019_v3  ;;  %1341 = vmatprep.subr.mxu1 %v1267_v4  ;;  %v1007_v40 = vmul.f32 %v974_v38, %v959_v17 }
 0x1ca   : > { %1214 = vmatpush1.msra.mxu0 %v1018_v5  ;;  %1247 = vmatprep.mubr.f32.mxu0 %v9732_v2  ;;  %v960_v41 = vadd.f32 %v10223_v63, %v945_v37 }
 0x1cb   : > { %1342 = vmatpush1.msra.mxu1 %v1266_v12  ;;  %8254 = vmatmul.mubr.msk.f32.vlgmr.msra.gmra.mxu0 %vm793_vm0, %v829_v55 }
 0x1cc   : > { %1343 = vmatprep.subr.mxu1 %v1264_v15  ;;  %8591 = vmatprep.subr.mxu0 %v1277_v16  ;;  %v1008_v44 = vmul.f32 %v979_v43, %v960_v41  ;;  %v989_v15 = vpop.permute.xlu0 %988 }
 0x1cd   : > { %1344 = vmatpush1.msra.mxu1 %v1263_v18  ;;  %8592 = vmatpush3.msra.mxu0 %v1277_v16 }
 0x1ce   : > { %8607 = vmatprep.mubr.msk.f32.mxu0 %vm13702_vm1, %v1006_v23  ;;  %1345 = vmatprep.subr.mxu1 %v1261_v21 }
 0x1cf   : > { %8593 = vmatprep.subr.mxu0 %v1274_v26  ;;  %1346 = vmatpush1.msra.mxu1 %v1260_v13 }
 0x1d0   : > { %8594 = vmatpush3.msra.mxu0 %v1274_v26  ;;  %1347 = vmatprep.subr.mxu1 %v1258_v28  ;;  %v999_v13 = vpop.permute.xlu0 %998 }
 0x1d1   : > { %8595 = vmatprep.subr.mxu0 %v1271_v29  ;;  %1348 = vmatpush1.msra.mxu1 %v1257_v14 }
 0x1d2   : > { %8596 = vmatpush3.msra.mxu0 %v1271_v29  ;;  %1349 = vmatprep.subr.mxu1 %v1255_v31  ;;  %v1568_v31 = vunpack.c.l.s4 %v9733_v30 }
 0x1d3   : > { %8597 = vmatprep.subr.mxu0 %v1268_v34  ;;  %1350 = vmatpush1.msra.mxu1 %v1254_v35 }
 0x1d4   : > { %1383 = vmatprep.mubr.f32.mxu1 %v9732_v2  ;;  %8598 = vmatpush3.msra.mxu0 %v1268_v34 }
 0x1d5   : > { %8255 = vmatmul.mubr.msk.f32.vlgmr.msra.gmra.mxu1 %vm13702_vm1, %v1006_v23  ;;  %8599 = vmatprep.subr.mxu0 %v1265_v36 }
 0x1d6   : > { %8600 = vmatpush3.msra.mxu0 %v1265_v36  ;;  %1389 = vmatprep.mubr.f32.mxu1 %v9732_v2 }
 0x1d7   : > { %8601 = vmatprep.subr.mxu0 %v1262_v33 }
 0x1d8   : > { %8602 = vmatpush3.msra.mxu0 %v1262_v33 }
 0x1d9   : > { %8256 = vmatmul.mubr.msk.f32.gmra.mxu1 %vm13702_vm1, %v1007_v40  ;;  %8603 = vmatprep.subr.mxu0 %v1259_v39 }
 0x1da   : > { %8604 = vmatpush3.msra.mxu0 %v1259_v39  ;;  %1395 = vmatprep.mubr.f32.mxu1 %v9732_v2 }
 0x1db   : > { %8605 = vmatprep.subr.mxu0 %v1256_v42 }
 0x1dc   : > { %8606 = vmatpush3.msra.mxu0 %v1256_v42 }
 0x1dd   : > { %8257 = vmatmul.mubr.msk.f32.gmra.mxu1 %vm13702_vm1, %v1008_v44  ;;  %8608 = vmatmul.mubr.msk.f32.vlgmr.msra.gmra.mxu0 %vm13702_vm1, %v1007_v40 }
 0x1de   : > { %8610 = vmatprep.mubr.msk.f32.mxu0 %vm13702_vm1, %v1008_v44  ;;  %1401 = vmatprep.mubr.f32.mxu1 %v9732_v2 }
 0x1f4   : > { %v891_v47 = vpop.xlane.xlu1 %890 }
 0x1f5   : > { %v907_v48 = vmul.f32 0.015625, %v891_v47 }
 0x1f7   : > { %v915_v49 = vadd.f32 1e-05, %v907_v48 }
 0x1f8   : > { %v894_v50 = vpop.xlane.xlu1 %893 }
 0x1f9   : > { %8999 = vrsqrt.f32 %v915_v49  ;;  %v908_v51 = vmul.f32 0.015625, %v894_v50 }
 0x1fb   : > { %v916_v52 = vadd.f32 1e-05, %v908_v51 }
 0x1fc   : > { %v897_v53 = vpop.xlane.xlu1 %896 }
 0x1fd   : > { %9001 = vrsqrt.f32 %v916_v52  ;;  %v909_v55 = vmul.f32 0.015625, %v897_v53 }
 0x1ff   : > { %v917_v24 = vadd.f32 1e-05, %v909_v55 }
 0x200   : > { %v900_v56 = vpop.xlane.xlu1 %899 }
 0x201   : > { %9003 = vrsqrt.f32 %v917_v24  ;;  %v910_v57 = vmul.f32 0.015625, %v900_v56 }
 0x203   : > { %v918_v58 = vadd.f32 1e-05, %v910_v57 }
 0x204   : > { %v903_v32 = vpop.xlane.xlu1 %902 }
 0x205   : > { %9005 = vrsqrt.f32 %v918_v58  ;;  %v911_v59 = vmul.f32 0.015625, %v903_v32 }
 0x206   : > { %v9000_v60 = vpop.eup %8999 }
 0x207   : > { %v919_v61 = vadd.f32 1e-05, %v911_v59  ;;  %v931_v62 = vmul.f32 %v9000_v60, %v10162_v6 }
 0x208   : > { %v1004_v14 = vpop.permute.xlu1 %1003 }
 0x209   : > { %9007 = vrsqrt.f32 %v919_v61  ;;  %v946_v0 = vmul.f32 %v10203_v54, %v931_v62 }
 0x20a   : > { %v9002_v1 = vpop.eup %9001 }
 0x20b   : > { %v961_v3 = vadd.f32 %v10223_v63, %v946_v0  ;;  %v932_v4 = vmul.f32 %v9002_v1, %v10165_v11 }
 0x20d   : > { %v1009_v5 = vmul.f32 %v984_v45, %v961_v3  ;;  %v947_v7 = vmul.f32 %v10203_v54, %v932_v4  ;;  %v1278_v45 = vld [vmem:[%s13607_s13] sm:$0x7] }
 0x20e   : > { %v9004_v8 = vpop.eup %9003 }
 0x20f   : > { %8258 = vmatmul.mubr.msk.f32.gmra.mxu1 %vm13702_vm1, %v1009_v5  ;;  %8611 = vmatmul.mubr.msk.f32.gmra.mxu0 %vm13702_vm1, %v1009_v5  ;;  %v962_v12 = vadd.f32 %v10223_v63, %v947_v7  ;;  %v933_v6 = vmul.f32 %v9004_v8, %v10171_v19 }
 0x210   : > { %1407 = vmatprep.mubr.f32.mxu1 %v9732_v2 }
 0x211   : > { %v1010_v16 = vmul.f32 %v989_v15, %v962_v12  ;;  %v948_v18 = vmul.f32 %v10203_v54, %v933_v6 }
 0x212   : > { %v9006_v20 = vpop.eup %9005 }
 0x213   : > { %8259 = vmatmul.mubr.msk.f32.gmra.mxu1 %vm13702_vm1, %v1010_v16  ;;  %8613 = vmatprep.mubr.msk.f32.mxu0 %vm13702_vm1, %v1010_v16  ;;  %v963_v11 = vadd.f32 %v10223_v63, %v948_v18  ;;  %v934_v9 = vmul.f32 %v9006_v20, %v10176_v10 }
 0x214   : > { %1413 = vmatprep.mubr.f32.mxu1 %v9732_v2 }
 0x215   : > { %v1011_v21 = vmul.f32 %v994_v46, %v963_v11  ;;  %v949_v19 = vmul.f32 %v10203_v54, %v934_v9 }
 0x216   : > { %v9008_v22 = vpop.eup %9007 }
 0x217   : > { %v935_v23 = vmul.f32 %v9008_v22, %v10183_v27  ;;  %8260 = vmatmul.mubr.msk.f32.gmra.mxu1 %vm13702_vm1, %v1011_v21  ;;  %8614 = vmatmul.mubr.msk.f32.gmra.mxu0 %vm13702_vm1, %v1011_v21  ;;  %v964_v26 = vadd.f32 %v10223_v63, %v949_v19 }
 0x218   : > { %1419 = vmatprep.mubr.f32.mxu1 %v9732_v2 }
 0x219   : > { %v950_v28 = vmul.f32 %v10203_v54, %v935_v23  ;;  %v1012_v10 = vmul.f32 %v999_v13, %v964_v26  ;;  %v10285_v54 = vshrl.u32 %v13629_v25, 7 }
 0x21b   : > { %v965_v29 = vadd.f32 %v10223_v63, %v950_v28  ;;  %8261 = vmatmul.mubr.msk.f32.gmra.mxu1 %vm13702_vm1, %v1012_v10  ;;  %8616 = vmatprep.mubr.msk.f32.mxu0 %vm13702_vm1, %v1012_v10  ;;  %13739 = vst [vmem:[#allocation23_spill] sm:$0xff] %v10285_v54  ;;  %v1569_v63 = vunpack.c.0.s8 %v1568_v31  ;;  %v10293_v40 = vsub.s32 0, %v10285_v54  ;;  %v10299_v49 = vsub.s32 1, %v10285_v54 }
 0x21c   : > { %1425 = vmatprep.mubr.f32.mxu1 %v9732_v2  ;;  %v10318_v0 = vsub.s32 2, %v10285_v54 }
 0x21d   : > { %v1013_v27 = vmul.f32 %v1004_v14, %v965_v29  ;;  %v1572_v2 = vsub.s32 %v1569_v63, %v10285_v54  ;;  %13740 = vst [vmem:[#allocation24_spill] sm:$0xff] %v10293_v40  ;;  %13741 = vst [vmem:[#allocation25_spill] sm:$0xff] %v10299_v49  ;;  %v10304_v53 = vrot.slane %v1278_v45, %v10293_v40 }
 0x21e   : > { %v10311_v57 = vrot.slane %v1278_v45, %v10299_v49  ;;  %13742 = vst [vmem:[#allocation26_spill] sm:$0xff] %v10318_v0  ;;  %v10325_v7 = vrot.slane %v1278_v45, %v10318_v0 }
 0x21f   : > { %8262 = vmatmul.mubr.msk.f32.gmra.mxu1 %vm13702_vm1, %v1013_v27  ;;  %8617 = vmatmul.mubr.msk.f32.gmra.mxu0 %vm13702_vm1, %v1013_v27 }
 0x283   : > { %v10282_v34 = vpop.f32.mrf.mxu0  ;;  %v10287_v35 = vpop.f32.mrf.mxu1 }
 0x285   : > { %v10289_v36 = vpop.f32.mrf.mxu0  ;;  %v1180_v17 = vpop.f32.mrf.mxu1 }
 0x28b   : > { %v1249_v37 = vpop.f32.mrf.mxu0 }
 0x28c   : > { %v1564_v38 = vcombine.low %v1180_v17, %v1249_v37  ;;  %v1565_v33 = vcombine.high %v1180_v17, %v1249_v37 }
 0x28d   : > { %v1251_v39 = vpop.f32.mrf.mxu0 }
 0x28e   : > { %v1573_v41 = vrot.slane %v1564_v38, %v1572_v2  ;;  %v1580_v42 = vrot.slane %v1565_v33, %v1572_v2  ;;  %v1566_v43 = vcombine.high %v1251_v39, %v1251_v39  ;;  %v1587_v44 = vrot.slane %v1251_v39, %v1572_v2 }
 0x290   : > { %v1594_v46 = vrot.slane %v1566_v43, %v1572_v2  ;;  %v1595_v47 = vcombine.low %v1573_v41, %v1587_v44  ;;  %v1596_v48 = vcombine.high %v1573_v41, %v1587_v44 }
 0x292   : > { %v1597_v50 = vcombine.low %v1580_v42, %v1594_v46  ;;  %v1598_v51 = vcombine.high %v1580_v42, %v1594_v46  ;;  %v10301_v52 = vrot.slane %v1596_v48, %v1572_v2  ;;  %v1605_v55 = vrot.slane %v1595_v47, %v1572_v2 }
 0x294   : > { %v10306_v24 = vrot.slane %v1597_v50, %v1572_v2  ;;  %v10308_v56 = vrot.slane %v1598_v51, %v1572_v2  ;;  %v1634_v61 = vrot.slane %v1605_v55, %v10293_v40  ;;  %v1638_v5 = vrot.slane %v1605_v55, %v10299_v49 }
 0x295   : > { %v1385_v58 = vpop.f32.mrf.mxu1  ;;  %v1650_v11 = vrot.slane %v10301_v52, %v10299_v49  ;;  %v10340_v21 = vcombine.high %v1605_v55, %v1605_v55  ;;  %v1654_v13 = vrot.slane %v10301_v52, %v10318_v0  ;;  %v1642_v31 = vrot.slane %v1605_v55, %v10318_v0 }
 0x296   : > { %v1386_v32 = vadd.f32 %v1385_v58, %v10304_v53  ;;  %v10362_v17 = vcombine.high %v10301_v52, %v10301_v52 }
 0x297   : > { %v1387_v59 = vpop.f32.mrf.mxu1  ;;  %v1662_v27 = vrot.slane %v10340_v21, %v10299_v49  ;;  %v1666_v46 = vrot.slane %v10340_v21, %v10318_v0 }
 0x298   : > { %v1537_v60 = vadd.f32 %v1386_v32, %v10282_v34  ;;  %v1388_v62 = vadd.f32 %v1387_v59, %v10311_v57  ;;  %v1678_v43 = vrot.slane %v10362_v17, %v10318_v0  ;;  %v1674_v51 = vrot.slane %v10362_v17, %v10299_v49 }
 0x299   : > { %v10320_v1 = vpop.f32.mrf.mxu1 }
 0x29a   : > { %v1751_v3 = vadd.f32 %v1634_v61, %v1537_v60  ;;  %v1538_v4 = vadd.f32 %v1388_v62, %v10289_v36 }
 0x29b   : > { %v1393_v8 = vpop.f32.mrf.mxu1 }
 0x29c   : > { %v10327_v12 = vmul.f32 0.17677669, %v1751_v3  ;;  %v10329_v6 = vadd.f32 %v1638_v5, %v1538_v4  ;;  %v1394_v15 = vadd.f32 %v1393_v8, %v10311_v57  ;;  %v1686_v4 = vrot.slane %v10306_v24, %v10299_v49 }
 0x29d   : > { %v10332_v16 = vpop.f32.mrf.mxu1  ;;  %v8609_v18 = vpop.f32.mrf.mxu0 }
 0x29e   : > { %v1541_v20 = vadd.f32 %v1394_v15, %v10289_v36  ;;  %v1504_v9 = vadd.f32 %v8609_v18, %v10325_v7  ;;  %8635 = vmatprep.mubr.msk.f32.mxu1 %vm793_vm0, %v10327_v12 }
 0x29f   : > { %v1399_v19 = vpop.f32.mrf.mxu1  ;;  %v1498_v22 = vpop.f32.mrf.mxu0 }
 0x2a0   : > { %v10342_v23 = vadd.f32 %v1650_v11, %v1541_v20  ;;  %v1542_v26 = vadd.f32 %v1504_v9, %v10287_v35  ;;  %v1400_v28 = vadd.f32 %v1399_v19, %v10311_v57  ;;  %v1499_v10 = vadd.f32 %v1498_v22, %v10325_v7 }
 0x2a1   : > { %v1702_v11 = vrot.slane %v10308_v56, %v10318_v0 }
 0x2a2   : > { %v10349_v29 = vadd.f32 %v1654_v13, %v1542_v26  ;;  %v1544_v14 = vadd.f32 %v1400_v28, %v10289_v36  ;;  %v1539_v30 = vadd.f32 %v1499_v10, %v10287_v35  ;;  %v1698_v28 = vrot.slane %v10308_v56, %v10299_v49 }
 0x2a3   : > { %v10409_v10 = vcombine.high %v10306_v24, %v10306_v24 }
 0x2a4   : > { %v10356_v63 = vadd.f32 %v1662_v27, %v1544_v14  ;;  %v10358_v2 = vadd.f32 %v1642_v31, %v1539_v30  ;;  %v1690_v27 = vrot.slane %v10306_v24, %v10318_v0 }
 0x2cf   : > { %v10364_v37 = vpop.f32.mrf.mxu1  ;;  %v8612_v38 = vpop.f32.mrf.mxu0 }
 0x2d0   : > { %v1514_v33 = vadd.f32 %v8612_v38, %v10325_v7 }
 0x2d1   : > { %v1405_v39 = vpop.f32.mrf.mxu1  ;;  %v1508_v41 = vpop.f32.mrf.mxu0 }
 0x2d2   : > { %v1548_v42 = vadd.f32 %v1514_v33, %v10287_v35  ;;  %v1406_v44 = vadd.f32 %v1405_v39, %v10311_v57  ;;  %v1509_v45 = vadd.f32 %v1508_v41, %v10325_v7  ;;  %v10419_v33 = vcombine.high %v10308_v56, %v10308_v56 }
 0x2d3   : > { %v10374_v47 = vpop.f32.mrf.mxu1 }
 0x2d4   : > { %v10376_v48 = vadd.f32 %v1678_v43, %v1548_v42  ;;  %v1547_v50 = vadd.f32 %v1406_v44, %v10289_v36  ;;  %v1545_v55 = vadd.f32 %v1509_v45, %v10287_v35  ;;  %v1710_v44 = vrot.slane %v10409_v10, %v10299_v49 }
 0x2d5   : > { %v1411_v58 = vpop.f32.mrf.mxu1 }
 0x2d6   : > { %v10382_v32 = vadd.f32 %v1674_v51, %v1547_v50  ;;  %v10384_v59 = vadd.f32 %v1666_v46, %v1545_v55  ;;  %v1412_v60 = vadd.f32 %v1411_v58, %v10311_v57  ;;  %v1726_v58 = vrot.slane %v10419_v33, %v10318_v0 }
 0x2d7   : > { %v10387_v61 = vpop.f32.mrf.mxu1  ;;  %v8615_v62 = vpop.f32.mrf.mxu0 }
 0x2d8   : > { %v1550_v3 = vadd.f32 %v1412_v60, %v10289_v36  ;;  %v1524_v5 = vadd.f32 %v8615_v62, %v10325_v7 }
 0x2d9   : > { %v1417_v8 = vpop.f32.mrf.mxu1  ;;  %v1518_v15 = vpop.f32.mrf.mxu0 }
 0x2da   : > { %v10393_v18 = vadd.f32 %v1686_v4, %v1550_v3  ;;  %v1554_v20 = vadd.f32 %v1524_v5, %v10287_v35  ;;  %v1418_v9 = vadd.f32 %v1417_v8, %v10311_v57  ;;  %v1519_v19 = vadd.f32 %v1518_v15, %v10325_v7 }
 0x2db   : > { %v10400_v22 = vpop.f32.mrf.mxu1  ;;  %v1722_v5 = vrot.slane %v10419_v33, %v10299_v49  ;;  %v1714_v15 = vrot.slane %v10409_v10, %v10318_v0 }
 0x2dc   : > { %v10402_v26 = vadd.f32 %v1702_v11, %v1554_v20  ;;  %v1553_v13 = vadd.f32 %v1418_v9, %v10289_v36  ;;  %v1551_v14 = vadd.f32 %v1519_v19, %v10287_v35  ;;  %v1646_v19 = vrot.slane %v10301_v52, %v10293_v40 }
 0x2dd   : > { %v1423_v30 = vpop.f32.mrf.mxu1  ;;  %v1422_v52 = vadd.f32 %v10400_v22, %v10304_v53 }
 0x2de   : > { %v10414_v31 = vadd.f32 %v1698_v28, %v1553_v13  ;;  %v1424_v38 = vadd.f32 %v1423_v30, %v10311_v57  ;;  %v10421_v39 = vadd.f32 %v1690_v27, %v1551_v14  ;;  %v1416_v28 = vadd.f32 %v10387_v61, %v10304_v53 }
 0x2df   : > { %v10423_v41 = vpop.f32.mrf.mxu1  ;;  %v8618_v42 = vpop.f32.mrf.mxu0  ;;  %v1682_v27 = vrot.slane %v10306_v24, %v10293_v40  ;;  %v1706_v24 = vrot.slane %v10409_v10, %v10293_v40 }
 0x2e0   : > { %v1556_v43 = vadd.f32 %v1424_v38, %v10289_v36  ;;  %v1534_v45 = vadd.f32 %v8618_v42, %v10325_v7  ;;  %v1552_v38 = vadd.f32 %v1416_v28, %v10282_v34  ;;  %v1428_v42 = vadd.f32 %v10423_v41, %v10304_v53 }
 0x2e1   : > { %v1429_v46 = vpop.f32.mrf.mxu1  ;;  %v1528_v50 = vpop.f32.mrf.mxu0 }
 0x2e2   : > { %v10429_v51 = vadd.f32 %v1710_v44, %v1556_v43  ;;  %v1560_v55 = vadd.f32 %v1534_v45, %v10287_v35  ;;  %v1430_v60 = vadd.f32 %v1429_v46, %v10311_v57  ;;  %v1529_v62 = vadd.f32 %v1528_v50, %v10325_v7 }
 0x2e3   : > { %v1404_v7 = vadd.f32 %v10364_v37, %v10304_v53  ;;  %v1555_v44 = vadd.f32 %v1422_v52, %v10282_v34  ;;  %v1558_v41 = vadd.f32 %v1428_v42, %v10282_v34 }
 0x2e4   : > { %v10436_v3 = vadd.f32 %v1726_v58, %v1560_v55  ;;  %v1559_v4 = vadd.f32 %v1430_v60, %v10289_v36  ;;  %v1557_v8 = vadd.f32 %v1529_v62, %v10287_v35  ;;  %v1392_v35 = vadd.f32 %v10320_v1, %v10304_v53 }
 0x2e5   : > { %v1398_v36 = vadd.f32 %v10332_v16, %v10304_v53  ;;  %v1410_v1 = vadd.f32 %v10374_v47, %v10304_v53  ;;  %v1658_v16 = vrot.slane %v10340_v21, %v10293_v40  ;;  %v1546_v37 = vadd.f32 %v1404_v7, %v10282_v34 }
 0x2e6   : > { %8647 = vmatprep.subr.mxu0 %v10436_v3  ;;  %v10445_v20 = vadd.f32 %v1722_v5, %v1559_v4  ;;  %v10447_v11 = vadd.f32 %v1714_v15, %v1557_v8  ;;  %v1540_v57 = vadd.f32 %v1392_v35, %v10282_v34  ;;  %v1670_v21 = vrot.slane %v10362_v17, %v10293_v40 }
 0x2e7   : > { %8648 = vmatpush3.msra.mxu0 %v10436_v3  ;;  %v1543_v9 = vadd.f32 %v1398_v36, %v10282_v34  ;;  %v1549_v47 = vadd.f32 %v1410_v1, %v10282_v34  ;;  %v1694_v17 = vrot.slane %v10308_v56, %v10293_v40  ;;  %v1769_v50 = vadd.f32 %v1706_v24, %v1555_v44 }
 0x2e8   : > { %8619 = vmatprep.subr.msk.mxu1 %vm793_vm0, %v10445_v20  ;;  %8649 = vmatprep.subr.mxu0 %v10447_v11  ;;  %v1754_v13 = vadd.f32 %v1646_v19, %v1540_v57  ;;  %v1760_v61 = vadd.f32 %v1670_v21, %v1546_v37  ;;  %v1718_v56 = vrot.slane %v10419_v33, %v10293_v40 }
 0x2e9   : > { %8620 = vmatpush3.xpose.msk.msra.mxu1 %vm793_vm0, %v10445_v20  ;;  %8650 = vmatpush3.msra.mxu0 %v10447_v11  ;;  %v1757_v14 = vadd.f32 %v1658_v16, %v1543_v9  ;;  %v1763_v22 = vadd.f32 %v1682_v27, %v1549_v47  ;;  %v1766_v53 = vadd.f32 %v1694_v17, %v1552_v38  ;;  %v10549_v58 = vmul.f32 0.17677669, %v1769_v50 }
 0x2ea   : > { %8621 = vmatprep.subr.msk.mxu1 %vm793_vm0, %v10429_v51  ;;  %8651 = vmatprep.subr.mxu0 %v10402_v26  ;;  %v10520_v30 = vmul.f32 0.17677669, %v1754_v13  ;;  %v10536_v45 = vmul.f32 0.17677669, %v1760_v61  ;;  %v1772_v55 = vadd.f32 %v1718_v56, %v1558_v41 }
 0x2eb   : > { %8652 = vmatpush3.msra.mxu0 %v10402_v26  ;;  %v10525_v43 = vmul.f32 0.17677669, %v1757_v14  ;;  %v10539_v46 = vmul.f32 0.17677669, %v1763_v22  ;;  %v10547_v10 = vmul.f32 0.17677669, %v1766_v53 }
 0x2ec   : > { %8653 = vmatprep.subr.mxu0 %v10421_v39  ;;  %v10555_v34 = vmul.f32 0.17677669, %v1772_v55 }
 0x2ed   : > { %8622 = vmatpush3.xpose.msk.msra.mxu1 %vm793_vm0, %v10429_v51  ;;  %8654 = vmatpush3.msra.mxu0 %v10421_v39 }
 0x2ee   : > { %8623 = vmatprep.subr.msk.mxu1 %vm793_vm0, %v10414_v31  ;;  %8655 = vmatprep.subr.mxu0 %v10376_v48 }
 0x2ef   : > { %8656 = vmatpush3.msra.mxu0 %v10376_v48 }
 0x2f0   : > { %8657 = vmatprep.subr.mxu0 %v10384_v59 }
 0x2f1   : > { %8624 = vmatpush3.xpose.msk.msra.mxu1 %vm793_vm0, %v10414_v31  ;;  %8658 = vmatpush3.msra.mxu0 %v10384_v59 }
 0x2f2   : > { %8625 = vmatprep.subr.msk.mxu1 %vm793_vm0, %v10393_v18  ;;  %8659 = vmatprep.subr.mxu0 %v10349_v29 }
 0x2f3   : > { %8660 = vmatpush3.msra.mxu0 %v10349_v29 }
 0x2f4   : > { %8661 = vmatprep.subr.mxu0 %v10358_v2 }
 0x2f5   : > { %8626 = vmatpush3.xpose.msk.msra.mxu1 %vm793_vm0, %v10393_v18  ;;  %8662 = vmatpush3.msra.mxu0 %v10358_v2 }
 0x2f6   : > { %8627 = vmatprep.subr.msk.mxu1 %vm793_vm0, %v10382_v32 }
 0x2f9   : > { %8628 = vmatpush3.xpose.msk.msra.mxu1 %vm793_vm0, %v10382_v32 }
 0x2fa   : > { %8629 = vmatprep.subr.msk.mxu1 %vm793_vm0, %v10356_v63 }
 0x2fd   : > { %8630 = vmatpush3.xpose.msk.msra.mxu1 %vm793_vm0, %v10356_v63 }
 0x2fe   : > { %8631 = vmatprep.subr.msk.mxu1 %vm793_vm0, %v10342_v23 }
 0x301   : > { %8632 = vmatpush3.xpose.msk.msra.mxu1 %vm793_vm0, %v10342_v23 }
 0x302   : > { %8633 = vmatprep.subr.msk.mxu1 %vm793_vm0, %v10329_v6 }
 0x305   : > { %8634 = vmatpush3.xpose.msk.msra.mxu1 %vm793_vm0, %v10329_v6 }
 0x308   : > { %8636 = vmatmul.mubr.msk.f32.vlgmr.msra.gmra.mxu1 %vm793_vm0, %v10520_v30 }
 0x309   : > { %8638 = vmatprep.mubr.msk.f32.mxu1 %vm793_vm0, %v10525_v43 }
 0x30c   : > { %8639 = vmatmul.mubr.msk.f32.gmra.mxu1 %vm793_vm0, %v10536_v45 }
 0x30d   : > { %8641 = vmatprep.mubr.msk.f32.mxu1 %vm793_vm0, %v10539_v46 }
 0x310   : > { %8642 = vmatmul.mubr.msk.f32.gmra.mxu1 %vm793_vm0, %v10547_v10 }
 0x311   : > { %8644 = vmatprep.mubr.msk.f32.mxu1 %vm793_vm0, %v10549_v58 }
 0x314   : > { %8645 = vmatmul.mubr.msk.f32.gmra.mxu1 %vm793_vm0, %v10555_v34 }
 0x3c8   : > { %v8637_v33 = vpop.f32.mrf.mxu1 }
 0x3c9   : > { %v1939_v60 = vsel %vm13702_vm1, %v8637_v33, -inf }
 0x3ca   : > { %1940 = vmax.xlane.f32.xlu1 %v1939_v60  ;;  %v1897_v62 = vpop.f32.mrf.mxu1 }
 0x3cb   : > { %v1936_v4 = vsel %vm13702_vm1, %v1897_v62, -inf }
 0x3cc   : > { %1937 = vmax.xlane.f32.xlu0 %v1936_v4  ;;  %v8640_v5 = vpop.f32.mrf.mxu1 }
 0x3cd   : > { %v1945_v57 = vsel %vm13702_vm1, %v8640_v5, -inf }
 0x3ce   : > { %v1907_v8 = vpop.f32.mrf.mxu1 }
 0x3cf   : > { %v1942_v15 = vsel %vm13702_vm1, %v1907_v8, -inf }
 0x3d0   : > { %1943 = vmax.xlane.f32.xlu0 %v1942_v15  ;;  %v8643_v35 = vpop.f32.mrf.mxu1 }
 0x3d1   : > { %v1951_v9 = vsel %vm13702_vm1, %v8643_v35, -inf }
 0x3d2   : > { %v1917_v36 = vpop.f32.mrf.mxu1 }
 0x3d3   : > { %v1948_v7 = vsel %vm13702_vm1, %v1917_v36, -inf }
 0x3d4   : > { %1946 = vmax.xlane.f32.xlu0 %v1945_v57  ;;  %1949 = vmax.xlane.f32.xlu1 %v1948_v7  ;;  %v8646_v1 = vpop.f32.mrf.mxu1 }
 0x3d5   : > { %v1957_v19 = vsel %vm13702_vm1, %v8646_v1, -inf }
 0x3d6   : > { %v1927_v16 = vpop.f32.mrf.mxu1 }
 0x3d7   : > { %v1954_v13 = vsel %vm13702_vm1, %v1927_v16, -inf }
 0x3d8   : > { %1952 = vmax.xlane.f32.xlu0 %v1951_v9 }
 0x3dc   : > { %1958 = vmax.xlane.f32.xlu0 %v1957_v19 }
 0x3e5   : > { %2239 = vrot.lane.b32.xlu1 %v10445_v20, %s9734_s23 }
 0x409   : > { %1955 = vmax.xlane.f32.xlu1 %v1954_v13 }
 0x453   : > { %v1941_v37 = vpop.xlane.xlu1 %1940 }
 0x454   : > { %v1961_v28 = vsub.f32 %v8637_v33, %v1941_v37 }
 0x455   : > { %v1938_v14 = vpop.xlane.xlu0 %1937 }
 0x456   : > { %v1970_v47 = vmul.f32 1.442695, %v1961_v28  ;;  %v1960_v52 = vsub.f32 %v1897_v62, %v1938_v14 }
 0x458   : > { %9009 = vpow2.f32 %v1970_v47  ;;  %v1968_v21 = vmul.f32 1.442695, %v1960_v52 }
 0x459   : > { %v1944_v27 = vpop.xlane.xlu0 %1943 }
 0x45a   : > { %9011 = vpow2.f32 %v1968_v21  ;;  %v1962_v61 = vsub.f32 %v1907_v8, %v1944_v27 }
 0x45c   : > { %v1972_v38 = vmul.f32 1.442695, %v1962_v61 }
 0x45d   : > { %v1947_v42 = vpop.xlane.xlu0 %1946  ;;  %v1950_v22 = vpop.xlane.xlu1 %1949 }
 0x45e   : > { %9013 = vpow2.f32 %v1972_v38  ;;  %v1963_v44 = vsub.f32 %v8640_v5, %v1947_v42  ;;  %v1964_v17 = vsub.f32 %v1917_v36, %v1950_v22 }
 0x460   : > { %v1974_v24 = vmul.f32 1.442695, %v1963_v44  ;;  %v1976_v53 = vmul.f32 1.442695, %v1964_v17  ;;  %v10602_v44 = vld [vmem:[%s10022_s2 + $0x8] sm:$0xff] }
 0x461   : > { %v1953_v41 = vpop.xlane.xlu0 %1952  ;;  %v10569_v50 = vpop.permute.xlu1 %2239 }
 0x462   : > { %9015 = vpow2.f32 %v1974_v24  ;;  %v1965_v56 = vsub.f32 %v8643_v35, %v1953_v41  ;;  %8675 = vmatprep.subr.msk.mxu0 %vm793_vm0, %v10569_v50 }
 0x463   : > { %9017 = vpow2.f32 %v1976_v53  ;;  %v10605_v53 = vld [vmem:[%s10022_s2] sm:$0xff] }
 0x464   : > { %v1978_v55 = vmul.f32 1.442695, %v1965_v56 }
 0x465   : > { %v9010_v33 = vpop.eup %9009  ;;  %v1959_v60 = vpop.xlane.xlu0 %1958 }
 0x466   : > { %9019 = vpow2.f32 %v1978_v55  ;;  %v1967_v62 = vsub.f32 %v8646_v1, %v1959_v60  ;;  %v1987_v4 = vsel %vm13702_vm1, %v9010_v33, 0.0 }
 0x467   : > { %v9012_v5 = vpop.eup %9011  ;;  %1988 = vadd.xlane.f32.xlu0 %v1987_v4  ;;  %v10616_v4 = vld [vmem:[%s10022_s2 + $0x10] sm:$0xff] }
 0x468   : > { %v1982_v8 = vmul.f32 1.442695, %v1967_v62  ;;  %v1984_v15 = vsel %vm13702_vm1, %v9012_v5, 0.0 }
 0x469   : > { %1985 = vadd.xlane.f32.xlu1 %v1984_v15 }
 0x46a   : > { %9021 = vpow2.f32 %v1982_v8 }
 0x46b   : > { %v9014_v36 = vpop.eup %9013 }
 0x46c   : > { %v1990_v35 = vsel %vm13702_vm1, %v9014_v36, 0.0 }
 0x46d   : > { %1991 = vadd.xlane.f32.xlu1 %v1990_v35 }
 0x46f   : > { %v10576_v57 = vpop.eup %9015 }
 0x470   : > { %v9018_v7 = vpop.eup %9017  ;;  %v1993_v9 = vsel %vm13702_vm1, %v10576_v57, 0.0 }
 0x471   : > { %1994 = vadd.xlane.f32.xlu0 %v1993_v9  ;;  %v1996_v1 = vsel %vm13702_vm1, %v9018_v7, 0.0  ;;  %v10626_v9 = vld [vmem:[%s10022_s2 + $0x20] sm:$0xff] }
 0x472   : > { %1997 = vadd.xlane.f32.xlu1 %v1996_v1 }
 0x473   : > { %v10581_v19 = vpop.eup %9019 }
 0x474   : > { %v1999_v13 = vsel %vm13702_vm1, %v10581_v19, 0.0 }
 0x475   : > { %2000 = vadd.xlane.f32.xlu0 %v1999_v13 }
 0x477   : > { %v10585_v37 = vpop.eup %9021 }
 0x478   : > { %v2005_v28 = vsel %vm13702_vm1, %v10585_v37, 0.0 }
 0x479   : > { %2006 = vadd.xlane.f32.xlu0 %v2005_v28 }
 0x483   : > { %2235 = vrot.lane.b32.xlu1 %v10414_v31, %s9734_s23 }
 0x487   : > { %2233 = vrot.lane.b32.xlu1 %v10393_v18, %s9734_s23 }
 0x48f   : > { %2237 = vrot.lane.b32.xlu0 %v10429_v51, %s9734_s23 }
 0x492   : > { %v1956_v14 = vpop.xlane.xlu1 %1955 }
 0x493   : > { %v1966_v47 = vsub.f32 %v1927_v16, %v1956_v14 }
 0x495   : > { %v1980_v52 = vmul.f32 1.442695, %v1966_v47 }
 0x497   : > { %9023 = vpow2.f32 %v1980_v52 }
 0x4a4   : > { %v10595_v21 = vpop.eup %9023 }
 0x4a5   : > { %v2002_v27 = vsel %vm13702_vm1, %v10595_v21, 0.0 }
 0x4ab   : > { %2003 = vadd.xlane.f32.xlu1 %v2002_v27 }
 0x4bc   : > { %2229 = vrot.lane.b32.xlu1 %v10356_v63, %s9734_s23 }
 0x4f0   : > { %v1989_v61 = vpop.xlane.xlu0 %1988 }
 0x4f1   : > { %9025 = vrcp.f32 %v1989_v61 }
 0x4f2   : > { %v1986_v38 = vpop.xlane.xlu1 %1985 }
 0x4f3   : > { %9027 = vrcp.f32 %v1986_v38 }
 0x4f6   : > { %v1992_v42 = vpop.xlane.xlu1 %1991 }
 0x4f7   : > { %9029 = vrcp.f32 %v1992_v42  ;;  %v10643_v42 = vld [vmem:[%s10022_s2 + $0x18] sm:$0xff] }
 0x4fb   : > { %v1998_v16 = vpop.xlane.xlu1 %1997 }
 0x4fc   : > { %9031 = vrcp.f32 %v1998_v16 }
 0x4fe   : > { %v9026_v22 = vpop.eup %9025 }
 0x4ff   : > { %v2017_v17 = vmul.f32 %v9026_v22, %v9010_v33  ;;  %v10637_v47 = vpop.permute.xlu1 %2235 }
 0x500   : > { %v9028_v24 = vpop.eup %9027 }
 0x501   : > { %v10608_v41 = vmul.f32 %v2017_v17, %v10602_v44  ;;  %v2016_v56 = vmul.f32 %v9028_v24, %v9012_v5 }
 0x503   : > { %v2035_v55 = vsel %vm13702_vm1, %v10608_v41, 0.0  ;;  %v10613_v60 = vmul.f32 %v2016_v56, %v10605_v53  ;;  %v10639_v27 = vpop.permute.xlu1 %2233  ;;  %v10650_v56 = vld [vmem:[%s10022_s2 + $0x28] sm:$0xff] }
 0x504   : > { %v9030_v62 = vpop.eup %9029  ;;  %2036 = vadd.xlane.f32.xlu0 %v2035_v55 }
 0x505   : > { %v2032_v33 = vsel %vm13702_vm1, %v10613_v60, 0.0  ;;  %v2018_v8 = vmul.f32 %v9030_v62, %v9014_v36  ;;  %v1995_v36 = vpop.xlane.xlu0 %1994 }
 0x506   : > { %2033 = vadd.xlane.f32.xlu1 %v2032_v33  ;;  %9033 = vrcp.f32 %v1995_v36  ;;  %v10659_v33 = vld [vmem:[%s10022_s2 + $0x38] sm:$0xff] }
 0x507   : > { %v10621_v15 = vmul.f32 %v2018_v8, %v10616_v4 }
 0x509   : > { %v9032_v35 = vpop.eup %9031  ;;  %v2038_v5 = vsel %vm13702_vm1, %v10621_v15, 0.0  ;;  %v2001_v14 = vpop.xlane.xlu0 %2000 }
 0x50a   : > { %2039 = vadd.xlane.f32.xlu1 %v2038_v5  ;;  %v2020_v1 = vmul.f32 %v9032_v35, %v9018_v7  ;;  %9035 = vrcp.f32 %v2001_v14 }
 0x50c   : > { %v10629_v13 = vmul.f32 %v2020_v1, %v10626_v9  ;;  %v10669_v1 = vld [vmem:[%s10022_s2 + $0x30] sm:$0xff] }
 0x50d   : > { %v2007_v7 = vpop.xlane.xlu0 %2006 }
 0x50e   : > { %v2044_v28 = vsel %vm13702_vm1, %v10629_v13, 0.0  ;;  %9037 = vrcp.f32 %v2007_v7 }
 0x50f   : > { %2045 = vadd.xlane.f32.xlu1 %v2044_v28 }
 0x513   : > { %v9034_v52 = vpop.eup %9033 }
 0x514   : > { %v2019_v61 = vmul.f32 %v9034_v52, %v10576_v57 }
 0x516   : > { %v10646_v22 = vmul.f32 %v2019_v61, %v10643_v42 }
 0x517   : > { %v9036_v38 = vpop.eup %9035 }
 0x518   : > { %v2021_v17 = vmul.f32 %v9036_v38, %v10581_v19  ;;  %v2041_v55 = vsel %vm13702_vm1, %v10646_v22, 0.0 }
 0x51a   : > { %2231 = vrot.lane.b32.xlu0 %v10382_v32, %s9734_s23  ;;  %v10655_v62 = vmul.f32 %v2021_v17, %v10650_v56 }
 0x51b   : > { %v9038_v24 = vpop.eup %9037 }
 0x51c   : > { %v2023_v57 = vmul.f32 %v9038_v24, %v10585_v37  ;;  %v2047_v8 = vsel %vm13702_vm1, %v10655_v62, 0.0 }
 0x51e   : > { %v10664_v19 = vmul.f32 %v2023_v57, %v10659_v33 }
 0x520   : > { %2225 = vrot.lane.b32.xlu1 %v10329_v6, %s9734_s23  ;;  %v2053_v35 = vsel %vm13702_vm1, %v10664_v19, 0.0 }
 0x534   : > { %v2004_v16 = vpop.xlane.xlu1 %2003 }
 0x535   : > { %9039 = vrcp.f32 %v2004_v16 }
 0x538   : > { %v2230_v14 = vpop.permute.xlu1 %2229 }
 0x539   : > { %2042 = vadd.xlane.f32.xlu0 %v2041_v55 }
 0x53d   : > { %2048 = vadd.xlane.f32.xlu0 %v2047_v8 }
 0x541   : > { %2054 = vadd.xlane.f32.xlu0 %v2053_v35 }
 0x542   : > { %v9040_v5 = vpop.eup %9039 }
 0x543   : > { %v2022_v28 = vmul.f32 %v9040_v5, %v10595_v21  ;;  %v2238_v21 = vpop.permute.xlu0 %2237 }
 0x545   : > { %v10673_v37 = vmul.f32 %v2022_v28, %v10669_v1 }
 0x547   : > { %v2050_v36 = vsel %vm13702_vm1, %v10673_v37, 0.0 }
 0x548   : > { %2051 = vadd.xlane.f32.xlu1 %v2050_v36 }
 0x557   : > { %2227 = vrot.lane.b32.xlu0 %v10342_v23, %s9734_s23 }
 0x559   : > { %2211 = vrot.lane.b32.xlu1 %v10520_v30, %s9734_s23 }
 0x55b   : > { %2209 = vrot.lane.b32.xlu0 %v10327_v12, %s9734_s23 }
 0x55d   : > { %2215 = vrot.lane.b32.xlu1 %v10536_v45, %s9734_s23 }
 0x55f   : > { %2213 = vrot.lane.b32.xlu0 %v10525_v43, %s9734_s23 }
 0x561   : > { %2219 = vrot.lane.b32.xlu1 %v10547_v10, %s9734_s23 }
 0x563   : > { %2217 = vrot.lane.b32.xlu0 %v10539_v46, %s9734_s23 }
 0x565   : > { %2223 = vrot.lane.b32.xlu1 %v10555_v34, %s9734_s23 }
 0x567   : > { %2221 = vrot.lane.b32.xlu0 %v10549_v58, %s9734_s23 }
 0x569   : > { %2544 = vrot.lane.b32.xlu1 %v10436_v3, %s9734_s23 }
 0x56b   : > { %2542 = vrot.lane.b32.xlu0 %v10447_v11, %s9734_s23 }
 0x56d   : > { %2540 = vrot.lane.b32.xlu1 %v10402_v26, %s9734_s23 }
 0x56f   : > { %2538 = vrot.lane.b32.xlu0 %v10421_v39, %s9734_s23 }
 0x571   : > { %2536 = vrot.lane.b32.xlu1 %v10376_v48, %s9734_s23 }
 0x58d   : > { %v2037_v7 = vpop.xlane.xlu0 %2036 }
 0x58e   : > { %v2057_v52 = vadd.f32 1e-10, %v2037_v7 }
 0x58f   : > { %v2034_v61 = vpop.xlane.xlu1 %2033 }
 0x590   : > { %v2056_v38 = vadd.f32 1e-10, %v2034_v61  ;;  %9041 = vrcp.f32 %v2057_v52 }
 0x592   : > { %9043 = vrcp.f32 %v2056_v38 }
 0x593   : > { %v2040_v16 = vpop.xlane.xlu1 %2039 }
 0x594   : > { %v2058_v17 = vadd.f32 1e-10, %v2040_v16 }
 0x596   : > { %9045 = vrcp.f32 %v2058_v17 }
 0x59d   : > { %v9042_v24 = vpop.eup %9041 }
 0x59e   : > { %v2073_v8 = vmul.f32 %v9042_v24, %v10608_v41  ;;  %v2232_v41 = vpop.permute.xlu0 %2231 }
 0x59f   : > { %v9044_v55 = vpop.eup %9043 }
 0x5a0   : > { %v2072_v57 = vmul.f32 %v9044_v55, %v10613_v60 }
 0x5a2   : > { %8663 = vmatprep.mubr.msk.f32.mxu0 %vm13702_vm1, %v2072_v57 }
 0x5a3   : > { %v9046_v35 = vpop.eup %9045  ;;  %8664 = vmatmul.mubr.msk.f32.vlgmr.msra.gmra.mxu0 %vm13702_vm1, %v2073_v8 }
 0x5a4   : > { %8676 = vmatpush3.xpose.msk.msra.mxu0 %vm793_vm0, %v10569_v50  ;;  %v2074_v5 = vmul.f32 %v9046_v35, %v10621_v15  ;;  %v2046_v50 = vpop.xlane.xlu1 %2045 }
 0x5a5   : > { %8677 = vmatprep.subr.msk.mxu0 %vm793_vm0, %v2238_v21  ;;  %v2060_v60 = vadd.f32 1e-10, %v2046_v50 }
 0x5a6   : > { %8666 = vmatprep.mubr.msk.f32.mxu0 %vm13702_vm1, %v2074_v5 }
 0x5a7   : > { %9047 = vrcp.f32 %v2060_v60 }
 0x5a8   : > { %8678 = vmatpush3.xpose.msk.msra.mxu0 %vm793_vm0, %v2238_v21  ;;  %v2226_v7 = vpop.permute.xlu1 %2225 }
 0x5a9   : > { %8679 = vmatprep.subr.msk.mxu0 %vm793_vm0, %v10637_v47 }
 0x5ac   : > { %8680 = vmatpush3.xpose.msk.msra.mxu0 %vm793_vm0, %v10637_v47 }
 0x5ad   : > { %8681 = vmatprep.subr.msk.mxu0 %vm793_vm0, %v10639_v27 }
 0x5b0   : > { %8682 = vmatpush3.xpose.msk.msra.mxu0 %vm793_vm0, %v10639_v27 }
 0x5b1   : > { %8683 = vmatprep.subr.msk.mxu0 %vm793_vm0, %v2232_v41 }
 0x5b4   : > { %8684 = vmatpush3.xpose.msk.msra.mxu0 %vm793_vm0, %v2232_v41  ;;  %v9048_v61 = vpop.eup %9047 }
 0x5b5   : > { %8685 = vmatprep.subr.msk.mxu0 %vm793_vm0, %v2230_v14  ;;  %v2076_v55 = vmul.f32 %v9048_v61, %v10629_v13 }
 0x5b8   : > { %8686 = vmatpush3.xpose.msk.msra.mxu0 %vm793_vm0, %v2230_v14 }
 0x5c2   : > { %v2043_v15 = vpop.xlane.xlu0 %2042 }
 0x5c3   : > { %v2059_v28 = vadd.f32 1e-10, %v2043_v15 }
 0x5c5   : > { %9049 = vrcp.f32 %v2059_v28 }
 0x5c6   : > { %v2049_v47 = vpop.xlane.xlu0 %2048 }
 0x5c7   : > { %v2061_v36 = vadd.f32 1e-10, %v2049_v47 }
 0x5c9   : > { %9051 = vrcp.f32 %v2061_v36 }
 0x5ca   : > { %v2055_v21 = vpop.xlane.xlu0 %2054 }
 0x5cb   : > { %v2063_v52 = vadd.f32 1e-10, %v2055_v21 }
 0x5cd   : > { %9053 = vrcp.f32 %v2063_v52 }
 0x5ce   : > { %v2228_v27 = vpop.permute.xlu0 %2227 }
 0x5cf   : > { %8687 = vmatprep.subr.msk.mxu0 %vm793_vm0, %v2228_v27 }
 0x5d0   : > { %8688 = vmatpush3.xpose.msk.msra.mxu0 %vm793_vm0, %v2228_v27 }
 0x5d1   : > { %v2052_v38 = vpop.xlane.xlu1 %2051  ;;  %8689 = vmatprep.subr.msk.mxu0 %vm793_vm0, %v2226_v7 }
 0x5d2   : > { %v9050_v14 = vpop.eup %9049  ;;  %v2062_v16 = vadd.f32 1e-10, %v2052_v38  ;;  %v2210_v17 = vpop.permute.xlu0 %2209 }
 0x5d3   : > { %v2075_v24 = vmul.f32 %v9050_v14, %v10646_v22 }
 0x5d4   : > { %9055 = vrcp.f32 %v2062_v16  ;;  %8690 = vmatpush3.xpose.msk.msra.mxu0 %vm793_vm0, %v2226_v7 }
 0x5d5   : > { %v2212_v57 = vpop.permute.xlu1 %2211  ;;  %8667 = vmatmul.mubr.msk.f32.gmra.mxu0 %vm13702_vm1, %v2075_v24 }
 0x5d6   : > { %v9052_v8 = vpop.eup %9051  ;;  %v2214_v35 = vpop.permute.xlu0 %2213  ;;  %8669 = vmatprep.mubr.msk.f32.mxu0 %vm13702_vm1, %v2076_v55 }
 0x5d7   : > { %v2077_v5 = vmul.f32 %v9052_v8, %v10655_v62 }
 0x5d9   : > { %v2216_v41 = vpop.permute.xlu1 %2215  ;;  %8670 = vmatmul.mubr.msk.f32.gmra.mxu0 %vm13702_vm1, %v2077_v5 }
 0x5da   : > { %v2218_v50 = vpop.permute.xlu0 %2217  ;;  %v9054_v15 = vpop.eup %9053 }
 0x5db   : > { %v2079_v36 = vmul.f32 %v9054_v15, %v10664_v19 }
 0x5dd   : > { %v2220_v60 = vpop.permute.xlu1 %2219 }
 0x5de   : > { %v2222_v22 = vpop.permute.xlu0 %2221 }
 0x5e1   : > { %v9056_v28 = vpop.eup %9055  ;;  %v2224_v47 = vpop.permute.xlu1 %2223 }
 0x5e2   : > { %v2078_v13 = vmul.f32 %v9056_v28, %v10673_v37  ;;  %v2543_v21 = vpop.permute.xlu0 %2542 }
 0x5e4   : > { %8672 = vmatprep.mubr.msk.f32.mxu0 %vm13702_vm1, %v2078_v13 }
 0x5e5   : > { %8673 = vmatmul.mubr.msk.f32.gmra.mxu0 %vm13702_vm1, %v2079_v36  ;;  %v2545_v7 = vpop.permute.xlu1 %2544 }
 0x5e6   : > { %8691 = vmatprep.mubr.msk.f32.mxu0 %vm793_vm0, %v2210_v17  ;;  %8703 = vmatprep.subr.mxu1 %v2545_v7  ;;  %v2539_v37 = vpop.permute.xlu0 %2538 }
 0x5e7   : > { %8704 = vmatpush3.msra.mxu1 %v2545_v7 }
 0x5e8   : > { %8705 = vmatprep.subr.mxu1 %v2543_v21 }
 0x5e9   : > { %8692 = vmatmul.mubr.msk.f32.vlgmr.msra.gmra.mxu0 %vm793_vm0, %v2212_v57  ;;  %8706 = vmatpush3.msra.mxu1 %v2543_v21  ;;  %v2541_v62 = vpop.permute.xlu1 %2540 }
 0x5ea   : > { %8694 = vmatprep.mubr.msk.f32.mxu0 %vm793_vm0, %v2214_v35  ;;  %8707 = vmatprep.subr.mxu1 %v2541_v62 }
 0x5eb   : > { %8708 = vmatpush3.msra.mxu1 %v2541_v62 }
 0x5ec   : > { %8709 = vmatprep.subr.mxu1 %v2539_v37 }
 0x5ed   : > { %8695 = vmatmul.mubr.msk.f32.gmra.mxu0 %vm793_vm0, %v2216_v41  ;;  %8710 = vmatpush3.msra.mxu1 %v2539_v37  ;;  %v2537_v19 = vpop.permute.xlu1 %2536 }
 0x5ee   : > { %8697 = vmatprep.mubr.msk.f32.mxu0 %vm793_vm0, %v2218_v50  ;;  %8711 = vmatprep.subr.mxu1 %v2537_v19 }
 0x5ef   : > { %8712 = vmatpush3.msra.mxu1 %v2537_v19 }
 0x5f1   : > { %8698 = vmatmul.mubr.msk.f32.gmra.mxu0 %vm793_vm0, %v2220_v60 }
 0x5f2   : > { %8700 = vmatprep.mubr.msk.f32.mxu0 %vm793_vm0, %v2222_v22 }
 0x5f5   : > { %8701 = vmatmul.mubr.msk.f32.gmra.mxu0 %vm793_vm0, %v2224_v47 }
 0x663   : > { %v10749_v27 = vpop.f32.mrf.mxu0 }
 0x665   : > { %v10751_v52 = vpop.f32.mrf.mxu0 }
 0x695   : > { %v10753_v61 = vpop.f32.mrf.mxu0 }
 0x697   : > { %v10755_v38 = vpop.f32.mrf.mxu0 }
 0x699   : > { %v10757_v14 = vpop.f32.mrf.mxu0 }
 0x69b   : > { %v10759_v16 = vpop.f32.mrf.mxu0 }
 0x6a5   : > { %v10761_v17 = vpop.f32.mrf.mxu0 }
 0x6a7   : > { %v10763_v24 = vpop.f32.mrf.mxu0 }
 0x6a9   : > { %v8693_v55 = vpop.f32.mrf.mxu0 }
 0x6aa   : > { %v2381_v57 = vsel %vm13702_vm1, %v8693_v55, -inf }
 0x6ab   : > { %2382 = vmax.xlane.f32.xlu1 %v2381_v57  ;;  %v2339_v8 = vpop.f32.mrf.mxu0 }
 0x6ac   : > { %v2378_v35 = vsel %vm13702_vm1, %v2339_v8, -inf }
 0x6ad   : > { %2379 = vmax.xlane.f32.xlu0 %v2378_v35  ;;  %v8696_v5 = vpop.f32.mrf.mxu0 }
 0x6ae   : > { %v2387_v15 = vsel %vm13702_vm1, %v8696_v5, -inf }
 0x6af   : > { %v2349_v41 = vpop.f32.mrf.mxu0 }
 0x6b0   : > { %v2384_v28 = vsel %vm13702_vm1, %v2349_v41, -inf }
 0x6b1   : > { %v8699_v50 = vpop.f32.mrf.mxu0 }
 0x6b2   : > { %v2393_v47 = vsel %vm13702_vm1, %v8699_v50, -inf }
 0x6b3   : > { %v2359_v60 = vpop.f32.mrf.mxu0 }
 0x6b4   : > { %v2390_v22 = vsel %vm13702_vm1, %v2359_v60, -inf }
 0x6b5   : > { %v8702_v13 = vpop.f32.mrf.mxu0 }
 0x6b6   : > { %v2399_v36 = vsel %vm13702_vm1, %v8702_v13, -inf }
 0x6b7   : > { %v10782_v21 = vpop.f32.mrf.mxu0 }
 0x6b8   : > { %v2396_v7 = vsel %vm13702_vm1, %v10782_v21, -inf }
 0x6bc   : > { %2532 = vrot.lane.b32.xlu1 %v10349_v29, %s9734_s23 }
 0x6c3   : > { %2534 = vrot.lane.b32.xlu0 %v10384_v59, %s9734_s23 }
 0x6e0   : > { %2391 = vmax.xlane.f32.xlu1 %v2390_v22 }
 0x6e2   : > { %2388 = vmax.xlane.f32.xlu0 %v2387_v15 }
 0x6e6   : > { %2385 = vmax.xlane.f32.xlu0 %v2384_v28 }
 0x6ea   : > { %2394 = vmax.xlane.f32.xlu0 %v2393_v47 }
 0x6ee   : > { %2400 = vmax.xlane.f32.xlu0 %v2399_v36 }
 0x6f1   : > { %2713 = vrot.lane.b32.xlu1 %v10445_v20, %s9735_s28 }
 0x6f5   : > { %2711 = vrot.lane.b32.xlu1 %v10429_v51, %s9735_s28 }
 0x704   : > { %2530 = vrot.lane.b32.xlu0 %v10358_v2, %s9734_s23  ;;  %s12160_s23 = scalar_lea.vmem %s13769_s24, %s8409_s29  ;;  %s13881_s29 = sld [smem:[#allocation68_spill]] }
 0x70a   : > { %s13882_s18 = smov %s13881_s29 }
 0x719   : > { %2397 = vmax.xlane.f32.xlu1 %v2396_v7 }
 0x734   : > { %v2383_v62 = vpop.xlane.xlu1 %2382 }
 0x735   : > { %v2403_v37 = vsub.f32 %v8693_v55, %v2383_v62 }
 0x736   : > { %v2380_v19 = vpop.xlane.xlu0 %2379 }
 0x737   : > { %v2412_v57 = vmul.f32 1.442695, %v2403_v37  ;;  %v2402_v35 = vsub.f32 %v2339_v8, %v2380_v19 }
 0x738   : > { %v2533_v28 = vpop.permute.xlu1 %2532 }
 0x739   : > { %9057 = vpow2.f32 %v2412_v57  ;;  %v2410_v22 = vmul.f32 1.442695, %v2402_v35 }
 0x73a   : > { %v2535_v15 = vpop.permute.xlu0 %2534 }
 0x73b   : > { %9059 = vpow2.f32 %v2410_v22  ;;  %8713 = vmatprep.subr.mxu1 %v2535_v15 }
 0x73c   : > { %8714 = vmatpush3.msra.mxu1 %v2535_v15 }
 0x73d   : > { %8715 = vmatprep.subr.mxu1 %v2533_v28 }
 0x73e   : > { %8716 = vmatpush3.msra.mxu1 %v2533_v28 }
 0x746   : > { %v9058_v47 = vpop.eup %9057 }
 0x747   : > { %v2429_v36 = vsel %vm13702_vm1, %v9058_v47, 0.0 }
 0x748   : > { %v10787_v25 = vpop.eup %9059  ;;  %2430 = vadd.xlane.f32.xlu0 %v2429_v36 }
 0x749   : > { %v2426_v55 = vsel %vm13702_vm1, %v10787_v25, 0.0 }
 0x74a   : > { %2427 = vadd.xlane.f32.xlu1 %v2426_v55 }
 0x769   : > { %v2392_v8 = vpop.xlane.xlu1 %2391 }
 0x76a   : > { %v2406_v37 = vsub.f32 %v2359_v60, %v2392_v8 }
 0x76b   : > { %v2389_v7 = vpop.xlane.xlu0 %2388 }
 0x76c   : > { %v2405_v62 = vsub.f32 %v8696_v5, %v2389_v7  ;;  %v2418_v22 = vmul.f32 1.442695, %v2406_v37 }
 0x76d   : > { %v10791_v60 = vpop.permute.xlu1 %2713 }
 0x76e   : > { %v2416_v19 = vmul.f32 1.442695, %v2405_v62 }
 0x76f   : > { %v2386_v57 = vpop.xlane.xlu0 %2385 }
 0x770   : > { %9061 = vpow2.f32 %v2416_v19  ;;  %v2404_v35 = vsub.f32 %v2349_v41, %v2386_v57 }
 0x771   : > { %v10802_v62 = vpop.permute.xlu1 %2711 }
 0x772   : > { %v2414_v15 = vmul.f32 1.442695, %v2404_v35 }
 0x773   : > { %v2395_v28 = vpop.xlane.xlu0 %2394 }
 0x774   : > { %9063 = vpow2.f32 %v2414_v15  ;;  %v2407_v0 = vsub.f32 %v8699_v50, %v2395_v28 }
 0x775   : > { %9065 = vpow2.f32 %v2418_v22 }
 0x776   : > { %v2420_v49 = vmul.f32 1.442695, %v2407_v0 }
 0x777   : > { %v2401_v36 = vpop.xlane.xlu0 %2400 }
 0x778   : > { %9067 = vpow2.f32 %v2420_v49  ;;  %v2409_v40 = vsub.f32 %v8702_v13, %v2401_v36 }
 0x77a   : > { %v2424_v54 = vmul.f32 1.442695, %v2409_v40 }
 0x77b   : > { %v2531_v55 = vpop.permute.xlu0 %2530 }
 0x77c   : > { %9069 = vpow2.f32 %v2424_v54  ;;  %8717 = vmatprep.subr.mxu1 %v2531_v55 }
 0x77d   : > { %v9062_v5 = vpop.eup %9061  ;;  %8718 = vmatpush3.msra.mxu1 %v2531_v55 }
 0x77e   : > { %8731 = vmatprep.subr.msk.mxu1 %vm793_vm0, %v10791_v60  ;;  %v2435_v41 = vsel %vm13702_vm1, %v9062_v5, 0.0 }
 0x77f   : > { %2436 = vadd.xlane.f32.xlu0 %v2435_v41 }
 0x781   : > { %v9064_v50 = vpop.eup %9063 }
 0x782   : > { %v2432_v0 = vsel %vm13702_vm1, %v9064_v50, 0.0  ;;  %v9066_v8 = vpop.eup %9065 }
 0x783   : > { %2433 = vadd.xlane.f32.xlu1 %v2432_v0  ;;  %v2438_v54 = vsel %vm13702_vm1, %v9066_v8, 0.0 }
 0x785   : > { %v9068_v49 = vpop.eup %9067 }
 0x786   : > { %v2441_v40 = vsel %vm13702_vm1, %v9068_v49, 0.0 }
 0x787   : > { %2442 = vadd.xlane.f32.xlu0 %v2441_v40  ;;  %2439 = vadd.xlane.f32.xlu1 %v2438_v54 }
 0x789   : > { %v9070_v13 = vpop.eup %9069 }
 0x78a   : > { %v2447_v7 = vsel %vm13702_vm1, %v9070_v13, 0.0 }
 0x78b   : > { %2448 = vadd.xlane.f32.xlu0 %v2447_v7 }
 0x798   : > { %2707 = vrot.lane.b32.xlu1 %v10393_v18, %s9735_s28 }
 0x7a1   : > { %2709 = vrot.lane.b32.xlu0 %v10414_v31, %s9735_s28 }
 0x7a2   : > { %v2398_v37 = vpop.xlane.xlu1 %2397 }
 0x7a3   : > { %v2408_v19 = vsub.f32 %v10782_v21, %v2398_v37 }
 0x7a5   : > { %v2422_v57 = vmul.f32 1.442695, %v2408_v19 }
 0x7a7   : > { %9071 = vpow2.f32 %v2422_v57 }
 0x7b4   : > { %v10807_v35 = vpop.eup %9071 }
 0x7b5   : > { %v2444_v22 = vsel %vm13702_vm1, %v10807_v35, 0.0 }
 0x7bc   : > { %2445 = vadd.xlane.f32.xlu1 %v2444_v22 }
 0x7cd   : > { %2703 = vrot.lane.b32.xlu1 %v10356_v63, %s9735_s28 }
 0x7d1   : > { %v2431_v15 = vpop.xlane.xlu0 %2430 }
 0x7d2   : > { %9073 = vrcp.f32 %v2431_v15 }
 0x7d3   : > { %v2428_v28 = vpop.xlane.xlu1 %2427 }
 0x7d4   : > { %9075 = vrcp.f32 %v2428_v28 }
 0x7df   : > { %v9074_v36 = vpop.eup %9073 }
 0x7e0   : > { %v2459_v55 = vmul.f32 %v9074_v36, %v9058_v47 }
 0x7e1   : > { %v9076_v0 = vpop.eup %9075 }
 0x7e2   : > { %v10814_v41 = vmul.f32 %v2459_v55, %v10602_v44  ;;  %v2458_v40 = vmul.f32 %v9076_v0, %v10787_v25 }
 0x7e4   : > { %v2477_v21 = vsel %vm13702_vm1, %v10814_v41, 0.0  ;;  %v10820_v54 = vmul.f32 %v2458_v40, %v10605_v53 }
 0x7e5   : > { %2478 = vadd.xlane.f32.xlu0 %v2477_v21 }
 0x7e6   : > { %v2474_v7 = vsel %vm13702_vm1, %v10820_v54, 0.0 }
 0x7f1   : > { %2475 = vadd.xlane.f32.xlu1 %v2474_v7 }
 0x7fb   : > { %2705 = vrot.lane.b32.xlu0 %v10382_v32, %s9735_s28 }
 0x808   : > { %v2437_v47 = vpop.xlane.xlu0 %2436 }
 0x809   : > { %9077 = vrcp.f32 %v2437_v47 }
 0x80c   : > { %v2434_v44 = vpop.xlane.xlu1 %2433 }
 0x80d   : > { %9079 = vrcp.f32 %v2434_v44 }
 0x810   : > { %v2443_v37 = vpop.xlane.xlu0 %2442  ;;  %v2440_v19 = vpop.xlane.xlu1 %2439 }
 0x811   : > { %9081 = vrcp.f32 %v2443_v37 }
 0x812   : > { %9083 = vrcp.f32 %v2440_v19 }
 0x814   : > { %v2449_v57 = vpop.xlane.xlu0 %2448 }
 0x815   : > { %9085 = vrcp.f32 %v2449_v57 }
 0x816   : > { %v9078_v25 = vpop.eup %9077 }
 0x817   : > { %v2461_v53 = vmul.f32 %v9078_v25, %v9062_v5 }
 0x818   : > { %v2710_v25 = vpop.permute.xlu0 %2709 }
 0x819   : > { %v10827_v22 = vmul.f32 %v2461_v53, %v10643_v42 }
 0x81a   : > { %v9080_v15 = vpop.eup %9079 }
 0x81b   : > { %v2483_v28 = vsel %vm13702_vm1, %v10827_v22, 0.0  ;;  %v2460_v36 = vmul.f32 %v9080_v15, %v9064_v50 }
 0x81c   : > { %2484 = vadd.xlane.f32.xlu0 %v2483_v28 }
 0x81d   : > { %v10832_v55 = vmul.f32 %v2460_v36, %v10616_v4 }
 0x81e   : > { %v9082_v21 = vpop.eup %9081 }
 0x81f   : > { %v9084_v0 = vpop.eup %9083  ;;  %v2480_v40 = vsel %vm13702_vm1, %v10832_v55, 0.0  ;;  %v2463_v7 = vmul.f32 %v9082_v21, %v9068_v49 }
 0x820   : > { %2481 = vadd.xlane.f32.xlu1 %v2480_v40  ;;  %v2462_v5 = vmul.f32 %v9084_v0, %v9066_v8 }
 0x821   : > { %v10837_v42 = vmul.f32 %v2463_v7, %v10650_v56 }
 0x822   : > { %v9086_v47 = vpop.eup %9085  ;;  %v10840_v44 = vmul.f32 %v2462_v5, %v10626_v9  ;;  %v2708_v9 = vpop.permute.xlu1 %2707 }
 0x823   : > { %v2489_v50 = vsel %vm13702_vm1, %v10837_v42, 0.0  ;;  %v2465_v4 = vmul.f32 %v9086_v47, %v9070_v13 }
 0x824   : > { %2490 = vadd.xlane.f32.xlu0 %v2489_v50  ;;  %v2486_v37 = vsel %vm13702_vm1, %v10840_v44, 0.0 }
 0x825   : > { %2487 = vadd.xlane.f32.xlu1 %v2486_v37  ;;  %v10847_v49 = vmul.f32 %v2465_v4, %v10659_v33 }
 0x827   : > { %v2495_v56 = vsel %vm13702_vm1, %v10847_v49, 0.0 }
 0x828   : > { %2496 = vadd.xlane.f32.xlu0 %v2495_v56 }
 0x836   : > { %2699 = vrot.lane.b32.xlu1 %v10329_v6, %s9735_s28 }
 0x83e   : > { %2701 = vrot.lane.b32.xlu0 %v10342_v23, %s9735_s28 }
 0x842   : > { %2683 = vrot.lane.b32.xlu0 %v10327_v12, %s9735_s28 }
 0x845   : > { %v2446_v8 = vpop.xlane.xlu1 %2445 }
 0x846   : > { %9087 = vrcp.f32 %v2446_v8  ;;  %2687 = vrot.lane.b32.xlu0 %v10525_v43, %s9735_s28 }
 0x849   : > { %v2704_v53 = vpop.permute.xlu1 %2703 }
 0x84a   : > { %2691 = vrot.lane.b32.xlu0 %v10539_v46, %s9735_s28 }
 0x84e   : > { %2695 = vrot.lane.b32.xlu0 %v10549_v58, %s9735_s28 }
 0x852   : > { %3008 = vrot.lane.b32.xlu0 %v10447_v11, %s9735_s28 }
 0x853   : > { %v9088_v33 = vpop.eup %9087 }
 0x854   : > { %v2464_v13 = vmul.f32 %v9088_v33, %v10807_v35 }
 0x856   : > { %3004 = vrot.lane.b32.xlu0 %v10421_v39, %s9735_s28  ;;  %v10869_v19 = vmul.f32 %v2464_v13, %v10669_v1 }
 0x858   : > { %v2492_v57 = vsel %vm13702_vm1, %v10869_v19, 0.0 }
 0x85a   : > { %2493 = vadd.xlane.f32.xlu1 %v2492_v57 }
 0x86b   : > { %2685 = vrot.lane.b32.xlu1 %v10520_v30, %s9735_s28 }
 0x86e   : > { %v2479_v35 = vpop.xlane.xlu0 %2478 }
 0x86f   : > { %2689 = vrot.lane.b32.xlu1 %v10536_v45, %s9735_s28  ;;  %v2499_v1 = vadd.f32 1e-10, %v2479_v35 }
 0x871   : > { %9089 = vrcp.f32 %v2499_v1 }
 0x873   : > { %2693 = vrot.lane.b32.xlu1 %v10547_v10, %s9735_s28 }
 0x877   : > { %2697 = vrot.lane.b32.xlu1 %v10555_v34, %s9735_s28 }
 0x87a   : > { %v2476_v15 = vpop.xlane.xlu1 %2475 }
 0x87b   : > { %3010 = vrot.lane.b32.xlu1 %v10436_v3, %s9735_s28  ;;  %v2498_v28 = vadd.f32 1e-10, %v2476_v15 }
 0x87d   : > { %9091 = vrcp.f32 %v2498_v28 }
 0x87e   : > { %v9090_v36 = vpop.eup %9089 }
 0x87f   : > { %3006 = vrot.lane.b32.xlu1 %v10402_v26, %s9735_s28  ;;  %v2515_v40 = vmul.f32 %v9090_v36, %v10814_v41  ;;  %v2706_v41 = vpop.permute.xlu0 %2705 }
 0x883   : > { %3002 = vrot.lane.b32.xlu1 %v10376_v48, %s9735_s28 }
 0x88a   : > { %v9092_v21 = vpop.eup %9091 }
 0x88b   : > { %v2514_v0 = vmul.f32 %v9092_v21, %v10820_v54 }
 0x88d   : > { %8719 = vmatprep.mubr.msk.f32.mxu1 %vm13702_vm1, %v2514_v0 }
 0x88e   : > { %8720 = vmatmul.mubr.msk.f32.vlgmr.msra.gmra.mxu1 %vm13702_vm1, %v2515_v40 }
 0x88f   : > { %8732 = vmatpush3.xpose.msk.msra.mxu1 %vm793_vm0, %v10791_v60 }
 0x890   : > { %8733 = vmatprep.subr.msk.mxu1 %vm793_vm0, %v10802_v62 }
 0x893   : > { %8734 = vmatpush3.xpose.msk.msra.mxu1 %vm793_vm0, %v10802_v62 }
 0x894   : > { %8735 = vmatprep.subr.msk.mxu1 %vm793_vm0, %v2710_v25 }
 0x897   : > { %8736 = vmatpush3.xpose.msk.msra.mxu1 %vm793_vm0, %v2710_v25 }
 0x898   : > { %8737 = vmatprep.subr.msk.mxu1 %vm793_vm0, %v2708_v9 }
 0x89b   : > { %8738 = vmatpush3.xpose.msk.msra.mxu1 %vm793_vm0, %v2708_v9 }
 0x89c   : > { %8739 = vmatprep.subr.msk.mxu1 %vm793_vm0, %v2706_v41 }
 0x89f   : > { %8740 = vmatpush3.xpose.msk.msra.mxu1 %vm793_vm0, %v2706_v41 }
 0x8a0   : > { %8741 = vmatprep.subr.msk.mxu1 %vm793_vm0, %v2704_v53 }
 0x8a3   : > { %8742 = vmatpush3.xpose.msk.msra.mxu1 %vm793_vm0, %v2704_v53 }
 0x8a5   : > { %v2485_v60 = vpop.xlane.xlu0 %2484 }
 0x8a6   : > { %v2501_v54 = vadd.f32 1e-10, %v2485_v60 }
 0x8a8   : > { %9093 = vrcp.f32 %v2501_v54 }
 0x8a9   : > { %v2482_v62 = vpop.xlane.xlu1 %2481 }
 0x8aa   : > { %v2500_v7 = vadd.f32 1e-10, %v2482_v62 }
 0x8ac   : > { %9095 = vrcp.f32 %v2500_v7 }
 0x8ad   : > { %v2491_v5 = vpop.xlane.xlu0 %2490 }
 0x8ae   : > { %v2503_v47 = vadd.f32 1e-10, %v2491_v5  ;;  %v2488_v50 = vpop.xlane.xlu1 %2487 }
 0x8af   : > { %v2502_v4 = vadd.f32 1e-10, %v2488_v50 }
 0x8b0   : > { %9097 = vrcp.f32 %v2503_v47 }
 0x8b1   : > { %9099 = vrcp.f32 %v2502_v4  ;;  %v2497_v37 = vpop.xlane.xlu0 %2496 }
 0x8b2   : > { %v2700_v9 = vpop.permute.xlu1 %2699 }
 0x8b5   : > { %v2702_v56 = vpop.permute.xlu0 %2701  ;;  %v9094_v8 = vpop.eup %9093 }
 0x8b6   : > { %8743 = vmatprep.subr.msk.mxu1 %vm793_vm0, %v2702_v56  ;;  %v2517_v57 = vmul.f32 %v9094_v8, %v10827_v22 }
 0x8b7   : > { %8744 = vmatpush3.xpose.msk.msra.mxu1 %vm793_vm0, %v2702_v56 }
 0x8b8   : > { %8745 = vmatprep.subr.msk.mxu1 %vm793_vm0, %v2700_v9 }
 0x8b9   : > { %v9096_v33 = vpop.eup %9095  ;;  %v2684_v15 = vpop.permute.xlu0 %2683 }
 0x8ba   : > { %v2516_v13 = vmul.f32 %v9096_v33, %v10832_v55  ;;  %v2505_v55 = vadd.f32 1e-10, %v2497_v37 }
 0x8bb   : > { %8746 = vmatpush3.xpose.msk.msra.mxu1 %vm793_vm0, %v2700_v9 }
 0x8bc   : > { %8722 = vmatprep.mubr.msk.f32.mxu1 %vm13702_vm1, %v2516_v13  ;;  %9101 = vrcp.f32 %v2505_v55 }
 0x8bd   : > { %v9098_v25 = vpop.eup %9097  ;;  %8723 = vmatmul.mubr.msk.f32.gmra.mxu1 %vm13702_vm1, %v2517_v57  ;;  %v2688_v22 = vpop.permute.xlu0 %2687 }
 0x8be   : > { %v9100_v35 = vpop.eup %9099  ;;  %v2519_v53 = vmul.f32 %v9098_v25, %v10837_v42 }
 0x8bf   : > { %v2518_v1 = vmul.f32 %v9100_v35, %v10840_v44 }
 0x8c1   : > { %8725 = vmatprep.mubr.msk.f32.mxu1 %vm13702_vm1, %v2518_v1  ;;  %v2692_v0 = vpop.permute.xlu0 %2691 }
 0x8c2   : > { %8726 = vmatmul.mubr.msk.f32.gmra.mxu1 %vm13702_vm1, %v2519_v53 }
 0x8c5   : > { %v2696_v60 = vpop.permute.xlu0 %2695 }
 0x8c9   : > { %v9102_v54 = vpop.eup %9101  ;;  %v3009_v5 = vpop.permute.xlu0 %3008 }
 0x8ca   : > { %v2521_v7 = vmul.f32 %v9102_v54, %v10847_v49 }
 0x8e3   : > { %v2494_v28 = vpop.xlane.xlu1 %2493 }
 0x8e4   : > { %v2504_v36 = vadd.f32 1e-10, %v2494_v28 }
 0x8e6   : > { %9103 = vrcp.f32 %v2504_v36 }
 0x8e7   : > { %v2686_v21 = vpop.permute.xlu1 %2685 }
 0x8eb   : > { %v2690_v40 = vpop.permute.xlu1 %2689 }
 0x8ef   : > { %v2694_v41 = vpop.permute.xlu1 %2693 }
 0x8f3   : > { %v9104_v42 = vpop.eup %9103  ;;  %v2698_v62 = vpop.permute.xlu1 %2697 }
 0x8f4   : > { %v2520_v44 = vmul.f32 %v9104_v42, %v10869_v19  ;;  %v3005_v19 = vpop.permute.xlu0 %3004 }
 0x8f6   : > { %8728 = vmatprep.mubr.msk.f32.mxu1 %vm13702_vm1, %v2520_v44 }
 0x8f7   : > { %8729 = vmatmul.mubr.msk.f32.gmra.mxu1 %vm13702_vm1, %v2521_v7  ;;  %v3011_v47 = vpop.permute.xlu1 %3010 }
 0x8f8   : > { %8747 = vmatprep.mubr.msk.f32.mxu1 %vm793_vm0, %v2684_v15  ;;  %8759 = vmatprep.subr.mxu0 %v3011_v47 }
 0x8f9   : > { %8760 = vmatpush3.msra.mxu0 %v3011_v47 }
 0x8fa   : > { %8761 = vmatprep.subr.mxu0 %v3009_v5 }
 0x8fb   : > { %8748 = vmatmul.mubr.msk.f32.vlgmr.msra.gmra.mxu1 %vm793_vm0, %v2686_v21  ;;  %8762 = vmatpush3.msra.mxu0 %v3009_v5  ;;  %v3007_v50 = vpop.permute.xlu1 %3006 }
 0x8fc   : > { %8750 = vmatprep.mubr.msk.f32.mxu1 %vm793_vm0, %v2688_v22  ;;  %8763 = vmatprep.subr.mxu0 %v3007_v50 }
 0x8fd   : > { %8764 = vmatpush3.msra.mxu0 %v3007_v50 }
 0x8fe   : > { %8765 = vmatprep.subr.mxu0 %v3005_v19 }
 0x8ff   : > { %8751 = vmatmul.mubr.msk.f32.gmra.mxu1 %vm793_vm0, %v2690_v40  ;;  %8766 = vmatpush3.msra.mxu0 %v3005_v19  ;;  %v3003_v49 = vpop.permute.xlu1 %3002 }
 0x900   : > { %8753 = vmatprep.mubr.msk.f32.mxu1 %vm793_vm0, %v2692_v0  ;;  %8767 = vmatprep.subr.mxu0 %v3003_v49 }
 0x901   : > { %8768 = vmatpush3.msra.mxu0 %v3003_v49 }
 0x903   : > { %8754 = vmatmul.mubr.msk.f32.gmra.mxu1 %vm793_vm0, %v2694_v41 }
 0x904   : > { %8756 = vmatprep.mubr.msk.f32.mxu1 %vm793_vm0, %v2696_v60 }
 0x907   : > { %8757 = vmatmul.mubr.msk.f32.gmra.mxu1 %vm793_vm0, %v2698_v62 }
 0x94e   : > { %v10929_v4 = vpop.f32.mrf.mxu1 }
 0x950   : > { %v10931_v37 = vpop.f32.mrf.mxu1 }
 0x97d   : > { %v10933_v56 = vpop.f32.mrf.mxu1 }
 0x97f   : > { %v10935_v9 = vpop.f32.mrf.mxu1 }
 0x982   : > { %v10937_v8 = vpop.f32.mrf.mxu1 }
 0x984   : > { %v10939_v33 = vpop.f32.mrf.mxu1 }
 0x9b7   : > { %v10941_v13 = vpop.f32.mrf.mxu1 }
 0x9b9   : > { %v10943_v57 = vpop.f32.mrf.mxu1 }
 0x9bb   : > { %v8749_v25 = vpop.f32.mrf.mxu1 }
 0x9bc   : > { %v2855_v35 = vsel %vm13702_vm1, %v8749_v25, -inf }
 0x9bd   : > { %2856 = vmax.xlane.f32.xlu1 %v2855_v35  ;;  %v2813_v53 = vpop.f32.mrf.mxu1 }
 0x9be   : > { %v2852_v1 = vsel %vm13702_vm1, %v2813_v53, -inf }
 0x9bf   : > { %2853 = vmax.xlane.f32.xlu0 %v2852_v1  ;;  %v8752_v15 = vpop.f32.mrf.mxu1 }
 0x9c0   : > { %v2861_v21 = vsel %vm13702_vm1, %v8752_v15, -inf }
 0x9c1   : > { %v2823_v55 = vpop.f32.mrf.mxu1 }
 0x9c2   : > { %v2858_v0 = vsel %vm13702_vm1, %v2823_v55, -inf }
 0x9c3   : > { %v8755_v28 = vpop.f32.mrf.mxu1 }
 0x9c4   : > { %v2867_v40 = vsel %vm13702_vm1, %v8755_v28, -inf }
 0x9c5   : > { %v2833_v36 = vpop.f32.mrf.mxu1 }
 0x9c6   : > { %v2864_v22 = vsel %vm13702_vm1, %v2833_v36, -inf }
 0x9c7   : > { %v8758_v41 = vpop.f32.mrf.mxu1 }
 0x9c8   : > { %v2873_v60 = vsel %vm13702_vm1, %v8758_v41, -inf }
 0x9c9   : > { %v10962_v54 = vpop.f32.mrf.mxu1 }
 0x9ca   : > { %v2870_v42 = vsel %vm13702_vm1, %v10962_v54, -inf }
 0x9ce   : > { %2998 = vrot.lane.b32.xlu1 %v10349_v29, %s9735_s28 }
 0x9d5   : > { %3000 = vrot.lane.b32.xlu0 %v10384_v59, %s9735_s28 }
 0x9f2   : > { %2865 = vmax.xlane.f32.xlu1 %v2864_v22 }
 0x9f4   : > { %2862 = vmax.xlane.f32.xlu0 %v2861_v21 }
 0x9f8   : > { %2859 = vmax.xlane.f32.xlu0 %v2858_v0 }
 0x9fc   : > { %2868 = vmax.xlane.f32.xlu0 %v2867_v40 }
 0xa00   : > { %2874 = vmax.xlane.f32.xlu0 %v2873_v60 }
 0xa03   : > { %3179 = vrot.lane.b32.xlu1 %v10445_v20, %s9736_s25 }
 0xa07   : > { %3177 = vrot.lane.b32.xlu1 %v10429_v51, %s9736_s25 }
 0xa16   : > { %2996 = vrot.lane.b32.xlu0 %v10358_v2, %s9735_s28  ;;  %s13880_s28 = sld [smem:[#allocation22_spill]] }
 0xa1c   : > { %p13884_p9 = scmp.ne.s32.totalorder %s13880_s28, 0 }
 0xa2b   : > { %2871 = vmax.xlane.f32.xlu1 %v2870_v42 }
 0xa46   : > { %v2857_v62 = vpop.xlane.xlu1 %2856 }
 0xa47   : > { %v2877_v44 = vsub.f32 %v8749_v25, %v2857_v62 }
 0xa48   : > { %v2854_v7 = vpop.xlane.xlu0 %2853 }
 0xa49   : > { %v2886_v5 = vmul.f32 1.442695, %v2877_v44  ;;  %v2876_v47 = vsub.f32 %v2813_v53, %v2854_v7 }
 0xa4a   : > { %v2999_v51 = vpop.permute.xlu1 %2998 }
 0xa4b   : > { %9105 = vpow2.f32 %v2886_v5  ;;  %v2884_v50 = vmul.f32 1.442695, %v2876_v47 }
 0xa4c   : > { %v3001_v20 = vpop.permute.xlu0 %3000 }
 0xa4d   : > { %9107 = vpow2.f32 %v2884_v50  ;;  %8769 = vmatprep.subr.mxu0 %v3001_v20 }
 0xa4e   : > { %8770 = vmatpush3.msra.mxu0 %v3001_v20 }
 0xa4f   : > { %8771 = vmatprep.subr.mxu0 %v2999_v51 }
 0xa50   : > { %8772 = vmatpush3.msra.mxu0 %v2999_v51 }
 0xa58   : > { %v9106_v19 = vpop.eup %9105 }
 0xa59   : > { %v2903_v49 = vsel %vm13702_vm1, %v9106_v19, 0.0 }
 0xa5a   : > { %v10967_v35 = vpop.eup %9107  ;;  %2904 = vadd.xlane.f32.xlu0 %v2903_v49 }
 0xa5b   : > { %v2900_v25 = vsel %vm13702_vm1, %v10967_v35, 0.0 }
 0xa5c   : > { %2901 = vadd.xlane.f32.xlu1 %v2900_v25 }
 0xa7b   : > { %v2866_v53 = vpop.xlane.xlu1 %2865 }
 0xa7c   : > { %v2880_v21 = vsub.f32 %v2833_v36, %v2866_v53 }
 0xa7d   : > { %v2863_v1 = vpop.xlane.xlu0 %2862 }
 0xa7e   : > { %v2879_v22 = vsub.f32 %v8752_v15, %v2863_v1  ;;  %v2892_v42 = vmul.f32 1.442695, %v2880_v21 }
 0xa7f   : > { %v10971_v36 = vpop.permute.xlu1 %3179 }
 0xa80   : > { %v2890_v0 = vmul.f32 1.442695, %v2879_v22 }
 0xa81   : > { %v2860_v40 = vpop.xlane.xlu0 %2859 }
 0xa82   : > { %9109 = vpow2.f32 %v2890_v0  ;;  %v2878_v60 = vsub.f32 %v2823_v55, %v2860_v40 }
 0xa83   : > { %v10988_v0 = vpop.permute.xlu1 %3177 }
 0xa84   : > { %v2888_v62 = vmul.f32 1.442695, %v2878_v60 }
 0xa85   : > { %v2869_v44 = vpop.xlane.xlu0 %2868 }
 0xa86   : > { %9111 = vpow2.f32 %v2888_v62  ;;  %v2881_v7 = vsub.f32 %v8755_v28, %v2869_v44 }
 0xa87   : > { %9113 = vpow2.f32 %v2892_v42 }
 0xa88   : > { %v2894_v5 = vmul.f32 1.442695, %v2881_v7 }
 0xa89   : > { %v2875_v47 = vpop.xlane.xlu0 %2874 }
 0xa8a   : > { %9115 = vpow2.f32 %v2894_v5  ;;  %v2883_v50 = vsub.f32 %v8758_v41, %v2875_v47  ;;  %v11000_v47 = vld [vmem:[%s10022_s2 + $0x8] sm:$0xff] }
 0xa8c   : > { %v2898_v20 = vmul.f32 1.442695, %v2883_v50 }
 0xa8d   : > { %v2997_v51 = vpop.permute.xlu0 %2996 }
 0xa8e   : > { %9117 = vpow2.f32 %v2898_v20  ;;  %8773 = vmatprep.subr.mxu0 %v2997_v51 }
 0xa8f   : > { %v9110_v15 = vpop.eup %9109  ;;  %8774 = vmatpush3.msra.mxu0 %v2997_v51 }
 0xa90   : > { %8787 = vmatprep.subr.msk.mxu0 %vm793_vm0, %v10971_v36  ;;  %v2909_v55 = vsel %vm13702_vm1, %v9110_v15, 0.0 }
 0xa91   : > { %2910 = vadd.xlane.f32.xlu0 %v2909_v55  ;;  %v11009_v55 = vld [vmem:[%s10022_s2] sm:$0xff] }
 0xa93   : > { %v9112_v28 = vpop.eup %9111 }
 0xa94   : > { %v2906_v49 = vsel %vm13702_vm1, %v9112_v28, 0.0  ;;  %v10977_v25 = vpop.eup %9113 }
 0xa95   : > { %2907 = vadd.xlane.f32.xlu1 %v2906_v49  ;;  %v2912_v1 = vsel %vm13702_vm1, %v10977_v25, 0.0 }
 0xa97   : > { %v9116_v41 = vpop.eup %9115 }
 0xa98   : > { %v2915_v53 = vsel %vm13702_vm1, %v9116_v41, 0.0 }
 0xa99   : > { %2916 = vadd.xlane.f32.xlu0 %v2915_v53  ;;  %2913 = vadd.xlane.f32.xlu1 %v2912_v1 }
 0xa9b   : > { %v10982_v22 = vpop.eup %9117 }
 0xa9c   : > { %v2921_v21 = vsel %vm13702_vm1, %v10982_v22, 0.0 }
 0xa9d   : > { %2922 = vadd.xlane.f32.xlu0 %v2921_v21 }
 0xaaa   : > { %3173 = vrot.lane.b32.xlu1 %v10393_v18, %s9736_s25 }
 0xab3   : > { %3175 = vrot.lane.b32.xlu0 %v10414_v31, %s9736_s25 }
 0xab4   : > { %v2872_v40 = vpop.xlane.xlu1 %2871 }
 0xab5   : > { %v2882_v60 = vsub.f32 %v10962_v54, %v2872_v40 }
 0xab7   : > { %v2896_v42 = vmul.f32 1.442695, %v2882_v60 }
 0xab9   : > { %9119 = vpow2.f32 %v2896_v42  ;;  %v11019_v42 = vld [vmem:[%s10022_s2 + $0x18] sm:$0xff] }
 0xac6   : > { %v10993_v62 = vpop.eup %9119 }
 0xac7   : > { %v2918_v44 = vsel %vm13702_vm1, %v10993_v62, 0.0 }
 0xace   : > { %2919 = vadd.xlane.f32.xlu1 %v2918_v44 }
 0xadf   : > { %3169 = vrot.lane.b32.xlu1 %v10356_v63, %s9736_s25 }
 0xae3   : > { %v2905_v18 = vpop.xlane.xlu0 %2904 }
 0xae4   : > { %9121 = vrcp.f32 %v2905_v18 }
 0xae5   : > { %v2902_v7 = vpop.xlane.xlu1 %2901 }
 0xae6   : > { %9123 = vrcp.f32 %v2902_v7 }
 0xaf1   : > { %v9122_v31 = vpop.eup %9121 }
 0xaf2   : > { %v2933_v5 = vmul.f32 %v9122_v31, %v9106_v19  ;;  %v11027_v31 = vld [vmem:[%s10022_s2 + $0x10] sm:$0xff] }
 0xaf3   : > { %v9124_v20 = vpop.eup %9123 }
 0xaf4   : > { %v11003_v54 = vmul.f32 %v11000_v47, %v2933_v5  ;;  %v2932_v51 = vmul.f32 %v9124_v20, %v10967_v35 }
 0xaf6   : > { %v2951_v50 = vsel %vm13702_vm1, %v11003_v54, 0.0  ;;  %v11012_v63 = vmul.f32 %v11009_v55, %v2932_v51 }
 0xaf7   : > { %2952 = vadd.xlane.f32.xlu0 %v2951_v50 }
 0xaf8   : > { %v2948_v19 = vsel %vm13702_vm1, %v11012_v63, 0.0 }
 0xb03   : > { %2949 = vadd.xlane.f32.xlu1 %v2948_v19 }
 0xb0d   : > { %3171 = vrot.lane.b32.xlu0 %v10382_v32, %s9736_s25 }
 0xb1a   : > { %v2911_v49 = vpop.xlane.xlu0 %2910 }
 0xb1b   : > { %9125 = vrcp.f32 %v2911_v49  ;;  %v11036_v49 = vld [vmem:[%s10022_s2 + $0x28] sm:$0xff] }
 0xb1e   : > { %v2908_v53 = vpop.xlane.xlu1 %2907 }
 0xb1f   : > { %9127 = vrcp.f32 %v2908_v53 }
 0xb22   : > { %v2917_v1 = vpop.xlane.xlu0 %2916  ;;  %v2914_v35 = vpop.xlane.xlu1 %2913 }
 0xb23   : > { %9129 = vrcp.f32 %v2917_v1  ;;  %v11042_v1 = vld [vmem:[%s10022_s2 + $0x20] sm:$0xff] }
 0xb24   : > { %9131 = vrcp.f32 %v2914_v35 }
 0xb26   : > { %v2923_v21 = vpop.xlane.xlu0 %2922 }
 0xb27   : > { %9133 = vrcp.f32 %v2923_v21 }
 0xb28   : > { %v9126_v40 = vpop.eup %9125 }
 0xb29   : > { %v2935_v60 = vmul.f32 %v9126_v40, %v9110_v15 }
 0xb2b   : > { %v11022_v44 = vmul.f32 %v11019_v42, %v2935_v60 }
 0xb2c   : > { %v9128_v32 = vpop.eup %9127 }
 0xb2d   : > { %v2957_v18 = vsel %vm13702_vm1, %v11022_v44, 0.0  ;;  %v2934_v7 = vmul.f32 %v9128_v32, %v9112_v28 }
 0xb2e   : > { %2958 = vadd.xlane.f32.xlu0 %v2957_v18 }
 0xb2f   : > { %v11030_v5 = vmul.f32 %v11027_v31, %v2934_v7 }
 0xb30   : > { %v9130_v50 = vpop.eup %9129 }
 0xb31   : > { %v9132_v15 = vpop.eup %9131  ;;  %v2954_v20 = vsel %vm13702_vm1, %v11030_v5, 0.0  ;;  %v2937_v51 = vmul.f32 %v9130_v50, %v9116_v41  ;;  %v11053_v41 = vld [vmem:[%s10022_s2 + $0x38] sm:$0xff]  ;;  %v11074_v50 = vld [vmem:[%s10022_s2 + $0x30] sm:$0xff]  ;;  %s734_s2 = scalar_lea.vmem [#allocation11], %s8238_s26 }
 0xb32   : > { %2955 = vadd.xlane.f32.xlu1 %v2954_v20  ;;  %v2936_v19 = vmul.f32 %v9132_v15, %v10977_v25  ;;  %s8051_s27 = sshll.u32 %s734_s2, 4  ;;  %s8052_s27 = int_to_ptr.vmem [resolvable:$true] %s8051_s27 }
 0xb33   : > { %v11039_v28 = vmul.f32 %v11036_v49, %v2937_v51 }
 0xb34   : > { %v9134_v53 = vpop.eup %9133  ;;  %v11045_v35 = vmul.f32 %v11042_v1, %v2936_v19 }
 0xb35   : > { %v2963_v21 = vsel %vm13702_vm1, %v11039_v28, 0.0  ;;  %v2939_v40 = vmul.f32 %v9134_v53, %v10982_v22  ;;  %v3174_v22 = vpop.permute.xlu1 %3173 }
 0xb36   : > { %2964 = vadd.xlane.f32.xlu0 %v2963_v21  ;;  %v2960_v25 = vsel %vm13702_vm1, %v11045_v35, 0.0 }
 0xb37   : > { %2961 = vadd.xlane.f32.xlu1 %v2960_v25  ;;  %v11056_v60 = vmul.f32 %v11053_v41, %v2939_v40 }
 0xb39   : > { %v2969_v32 = vsel %vm13702_vm1, %v11056_v60, 0.0 }
 0xb3a   : > { %2970 = vadd.xlane.f32.xlu0 %v2969_v32 }
 0xb48   : > { %3165 = vrot.lane.b32.xlu1 %v10329_v6, %s9736_s25 }
 0xb50   : > { %3167 = vrot.lane.b32.xlu0 %v10342_v23, %s9736_s25 }
 0xb54   : > { %3149 = vrot.lane.b32.xlu0 %v10327_v12, %s9736_s25 }
 0xb57   : > { %v2920_v18 = vpop.xlane.xlu1 %2919 }
 0xb58   : > { %9135 = vrcp.f32 %v2920_v18  ;;  %3153 = vrot.lane.b32.xlu0 %v10525_v43, %s9736_s25  ;;  %v3176_v43 = vpop.permute.xlu0 %3175 }
 0xb5c   : > { %3157 = vrot.lane.b32.xlu0 %v10539_v46, %s9736_s25 }
 0xb60   : > { %3161 = vrot.lane.b32.xlu0 %v10549_v58, %s9736_s25  ;;  %v3170_v58 = vpop.permute.xlu1 %3169 }
 0xb65   : > { %v9136_v7 = vpop.eup %9135 }
 0xb66   : > { %v2938_v6 = vmul.f32 %v9136_v7, %v10993_v62 }
 0xb68   : > { %v11077_v23 = vmul.f32 %v11074_v50, %v2938_v6  ;;  %v11110_v6 = vld [vmem:[#allocation9 + $0x18] sm:$0xff] }
 0xb6a   : > { %v2966_v12 = vsel %vm13702_vm1, %v11077_v23, 0.0 }
 0xb6c   : > { %2967 = vadd.xlane.f32.xlu1 %v2966_v12 }
 0xb7d   : > { %3151 = vrot.lane.b32.xlu1 %v10520_v30, %s9736_s25 }
 0xb80   : > { %v2953_v46 = vpop.xlane.xlu0 %2952 }
 0xb81   : > { %3155 = vrot.lane.b32.xlu1 %v10536_v45, %s9736_s25  ;;  %v2973_v62 = vadd.f32 1e-10, %v2953_v46 }
 0xb83   : > { %9137 = vrcp.f32 %v2973_v62 }
 0xb85   : > { %3159 = vrot.lane.b32.xlu1 %v10547_v10, %s9736_s25  ;;  %v3172_v10 = vpop.permute.xlu0 %3171 }
 0xb89   : > { %3163 = vrot.lane.b32.xlu1 %v10555_v34, %s9736_s25 }
 0xb8c   : > { %v2950_v15 = vpop.xlane.xlu1 %2949 }
 0xb8d   : > { %v2972_v20 = vadd.f32 1e-10, %v2950_v15 }
 0xb8f   : > { %9139 = vrcp.f32 %v2972_v20 }
 0xb90   : > { %v9138_v51 = vpop.eup %9137 }
 0xb91   : > { %v2989_v45 = vmul.f32 %v9138_v51, %v11003_v54 }
 0xb9c   : > { %v9140_v19 = vpop.eup %9139 }
 0xb9d   : > { %v2988_v30 = vmul.f32 %v9140_v19, %v11012_v63 }
 0xb9f   : > { %8775 = vmatprep.mubr.msk.f32.mxu0 %vm13702_vm1, %v2988_v30 }
 0xba0   : > { %8776 = vmatmul.mubr.msk.f32.vlgmr.msra.gmra.mxu0 %vm13702_vm1, %v2989_v45 }
 0xba1   : > { %8788 = vmatpush3.xpose.msk.msra.mxu0 %vm793_vm0, %v10971_v36 }
 0xba2   : > { %8789 = vmatprep.subr.msk.mxu0 %vm793_vm0, %v10988_v0 }
 0xba5   : > { %8790 = vmatpush3.xpose.msk.msra.mxu0 %vm793_vm0, %v10988_v0 }
 0xba6   : > { %8791 = vmatprep.subr.msk.mxu0 %vm793_vm0, %v3176_v43 }
 0xba9   : > { %8792 = vmatpush3.xpose.msk.msra.mxu0 %vm793_vm0, %v3176_v43 }
 0xbaa   : > { %8793 = vmatprep.subr.msk.mxu0 %vm793_vm0, %v3174_v22 }
 0xbad   : > { %8794 = vmatpush3.xpose.msk.msra.mxu0 %vm793_vm0, %v3174_v22 }
 0xbae   : > { %8795 = vmatprep.subr.msk.mxu0 %vm793_vm0, %v3172_v10 }
 0xbb1   : > { %8796 = vmatpush3.xpose.msk.msra.mxu0 %vm793_vm0, %v3172_v10 }
 0xbb2   : > { %8797 = vmatprep.subr.msk.mxu0 %vm793_vm0, %v3170_v58 }
 0xbb5   : > { %8798 = vmatpush3.xpose.msk.msra.mxu0 %vm793_vm0, %v3170_v58 }
 0xbb7   : > { %v2959_v34 = vpop.xlane.xlu0 %2958 }
 0xbb8   : > { %v2975_v36 = vadd.f32 1e-10, %v2959_v34 }
 0xbba   : > { %9141 = vrcp.f32 %v2975_v36  ;;  %v11127_v36 = vld [vmem:[#allocation9 + $0x10] sm:$0xff] }
 0xbbb   : > { %v2956_v0 = vpop.xlane.xlu1 %2955 }
 0xbbc   : > { %v2974_v54 = vadd.f32 1e-10, %v2956_v0  ;;  %v11132_v0 = vld [vmem:[#allocation9 + $0x8] sm:$0xff] }
 0xbbe   : > { %9143 = vrcp.f32 %v2974_v54 }
 0xbbf   : > { %v2965_v63 = vpop.xlane.xlu0 %2964 }
 0xbc0   : > { %v2977_v53 = vadd.f32 1e-10, %v2965_v63  ;;  %v2962_v21 = vpop.xlane.xlu1 %2961 }
 0xbc1   : > { %v2976_v40 = vadd.f32 1e-10, %v2962_v21 }
 0xbc2   : > { %9145 = vrcp.f32 %v2977_v53 }
 0xbc3   : > { %9147 = vrcp.f32 %v2976_v40  ;;  %v2971_v25 = vpop.xlane.xlu0 %2970 }
 0xbc4   : > { %v3166_v22 = vpop.permute.xlu1 %3165 }
 0xbc7   : > { %v3168_v32 = vpop.permute.xlu0 %3167  ;;  %v9142_v18 = vpop.eup %9141 }
 0xbc8   : > { %8799 = vmatprep.subr.msk.mxu0 %vm793_vm0, %v3168_v32  ;;  %v2991_v43 = vmul.f32 %v9142_v18, %v11022_v44 }
 0xbc9   : > { %8800 = vmatpush3.xpose.msk.msra.mxu0 %vm793_vm0, %v3168_v32 }
 0xbca   : > { %8801 = vmatprep.subr.msk.mxu0 %vm793_vm0, %v3166_v22 }
 0xbcb   : > { %v9144_v7 = vpop.eup %9143  ;;  %v3150_v44 = vpop.permute.xlu0 %3149 }
 0xbcc   : > { %v2990_v12 = vmul.f32 %v9144_v7, %v11030_v5  ;;  %v2979_v5 = vadd.f32 1e-10, %v2971_v25 }
 0xbcd   : > { %8802 = vmatpush3.xpose.msk.msra.mxu0 %vm793_vm0, %v3166_v22 }
 0xbce   : > { %8778 = vmatprep.mubr.msk.f32.mxu0 %vm13702_vm1, %v2990_v12  ;;  %8843 = vmatprep.subr.mxu0 %v11110_v6  ;;  %9149 = vrcp.f32 %v2979_v5 }
 0xbcf   : > { %v9146_v46 = vpop.eup %9145  ;;  %8779 = vmatmul.mubr.msk.f32.gmra.mxu0 %vm13702_vm1, %v2991_v43 }
 0xbd0   : > { %v9148_v58 = vpop.eup %9147  ;;  %v2993_v62 = vmul.f32 %v9146_v46, %v11039_v28  ;;  %v3154_v28 = vpop.permute.xlu0 %3153 }
 0xbd1   : > { %v2992_v15 = vmul.f32 %v9148_v58, %v11045_v35 }
 0xbd3   : > { %8781 = vmatprep.mubr.msk.f32.mxu0 %vm13702_vm1, %v2992_v15 }
 0xbd4   : > { %8782 = vmatmul.mubr.msk.f32.gmra.mxu0 %vm13702_vm1, %v2993_v62 }
 0xbdb   : > { %v9150_v19 = vpop.eup %9149 }
 0xbdc   : > { %v2995_v34 = vmul.f32 %v9150_v19, %v11056_v60  ;;  %v11136_v60 = vld [vmem:[#allocation9] sm:$0xff] }
 0xbf5   : > { %v2968_v20 = vpop.xlane.xlu1 %2967 }
 0xbf6   : > { %v2978_v51 = vadd.f32 1e-10, %v2968_v20 }
 0xbf8   : > { %9151 = vrcp.f32 %v2978_v51 }
 0xbf9   : > { %v3152_v45 = vpop.permute.xlu1 %3151 }
 0xbfd   : > { %v3156_v35 = vpop.permute.xlu1 %3155 }
 0xc01   : > { %v3160_v54 = vpop.permute.xlu1 %3159 }
 0xc05   : > { %v9152_v30 = vpop.eup %9151  ;;  %v3164_v53 = vpop.permute.xlu1 %3163 }
 0xc06   : > { %v2994_v10 = vmul.f32 %v9152_v30, %v11077_v23  ;;  %v3158_v23 = vpop.permute.xlu0 %3157 }
 0xc08   : > { %8784 = vmatprep.mubr.msk.f32.mxu0 %vm13702_vm1, %v2994_v10 }
 0xc09   : > { %8785 = vmatmul.mubr.msk.f32.gmra.mxu0 %vm13702_vm1, %v2995_v34 }
 0xc0a   : > { %8803 = vmatprep.mubr.msk.f32.mxu0 %vm793_vm0, %v3150_v44  ;;  %v3162_v63 = vpop.permute.xlu0 %3161 }
 0xc0d   : > { %8804 = vmatmul.mubr.msk.f32.vlgmr.msra.gmra.mxu0 %vm793_vm0, %v3152_v45 }
 0xc0e   : > { %8806 = vmatprep.mubr.msk.f32.mxu0 %vm793_vm0, %v3154_v28  ;;  %8844 = vmatpush3.msra.mxu0 %v11110_v6 }
 0xc0f   : > { %8845 = vmatprep.subr.mxu0 %v11127_v36 }
 0xc10   : > { %8846 = vmatpush3.msra.mxu0 %v11127_v36 }
 0xc11   : > { %8807 = vmatmul.mubr.msk.f32.gmra.mxu0 %vm793_vm0, %v3156_v35  ;;  %8847 = vmatprep.subr.mxu0 %v11132_v0 }
 0xc12   : > { %8809 = vmatprep.mubr.msk.f32.mxu0 %vm793_vm0, %v3158_v23  ;;  %8848 = vmatpush3.msra.mxu0 %v11132_v0 }
 0xc13   : > { %8849 = vmatprep.subr.mxu0 %v11136_v60 }
 0xc14   : > { %8850 = vmatpush3.msra.mxu0 %v11136_v60 }
 0xc15   : > { %8810 = vmatmul.mubr.msk.f32.gmra.mxu0 %vm793_vm0, %v3160_v54 }
 0xc16   : > { %8812 = vmatprep.mubr.msk.f32.mxu0 %vm793_vm0, %v3162_v63 }
 0xc19   : > { %8813 = vmatmul.mubr.msk.f32.gmra.mxu0 %vm793_vm0, %v3164_v53 }
 0xc1a   : > { %8851 = vmatprep.mubr.msk.f32.mxu0 %vm793_vm0, %v10751_v52 }
 0xc1d   : > { %8852 = vmatmul.mubr.msk.f32.vlgmr.msra.gmra.mxu0 %vm793_vm0, %v10749_v27 }
 0xc1e   : > { %8854 = vmatprep.mubr.msk.f32.mxu0 %vm793_vm0, %v10755_v38 }
 0xc21   : > { %8855 = vmatmul.mubr.msk.f32.gmra.mxu0 %vm793_vm0, %v10753_v61 }
 0xc22   : > { %8857 = vmatprep.mubr.msk.f32.mxu0 %vm793_vm0, %v10759_v16 }
 0xc25   : > { %8858 = vmatmul.mubr.msk.f32.gmra.mxu0 %vm793_vm0, %v10757_v14 }
 0xc26   : > { %8860 = vmatprep.mubr.msk.f32.mxu0 %vm793_vm0, %v10763_v24 }
 0xc29   : > { %8861 = vmatmul.mubr.msk.f32.gmra.mxu0 %vm793_vm0, %v10761_v17 }
 0xc2a   : > { %8863 = vmatprep.mubr.msk.f32.mxu0 %vm793_vm0, %v10931_v37 }
 0xc2d   : > { %8864 = vmatmul.mubr.msk.f32.gmra.mxu0 %vm793_vm0, %v10929_v4 }
 0xc2e   : > { %8866 = vmatprep.mubr.msk.f32.mxu0 %vm793_vm0, %v10935_v9 }
 0xc31   : > { %8867 = vmatmul.mubr.msk.f32.gmra.mxu0 %vm793_vm0, %v10933_v56 }
 0xc32   : > { %8869 = vmatprep.mubr.msk.f32.mxu0 %vm793_vm0, %v10939_v33 }
 0xc35   : > { %8870 = vmatmul.mubr.msk.f32.gmra.mxu0 %vm793_vm0, %v10937_v8 }
 0xc60   : > { %v11175_v27 = vpop.f32.mrf.mxu0 }
 0xc62   : > { %v11177_v52 = vpop.f32.mrf.mxu0 }
 0xc8f   : > { %v11179_v61 = vpop.f32.mrf.mxu0 }
 0xc91   : > { %v11181_v38 = vpop.f32.mrf.mxu0 }
 0xc94   : > { %v11183_v14 = vpop.f32.mrf.mxu0 }
 0xc96   : > { %v11185_v16 = vpop.f32.mrf.mxu0 }
 0xcc9   : > { %v11187_v17 = vpop.f32.mrf.mxu0 }
 0xccb   : > { %v11189_v24 = vpop.f32.mrf.mxu0 }
 0xccd   : > { %v8805_v4 = vpop.f32.mrf.mxu0 }
 0xcce   : > { %v3321_v37 = vsel %vm13702_vm1, %v8805_v4, -inf }
 0xccf   : > { %3322 = vmax.xlane.f32.xlu1 %v3321_v37  ;;  %v3279_v56 = vpop.f32.mrf.mxu0 }
 0xcd0   : > { %v3318_v9 = vsel %vm13702_vm1, %v3279_v56, -inf }
 0xcd1   : > { %3319 = vmax.xlane.f32.xlu0 %v3318_v9  ;;  %v8808_v8 = vpop.f32.mrf.mxu0 }
 0xcd2   : > { %v3327_v32 = vsel %vm13702_vm1, %v8808_v8, -inf }
 0xcd3   : > { %v3289_v33 = vpop.f32.mrf.mxu0 }
 0xcd4   : > { %v3324_v21 = vsel %vm13702_vm1, %v3289_v33, -inf }
 0xcd5   : > { %3325 = vmax.xlane.f32.xlu0 %v3324_v21  ;;  %v8811_v40 = vpop.f32.mrf.mxu0 }
 0xcd6   : > { %v3333_v12 = vsel %vm13702_vm1, %v8811_v40, -inf }
 0xcd7   : > { %v3299_v25 = vpop.f32.mrf.mxu0 }
 0xcd8   : > { %v3330_v22 = vsel %vm13702_vm1, %v3299_v25, -inf }
 0xcd9   : > { %3328 = vmax.xlane.f32.xlu0 %v3327_v32  ;;  %3331 = vmax.xlane.f32.xlu1 %v3330_v22  ;;  %v8814_v18 = vpop.f32.mrf.mxu0 }
 0xcda   : > { %v3339_v46 = vsel %vm13702_vm1, %v8814_v18, -inf }
 0xcdb   : > { %v3309_v7 = vpop.f32.mrf.mxu0 }
 0xcdc   : > { %v3336_v43 = vsel %vm13702_vm1, %v3309_v7, -inf }
 0xcdd   : > { %3334 = vmax.xlane.f32.xlu0 %v3333_v12  ;;  %3337 = vmax.xlane.f32.xlu1 %v3336_v43 }
 0xce1   : > { %3340 = vmax.xlane.f32.xlu0 %v3339_v46 }
 0xd58   : > { %v3323_v58 = vpop.xlane.xlu1 %3322 }
 0xd59   : > { %v3343_v62 = vsub.f32 %v8805_v4, %v3323_v58 }
 0xd5a   : > { %v3320_v15 = vpop.xlane.xlu0 %3319 }
 0xd5b   : > { %v3352_v5 = vmul.f32 1.442695, %v3343_v62  ;;  %v3342_v20 = vsub.f32 %v3279_v56, %v3320_v15 }
 0xd5d   : > { %9153 = vpow2.f32 %v3352_v5  ;;  %v3350_v51 = vmul.f32 1.442695, %v3342_v20 }
 0xd5e   : > { %v3326_v44 = vpop.xlane.xlu0 %3325 }
 0xd5f   : > { %9155 = vpow2.f32 %v3350_v51  ;;  %v3344_v19 = vsub.f32 %v3289_v33, %v3326_v44 }
 0xd61   : > { %v3354_v30 = vmul.f32 1.442695, %v3344_v19 }
 0xd62   : > { %v3329_v45 = vpop.xlane.xlu0 %3328  ;;  %v3332_v10 = vpop.xlane.xlu1 %3331 }
 0xd63   : > { %9157 = vpow2.f32 %v3354_v30  ;;  %v3345_v34 = vsub.f32 %v8808_v8, %v3329_v45  ;;  %v3346_v28 = vsub.f32 %v3299_v25, %v3332_v10 }
 0xd65   : > { %v3356_v35 = vmul.f32 1.442695, %v3345_v34  ;;  %v3358_v23 = vmul.f32 1.442695, %v3346_v28 }
 0xd66   : > { %v3335_v54 = vpop.xlane.xlu0 %3334  ;;  %v3338_v15 = vpop.xlane.xlu1 %3337 }
 0xd67   : > { %9159 = vpow2.f32 %v3356_v35  ;;  %v3347_v63 = vsub.f32 %v8811_v40, %v3335_v54  ;;  %v3348_v5 = vsub.f32 %v3309_v7, %v3338_v15 }
 0xd68   : > { %9161 = vpow2.f32 %v3358_v23 }
 0xd69   : > { %v3360_v53 = vmul.f32 1.442695, %v3347_v63  ;;  %v3362_v20 = vmul.f32 1.442695, %v3348_v5 }
 0xd6a   : > { %v9154_v4 = vpop.eup %9153  ;;  %v3341_v37 = vpop.xlane.xlu0 %3340 }
 0xd6b   : > { %9163 = vpow2.f32 %v3360_v53  ;;  %v3349_v56 = vsub.f32 %v8814_v18, %v3341_v37  ;;  %v3369_v9 = vsel %vm13702_vm1, %v9154_v4, 0.0 }
 0xd6c   : > { %v9156_v33 = vpop.eup %9155  ;;  %3370 = vadd.xlane.f32.xlu0 %v3369_v9 }
 0xd6d   : > { %v3364_v21 = vmul.f32 1.442695, %v3349_v56  ;;  %v3366_v32 = vsel %vm13702_vm1, %v9156_v33, 0.0 }
 0xd6e   : > { %3367 = vadd.xlane.f32.xlu1 %v3366_v32 }
 0xd6f   : > { %9165 = vpow2.f32 %v3364_v21 }
 0xd70   : > { %v9158_v8 = vpop.eup %9157  ;;  %9167 = vpow2.f32 %v3362_v20 }
 0xd71   : > { %v3372_v25 = vsel %vm13702_vm1, %v9158_v8, 0.0 }
 0xd72   : > { %3373 = vadd.xlane.f32.xlu1 %v3372_v25 }
 0xd74   : > { %v9160_v40 = vpop.eup %9159 }
 0xd75   : > { %v9162_v22 = vpop.eup %9161  ;;  %v3375_v12 = vsel %vm13702_vm1, %v9160_v40, 0.0 }
 0xd76   : > { %3376 = vadd.xlane.f32.xlu0 %v3375_v12  ;;  %v3378_v18 = vsel %vm13702_vm1, %v9162_v22, 0.0 }
 0xd77   : > { %3379 = vadd.xlane.f32.xlu1 %v3378_v18 }
 0xd78   : > { %v9164_v43 = vpop.eup %9163 }
 0xd79   : > { %v3381_v46 = vsel %vm13702_vm1, %v9164_v43, 0.0 }
 0xd7a   : > { %3382 = vadd.xlane.f32.xlu0 %v3381_v46  ;;  %v11261_v46 = vpop.f32.mrf.mxu0 }
 0xd7c   : > { %v11205_v58 = vpop.eup %9165 }
 0xd7d   : > { %v3387_v62 = vsel %vm13702_vm1, %v11205_v58, 0.0  ;;  %v11215_v51 = vpop.eup %9167 }
 0xd7e   : > { %3388 = vadd.xlane.f32.xlu0 %v3387_v62  ;;  %v3384_v44 = vsel %vm13702_vm1, %v11215_v51, 0.0  ;;  %v3788_v62 = vpop.f32.mrf.mxu0 }
 0xd88   : > { %3476 = vrot.lane.b32.xlu1 %v10436_v3, %s9736_s25 }
 0xd94   : > { %3474 = vrot.lane.b32.xlu0 %v10447_v11, %s9736_s25 }
 0xd98   : > { %3468 = vrot.lane.b32.xlu0 %v10376_v48, %s9736_s25 }
 0xdac   : > { %3385 = vadd.xlane.f32.xlu1 %v3384_v44 }
 0xdbd   : > { %3472 = vrot.lane.b32.xlu1 %v10402_v26, %s9736_s25 }
 0xdc1   : > { %3470 = vrot.lane.b32.xlu1 %v10421_v39, %s9736_s25 }
 0xdc5   : > { %3466 = vrot.lane.b32.xlu1 %v10384_v59, %s9736_s25 }
 0xdf5   : > { %v3371_v3 = vpop.xlane.xlu0 %3370 }
 0xdf6   : > { %9169 = vrcp.f32 %v3371_v3 }
 0xdf7   : > { %v3368_v11 = vpop.xlane.xlu1 %3367 }
 0xdf8   : > { %9171 = vrcp.f32 %v3368_v11 }
 0xdfb   : > { %v3374_v48 = vpop.xlane.xlu1 %3373 }
 0xdfc   : > { %9173 = vrcp.f32 %v3374_v48 }
 0xdff   : > { %v3377_v7 = vpop.xlane.xlu0 %3376 }
 0xe00   : > { %9175 = vrcp.f32 %v3377_v7  ;;  %v3380_v19 = vpop.xlane.xlu1 %3379 }
 0xe01   : > { %9177 = vrcp.f32 %v3380_v19 }
 0xe03   : > { %v9170_v30 = vpop.eup %9169  ;;  %v3383_v45 = vpop.xlane.xlu0 %3382 }
 0xe04   : > { %9179 = vrcp.f32 %v3383_v45  ;;  %v3477_v26 = vpop.permute.xlu1 %3476  ;;  %v3399_v10 = vmul.f32 %v9170_v30, %v9154_v4 }
 0xe05   : > { %v9172_v34 = vpop.eup %9171  ;;  %8815 = vmatprep.subr.mxu1 %v3477_v26 }
 0xe06   : > { %8816 = vmatpush3.msra.mxu1 %v3477_v26  ;;  %v11226_v59 = vmul.f32 %v11000_v47, %v3399_v10  ;;  %v3398_v39 = vmul.f32 %v9172_v34, %v9156_v33 }
 0xe07   : > { %v3389_v28 = vpop.xlane.xlu0 %3388 }
 0xe08   : > { %9181 = vrcp.f32 %v3389_v28  ;;  %v3417_v35 = vsel %vm13702_vm1, %v11226_v59, 0.0  ;;  %v11231_v23 = vmul.f32 %v11009_v55, %v3398_v39  ;;  %v11283_v28 = vld [vmem:[%s13610_s16] ss:$0 sm:$0xff] }
 0xe09   : > { %v9174_v54 = vpop.eup %9173  ;;  %3418 = vadd.xlane.f32.xlu0 %v3417_v35 }
 0xe0a   : > { %v3414_v63 = vsel %vm13702_vm1, %v11231_v23, 0.0  ;;  %v3400_v53 = vmul.f32 %v9174_v54, %v9158_v8 }
 0xe0b   : > { %v3475_v4 = vpop.permute.xlu0 %3474  ;;  %3415 = vadd.xlane.f32.xlu1 %v3414_v63 }
 0xe0c   : > { %8817 = vmatprep.subr.mxu1 %v3475_v4  ;;  %v11236_v47 = vmul.f32 %v11027_v31, %v3400_v53 }
 0xe0d   : > { %v9176_v37 = vpop.eup %9175  ;;  %8818 = vmatpush3.msra.mxu1 %v3475_v4 }
 0xe0e   : > { %v9178_v56 = vpop.eup %9177  ;;  %v3420_v9 = vsel %vm13702_vm1, %v11236_v47, 0.0  ;;  %v3401_v55 = vmul.f32 %v9176_v37, %v9160_v40 }
 0xe0f   : > { %3421 = vadd.xlane.f32.xlu1 %v3420_v9  ;;  %v3402_v33 = vmul.f32 %v9178_v56, %v9162_v22  ;;  %v3469_v44 = vpop.permute.xlu0 %3468 }
 0xe10   : > { %v11241_v21 = vmul.f32 %v11019_v42, %v3401_v55 }
 0xe11   : > { %v9180_v32 = vpop.eup %9179  ;;  %v11244_v8 = vmul.f32 %v11042_v1, %v3402_v33 }
 0xe12   : > { %v3423_v31 = vsel %vm13702_vm1, %v11241_v21, 0.0  ;;  %v3403_v25 = vmul.f32 %v9180_v32, %v9164_v43 }
 0xe13   : > { %3424 = vadd.xlane.f32.xlu0 %v3423_v31  ;;  %v3426_v12 = vsel %vm13702_vm1, %v11244_v8, 0.0 }
 0xe14   : > { %3427 = vadd.xlane.f32.xlu1 %v3426_v12  ;;  %v11251_v40 = vmul.f32 %v11036_v49, %v3403_v25  ;;  %v8856_v49 = vpop.f32.mrf.mxu0 }
 0xe15   : > { %v9182_v22 = vpop.eup %9181 }
 0xe16   : > { %v3429_v42 = vsel %vm13702_vm1, %v11251_v40, 0.0  ;;  %v3405_v18 = vmul.f32 %v9182_v22, %v11205_v58  ;;  %v3798_v5 = vpop.f32.mrf.mxu0 }
 0xe17   : > { %3430 = vadd.xlane.f32.xlu0 %v3429_v42 }
 0xe18   : > { %v11257_v1 = vmul.f32 %v11053_v41, %v3405_v18  ;;  %v8859_v58 = vpop.f32.mrf.mxu0 }
 0xe1a   : > { %v3435_v43 = vsel %vm13702_vm1, %v11257_v1, 0.0  ;;  %v11265_v3 = vpop.f32.mrf.mxu0 }
 0xe1b   : > { %3436 = vadd.xlane.f32.xlu0 %v3435_v43 }
 0xe1c   : > { %v8862_v19 = vpop.f32.mrf.mxu0 }
 0xe1e   : > { %v3818_v34 = vpop.f32.mrf.mxu0 }
 0xe31   : > { %3464 = vrot.lane.b32.xlu0 %v10349_v29, %s9736_s25  ;;  %v11270_v29 = vld [vmem:[%s13609_s15] ss:$0 sm:$0xff] }
 0xe32   : > { %v3789_v7 = vadd.f32 %v11270_v29, %v3788_v62  ;;  %v3799_v10 = vadd.f32 %v11270_v29, %v3798_v5  ;;  %v3814_v4 = vadd.f32 %v8859_v58, %v11270_v29  ;;  %v3824_v33 = vadd.f32 %v8862_v19, %v11270_v29 }
 0xe34   : > { %v3947_v26 = vmax.f32 %v3789_v7, 0.0  ;;  %v3949_v54 = vmax.f32 %v3799_v10, 0.0  ;;  %v3952_v55 = vmax.f32 %v3814_v4, 0.0  ;;  %v3954_v12 = vmax.f32 %v3824_v33, 0.0 }
 0xe35   : > { %v3386_v15 = vpop.xlane.xlu1 %3385 }
 0xe36   : > { %9183 = vrcp.f32 %v3386_v15  ;;  %v3986_v35 = vmul.f32 %v11283_v28, %v3947_v26  ;;  %v3988_v53 = vmul.f32 %v11283_v28, %v3949_v54  ;;  %v3991_v25 = vmul.f32 %v11283_v28, %v3952_v55 }
 0xe37   : > { %v3993_v43 = vmul.f32 %v11283_v28, %v3954_v12  ;;  %v3794_v26 = vadd.f32 %v11261_v46, %v11270_v29  ;;  %v3819_v54 = vadd.f32 %v11270_v29, %v3818_v34 }
 0xe38   : > { %v4018_v37 = vsel %vm793_vm0, %v3986_v35, 0.0  ;;  %v4024_v32 = vsel %vm793_vm0, %v3988_v53, 0.0  ;;  %v4033_v15 = vsel %vm793_vm0, %v3991_v25, 0.0 }
 0xe39   : > { %v3473_v20 = vpop.permute.xlu1 %3472  ;;  %v3948_v10 = vmax.f32 %v3794_v26, 0.0 }
 0xe3a   : > { %8819 = vmatprep.subr.mxu1 %v3473_v20 }
 0xe3b   : > { %8820 = vmatpush3.msra.mxu1 %v3473_v20  ;;  %v3987_v35 = vmul.f32 %v11283_v28, %v3948_v10 }
 0xe3d   : > { %v3471_v41 = vpop.permute.xlu1 %3470  ;;  %v4021_v4 = vsel %vm793_vm0, %v3987_v35, 0.0 }
 0xe3e   : > { %8821 = vmatprep.subr.mxu1 %v3471_v41 }
 0xe3f   : > { %8822 = vmatpush3.msra.mxu1 %v3471_v41 }
 0xe40   : > { %8823 = vmatprep.subr.mxu1 %v3469_v44 }
 0xe41   : > { %8824 = vmatpush3.msra.mxu1 %v3469_v44  ;;  %v3467_v11 = vpop.permute.xlu1 %3466  ;;  %v4039_v44 = vsel %vm793_vm0, %v3993_v43, 0.0 }
 0xe42   : > { %8825 = vmatprep.subr.mxu1 %v3467_v11 }
 0xe43   : > { %v9184_v48 = vpop.eup %9183  ;;  %8826 = vmatpush3.msra.mxu1 %v3467_v11 }
 0xe44   : > { %v3404_v30 = vmul.f32 %v9184_v48, %v11215_v51  ;;  %v3804_v51 = vadd.f32 %v8856_v49, %v11270_v29 }
 0xe46   : > { %v11275_v45 = vmul.f32 %v11074_v50, %v3404_v30  ;;  %v8865_v50 = vpop.f32.mrf.mxu0  ;;  %v3950_v63 = vmax.f32 %v3804_v51, 0.0 }
 0xe47   : > { %v3834_v22 = vadd.f32 %v8865_v50, %v11270_v29 }
 0xe48   : > { %v3432_v39 = vsel %vm13702_vm1, %v11275_v45, 0.0  ;;  %v3828_v56 = vpop.f32.mrf.mxu0  ;;  %v3989_v9 = vmul.f32 %v11283_v28, %v3950_v63  ;;  %v3953_v63 = vmax.f32 %v3819_v54, 0.0 }
 0xe49   : > { %3433 = vadd.xlane.f32.xlu1 %v3432_v39  ;;  %v3956_v62 = vmax.f32 %v3834_v22, 0.0  ;;  %v3809_v39 = vadd.f32 %v11270_v29, %v11265_v3  ;;  %v3829_v53 = vadd.f32 %v11270_v29, %v3828_v56 }
 0xe4a   : > { %v8868_v31 = vpop.f32.mrf.mxu0  ;;  %v4027_v42 = vsel %vm793_vm0, %v3989_v9, 0.0 }
 0xe4b   : > { %v3844_v49 = vadd.f32 %v8868_v31, %v11270_v29  ;;  %v3995_v20 = vmul.f32 %v11283_v28, %v3956_v62  ;;  %v3951_v51 = vmax.f32 %v3809_v39, 0.0  ;;  %v3955_v46 = vmax.f32 %v3829_v53, 0.0 }
 0xe4c   : > { %v3838_v18 = vpop.f32.mrf.mxu0 }
 0xe4d   : > { %v3958_v58 = vmax.f32 %v3844_v49, 0.0  ;;  %v4045_v48 = vsel %vm793_vm0, %v3995_v20, 0.0  ;;  %v3990_v50 = vmul.f32 %v11283_v28, %v3951_v51  ;;  %v3839_v9 = vadd.f32 %v11270_v29, %v3838_v18  ;;  %v8401_v20 = vld [vmem:[#allocation2] ss:$0 sm:$0xff] }
 0xe4e   : > { %v8871_v5 = vpop.f32.mrf.mxu0  ;;  %v3994_v33 = vmul.f32 %v11283_v28, %v3955_v46 }
 0xe4f   : > { %v3854_v41 = vadd.f32 %v8871_v5, %v11270_v29  ;;  %v3997_v11 = vmul.f32 %v11283_v28, %v3958_v58  ;;  %v4030_v3 = vsel %vm793_vm0, %v3990_v50, 0.0  ;;  %v3957_v34 = vmax.f32 %v3839_v9, 0.0 }
 0xe50   : > { %4019 = vadd.xlane.f32.xlu0 %v4018_v37  ;;  %v3992_v37 = vmul.f32 %v11283_v28, %v3953_v63  ;;  %v3848_v55 = vpop.f32.mrf.mxu0  ;;  %v4042_v12 = vsel %vm793_vm0, %v3994_v33, 0.0 }
 0xe51   : > { %v4051_v19 = vsel %vm793_vm0, %v3997_v11, 0.0  ;;  %v3996_v56 = vmul.f32 %v11283_v28, %v3957_v34 }
 0xe52   : > { %v4036_v31 = vsel %vm793_vm0, %v3992_v37, 0.0 }
 0xe54   : > { %4025 = vadd.xlane.f32.xlu0 %v4024_v32  ;;  %v3849_v32 = vadd.f32 %v11270_v29, %v3848_v55 }
 0xe56   : > { %v3959_v25 = vmax.f32 %v3849_v32, 0.0 }
 0xe58   : > { %4028 = vadd.xlane.f32.xlu0 %v4027_v42  ;;  %v3998_v22 = vmul.f32 %v11283_v28, %v3959_v25  ;;  %v4048_v42 = vsel %vm793_vm0, %v3996_v56, 0.0 }
 0xe5a   : > { %3462 = vrot.lane.b32.xlu1 %v10358_v2, %s9736_s25  ;;  %v3960_v2 = vmax.f32 %v3854_v41, 0.0  ;;  %v4054_v18 = vsel %vm793_vm0, %v3998_v22, 0.0  ;;  %s8403_s25 = sshll.u32 %s9857_s17, 6  ;;  %s9737_s17 = smov [#allocation11]  }
 0xe5b   : > { %s13556_s21 = scalar_lea.hbm %s13881_s29, %s8403_s25  ;;  %s9649_s22 = sshll.u32 %s9737_s17, 4  ;;  %s9650_s22 = int_to_ptr.vmem [resolvable:$false] %s9649_s22 }
 0xe5c   : > { %4034 = vadd.xlane.f32.xlu0 %v4033_v15  ;;  %v3999_v7 = vmul.f32 %v11283_v28, %v3960_v2  ;;  %s9651_s20 = scalar_lea.vmem %s9650_s22, 128  ;;  %p9652_p1 = scmp.lt.s32.totalorder %s8052_s27, %s9650_s22 }
 0xe5e   : > { %v4057_v30 = vsel %vm793_vm0, %v3999_v7, 0.0 }
 0xe60   : > { %4040 = vadd.xlane.f32.xlu0 %v4039_v44 }
 0xe64   : > { %4046 = vadd.xlane.f32.xlu0 %v4045_v48 }
 0xe68   : > { %4052 = vadd.xlane.f32.xlu0 %v4051_v19 }
 0xe6c   : > { %4058 = vadd.xlane.f32.xlu0 %v4057_v30 }
 0xe7e   : > { %4022 = vadd.xlane.f32.xlu1 %v4021_v4 }
 0xe82   : > { %4031 = vadd.xlane.f32.xlu1 %v4030_v3 }
 0xe86   : > { %4037 = vadd.xlane.f32.xlu1 %v4036_v31 }
 0xe8a   : > { %4043 = vadd.xlane.f32.xlu1 %v4042_v12 }
 0xe8e   : > { %4049 = vadd.xlane.f32.xlu1 %v4048_v42 }
 0xe92   : > { %4055 = vadd.xlane.f32.xlu1 %v4054_v18  ;;  %v3419_v49 = vpop.xlane.xlu0 %3418 }
 0xe93   : > { %v3439_v48 = vadd.f32 1e-10, %v3419_v49 }
 0xe94   : > { %v3416_v43 = vpop.xlane.xlu1 %3415 }
 0xe95   : > { %v3438_v62 = vadd.f32 1e-10, %v3416_v43 }
 0xe97   : > { %9185 = vrcp.f32 %v3438_v62 }
 0xe98   : > { %v3422_v2 = vpop.xlane.xlu1 %3421  ;;  %9187 = vrcp.f32 %v3439_v48 }
 0xe99   : > { %v3440_v7 = vadd.f32 1e-10, %v3422_v2 }
 0xe9b   : > { %9189 = vrcp.f32 %v3440_v7 }
 0xe9c   : > { %v3425_v15 = vpop.xlane.xlu0 %3424 }
 0xe9d   : > { %v3428_v19 = vpop.xlane.xlu1 %3427  ;;  %v3441_v30 = vadd.f32 1e-10, %v3425_v15 }
 0xe9e   : > { %v3442_v26 = vadd.f32 1e-10, %v3428_v19 }
 0xe9f   : > { %9191 = vrcp.f32 %v3441_v30 }
 0xea0   : > { %v3431_v5 = vpop.xlane.xlu0 %3430  ;;  %9193 = vrcp.f32 %v3442_v26 }
 0xea1   : > { %v3443_v10 = vadd.f32 1e-10, %v3431_v5 }
 0xea3   : > { %4121 = vperm.xlu1 %8990, %v8401_v20   ;;  %9195 = vrcp.f32 %v3443_v10 }
 0xea4   : > { %v9186_v58 = vpop.eup %9185  ;;  %v3437_v41 = vpop.xlane.xlu0 %3436 }
 0xea5   : > { %v3454_v44 = vmul.f32 %v9186_v58, %v11231_v23  ;;  %v3445_v39 = vadd.f32 1e-10, %v3437_v41  ;;  %v9188_v51 = vpop.eup %9187 }
 0xea6   : > { %v3455_v63 = vmul.f32 %v9188_v51, %v11226_v59 }
 0xea7   : > { %8831 = vmatprep.mubr.msk.f32.mxu1 %vm13702_vm1, %v3454_v44  ;;  %9197 = vrcp.f32 %v3445_v39 }
 0xea8   : > { %v3465_v11 = vpop.permute.xlu0 %3464  ;;  %v9190_v54 = vpop.eup %9189 }
 0xea9   : > { %8827 = vmatprep.subr.mxu1 %v3465_v11  ;;  %v3456_v4 = vmul.f32 %v9190_v54, %v11236_v47 }
 0xeaa   : > { %8828 = vmatpush3.msra.mxu1 %v3465_v11 }
 0xeac   : > { %v9192_v53 = vpop.eup %9191 }
 0xead   : > { %v9194_v37 = vpop.eup %9193  ;;  %v3457_v46 = vmul.f32 %v9192_v53, %v11241_v21 }
 0xeae   : > { %v3458_v59 = vmul.f32 %v9194_v37, %v11244_v8 }
 0xeb0   : > { %v9196_v9 = vpop.eup %9195 }
 0xeb1   : > { %v3459_v47 = vmul.f32 %v9196_v9, %v11251_v40 }
 0xed2   : > { %v3434_v35 = vpop.xlane.xlu1 %3433 }
 0xed3   : > { %v3444_v23 = vadd.f32 1e-10, %v3434_v35 }
 0xed5   : > { %9199 = vrcp.f32 %v3444_v23 }
 0xed6   : > { %v3463_v50 = vpop.permute.xlu1 %3462 }
 0xed7   : > { %8829 = vmatprep.subr.mxu1 %v3463_v50 }
 0xed8   : > { %8830 = vmatpush3.msra.mxu1 %v3463_v50 }
 0xed9   : > { %8832 = vmatmul.mubr.msk.f32.vlgmr.msra.gmra.mxu1 %vm13702_vm1, %v3455_v63  ;;  %8899 = vmatprep.subr.mxu1 %v11110_v6 }
 0xeda   : > { %8834 = vmatprep.mubr.msk.f32.mxu1 %vm13702_vm1, %v3456_v4  ;;  %8903 = vmatpush3.msra.mxu1 %v11110_v6  ;;  %v9198_v6 = vpop.eup %9197  ;;  %v13746_v4 = vld [vmem:[#allocation24_spill] sm:$0xff] }
 0xedb   : > { %8900 = vmatprep.subr.mxu1 %v11127_v36  ;;  %v3461_v8 = vmul.f32 %v9198_v6, %v11257_v1 }
 0xedc   : > { %8904 = vmatpush3.msra.mxu1 %v11127_v36 }
 0xedd   : > { %8835 = vmatmul.mubr.msk.f32.gmra.mxu1 %vm13702_vm1, %v3457_v46  ;;  %8901 = vmatprep.subr.mxu1 %v11132_v0  ;;  %v13747_v46 = vld [vmem:[#allocation25_spill] sm:$0xff] }
 0xede   : > { %8837 = vmatprep.mubr.msk.f32.mxu1 %vm13702_vm1, %v3458_v59  ;;  %8905 = vmatpush3.msra.mxu1 %v11132_v0  ;;  %v13748_v59 = vld [vmem:[#allocation26_spill] sm:$0xff] }
 0xedf   : > { %8902 = vmatprep.subr.mxu1 %v11136_v60 }
 0xee0   : > { %8906 = vmatpush3.msra.mxu1 %v11136_v60 }
 0xee1   : > { %8838 = vmatmul.mubr.msk.f32.gmra.mxu1 %vm13702_vm1, %v3459_v47 }
 0xee2   : > { %v9200_v21 = vpop.eup %9199 }
 0xee3   : > { %v3460_v36 = vmul.f32 %v9200_v21, %v11275_v45 }
 0xee5   : > { %8840 = vmatprep.mubr.msk.f32.mxu1 %vm13702_vm1, %v3460_v36 }
 0xee6   : > { %8841 = vmatmul.mubr.msk.f32.gmra.mxu1 %vm13702_vm1, %v3461_v8  ;;  %vm7870_vm1 = vcmask 654912  }
 0xee7   : > { %8872 = vmatprep.mubr.msk.f32.mxu1 %vm793_vm0, %v10943_v57  ;;  %v4020_v57 = vpop.xlane.xlu0 %4019 }
 0xeea   : > { %8873 = vmatmul.mubr.msk.f32.vlgmr.msra.gmra.mxu1 %vm793_vm0, %v10941_v13 }
 0xeeb   : > { %8875 = vmatprep.mubr.msk.f32.mxu1 %vm793_vm0, %v11177_v52 }
 0xeee   : > { %8876 = vmatmul.mubr.msk.f32.gmra.mxu1 %vm793_vm0, %v11175_v27  ;;  %v4026_v27 = vpop.xlane.xlu0 %4025 }
 0xeef   : > { %8878 = vmatprep.mubr.msk.f32.mxu1 %vm793_vm0, %v11181_v38 }
 0xef2   : > { %8879 = vmatmul.mubr.msk.f32.gmra.mxu1 %vm793_vm0, %v11179_v61  ;;  %v4029_v61 = vpop.xlane.xlu0 %4028 }
 0xef3   : > { %8881 = vmatprep.mubr.msk.f32.mxu1 %vm793_vm0, %v11185_v16  ;;  %v13743_v16 = vlaneseq }
 0xef5   : > { %v11378_v40 = vand.u32 127, %v13743_v16 }
 0xef6   : > { %8882 = vmatmul.mubr.msk.f32.gmra.mxu1 %vm793_vm0, %v11183_v14  ;;  %v4035_v1 = vpop.xlane.xlu0 %4034 }
 0xef7   : > { %8884 = vmatprep.mubr.msk.f32.mxu1 %vm793_vm0, %v11189_v24  ;;  %13744 = vst [vmem:[#allocation27_spill] sm:$0xff] %v11378_v40  ;;  %v13745_v24 = vld [vmem:[#allocation23_spill] sm:$0xff] }
 0xef8   : > { %v11384_v45 = vsub.s32 %v11378_v40, %v13745_v24 }
 0xefa   : > { %8885 = vmatmul.mubr.msk.f32.gmra.mxu1 %vm793_vm0, %v11187_v17  ;;  %v4041_v22 = vpop.xlane.xlu0 %4040 }
 0xefe   : > { %v11432_v23 = vpop.xlane.xlu0 %4046 }
 0xf02   : > { %v11437_v50 = vpop.xlane.xlu0 %4052 }
 0xf06   : > { %v11439_v63 = vpop.xlane.xlu0 %4058 }
 0xf07   : > { %v4023_v13 = vpop.xlane.xlu1 %4022 }
 0xf0b   : > { %v4032_v0 = vpop.xlane.xlu1 %4031 }
 0xf0f   : > { %v4038_v60 = vpop.xlane.xlu1 %4037 }
 0xf13   : > { %v11373_v52 = vpop.xlane.xlu1 %4043 }
 0xf17   : > { %v11375_v38 = vpop.xlane.xlu1 %4049 }
 0xf1b   : > { %v11380_v14 = vpop.xlane.xlu1 %4055 }
 0xf1f   : > { %v11386_v17 = vpop.permute.xlu1 %4121 }
 0xf20   : > { %v4124_v3 = vadd.f32 %v11386_v17, %v4020_v57  ;;  %v4125_v55 = vadd.f32 %v11386_v17, %v4023_v13  ;;  %v4126_v33 = vadd.f32 %v11386_v17, %v4026_v27  ;;  %v11392_v34 = vadd.f32 %v11386_v17, %v4029_v61 }
 0xf21   : > { %v11395_v32 = vadd.f32 %v11386_v17, %v4032_v0  ;;  %v11398_v31 = vadd.f32 %v11386_v17, %v4035_v1  ;;  %v11404_v42 = vadd.f32 %v11386_v17, %v4038_v60  ;;  %v11407_v18 = vadd.f32 %v11386_v17, %v4041_v22 }
 0xf22   : > { %v4193_v56 = vrot.slane %v4124_v3, %v11384_v45  ;;  %v4197_v25 = vrot.slane %v4125_v55, %v11384_v45  ;;  %v4201_v12 = vrot.slane %v4126_v33, %v11384_v45  ;;  %v4205_v43 = vrot.slane %v11392_v34, %v11384_v45 }
 0xf23   : > { %v4209_v49 = vrot.slane %v11395_v32, %v11384_v45  ;;  %v4213_v5 = vrot.slane %v11398_v31, %v11384_v45  ;;  %v4217_v58 = vrot.slane %v11404_v42, %v11384_v45  ;;  %v4221_v44 = vrot.slane %v11407_v18, %v11384_v45 }
 0xf24   : > { %v4319_v62 = vsel %vm4318_vm2, %v4197_v25, %v4193_v56 }
 0xf25   : > { %v4321_v15 = vsel %vm4320_vm3, %v4201_v12, %v4319_v62 }
 0xf26   : > { %v4323_v20 = vsel %vm4322_vm4, %v4205_v43, %v4321_v15 }
 0xf27   : > { %v4325_v41 = vsel %vm4324_vm5, %v4209_v49, %v4323_v20 }
 0xf28   : > { %v4327_v11 = vsel %vm4326_vm6, %v4213_v5, %v4325_v41 }
 0xf29   : > { %v4329_v2 = vsel %vm4328_vm7, %v4217_v58, %v4327_v11 }
 0xf2a   : > { %v4331_v48 = vsel %vm4330_vm8, %v4221_v44, %v4329_v2 }
 0xf2b   : > { %v4358_v7 = vsel %vm4357_vm9, %v4331_v48, -inf }
 0xf2c   : > { %4359 = vmax.xlane.f32.xlu0 %v4358_v7 }
 0xf99   : > { %v8833_v19 = vpop.f32.mrf.mxu1 }
 0xf9b   : > { %v3576_v30 = vpop.f32.mrf.mxu1 }
 0xf9c   : > { %8887 = vmatprep.mubr.msk.f32.mxu1 %vm793_vm0, %v3576_v30 }
 0xf9d   : > { %v8836_v26 = vpop.f32.mrf.mxu1  ;;  %8888 = vmatmul.mubr.msk.f32.gmra.mxu1 %vm793_vm0, %v8833_v19 }
 0xf9f   : > { %v3586_v10 = vpop.f32.mrf.mxu1 }
 0xfa0   : > { %8890 = vmatprep.mubr.msk.f32.mxu1 %vm793_vm0, %v3586_v10 }
 0xfa1   : > { %v8839_v39 = vpop.f32.mrf.mxu1  ;;  %8891 = vmatmul.mubr.msk.f32.gmra.mxu1 %vm793_vm0, %v8836_v26 }
 0xfa3   : > { %v3596_v35 = vpop.f32.mrf.mxu1 }
 0xfa4   : > { %8893 = vmatprep.mubr.msk.f32.mxu1 %vm793_vm0, %v3596_v35 }
 0xfa5   : > { %8894 = vmatmul.mubr.msk.f32.gmra.mxu1 %vm793_vm0, %v8839_v39 }
 0xfa6   : > { %v8842_v51 = vpop.f32.mrf.mxu1 }
 0xfa8   : > { %v3606_v54 = vpop.f32.mrf.mxu1 }
 0xfa9   : > { %8896 = vmatprep.mubr.msk.f32.mxu1 %vm793_vm0, %v3606_v54 }
 0xfaa   : > { %8897 = vmatmul.mubr.msk.f32.gmra.mxu1 %vm793_vm0, %v8842_v51  ;;  %v8874_v27 = vpop.f32.mrf.mxu1 }
 0xfac   : > { %v3858_v16 = vpop.f32.mrf.mxu1 }
 0xfad   : > { %v3859_v43 = vadd.f32 %v11270_v29, %v3858_v16 }
 0xfae   : > { %v8877_v1 = vpop.f32.mrf.mxu1 }
 0xfaf   : > { %v3874_v12 = vadd.f32 %v8877_v1, %v11270_v29  ;;  %v3961_v20 = vmax.f32 %v3859_v43, 0.0 }
 0xfb1   : > { %v3964_v49 = vmax.f32 %v3874_v12, 0.0  ;;  %v4000_v7 = vmul.f32 %v11283_v28, %v3961_v20 }
 0xfb3   : > { %v4003_v41 = vmul.f32 %v11283_v28, %v3964_v49 }
 0xfb5   : > { %v11441_v53 = vpop.xlane.xlu0 %4359  ;;  %v4069_v35 = vsel %vm793_vm0, %v4003_v41, 0.0 }
 0xfb6   : > { %v4377_v37 = vrot.slane %v11441_v53, %v13746_v4  ;;  %v4381_v9 = vrot.slane %v11441_v53, %v13747_v46  ;;  %v4385_v47 = vrot.slane %v11441_v53, %v13748_v59 }
 0xfb8   : > { %v4534_v6 = vsub.f32 %v4124_v3, %v4377_v37  ;;  %v4535_v21 = vsub.f32 %v4125_v55, %v4381_v9  ;;  %v4536_v36 = vsub.f32 %v4126_v33, %v4385_v47  ;;  %v3868_v3 = vpop.f32.mrf.mxu1  ;;  %v3864_v33 = vadd.f32 %v8874_v27, %v11270_v29 }
 0xfb9   : > { %v3869_v58 = vadd.f32 %v11270_v29, %v3868_v3  ;;  %v4060_v37 = vsel %vm793_vm0, %v4000_v7, 0.0 }
 0xfba   : > { %v4566_v8 = vmul.f32 1.442695, %v4534_v6  ;;  %v4568_v13 = vmul.f32 1.442695, %v4535_v21  ;;  %v4570_v57 = vmul.f32 1.442695, %v4536_v36  ;;  %v8880_v55 = vpop.f32.mrf.mxu1 }
 0xfbb   : > { %v3962_v25 = vmax.f32 %v3864_v33, 0.0  ;;  %v3884_v15 = vadd.f32 %v8880_v55, %v11270_v29  ;;  %v3963_v19 = vmax.f32 %v3869_v58, 0.0 }
 0xfbc   : > { %9201 = vpow2.f32 %v4566_v8  ;;  %v3878_v56 = vpop.f32.mrf.mxu1 }
 0xfbd   : > { %9203 = vpow2.f32 %v4568_v13  ;;  %v4001_v62 = vmul.f32 %v11283_v28, %v3962_v25  ;;  %v3966_v44 = vmax.f32 %v3884_v15, 0.0  ;;  %v3879_v30 = vadd.f32 %v11270_v29, %v3878_v56 }
 0xfbe   : > { %9205 = vpow2.f32 %v4570_v57  ;;  %v8883_v22 = vpop.f32.mrf.mxu1  ;;  %v4002_v51 = vmul.f32 %v11283_v28, %v3963_v19 }
 0xfbf   : > { %v3894_v11 = vadd.f32 %v8883_v22, %v11270_v29  ;;  %v4063_v2 = vsel %vm793_vm0, %v4001_v62, 0.0  ;;  %v4005_v26 = vmul.f32 %v11283_v28, %v3966_v44  ;;  %v3965_v54 = vmax.f32 %v3879_v30, 0.0 }
 0xfc0   : > { %v3888_v5 = vpop.f32.mrf.mxu1  ;;  %v4066_v1 = vsel %vm793_vm0, %v4002_v51, 0.0  ;;  %v11512_v51 = vadd.f32 %v11386_v17, %v11432_v23 }
 0xfc1   : > { %v3968_v10 = vmax.f32 %v3894_v11, 0.0  ;;  %v3889_v47 = vadd.f32 %v11270_v29, %v3888_v5  ;;  %v4075_v36 = vsel %vm793_vm0, %v4005_v26, 0.0  ;;  %v4004_v8 = vmul.f32 %v11283_v28, %v3965_v54 }
 0xfc2   : > { %v8886_v48 = vpop.f32.mrf.mxu1  ;;  %v11515_v54 = vsub.s32 4, %v13745_v24 }
 0xfc3   : > { %v3904_v39 = vadd.f32 %v8886_v48, %v11270_v29  ;;  %v4007_v9 = vmul.f32 %v11283_v28, %v3968_v10  ;;  %v3967_v57 = vmax.f32 %v3889_v47, 0.0  ;;  %v4072_v56 = vsel %vm793_vm0, %v4004_v8, 0.0 }
 0xfc4   : > { %v3898_v21 = vpop.f32.mrf.mxu1  ;;  %v11499_v48 = vsub.s32 3, %v13745_v24  ;;  %v11531_v8 = vsub.s32 5, %v13745_v24 }
 0xfc5   : > { %v3970_v6 = vmax.f32 %v3904_v39, 0.0  ;;  %v3899_v13 = vadd.f32 %v11270_v29, %v3898_v21  ;;  %v4081_v16 = vsel %vm793_vm0, %v4007_v9, 0.0  ;;  %v4006_v3 = vmul.f32 %v11283_v28, %v3967_v57 }
 0xfc6   : > { %13749 = vst [vmem:[#allocation24_spill] sm:$0xff] %v11499_v48 }
 0xfc7   : > { %v4009_v27 = vmul.f32 %v11283_v28, %v3970_v6  ;;  %v3969_v55 = vmax.f32 %v3899_v13, 0.0  ;;  %v4078_v12 = vsel %vm793_vm0, %v4006_v3, 0.0  ;;  %v4393_v13 = vrot.slane %v11441_v53, %v11515_v54 }
 0xfc8   : > { %v11542_v3 = vsub.s32 6, %v13745_v24 }
 0xfc9   : > { %v11449_v0 = vpop.eup %9201  ;;  %v4087_v33 = vsel %vm793_vm0, %v4009_v27, 0.0  ;;  %v4008_v25 = vmul.f32 %v11283_v28, %v3969_v55  ;;  %v11546_v55 = vadd.f32 %v11386_v17, %v11437_v50 }
 0xfca   : > { %v11451_v60 = vpop.eup %9203  ;;  %4663 = vperm.xlu1 %8990, %v11449_v0  }
 0xfcb   : > { %4666 = vperm.xlu0 %8989, %v11451_v60   ;;  %v11455_v61 = vpop.eup %9205  ;;  %v4084_v22 = vsel %vm793_vm0, %v4008_v25, 0.0  ;;  %v4538_v25 = vsub.f32 %v11395_v32, %v4393_v13  ;;  %v4237_v50 = vrot.slane %v11546_v55, %v11384_v45 }
 0xfcd   : > { %v4574_v32 = vmul.f32 1.442695, %v4538_v25 }
 0xfce   : > { %4669 = vperm.xlu1 %8990, %v11455_v61  }
 0xfea   : > { %4064 = vadd.xlane.f32.xlu0 %v4063_v2 }
 0xfee   : > { %4070 = vadd.xlane.f32.xlu0 %v4069_v35  ;;  %v11508_v35 = vadd.f32 %v11386_v17, %v11373_v52  ;;  %v11524_v52 = vadd.f32 %v11386_v17, %v11375_v38 }
 0xff0   : > { %v4225_v23 = vrot.slane %v11508_v35, %v11384_v45 }
 0xff2   : > { %4076 = vadd.xlane.f32.xlu0 %v4075_v36  ;;  %4061 = vadd.xlane.f32.xlu1 %v4060_v37  ;;  %v4389_v37 = vrot.slane %v11441_v53, %v11499_v48  ;;  %v4229_v36 = vrot.slane %v11512_v51, %v11384_v45 }
 0xff4   : > { %v4537_v57 = vsub.f32 %v11392_v34, %v4389_v37  ;;  %v4332_v34 = vsel %vm4318_vm2, %v4229_v36, %v4225_v23 }
 0xff6   : > { %4082 = vadd.xlane.f32.xlu0 %v4081_v16  ;;  %4067 = vadd.xlane.f32.xlu1 %v4066_v1 }
 0xffa   : > { %4088 = vadd.xlane.f32.xlu0 %v4087_v33  ;;  %4073 = vadd.xlane.f32.xlu1 %v4072_v56  ;;  %v4233_v33 = vrot.slane %v11524_v52, %v11384_v45  ;;  %v4397_v56 = vrot.slane %v11441_v53, %v11531_v8 }
 0xffe   : > { %4079 = vadd.xlane.f32.xlu1 %v4078_v12  ;;  %v4572_v12 = vmul.f32 1.442695, %v4537_v57 }
0x1000   : > { %9207 = vpow2.f32 %v4572_v12 }
0x1001   : > { %9209 = vpow2.f32 %v4574_v32 }
0x1002   : > { %4085 = vadd.xlane.f32.xlu1 %v4084_v22 }
0x100d   : > { %v11600_v25 = vpop.eup %9207 }
0x1045   : > { %v11538_v38 = vpop.permute.xlu1 %4663 }
0x1046   : > { %v11536_v27 = vpop.permute.xlu0 %4666 }
0x105d   : > { %v11488_v43 = vpop.f32.mrf.mxu1 }
0x105f   : > { %v3908_v62 = vpop.f32.mrf.mxu1 }
0x1060   : > { %v3909_v49 = vadd.f32 %v11270_v29, %v3908_v62 }
0x1061   : > { %v11491_v15 = vpop.f32.mrf.mxu1 }
0x1062   : > { %v3971_v5 = vmax.f32 %v3909_v49, 0.0  ;;  %v11557_v49 = vadd.f32 %v11386_v17, %v11380_v14 }
0x1063   : > { %v3918_v20 = vpop.f32.mrf.mxu1 }
0x1064   : > { %v4010_v58 = vmul.f32 %v11283_v28, %v3971_v5  ;;  %v3919_v41 = vadd.f32 %v11270_v29, %v3918_v20  ;;  %v4333_v5 = vsel %vm4320_vm3, %v4233_v33, %v4332_v34  ;;  %v4401_v20 = vrot.slane %v11441_v53, %v11542_v3 }
0x1065   : > { %v11495_v44 = vpop.f32.mrf.mxu1  ;;  %v4334_v14 = vsel %vm4322_vm4, %v4237_v50, %v4333_v5 }
0x1066   : > { %v3973_v11 = vmax.f32 %v3919_v41, 0.0  ;;  %v4090_v2 = vsel %vm793_vm0, %v4010_v58, 0.0  ;;  %v4539_v58 = vsub.f32 %v11398_v31, %v4397_v56  ;;  %v11565_v41 = vpop.permute.xlu1 %4669 }
0x1067   : > { %v3928_v7 = vpop.f32.mrf.mxu1  ;;  %4091 = vadd.xlane.f32.xlu1 %v4090_v2  ;;  %v11569_v2 = vadd.f32 %v11386_v17, %v11439_v63 }
0x1068   : > { %v4012_v19 = vmul.f32 %v11283_v28, %v3973_v11  ;;  %v3929_v30 = vadd.f32 %v11270_v29, %v3928_v7  ;;  %v4241_v7 = vrot.slane %v11557_v49, %v11384_v45 }
0x106a   : > { %v3975_v26 = vmax.f32 %v3929_v30, 0.0  ;;  %v11503_v10 = vpop.f32.mrf.mxu1  ;;  %v4096_v39 = vsel %vm793_vm0, %v4012_v19, 0.0  ;;  %v4540_v19 = vsub.f32 %v11404_v42, %v4401_v20  ;;  %v4576_v30 = vmul.f32 1.442695, %v4539_v58  ;;  %v11614_v58 = vpop.eup %9209 }
0x106b   : > { %4097 = vadd.xlane.f32.xlu1 %v4096_v39  ;;  %v4335_v63 = vsel %vm4324_vm5, %v4241_v7, %v4334_v14 }
0x106c   : > { %v4014_v9 = vmul.f32 %v11283_v28, %v3975_v26  ;;  %v3938_v47 = vpop.f32.mrf.mxu1  ;;  %9211 = vpow2.f32 %v4576_v30  ;;  %v4578_v42 = vmul.f32 1.442695, %v4540_v19  ;;  %v3914_v30 = vadd.f32 %v11488_v43, %v11270_v29 }
0x106d   : > { %v3939_v6 = vadd.f32 %v11270_v29, %v3938_v47 }
0x106e   : > { %v4102_v21 = vsel %vm793_vm0, %v4014_v9, 0.0  ;;  %v4245_v9 = vrot.slane %v11569_v2, %v11384_v45  ;;  %9213 = vpow2.f32 %v4578_v42  ;;  %v3972_v43 = vmax.f32 %v3914_v30, 0.0 }
0x106f   : > { %v3977_v16 = vmax.f32 %v3939_v6, 0.0  ;;  %4103 = vadd.xlane.f32.xlu1 %v4102_v21 }
0x1070   : > { %v4336_v23 = vsel %vm4326_vm6, %v4245_v9, %v4335_v63 }
0x1071   : > { %v4016_v1 = vmul.f32 %v11283_v28, %v3977_v16 }
0x1073   : > { %v4065_v22 = vpop.xlane.xlu0 %4064  ;;  %v4108_v62 = vsel %vm793_vm0, %v4016_v1, 0.0 }
0x1074   : > { %4109 = vadd.xlane.f32.xlu1 %v4108_v62  ;;  %v11576_v31 = vadd.f32 %v11386_v17, %v4065_v22 }
0x1076   : > { %v4253_v6 = vrot.slane %v11576_v31, %v11384_v45 }
0x1077   : > { %v4071_v11 = vpop.xlane.xlu0 %4070 }
0x1078   : > { %v11594_v57 = vadd.f32 %v11386_v17, %v4071_v11 }
0x107a   : > { %v4261_v22 = vrot.slane %v11594_v57, %v11384_v45 }
0x107b   : > { %v4062_v26 = vpop.xlane.xlu1 %4061  ;;  %v4077_v39 = vpop.xlane.xlu0 %4076 }
0x107c   : > { %v11579_v37 = vadd.f32 %v11386_v17, %v4062_v26  ;;  %v11608_v62 = vadd.f32 %v11386_v17, %v4077_v39 }
0x107e   : > { %v4249_v47 = vrot.slane %v11579_v37, %v11384_v45  ;;  %v4269_v7 = vrot.slane %v11608_v62, %v11384_v45 }
0x107f   : > { %v4068_v21 = vpop.xlane.xlu1 %4067  ;;  %v4083_v1 = vpop.xlane.xlu0 %4082 }
0x1080   : > { %v11590_v36 = vadd.f32 %v11386_v17, %v4068_v21  ;;  %v4337_v13 = vsel %vm4328_vm7, %v4249_v47, %v4336_v23  ;;  %v11623_v19 = vadd.f32 %v11386_v17, %v4083_v1  ;;  %v11634_v47 = vpop.eup %9211  ;;  %v3924_v23 = vadd.f32 %v11491_v15, %v11270_v29 }
0x1081   : > { %v4338_v16 = vsel %vm4330_vm8, %v4253_v6, %v4337_v13  ;;  %v3934_v15 = vadd.f32 %v11495_v44, %v11270_v29  ;;  %v11666_v44 = vsub.s32 7, %v13745_v24 }
0x1082   : > { %v4361_v33 = vsel %vm4357_vm9, %v4338_v16, -inf  ;;  %v4257_v34 = vrot.slane %v11590_v36, %v11384_v45  ;;  %v4277_v21 = vrot.slane %v11623_v19, %v11384_v45 }
0x1083   : > { %4362 = vmax.xlane.f32.xlu0 %v4361_v33  ;;  %v4074_v56 = vpop.xlane.xlu1 %4073  ;;  %v4089_v32 = vpop.xlane.xlu0 %4088 }
0x1084   : > { %v11603_v12 = vadd.f32 %v11386_v17, %v4074_v56  ;;  %v4339_v5 = vsel %vm4318_vm2, %v4261_v22, %v4257_v34  ;;  %v11631_v39 = vadd.f32 %v11386_v17, %v4089_v32  ;;  %v11650_v33 = vpop.eup %9213  ;;  %v4011_v22 = vmul.f32 %v11283_v28, %v3972_v43 }
0x1085   : > { %4672 = vperm.xlu1 %8990, %v11600_v25   ;;  %v3976_v32 = vmax.f32 %v3934_v15, 0.0 }
0x1086   : > { %v4265_v50 = vrot.slane %v11603_v12, %v11384_v45  ;;  %v4285_v16 = vrot.slane %v11631_v39, %v11384_v45 }
0x1087   : > { %v4080_v20 = vpop.xlane.xlu1 %4079  ;;  %v4015_v30 = vmul.f32 %v11283_v28, %v3976_v32 }
0x1088   : > { %v4340_v11 = vsel %vm4320_vm3, %v4265_v50, %v4339_v5  ;;  %v11618_v14 = vadd.f32 %v11386_v17, %v4080_v20  ;;  %v3974_v50 = vmax.f32 %v3924_v23, 0.0 }
0x1089   : > { %4675 = vperm.xlu1 %8990, %v11614_v58   ;;  %v4341_v63 = vsel %vm4322_vm4, %v4269_v7, %v4340_v11  ;;  %v3944_v11 = vadd.f32 %v11503_v10, %v11270_v29  ;;  %v4093_v7 = vsel %vm793_vm0, %v4011_v22, 0.0  ;;  %v4405_v29 = vrot.slane %v11441_v53, %v11666_v44 }
0x108a   : > { %v4273_v26 = vrot.slane %v11618_v14, %v11384_v45  ;;  %v4013_v20 = vmul.f32 %v11283_v28, %v3974_v50 }
0x108b   : > { %v4086_v9 = vpop.xlane.xlu1 %4085 }
0x108c   : > { %v4342_v42 = vsel %vm4324_vm5, %v4273_v26, %v4341_v63  ;;  %v11638_v6 = vadd.f32 %v11386_v17, %v4086_v9  ;;  %v3978_v26 = vmax.f32 %v3944_v11, 0.0  ;;  %v4099_v63 = vsel %vm793_vm0, %v4013_v20, 0.0 }
0x108d   : > { %4678 = vperm.xlu1 %8990, %v11634_v47   ;;  %v4343_v1 = vsel %vm4326_vm6, %v4277_v21, %v4342_v42  ;;  %v4105_v42 = vsel %vm793_vm0, %v4015_v30, 0.0  ;;  %v4541_v21 = vsub.f32 %v11407_v18, %v4405_v29 }
0x108e   : > { %v4281_v13 = vrot.slane %v11638_v6, %v11384_v45  ;;  %v4017_v9 = vmul.f32 %v11283_v28, %v3978_v26  ;;  %v11683_v28 = vld [vmem:[%s11680_s0] sm:$0xff] }
0x108f   : > { %v4580_v43 = vmul.f32 1.442695, %v4541_v21  ;;  %v5137_v18 = vrot.slane %v11683_v28, %v13746_v4  ;;  %v5158_v23 = vrot.slane %v11683_v28, %v11499_v48 }
0x1090   : > { %v4344_v34 = vsel %vm4328_vm7, %v4281_v13, %v4343_v1  ;;  %v4111_v10 = vsel %vm793_vm0, %v4017_v9, 0.0  ;;  %v5172_v13 = vrot.slane %v11683_v28, %v11531_v8  ;;  %v11697_v1 = vld [vmem:[%s11680_s0 + $0x8] sm:$0xff]  ;;  %vm13703_vm0 = vcmask 523712  }
0x1091   : > { %4681 = vperm.xlu1 %8990, %v11650_v33   ;;  %v4345_v56 = vsel %vm4330_vm8, %v4285_v16, %v4344_v34  ;;  %9215 = vpow2.f32 %v4580_v43  ;;  %v5186_v16 = vrot.slane %v11683_v28, %v11666_v44  ;;  %v5200_v34 = vrot.slane %v11697_v1, %v13747_v46 }
0x1092   : > { %v4364_v5 = vsel %vm4357_vm9, %v4345_v56, -inf }
0x1093   : > { %4365 = vmax.xlane.f32.xlu0 %v4364_v5 }
0x1097   : > { %4094 = vadd.xlane.f32.xlu0 %v4093_v7 }
0x109b   : > { %4100 = vadd.xlane.f32.xlu0 %v4099_v63 }
0x109e   : > { %v11685_v53 = vpop.eup %9215 }
0x109f   : > { %4106 = vadd.xlane.f32.xlu0 %v4105_v42 }
0x10a3   : > { %4112 = vadd.xlane.f32.xlu0 %v4111_v10 }
0x10b9   : > { %4684 = vperm.xlu0 %8989, %v11685_v53  }
0x10bd   : > { %5139 = vbcast.lane.b32.xlu0 %v5137_v18, 256 }
0x10c1   : > { %5160 = vbcast.lane.b32.xlu0 %v5158_v23, 256 }
0x10c5   : > { %5174 = vbcast.lane.b32.xlu0 %v5172_v13, 256 }
0x10c9   : > { %5188 = vbcast.lane.b32.xlu0 %v5186_v16, 256 }
0x10cd   : > { %5202 = vbcast.lane.b32.xlu0 %v5200_v34, 256 }
0x10f0   : > { %v11701_v56 = vpop.xlane.xlu1 %4091 }
0x10f4   : > { %v11703_v22 = vpop.xlane.xlu1 %4097 }
0x10f8   : > { %v11715_v7 = vpop.xlane.xlu1 %4103 }
0x10fd   : > { %v11720_v42 = vpop.xlane.xlu1 %4109 }
0x110c   : > { %v11705_v50 = vpop.xlane.xlu0 %4362 }
0x110d   : > { %v4413_v15 = vrot.slane %v11705_v50, %v13747_v46  ;;  %v4421_v5 = vrot.slane %v11705_v50, %v11499_v48  ;;  %v4429_v32 = vrot.slane %v11705_v50, %v11531_v8  ;;  %v4437_v26 = vrot.slane %v11705_v50, %v11666_v44 }
0x110f   : > { %v4543_v20 = vsub.f32 %v11512_v51, %v4413_v15  ;;  %v4545_v11 = vsub.f32 %v11546_v55, %v4421_v5  ;;  %v4547_v63 = vsub.f32 %v11569_v2, %v4429_v32  ;;  %v4549_v29 = vsub.f32 %v11576_v31, %v4437_v26  ;;  %v4673_v55 = vpop.permute.xlu1 %4672 }
0x1111   : > { %v4584_v30 = vmul.f32 1.442695, %v4543_v20  ;;  %v4588_v9 = vmul.f32 1.442695, %v4545_v11  ;;  %v4592_v51 = vmul.f32 1.442695, %v4547_v63 }
0x1112   : > { %v4596_v10 = vmul.f32 1.442695, %v4549_v29 }
0x1113   : > { %9217 = vpow2.f32 %v4584_v30  ;;  %v4676_v15 = vpop.permute.xlu1 %4675 }
0x1114   : > { %9219 = vpow2.f32 %v4588_v9 }
0x1115   : > { %9221 = vpow2.f32 %v4592_v51  ;;  %v4765_v51 = vrot.slane %v11536_v27, %v11384_v45 }
0x1116   : > { %9223 = vpow2.f32 %v4596_v10  ;;  %v4761_v10 = vrot.slane %v11538_v38, %v11384_v45 }
0x1117   : > { %v4679_v63 = vpop.permute.xlu1 %4678 }
0x1118   : > { %v4781_v27 = vrot.slane %v4679_v63, %v11384_v45 }
0x111c   : > { %v11723_v21 = vpop.xlane.xlu0 %4365 }
0x111d   : > { %v4445_v43 = vrot.slane %v11723_v21, %v13747_v46  ;;  %v4453_v18 = vrot.slane %v11723_v21, %v11499_v48  ;;  %v4461_v23 = vrot.slane %v11723_v21, %v11531_v8  ;;  %v4469_v5 = vrot.slane %v11723_v21, %v11666_v44 }
0x111f   : > { %v4551_v2 = vsub.f32 %v11594_v57, %v4445_v43  ;;  %v4553_v31 = vsub.f32 %v11608_v62, %v4453_v18  ;;  %v4555_v20 = vsub.f32 %v11623_v19, %v4461_v23  ;;  %v4557_v62 = vsub.f32 %v11631_v39, %v4469_v5  ;;  %v4682_v18 = vpop.permute.xlu1 %4681 }
0x1120   : > { %v4095_v13 = vpop.xlane.xlu0 %4094  ;;  %v11733_v16 = vpop.eup %9217  ;;  %v4769_v39 = vrot.slane %v11565_v41, %v11384_v45  ;;  %v4773_v43 = vrot.slane %v4673_v55, %v11384_v45  ;;  %v4785_v5 = vrot.slane %v4682_v18, %v11384_v45  ;;  %v11787_v18 = vadd.f32 %v11386_v17, %v11701_v56 }
0x1121   : > { %v4600_v34 = vmul.f32 1.442695, %v4551_v2  ;;  %4690 = vperm.xlu0 %8989, %v11733_v16   ;;  %v4604_v57 = vmul.f32 1.442695, %v4553_v31  ;;  %v11739_v11 = vpop.eup %9219  ;;  %v4608_v30 = vmul.f32 1.442695, %v4555_v20  ;;  %v4777_v2 = vrot.slane %v4676_v15, %v11384_v45 }
0x1122   : > { %v11743_v26 = vpop.eup %9221  ;;  %v4612_v29 = vmul.f32 1.442695, %v4557_v62  ;;  %v4289_v56 = vrot.slane %v11787_v18, %v11384_v45 }
0x1123   : > { %9225 = vpow2.f32 %v4600_v34  ;;  %v11746_v19 = vpop.eup %9223  ;;  %v4886_v34 = vsel %vm4318_vm2, %v4765_v51, %v4761_v10 }
0x1124   : > { %v4101_v32 = vpop.xlane.xlu0 %4100  ;;  %9227 = vpow2.f32 %v4604_v57  ;;  %v4887_v38 = vsel %vm4320_vm3, %v4769_v39, %v4886_v34  ;;  %v11781_v39 = vadd.f32 %v11386_v17, %v4095_v13  ;;  %v11798_v13 = vadd.f32 %v11386_v17, %v11703_v22 }
0x1125   : > { %4696 = vperm.xlu0 %8989, %v11739_v11   ;;  %9229 = vpow2.f32 %v4608_v30  ;;  %v4888_v41 = vsel %vm4322_vm4, %v4773_v43, %v4887_v38  ;;  %v5144_v43 = vrot.slane %v11683_v28, %v13747_v46  ;;  %v5151_v38 = vrot.slane %v11683_v28, %v13748_v59 }
0x1126   : > { %9231 = vpow2.f32 %v4612_v29  ;;  %v4889_v55 = vsel %vm4324_vm5, %v4777_v2, %v4888_v41  ;;  %v4409_v2 = vrot.slane %v11705_v50, %v13746_v4  ;;  %v4293_v34 = vrot.slane %v11781_v39, %v11384_v45 }
0x1127   : > { %v4890_v57 = vsel %vm4326_vm6, %v4781_v27, %v4889_v55  ;;  %v11794_v27 = vadd.f32 %v11386_v17, %v4101_v32 }
0x1128   : > { %v4107_v9 = vpop.xlane.xlu0 %4106  ;;  %v4891_v30 = vsel %vm4328_vm7, %v4785_v5, %v4890_v57  ;;  %v4417_v5 = vrot.slane %v11705_v50, %v13748_v59  ;;  %v4542_v41 = vsub.f32 %v11508_v35, %v4409_v2  ;;  %v4346_v55 = vsel %vm4318_vm2, %v4293_v34, %v4289_v56 }
0x1129   : > { %4702 = vperm.xlu0 %8989, %v11743_v26   ;;  %v4301_v32 = vrot.slane %v11794_v27, %v11384_v45  ;;  %v11811_v22 = vadd.f32 %v11386_v17, %v4107_v9  ;;  %v11817_v57 = vadd.f32 %v11386_v17, %v11715_v7  ;;  %v4425_v35 = vrot.slane %v11705_v50, %v11515_v54 }
0x112a   : > { %v11835_v34 = vadd.f32 %v11386_v17, %v11720_v42  ;;  %v4441_v42 = vrot.slane %v11723_v21, %v13746_v4 }
0x112b   : > { %v4305_v2 = vrot.slane %v11817_v57, %v11384_v45  ;;  %v4546_v56 = vsub.f32 %v11557_v49, %v4425_v35 }
0x112c   : > { %v4113_v23 = vpop.xlane.xlu0 %4112 }
0x112d   : > { %4708 = vperm.xlu0 %8989, %v11746_v19   ;;  %v11829_v7 = vadd.f32 %v11386_v17, %v4113_v23  ;;  %v4313_v17 = vrot.slane %v11835_v34, %v11384_v45  ;;  %v4590_v49 = vmul.f32 1.442695, %v4546_v56 }
0x1130   : > { %v11757_v31 = vpop.eup %9225 }
0x1131   : > { %13751 = vst [vmem:[#allocation25_spill] sm:$0xff] %v11757_v31  ;;  %4714 = vperm.xlu0 %8989, %v11757_v31   ;;  %v11766_v15 = vpop.eup %9227 }
0x1132   : > { %13752 = vst [vmem:[#allocation26_spill] sm:$0xff] %v11766_v15  ;;  %v11774_v51 = vpop.eup %9229 }
0x1133   : > { %13753 = vst [vmem:[#allocation28_spill] sm:$0xff] %v11774_v51  ;;  %v11777_v10 = vpop.eup %9231 }
0x1134   : > { %v4685_v20 = vpop.permute.xlu0 %4684  ;;  %13754 = vst [vmem:[#allocation29_spill] sm:$0xff] %v11777_v10 }
0x1135   : > { %v4789_v62 = vrot.slane %v4685_v20, %v11384_v45  ;;  %4720 = vperm.xlu0 %8989, %v11766_v15   ;;  %v4297_v20 = vrot.slane %v11798_v13, %v11384_v45 }
0x1137   : > { %v4892_v63 = vsel %vm4330_vm8, %v4789_v62, %v4891_v30  ;;  %v5165_v62 = vrot.slane %v11683_v28, %v11515_v54  ;;  %v4544_v30 = vsub.f32 %v11524_v52, %v4417_v5  ;;  %v4347_v9 = vsel %vm4320_vm3, %v4297_v20, %v4346_v55 }
0x1138   : > { %v4918_v29 = vsel %vm4357_vm9, %v4892_v63, 0.0  ;;  %v4582_v63 = vmul.f32 1.442695, %v4542_v41  ;;  %v5179_v52 = vrot.slane %v11683_v28, %v11542_v3  ;;  %v4317_v41 = vrot.slane %v11829_v7, %v11384_v45 }
0x1139   : > { %4919 = vadd.xlane.f32.xlu1 %v4918_v29  ;;  %4726 = vperm.xlu0 %8989, %v11774_v51   ;;  %v4348_v29 = vsel %vm4322_vm4, %v4301_v32, %v4347_v9  ;;  %v4586_v5 = vmul.f32 1.442695, %v4544_v30  ;;  %v5193_v28 = vrot.slane %v11697_v1, %v13746_v4  ;;  %v4449_v30 = vrot.slane %v11723_v21, %v13748_v59 }
0x113a   : > { %9233 = vpow2.f32 %v4582_v63  ;;  %v4349_v23 = vsel %vm4324_vm5, %v4305_v2, %v4348_v29  ;;  %v4457_v9 = vrot.slane %v11723_v21, %v11515_v54 }
0x113b   : > { %9235 = vpow2.f32 %v4586_v5  ;;  %v4552_v29 = vsub.f32 %v11603_v12, %v4449_v30 }
0x113c   : > { %9237 = vpow2.f32 %v4590_v49  ;;  %v11896_v49 = vpop.permute.xlu0 %5139 }
0x113d   : > { %4732 = vperm.xlu0 %8989, %v11777_v10  }
0x1147   : > { %v11864_v2 = vpop.eup %9233 }
0x1148   : > { %13755 = vst [vmem:[#allocation30_spill] sm:$0xff] %v11864_v2  ;;  %v11870_v56 = vpop.eup %9235 }
0x1149   : > { %13756 = vst [vmem:[#allocation31_spill] sm:$0xff] %v11870_v56 }
0x114a   : > { %5146 = vbcast.lane.b32.xlu1 %v5144_v43, 256  ;;  %v4309_v43 = vrot.slane %v11811_v22, %v11384_v45 }
0x114c   : > { %v4350_v55 = vsel %vm4326_vm6, %v4309_v43, %v4349_v23  ;;  %v11874_v23 = vpop.eup %9237 }
0x114d   : > { %v4351_v32 = vsel %vm4328_vm7, %v4313_v17, %v4350_v55  ;;  %13757 = vst [vmem:[#allocation32_spill] sm:$0xff] %v11874_v23 }
0x114e   : > { %5153 = vbcast.lane.b32.xlu1 %v5151_v38, 256  ;;  %v4433_v38 = vrot.slane %v11705_v50, %v11542_v3  ;;  %v4352_v20 = vsel %vm4330_vm8, %v4317_v41, %v4351_v32 }
0x114f   : > { %v4367_v63 = vsel %vm4357_vm9, %v4352_v20, -inf }
0x1150   : > { %v4548_v50 = vsub.f32 %v11579_v37, %v4433_v38  ;;  %v4550_v37 = vsub.f32 %v11590_v36, %v4441_v42  ;;  %v4554_v36 = vsub.f32 %v11618_v14, %v4457_v9  ;;  %v4602_v38 = vmul.f32 1.442695, %v4552_v29  ;;  %v11898_v42 = vpop.permute.xlu0 %5160 }
0x1151   : > { %v5214_v14 = vrot.slane %v11697_v1, %v11499_v48 }
0x1152   : > { %5167 = vbcast.lane.b32.xlu1 %v5165_v62, 256  ;;  %v5207_v62 = vrot.slane %v11697_v1, %v13748_v59  ;;  %v4594_v35 = vmul.f32 1.442695, %v4548_v50  ;;  %v4598_v43 = vmul.f32 1.442695, %v4550_v37  ;;  %v5221_v50 = vrot.slane %v11697_v1, %v11515_v54 }
0x1153   : > { %v4606_v12 = vmul.f32 1.442695, %v4554_v36 }
0x1154   : > { %9239 = vpow2.f32 %v4594_v35  ;;  %v11900_v32 = vpop.permute.xlu0 %5174 }
0x1155   : > { %9241 = vpow2.f32 %v4598_v43 }
0x1156   : > { %5181 = vbcast.lane.b32.xlu1 %v5179_v52, 256  ;;  %v4465_v52 = vrot.slane %v11723_v21, %v11542_v3  ;;  %9243 = vpow2.f32 %v4602_v38 }
0x1157   : > { %9245 = vpow2.f32 %v4606_v12 }
0x1158   : > { %v4556_v5 = vsub.f32 %v11638_v6, %v4465_v52  ;;  %v11902_v20 = vpop.permute.xlu0 %5188 }
0x115a   : > { %5195 = vbcast.lane.b32.xlu1 %v5193_v28, 256  ;;  %v4610_v41 = vmul.f32 1.442695, %v4556_v5 }
0x115c   : > { %4368 = vmax.xlane.f32.xlu0 %v4367_v63  ;;  %9247 = vpow2.f32 %v4610_v41 }
0x115e   : > { %5209 = vbcast.lane.b32.xlu1 %v5207_v62, 256  ;;  %v11904_v62 = vpop.permute.xlu0 %5202 }
0x1161   : > { %v11877_v55 = vpop.eup %9239 }
0x1162   : > { %4687 = vperm.xlu1 %8990, %v11864_v2   ;;  %13758 = vst [vmem:[#allocation33_spill] sm:$0xff] %v11877_v55  ;;  %v11882_v21 = vpop.eup %9241 }
0x1163   : > { %13759 = vst [vmem:[#allocation34_spill] sm:$0xff] %v11882_v21  ;;  %v11885_v6 = vpop.eup %9243 }
0x1164   : > { %13760 = vst [vmem:[#allocation35_spill] sm:$0xff] %v11885_v6  ;;  %v11888_v17 = vpop.eup %9245 }
0x1165   : > { %13761 = vst [vmem:[#allocation36_spill] sm:$0xff] %v11888_v17 }
0x1166   : > { %4693 = vperm.xlu1 %8990, %v11870_v56  }
0x1169   : > { %v11891_v28 = vpop.eup %9247 }
0x116a   : > { %4699 = vperm.xlu1 %8990, %v11874_v23   ;;  %13762 = vst [vmem:[#allocation37_spill] sm:$0xff] %v11891_v28 }
0x116e   : > { %4705 = vperm.xlu1 %8990, %v11877_v55  }
0x1172   : > { %4711 = vperm.xlu1 %8990, %v11882_v21   ;;  %5216 = vbcast.lane.b32.xlu0 %v5214_v14, 256 }
0x1176   : > { %4717 = vperm.xlu1 %8990, %v11885_v6  }
0x117a   : > { %4723 = vperm.xlu1 %8990, %v11888_v17  }
0x117e   : > { %4729 = vperm.xlu1 %8990, %v11891_v28  }
0x1182   : > { %5223 = vbcast.lane.b32.xlu1 %v5221_v50, 256 }
0x119c   : > { %v4691_v35 = vpop.permute.xlu0 %4690 }
0x119d   : > { %v4797_v6 = vrot.slane %v4691_v35, %v11384_v45 }
0x11a0   : > { %v4697_v30 = vpop.permute.xlu0 %4696 }
0x11a1   : > { %v4805_v2 = vrot.slane %v4697_v30, %v11384_v45 }
0x11a4   : > { %v4703_v63 = vpop.permute.xlu0 %4702 }
0x11a5   : > { %v4813_v31 = vrot.slane %v4703_v63, %v11384_v45 }
0x11a8   : > { %v4709_v29 = vpop.permute.xlu0 %4708 }
0x11ac   : > { %v4715_v36 = vpop.permute.xlu0 %4714 }
0x11b0   : > { %v4721_v5 = vpop.permute.xlu0 %4720 }
0x11b4   : > { %v4727_v14 = vpop.permute.xlu0 %4726 }
0x11b8   : > { %v4733_v24 = vpop.permute.xlu0 %4732 }
0x11c2   : > { %v11906_v37 = vpop.xlane.xlu1 %4919 }
0x11c6   : > { %v11908_v9 = vpop.permute.xlu1 %5146 }
0x11ca   : > { %v11910_v43 = vpop.permute.xlu1 %5153 }
0x11ce   : > { %v11912_v52 = vpop.permute.xlu1 %5167 }
0x11d2   : > { %v11914_v38 = vpop.permute.xlu1 %5181 }
0x11d6   : > { %v11916_v12 = vpop.permute.xlu1 %5195 }
0x11d7   : > { %13763 = vst [vmem:[#allocation38_spill] sm:$0xff] %v11916_v12 }
0x11da   : > { %v11918_v41 = vpop.permute.xlu1 %5209 }
0x11db   : > { %13764 = vst [vmem:[#allocation39_spill] sm:$0xff] %v11918_v41 }
0x11de   : > { %v4688_v50 = vpop.permute.xlu1 %4687 }
0x11df   : > { %v4793_v28 = vrot.slane %v4688_v50, %v11384_v45 }
0x11e1   : > { %v4893_v41 = vsel %vm4318_vm2, %v4797_v6, %v4793_v28 }
0x11e2   : > { %v4694_v40 = vpop.permute.xlu1 %4693 }
0x11e3   : > { %v4801_v17 = vrot.slane %v4694_v40, %v11384_v45 }
0x11e5   : > { %v11923_v21 = vpop.xlane.xlu0 %4368  ;;  %v4894_v12 = vsel %vm4320_vm3, %v4801_v17, %v4893_v41 }
0x11e6   : > { %v4700_v55 = vpop.permute.xlu1 %4699  ;;  %v4473_v23 = vrot.slane %v11923_v21, %v13746_v4  ;;  %v4481_v56 = vrot.slane %v11923_v21, %v13748_v59  ;;  %v4489_v50 = vrot.slane %v11923_v21, %v11515_v54  ;;  %v4497_v6 = vrot.slane %v11923_v21, %v11542_v3 }
0x11e7   : > { %v4809_v15 = vrot.slane %v4700_v55, %v11384_v45  ;;  %v4895_v17 = vsel %vm4322_vm4, %v4805_v2, %v4894_v12 }
0x11e8   : > { %v4558_v40 = vsub.f32 %v11787_v18, %v4473_v23  ;;  %v4560_v35 = vsub.f32 %v11798_v13, %v4481_v56  ;;  %v4562_v41 = vsub.f32 %v11817_v57, %v4489_v50  ;;  %v4821_v56 = vrot.slane %v4709_v29, %v11384_v45 }
0x11e9   : > { %v4896_v13 = vsel %vm4324_vm5, %v4809_v15, %v4895_v17  ;;  %v4564_v2 = vsub.f32 %v11835_v34, %v4497_v6  ;;  %v4829_v57 = vrot.slane %v4715_v36, %v11384_v45 }
0x11ea   : > { %v4706_v10 = vpop.permute.xlu1 %4705  ;;  %v4614_v51 = vmul.f32 1.442695, %v4558_v40  ;;  %v4618_v18 = vmul.f32 1.442695, %v4560_v35  ;;  %v4897_v55 = vsel %vm4326_vm6, %v4813_v31, %v4896_v13  ;;  %v4837_v35 = vrot.slane %v4721_v5, %v11384_v45 }
0x11eb   : > { %v4817_v28 = vrot.slane %v4706_v10, %v11384_v45  ;;  %v4622_v10 = vmul.f32 1.442695, %v4562_v41  ;;  %v4626_v12 = vmul.f32 1.442695, %v4564_v2  ;;  %v4845_v41 = vrot.slane %v4727_v14, %v11384_v45 }
0x11ec   : > { %9249 = vpow2.f32 %v4614_v51  ;;  %v4477_v5 = vrot.slane %v11923_v21, %v13747_v46 }
0x11ed   : > { %v4898_v30 = vsel %vm4328_vm7, %v4817_v28, %v4897_v55  ;;  %9251 = vpow2.f32 %v4618_v18 }
0x11ee   : > { %v4712_v23 = vpop.permute.xlu1 %4711  ;;  %v4899_v40 = vsel %vm4330_vm8, %v4821_v56, %v4898_v30  ;;  %9253 = vpow2.f32 %v4622_v10  ;;  %v4853_v56 = vrot.slane %v4733_v24, %v11384_v45  ;;  %v4559_v24 = vsub.f32 %v11781_v39, %v4477_v5 }
0x11ef   : > { %v4825_v63 = vrot.slane %v4712_v23, %v11384_v45  ;;  %v4921_v51 = vsel %vm4357_vm9, %v4899_v40, 0.0  ;;  %9255 = vpow2.f32 %v4626_v12  ;;  %v4485_v40 = vrot.slane %v11923_v21, %v11499_v48 }
0x11f0   : > { %4922 = vadd.xlane.f32.xlu0 %v4921_v51  ;;  %v4493_v10 = vrot.slane %v11923_v21, %v11531_v8  ;;  %v4501_v39 = vrot.slane %v11923_v21, %v11666_v44 }
0x11f1   : > { %v4900_v31 = vsel %vm4318_vm2, %v4829_v57, %v4825_v63  ;;  %v4561_v51 = vsub.f32 %v11794_v27, %v4485_v40  ;;  %v4616_v57 = vmul.f32 1.442695, %v4559_v24 }
0x11f2   : > { %v4718_v15 = vpop.permute.xlu1 %4717  ;;  %v4565_v27 = vsub.f32 %v11829_v7, %v4501_v39 }
0x11f3   : > { %v4833_v29 = vrot.slane %v4718_v15, %v11384_v45  ;;  %9257 = vpow2.f32 %v4616_v57  ;;  %v4620_v12 = vmul.f32 1.442695, %v4561_v51 }
0x11f5   : > { %v4901_v50 = vsel %vm4320_vm3, %v4833_v29, %v4900_v31  ;;  %v5235_v29 = vrot.slane %v11697_v1, %v11542_v3  ;;  %v4563_v31 = vsub.f32 %v11811_v22, %v4493_v10  ;;  %9259 = vpow2.f32 %v4620_v12 }
0x11f6   : > { %v4724_v17 = vpop.permute.xlu1 %4723  ;;  %v4902_v6 = vsel %vm4322_vm4, %v4837_v35, %v4901_v50  ;;  %v787_v50 = vld [vmem:[%s11680_s0 + $0x10] sm:$0xff] }
0x11f7   : > { %v4841_v34 = vrot.slane %v4724_v17, %v11384_v45  ;;  %v5249_v35 = vrot.slane %v787_v50, %v13746_v4  ;;  %v4624_v17 = vmul.f32 1.442695, %v4563_v31  ;;  %v5277_v21 = vrot.slane %v787_v50, %v11515_v54 }
0x11f8   : > { %v5291_v7 = vrot.slane %v787_v50, %v11542_v3  ;;  %v5256_v51 = vrot.slane %v787_v50, %v13747_v46 }
0x11f9   : > { %v4903_v36 = vsel %vm4324_vm5, %v4841_v34, %v4902_v6  ;;  %v11959_v28 = vpop.eup %9249  ;;  %v5263_v34 = vrot.slane %v787_v50, %v13748_v59  ;;  %9261 = vpow2.f32 %v4624_v17  ;;  %v4628_v6 = vmul.f32 1.442695, %v4565_v27 }
0x11fa   : > { %v4730_v18 = vpop.permute.xlu1 %4729  ;;  %4735 = vperm.xlu1 %8990, %v11959_v28   ;;  %v4904_v23 = vsel %vm4326_vm6, %v4845_v41, %v4903_v36  ;;  %v11969_v30 = vpop.eup %9251  ;;  %v788_v36 = vld [vmem:[%s11680_s0 + $0x18] sm:$0xff]  ;;  %v5298_v27 = vrot.slane %v787_v50, %v11666_v44  ;;  %s9645_s0 = scalar_lea.vmem %s8052_s27, 64 }
0x11fb   : > { %v4849_v13 = vrot.slane %v4730_v18, %v11384_v45  ;;  %v11977_v2 = vpop.eup %9253  ;;  %9263 = vpow2.f32 %v4628_v6  ;;  %v5305_v18 = vrot.slane %v788_v36, %v13746_v4  ;;  %v5347_v40 = vrot.slane %v788_v36, %v11542_v3  ;;  %p9646_p3 = scmp.ne.s32.totalorder %s8052_s27, %s9645_s0  ;;  %p9653_p4 = scmp.lt.s32.totalorder %s9651_s20, %s9645_s0 }
0x11fc   : > { %v11983_v15 = vpop.eup %9255  ;;  %9265 = vrcp.f32 %v11906_v37  ;;  %v5319_v37 = vrot.slane %v788_v36, %v13748_v59  ;;  %v5326_v17 = vrot.slane %v788_v36, %v11499_v48 }
0x11fd   : > { %v4905_v55 = vsel %vm4328_vm7, %v4849_v13, %v4904_v23  ;;  %v5228_v23 = vrot.slane %v11697_v1, %v11531_v8  ;;  %p9647_p13 = pnand %p9646_p3, %p13884_p9  ;;  %p9654_p7 = por %p9653_p4, %p9652_p1 }
0x11fe   : > { %v4906_v63 = vsel %vm4330_vm8, %v4853_v56, %v4905_v55  ;;  %4741 = vperm.xlu1 %8990, %v11969_v30   ;;  %v5333_v55 = vrot.slane %v788_v36, %v11515_v54 }
0x11ff   : > { %v4924_v14 = vsel %vm4357_vm9, %v4906_v63, 0.0  ;;  %p9648_p5 = pneg %p9647_p13 }
0x1200   : > { %4925 = vadd.xlane.f32.xlu0 %v4924_v14  ;;  %v11996_v22 = vpop.eup %9257  ;;  %v5242_v14 = vrot.slane %v11697_v1, %v11666_v44  ;;  %v5270_v1 = vrot.slane %v787_v50, %v11499_v48 }
0x1201   : > { %p9655_p2 = pnand %p9654_p7, %p9648_p5 }
0x1202   : > { %4747 = vperm.xlu1 %8990, %v11977_v2   ;;  %v12002_v41 = vpop.eup %9259 }
0x1206   : > { %4753 = vperm.xlu1 %8990, %v11983_v15   ;;  %v12006_v13 = vpop.eup %9261 }
0x1208   : > { %v12010_v56 = vpop.eup %9263 }
0x1209   : > { %v9266_v5 = vpop.eup %9265 }
0x120a   : > { %5237 = vbcast.lane.b32.xlu1 %v5235_v29, 256  ;;  %v4941_v63 = vrot.slane %v9266_v5, %v13746_v4  ;;  %v4949_v24 = vrot.slane %v9266_v5, %v13748_v59  ;;  %v4957_v29 = vrot.slane %v9266_v5, %v11515_v54  ;;  %v4965_v12 = vrot.slane %v9266_v5, %v11542_v3 }
0x120c   : > { %v5098_v10 = vmul.f32 %v11449_v0, %v4941_v63  ;;  %v5100_v57 = vmul.f32 %v11455_v61, %v4949_v24  ;;  %v5102_v0 = vmul.f32 %v11614_v58, %v4957_v29  ;;  %v5284_v61 = vrot.slane %v787_v50, %v11531_v8 }
0x120d   : > { %v5312_v58 = vrot.slane %v788_v36, %v13747_v46  ;;  %v5354_v50 = vrot.slane %v788_v36, %v11666_v44 }
0x120e   : > { %5251 = vbcast.lane.b32.xlu1 %v5249_v35, 256  ;;  %v12026_v39 = vmul.f32 %v11896_v49, %v5098_v10  ;;  %v12031_v31 = vmul.f32 %v11910_v43, %v5100_v57  ;;  %v12038_v49 = vmul.f32 %v11912_v52, %v5102_v0  ;;  %v5104_v35 = vmul.f32 %v11650_v33, %v4965_v12 }
0x120f   : > { %v5340_v52 = vrot.slane %v788_v36, %v11531_v8  ;;  %v4945_v33 = vrot.slane %v9266_v5, %v13747_v46  ;;  %v4969_v36 = vrot.slane %v9266_v5, %v11666_v44 }
0x1210   : > { %v12044_v43 = vmul.f32 %v11914_v38, %v5104_v35  ;;  %v4953_v38 = vrot.slane %v9266_v5, %v11499_v48 }
0x1212   : > { %5265 = vbcast.lane.b32.xlu1 %v5263_v34, 256  ;;  %v5099_v34 = vmul.f32 %v11451_v60, %v4945_v33 }
0x1214   : > { %v12055_v6 = vmul.f32 %v11908_v9, %v5099_v34  ;;  %v5105_v9 = vmul.f32 %v11685_v53, %v4969_v36 }
0x1216   : > { %4738 = vperm.xlu0 %8989, %v11996_v22   ;;  %5279 = vbcast.lane.b32.xlu1 %v5277_v21, 256  ;;  %v5101_v21 = vmul.f32 %v11600_v25, %v4953_v38  ;;  %v12072_v25 = vmul.f32 %v11902_v20, %v5105_v9 }
0x121a   : > { %4744 = vperm.xlu0 %8989, %v12002_v41   ;;  %5293 = vbcast.lane.b32.xlu1 %v5291_v7, 256  ;;  %v4961_v7 = vrot.slane %v9266_v5, %v11531_v8 }
0x121e   : > { %4750 = vperm.xlu0 %8989, %v12006_v13   ;;  %5307 = vbcast.lane.b32.xlu1 %v5305_v18, 256  ;;  %v12061_v18 = vmul.f32 %v11898_v42, %v5101_v21  ;;  %v12075_v42 = vpop.permute.xlu1 %5223 }
0x1222   : > { %4756 = vperm.xlu0 %8989, %v12010_v56   ;;  %5321 = vbcast.lane.b32.xlu1 %v5319_v37, 256  ;;  %v5103_v37 = vmul.f32 %v11634_v47, %v4961_v7  ;;  %v5217_v47 = vpop.permute.xlu0 %5216 }
0x1224   : > { %v12067_v60 = vmul.f32 %v11900_v32, %v5103_v37 }
0x1226   : > { %5230 = vbcast.lane.b32.xlu0 %v5228_v23, 256  ;;  %5335 = vbcast.lane.b32.xlu1 %v5333_v55, 256 }
0x122a   : > { %5244 = vbcast.lane.b32.xlu0 %v5242_v14, 256  ;;  %5349 = vbcast.lane.b32.xlu1 %v5347_v40, 256 }
0x122e   : > { %5258 = vbcast.lane.b32.xlu0 %v5256_v51, 256  ;;  %5455 = vperm.xlu1 %8990, %v12026_v39  }
0x1232   : > { %5272 = vbcast.lane.b32.xlu0 %v5270_v1, 256  ;;  %5461 = vperm.xlu1 %8990, %v12031_v31  }
0x1236   : > { %5286 = vbcast.lane.b32.xlu0 %v5284_v61, 256  ;;  %5467 = vperm.xlu1 %8990, %v12038_v49  }
0x123a   : > { %5300 = vbcast.lane.b32.xlu0 %v5298_v27, 256  ;;  %5473 = vperm.xlu1 %8990, %v12044_v43  }
0x123e   : > { %5314 = vbcast.lane.b32.xlu0 %v5312_v58, 256 }
0x1242   : > { %5328 = vbcast.lane.b32.xlu0 %v5326_v17, 256 }
0x1246   : > { %5342 = vbcast.lane.b32.xlu0 %v5340_v52, 256 }
0x124a   : > { %5356 = vbcast.lane.b32.xlu0 %v5354_v50, 256 }
0x124e   : > { %5458 = vperm.xlu0 %8989, %v12055_v6  }
0x1252   : > { %5464 = vperm.xlu0 %8989, %v12061_v18  }
0x1256   : > { %5470 = vperm.xlu0 %8989, %v12067_v60  }
0x125a   : > { %5476 = vperm.xlu0 %8989, %v12072_v25  }
0x1275   : > { %v4736_v23 = vpop.permute.xlu1 %4735 }
0x1276   : > { %v4857_v0 = vrot.slane %v4736_v23, %v11384_v45 }
0x1279   : > { %v4742_v55 = vpop.permute.xlu1 %4741  ;;  %v4923_v5 = vpop.xlane.xlu0 %4922 }
0x127a   : > { %9267 = vrcp.f32 %v4923_v5 }
0x127d   : > { %v4748_v63 = vpop.permute.xlu1 %4747 }
0x127e   : > { %v4873_v52 = vrot.slane %v4748_v63, %v11384_v45 }
0x1281   : > { %v4754_v14 = vpop.permute.xlu1 %4753 }
0x1282   : > { %v4881_v37 = vrot.slane %v4754_v14, %v11384_v45 }
0x1285   : > { %v12079_v40 = vpop.permute.xlu1 %5237 }
0x1287   : > { %v12077_v32 = vpop.eup %9267 }
0x1288   : > { %v4977_v53 = vrot.slane %v12077_v32, %v13747_v46  ;;  %v4985_v20 = vrot.slane %v12077_v32, %v11499_v48  ;;  %v4993_v7 = vrot.slane %v12077_v32, %v11531_v8  ;;  %v5001_v5 = vrot.slane %v12077_v32, %v11666_v44 }
0x1289   : > { %v4926_v10 = vpop.xlane.xlu0 %4925  ;;  %v12090_v29 = vpop.permute.xlu1 %5251 }
0x128a   : > { %v5107_v24 = vmul.f32 %v11733_v16, %v4977_v53  ;;  %v5109_v57 = vmul.f32 %v11739_v11, %v4985_v20  ;;  %9269 = vrcp.f32 %v4926_v10  ;;  %v5113_v10 = vmul.f32 %v11746_v19, %v5001_v5  ;;  %v13766_v19 = vld [vmem:[#allocation26_spill] sm:$0xff]  ;;  %v12167_v5 = vld [vmem:[%s12160_s23] sm:$0xff] }
0x128c   : > { %v12087_v51 = vmul.f32 %v11904_v62, %v5107_v24  ;;  %v12095_v61 = vmul.f32 %v5217_v47, %v5109_v57  ;;  %v4865_v62 = vrot.slane %v4742_v55, %v11384_v45  ;;  %v5111_v47 = vmul.f32 %v11743_v26, %v4993_v7 }
0x128d   : > { %v12100_v11 = vpop.permute.xlu1 %5265 }
0x128e   : > { %5482 = vperm.xlu0 %8989, %v12087_v51  }
0x1291   : > { %v4739_v1 = vpop.permute.xlu0 %4738  ;;  %v12108_v38 = vpop.permute.xlu1 %5279 }
0x1292   : > { %v4861_v12 = vrot.slane %v4739_v1, %v11384_v45  ;;  %5488 = vperm.xlu0 %8989, %v12095_v61  }
0x1294   : > { %v4907_v16 = vsel %vm4318_vm2, %v4861_v12, %v4857_v0  ;;  %v13765_v12 = vld [vmem:[#allocation25_spill] sm:$0xff] }
0x1295   : > { %v4745_v35 = vpop.permute.xlu0 %4744  ;;  %v4908_v58 = vsel %vm4320_vm3, %v4865_v62, %v4907_v16  ;;  %v12123_v24 = vpop.permute.xlu1 %5293 }
0x1296   : > { %v4869_v27 = vrot.slane %v4745_v35, %v11384_v45 }
0x1297   : > { %v12120_v63 = vpop.eup %9269 }
0x1298   : > { %v4909_v17 = vsel %vm4322_vm4, %v4869_v27, %v4908_v58  ;;  %v5009_v26 = vrot.slane %v12120_v63, %v13747_v46  ;;  %v5017_v62 = vrot.slane %v12120_v63, %v11499_v48  ;;  %v5033_v7 = vrot.slane %v12120_v63, %v11666_v44 }
0x1299   : > { %v4751_v33 = vpop.permute.xlu0 %4750  ;;  %v4910_v34 = vsel %vm4324_vm5, %v4873_v52, %v4909_v17  ;;  %v12133_v0 = vpop.permute.xlu1 %5307  ;;  %v5025_v17 = vrot.slane %v12120_v63, %v11531_v8 }
0x129a   : > { %v4877_v50 = vrot.slane %v4751_v33, %v11384_v45  ;;  %v5115_v16 = vmul.f32 %v13765_v12, %v5009_v26  ;;  %v5117_v58 = vmul.f32 %v13766_v19, %v5017_v62 }
0x129c   : > { %v4911_v21 = vsel %vm4326_vm6, %v4877_v50, %v4910_v34  ;;  %v13767_v34 = vld [vmem:[#allocation28_spill] sm:$0xff] }
0x129d   : > { %v4757_v36 = vpop.permute.xlu0 %4756  ;;  %v4912_v23 = vsel %vm4328_vm7, %v4881_v37, %v4911_v21  ;;  %v12145_v33 = vpop.permute.xlu1 %5321  ;;  %v5119_v21 = vmul.f32 %v13767_v34, %v5025_v17 }
0x129e   : > { %v4885_v9 = vrot.slane %v4757_v36, %v11384_v45 }
0x12a0   : > { %v4913_v55 = vsel %vm4330_vm8, %v4885_v9, %v4912_v23  ;;  %v13770_v23 = vld [vmem:[#allocation29_spill] sm:$0xff] }
0x12a1   : > { %v5231_v53 = vpop.permute.xlu0 %5230  ;;  %v4927_v20 = vsel %vm4357_vm9, %v4913_v55, 0.0  ;;  %v12162_v9 = vpop.permute.xlu1 %5335 }
0x12a2   : > { %v12125_v14 = vmul.f32 %v5231_v53, %v5111_v47  ;;  %4928 = vadd.xlane.f32.xlu1 %v4927_v20  ;;  %v5121_v47 = vmul.f32 %v13770_v23, %v5033_v7  ;;  %v6057_v20 = vrot.slane %v12167_v5, %v13746_v4 }
0x12a4   : > { %5494 = vperm.xlu0 %8989, %v12125_v14  }
0x12a5   : > { %v5245_v57 = vpop.permute.xlu0 %5244  ;;  %v12176_v26 = vpop.permute.xlu1 %5349 }
0x12a6   : > { %v12131_v1 = vmul.f32 %v5245_v57, %v5113_v10  ;;  %v6078_v57 = vrot.slane %v12167_v5, %v11499_v48 }
0x12a8   : > { %5500 = vperm.xlu0 %8989, %v12131_v1  }
0x12a9   : > { %v5259_v35 = vpop.permute.xlu0 %5258 }
0x12aa   : > { %v12139_v27 = vmul.f32 %v5259_v35, %v5115_v16  ;;  %v5456_v16 = vpop.permute.xlu1 %5455 }
0x12ab   : > { %v5553_v17 = vrot.slane %v5456_v16, %v11384_v45 }
0x12ac   : > { %5506 = vperm.xlu0 %8989, %v12139_v27  }
0x12ad   : > { %v5273_v52 = vpop.permute.xlu0 %5272 }
0x12ae   : > { %v12147_v50 = vmul.f32 %v5273_v52, %v5117_v58  ;;  %v5462_v19 = vpop.permute.xlu1 %5461 }
0x12af   : > { %v5561_v7 = vrot.slane %v5462_v19, %v11384_v45 }
0x12b0   : > { %5512 = vperm.xlu0 %8989, %v12147_v50  }
0x12b1   : > { %v5287_v37 = vpop.permute.xlu0 %5286 }
0x12b2   : > { %v12153_v36 = vmul.f32 %v5287_v37, %v5119_v21  ;;  %v5468_v34 = vpop.permute.xlu1 %5467 }
0x12b4   : > { %13768 = vst [vmem:[#allocation25_spill] sm:$0xff] %v12153_v36  ;;  %5518 = vperm.xlu0 %8989, %v12153_v36  }
0x12b5   : > { %v5301_v55 = vpop.permute.xlu0 %5300 }
0x12b6   : > { %v12169_v53 = vmul.f32 %v5301_v55, %v5121_v47 }
0x12b8   : > { %13771 = vst [vmem:[#allocation26_spill] sm:$0xff] %v12169_v53  ;;  %5524 = vperm.xlu0 %8989, %v12169_v53   ;;  %v5474_v53 = vpop.permute.xlu1 %5473 }
0x12b9   : > { %v12174_v10 = vpop.permute.xlu0 %5314 }
0x12bc   : > { %6059 = vbcast.lane.b32.xlu0 %v6057_v20, 256  ;;  %v5569_v20 = vrot.slane %v5468_v34, %v11384_v45  ;;  %v4973_v34 = vrot.slane %v12077_v32, %v13746_v4 }
0x12bd   : > { %v12180_v12 = vpop.permute.xlu0 %5328 }
0x12c0   : > { %6080 = vbcast.lane.b32.xlu0 %v6078_v57, 256 }
0x12c1   : > { %v12182_v62 = vpop.permute.xlu0 %5342 }
0x12c5   : > { %v12184_v35 = vpop.permute.xlu0 %5356 }
0x12c9   : > { %v5459_v58 = vpop.permute.xlu0 %5458 }
0x12ca   : > { %v5557_v52 = vrot.slane %v5459_v58, %v11384_v45 }
0x12cc   : > { %v5678_v21 = vsel %vm4318_vm2, %v5557_v52, %v5553_v17  ;;  %v5577_v17 = vrot.slane %v5474_v53, %v11384_v45 }
0x12cd   : > { %v5465_v37 = vpop.permute.xlu0 %5464  ;;  %v5679_v47 = vsel %vm4320_vm3, %v5561_v7, %v5678_v21 }
0x12ce   : > { %v5565_v23 = vrot.slane %v5465_v37, %v11384_v45 }
0x12d0   : > { %v5680_v55 = vsel %vm4322_vm4, %v5565_v23, %v5679_v47  ;;  %v13772_v23 = vld [vmem:[#allocation30_spill] sm:$0xff] }
0x12d1   : > { %v5471_v57 = vpop.permute.xlu0 %5470  ;;  %v5681_v58 = vsel %vm4324_vm5, %v5569_v20, %v5680_v55  ;;  %v5106_v47 = vmul.f32 %v13772_v23, %v4973_v34  ;;  %v4981_v55 = vrot.slane %v12077_v32, %v13748_v59  ;;  %v13773_v20 = vld [vmem:[#allocation38_spill] sm:$0xff]  ;;  %v5005_v34 = vrot.slane %v12120_v63, %v13746_v4 }
0x12d2   : > { %v5573_v16 = vrot.slane %v5471_v57, %v11384_v45  ;;  %v13774_v57 = vld [vmem:[#allocation31_spill] sm:$0xff] }
0x12d3   : > { %v12208_v53 = vmul.f32 %v13773_v20, %v5106_v47  ;;  %v5013_v20 = vrot.slane %v12120_v63, %v13748_v59 }
0x12d4   : > { %v5682_v36 = vsel %vm4326_vm6, %v5573_v16, %v5681_v58  ;;  %v5108_v16 = vmul.f32 %v13774_v57, %v4981_v55  ;;  %v4997_v58 = vrot.slane %v12077_v32, %v11542_v3 }
0x12d5   : > { %v5477_v19 = vpop.permute.xlu0 %5476  ;;  %v5683_v37 = vsel %vm4328_vm7, %v5577_v17, %v5682_v36  ;;  %v4989_v36 = vrot.slane %v12077_v32, %v11515_v54  ;;  %v13775_v17 = vld [vmem:[#allocation39_spill] sm:$0xff]  ;;  %v13778_v32 = vld [vmem:[#allocation34_spill] sm:$0xff] }
0x12d6   : > { %v5581_v52 = vrot.slane %v5477_v19, %v11384_v45  ;;  %v12217_v19 = vmul.f32 %v13775_v17, %v5108_v16  ;;  %v5114_v55 = vmul.f32 %v13778_v32, %v5005_v34  ;;  %v13779_v16 = vld [vmem:[#allocation35_spill] sm:$0xff] }
0x12d8   : > { %v5684_v21 = vsel %vm4330_vm8, %v5581_v52, %v5683_v37  ;;  %v13776_v52 = vld [vmem:[#allocation32_spill] sm:$0xff]  ;;  %v12236_v57 = vmul.f32 %v12090_v29, %v5114_v55 }
0x12d9   : > { %v5710_v7 = vsel %vm4357_vm9, %v5684_v21, 0.0  ;;  %v5110_v37 = vmul.f32 %v13776_v52, %v4989_v36  ;;  %v13777_v21 = vld [vmem:[#allocation33_spill] sm:$0xff]  ;;  %v5116_v36 = vmul.f32 %v13779_v16, %v5013_v20  ;;  %v5029_v52 = vrot.slane %v12120_v63, %v11542_v3 }
0x12da   : > { %5711 = vadd.xlane.f32.xlu1 %v5710_v7  ;;  %v5112_v7 = vmul.f32 %v13777_v21, %v4997_v58  ;;  %v13780_v58 = vld [vmem:[#allocation36_spill] sm:$0xff] }
0x12db   : > { %v12225_v23 = vmul.f32 %v12075_v42, %v5110_v37  ;;  %v5021_v42 = vrot.slane %v12120_v63, %v11515_v54  ;;  %v13781_v37 = vld [vmem:[#allocation37_spill] sm:$0xff]  ;;  %v6071_v63 = vrot.slane %v12167_v5, %v13748_v59 }
0x12dc   : > { %v12229_v47 = vmul.f32 %v12079_v40, %v5112_v7  ;;  %v12243_v40 = vmul.f32 %v12100_v11, %v5116_v36  ;;  %v5120_v21 = vmul.f32 %v13781_v37, %v5029_v52  ;;  %v6064_v11 = vrot.slane %v12167_v5, %v13747_v46 }
0x12dd   : > { %v5118_v17 = vmul.f32 %v13780_v58, %v5021_v42 }
0x12de   : > { %v12255_v7 = vmul.f32 %v12123_v24, %v5120_v21 }
0x12df   : > { %v12250_v29 = vmul.f32 %v12108_v38, %v5118_v17  ;;  %v6085_v38 = vrot.slane %v12167_v5, %v11515_v54 }
0x12e0   : > { %13782 = vst [vmem:[#allocation28_spill] sm:$0xff] %v12255_v7 }
0x12eb   : > { %5479 = vperm.xlu1 %8990, %v12208_v53  }
0x12ef   : > { %5485 = vperm.xlu1 %8990, %v12217_v19  }
0x12f3   : > { %5491 = vperm.xlu1 %8990, %v12225_v23  }
0x12f7   : > { %5497 = vperm.xlu1 %8990, %v12229_v47  }
0x12fb   : > { %5503 = vperm.xlu1 %8990, %v12236_v57  }
0x12ff   : > { %5509 = vperm.xlu1 %8990, %v12243_v40  }
0x1303   : > { %5515 = vperm.xlu1 %8990, %v12250_v29  }
0x1307   : > { %5521 = vperm.xlu1 %8990, %v12255_v7  }
0x1309   : > { %v5483_v37 = vpop.permute.xlu0 %5482 }
0x130b   : > { %6066 = vbcast.lane.b32.xlu1 %v6064_v11, 256  ;;  %v12308_v11 = vld [vmem:[%s12160_s23 + $0x10] sm:$0xff] }
0x130f   : > { %6073 = vbcast.lane.b32.xlu1 %v6071_v63, 256  ;;  %v5489_v63 = vpop.permute.xlu0 %5488 }
0x1313   : > { %6087 = vbcast.lane.b32.xlu1 %v6085_v38, 256  ;;  %v6169_v38 = vrot.slane %v12308_v11, %v13746_v4 }
0x132b   : > { %v4929_v34 = vpop.xlane.xlu1 %4928 }
0x132c   : > { %9271 = vrcp.f32 %v4929_v34 }
0x1339   : > { %v12264_v32 = vpop.eup %9271 }
0x133a   : > { %v5037_v24 = vrot.slane %v12264_v32, %v13746_v4  ;;  %v5045_v55 = vrot.slane %v12264_v32, %v13748_v59  ;;  %v5053_v42 = vrot.slane %v12264_v32, %v11515_v54  ;;  %v5061_v52 = vrot.slane %v12264_v32, %v11542_v3 }
0x133c   : > { %v5122_v20 = vmul.f32 %v11959_v28, %v5037_v24  ;;  %v5124_v36 = vmul.f32 %v11969_v30, %v5045_v55  ;;  %v5126_v17 = vmul.f32 %v11977_v2, %v5053_v42  ;;  %v5128_v30 = vmul.f32 %v11983_v15, %v5061_v52  ;;  %v5495_v24 = vpop.permute.xlu0 %5494 }
0x133d   : > { %v6099_v2 = vrot.slane %v12167_v5, %v11542_v3  ;;  %v6183_v55 = vrot.slane %v12308_v11, %v13748_v59  ;;  %v5589_v52 = vrot.slane %v5483_v37, %v11384_v45 }
0x133e   : > { %v12272_v16 = vmul.f32 %v12133_v0, %v5122_v20  ;;  %v12279_v58 = vmul.f32 %v12145_v33, %v5124_v36  ;;  %v12286_v28 = vmul.f32 %v12162_v9, %v5126_v17  ;;  %v12291_v0 = vmul.f32 %v12176_v26, %v5128_v30  ;;  %v12297_v33 = vld [vmem:[%s12160_s23 + $0x8] sm:$0xff] }
0x133f   : > { %v6113_v9 = vrot.slane %v12297_v33, %v13746_v4  ;;  %v6127_v15 = vrot.slane %v12297_v33, %v13748_v59  ;;  %v6141_v26 = vrot.slane %v12297_v33, %v11515_v54  ;;  %v6155_v21 = vrot.slane %v12297_v33, %v11542_v3 }
0x1340   : > { %5527 = vperm.xlu1 %8990, %v12272_v16   ;;  %13783 = vst [vmem:[#allocation29_spill] sm:$0xff] %v12286_v28  ;;  %13784 = vst [vmem:[#allocation30_spill] sm:$0xff] %v12291_v0  ;;  %v6197_v36 = vrot.slane %v12308_v11, %v11515_v54  ;;  %v5501_v17 = vpop.permute.xlu0 %5500 }
0x1344   : > { %5533 = vperm.xlu1 %8990, %v12279_v58  }
0x1348   : > { %5539 = vperm.xlu1 %8990, %v12286_v28  }
0x134c   : > { %5545 = vperm.xlu1 %8990, %v12291_v0  }
0x1350   : > { %6101 = vbcast.lane.b32.xlu1 %v6099_v2, 256 }
0x1354   : > { %6115 = vbcast.lane.b32.xlu1 %v6113_v9, 256  ;;  %v6211_v9 = vrot.slane %v12308_v11, %v11542_v3 }
0x1358   : > { %6129 = vbcast.lane.b32.xlu1 %v6127_v15, 256 }
0x135c   : > { %6143 = vbcast.lane.b32.xlu1 %v6141_v26, 256 }
0x1360   : > { %6157 = vbcast.lane.b32.xlu1 %v6155_v21, 256  ;;  %v5597_v21 = vrot.slane %v5489_v63, %v11384_v45  ;;  %v5613_v63 = vrot.slane %v5501_v17, %v11384_v45 }
0x1363   : > { %v12312_v34 = vpop.xlane.xlu1 %5711 }
0x1364   : > { %6171 = vbcast.lane.b32.xlu1 %v6169_v38, 256 }
0x1367   : > { %v5480_v20 = vpop.permute.xlu1 %5479 }
0x1368   : > { %6185 = vbcast.lane.b32.xlu1 %v6183_v55, 256  ;;  %v5585_v42 = vrot.slane %v5480_v20, %v11384_v45  ;;  %v12327_v55 = vld [vmem:[%s12160_s23 + $0x18] sm:$0xff]  ;;  %v5507_v20 = vpop.permute.xlu0 %5506 }
0x1369   : > { %v6225_v37 = vrot.slane %v12327_v55, %v13746_v4 }
0x136a   : > { %v5685_v15 = vsel %vm4318_vm2, %v5589_v52, %v5585_v42  ;;  %v5605_v42 = vrot.slane %v5495_v24, %v11384_v45  ;;  %v5621_v24 = vrot.slane %v5507_v20, %v11384_v45 }
0x136b   : > { %v5486_v30 = vpop.permute.xlu1 %5485 }
0x136c   : > { %v5593_v2 = vrot.slane %v5486_v30, %v11384_v45  ;;  %6199 = vbcast.lane.b32.xlu1 %v6197_v36, 256  ;;  %v5513_v28 = vpop.permute.xlu0 %5512 }
0x136e   : > { %v5686_v26 = vsel %vm4320_vm3, %v5593_v2, %v5685_v15 }
0x136f   : > { %v5492_v38 = vpop.permute.xlu1 %5491  ;;  %v5687_v36 = vsel %vm4322_vm4, %v5597_v21, %v5686_v26 }
0x1370   : > { %v5601_v7 = vrot.slane %v5492_v38, %v11384_v45  ;;  %6213 = vbcast.lane.b32.xlu1 %v6211_v9, 256 }
0x1372   : > { %v5688_v30 = vsel %vm4324_vm5, %v5601_v7, %v5687_v36  ;;  %v5519_v36 = vpop.permute.xlu0 %5518 }
0x1373   : > { %v5498_v52 = vpop.permute.xlu1 %5497  ;;  %v5689_v15 = vsel %vm4326_vm6, %v5605_v42, %v5688_v30  ;;  %v5629_v42 = vrot.slane %v5513_v28, %v11384_v45  ;;  %v5637_v20 = vrot.slane %v5519_v36, %v11384_v45 }
0x1374   : > { %v5609_v2 = vrot.slane %v5498_v52, %v11384_v45  ;;  %6227 = vbcast.lane.b32.xlu1 %v6225_v37, 256 }
0x1376   : > { %v5690_v9 = vsel %vm4328_vm7, %v5609_v2, %v5689_v15 }
0x1377   : > { %v5504_v38 = vpop.permute.xlu1 %5503  ;;  %v5691_v0 = vsel %vm4330_vm8, %v5613_v63, %v5690_v9  ;;  %v5525_v63 = vpop.permute.xlu0 %5524 }
0x1378   : > { %v5713_v26 = vsel %vm4357_vm9, %v5691_v0, 0.0  ;;  %v5617_v7 = vrot.slane %v5504_v38, %v11384_v45  ;;  %v6239_v38 = vrot.slane %v12327_v55, %v13748_v59 }
0x1379   : > { %5714 = vadd.xlane.f32.xlu0 %v5713_v26 }
0x137a   : > { %v5692_v17 = vsel %vm4318_vm2, %v5621_v24, %v5617_v7  ;;  %v5645_v7 = vrot.slane %v5525_v63, %v11384_v45  ;;  %6241 = vbcast.lane.b32.xlu1 %v6239_v38, 256  ;;  %v6253_v24 = vrot.slane %v12327_v55, %v11515_v54  ;;  %v6176_v38 = vrot.slane %v12308_v11, %v13747_v46 }
0x137b   : > { %v5510_v21 = vpop.permute.xlu1 %5509 }
0x137c   : > { %v5625_v37 = vrot.slane %v5510_v21, %v11384_v45 }
0x137e   : > { %v5693_v30 = vsel %vm4320_vm3, %v5625_v37, %v5692_v17  ;;  %6255 = vbcast.lane.b32.xlu1 %v6253_v24, 256  ;;  %v5041_v17 = vrot.slane %v12264_v32, %v13747_v46 }
0x137f   : > { %v5516_v52 = vpop.permute.xlu1 %5515  ;;  %v5694_v0 = vsel %vm4322_vm4, %v5629_v42, %v5693_v30  ;;  %v5049_v42 = vrot.slane %v12264_v32, %v11499_v48 }
0x1380   : > { %v5633_v2 = vrot.slane %v5516_v52, %v11384_v45  ;;  %v5123_v30 = vmul.f32 %v11996_v22, %v5041_v17  ;;  %v5065_v22 = vrot.slane %v12264_v32, %v11666_v44 }
0x1382   : > { %v5695_v15 = vsel %vm4324_vm5, %v5633_v2, %v5694_v0  ;;  %v12367_v52 = vmul.f32 %v12174_v10, %v5123_v30  ;;  %v5125_v2 = vmul.f32 %v12002_v41, %v5049_v42  ;;  %v5057_v0 = vrot.slane %v12264_v32, %v11531_v8 }
0x1383   : > { %v5522_v9 = vpop.permute.xlu1 %5521  ;;  %v5696_v28 = vsel %vm4326_vm6, %v5637_v20, %v5695_v15  ;;  %v5129_v41 = vmul.f32 %v12010_v56, %v5065_v22  ;;  %v12394_v32 = vadd.f32 1e-10, %v12312_v34  ;;  %v6120_v56 = vrot.slane %v12297_v33, %v13747_v46 }
0x1384   : > { %v5641_v26 = vrot.slane %v5522_v9, %v11384_v45  ;;  %v12374_v63 = vmul.f32 %v12180_v12, %v5125_v2  ;;  %v5127_v15 = vmul.f32 %v12006_v13, %v5057_v0  ;;  %v6092_v13 = vrot.slane %v12167_v5, %v11531_v8  ;;  %v12432_v2 = vpop.permute.xlu0 %6059 }
0x1385   : > { %v12386_v20 = vmul.f32 %v12184_v35, %v5129_v41  ;;  %v6106_v12 = vrot.slane %v12167_v5, %v11666_v44  ;;  %v6134_v35 = vrot.slane %v12297_v33, %v11499_v48  ;;  %v5745_v9 = vrot.slane %v12394_v32, %v11499_v48 }
0x1386   : > { %v5697_v21 = vsel %vm4328_vm7, %v5641_v26, %v5696_v28  ;;  %v12381_v10 = vmul.f32 %v12182_v62, %v5127_v15  ;;  %v5737_v62 = vrot.slane %v12394_v32, %v13747_v46  ;;  %v6148_v5 = vrot.slane %v12297_v33, %v11531_v8 }
0x1387   : > { %v5698_v37 = vsel %vm4330_vm8, %v5645_v7, %v5697_v21  ;;  %v6162_v34 = vrot.slane %v12297_v33, %v11666_v44  ;;  %v6190_v7 = vrot.slane %v12308_v11, %v11499_v48  ;;  %v6204_v21 = vrot.slane %v12308_v11, %v11531_v8  ;;  %v6067_v22 = vpop.permute.xlu1 %6066 }
0x1388   : > { %v5716_v36 = vsel %vm4357_vm9, %v5698_v37, 0.0  ;;  %9273 = vrcp.f32 %v5737_v62  ;;  %v6246_v30 = vrot.slane %v12327_v55, %v11499_v48  ;;  %v5753_v62 = vrot.slane %v12394_v32, %v11531_v8 }
0x1389   : > { %5717 = vadd.xlane.f32.xlu0 %v5716_v36  ;;  %9275 = vrcp.f32 %v5745_v9  ;;  %v6218_v36 = vrot.slane %v12308_v11, %v11666_v44  ;;  %v6274_v11 = vrot.slane %v12327_v55, %v11666_v44 }
0x138b   : > { %v12444_v9 = vpop.permute.xlu1 %6073 }
0x1395   : > { %v9274_v26 = vpop.eup %9273 }
0x1396   : > { %v12413_v28 = vmul.f32 %v9274_v26, %v12055_v6  ;;  %v9276_v24 = vpop.eup %9275  ;;  %v6232_v6 = vrot.slane %v12327_v55, %v13747_v46  ;;  %v12450_v26 = vpop.permute.xlu1 %6087 }
0x1397   : > { %v12419_v33 = vmul.f32 %v9276_v24, %v12061_v18  ;;  %v6260_v18 = vrot.slane %v12327_v55, %v11531_v8  ;;  %v5733_v24 = vrot.slane %v12394_v32, %v13746_v4 }
0x1398   : > { %13785 = vst [vmem:[#allocation38_spill] sm:$0xff] %v12413_v28  ;;  %v5955_v37 = vadd.f32 1e-10, %v12413_v28 }
0x1399   : > { %13786 = vst [vmem:[#allocation31_spill] sm:$0xff] %v12419_v33  ;;  %v5957_v17 = vadd.f32 1e-10, %v12419_v33 }
0x139a   : > { %9277 = vlog2.f32 %v5955_v37 }
0x139b   : > { %9279 = vlog2.f32 %v5957_v17 }
0x139c   : > { %9281 = vrcp.f32 %v5753_v62 }
0x139f   : > { %5530 = vperm.xlu0 %8989, %v12367_v52  }
0x13a3   : > { %5536 = vperm.xlu0 %8989, %v12374_v63  }
0x13a7   : > { %5542 = vperm.xlu0 %8989, %v12381_v10   ;;  %v9278_v42 = vpop.eup %9277 }
0x13a8   : > { %v5989_v0 = vmul.f32 0.6931472, %v9278_v42  ;;  %v9280_v15 = vpop.eup %9279  ;;  %v5741_v42 = vrot.slane %v12394_v32, %v13748_v59 }
0x13aa   : > { %v12434_v41 = vadd.f32 %v6067_v22, %v5989_v0  ;;  %v5749_v22 = vrot.slane %v12394_v32, %v11515_v54 }
0x13ab   : > { %5548 = vperm.xlu0 %8989, %v12386_v20  }
0x13af   : > { %6094 = vbcast.lane.b32.xlu0 %v6092_v13, 256  ;;  %v5993_v13 = vmul.f32 0.6931472, %v9280_v15 }
0x13b3   : > { %6108 = vbcast.lane.b32.xlu0 %v6106_v12, 256  ;;  %v6081_v12 = vpop.permute.xlu0 %6080 }
0x13b7   : > { %6122 = vbcast.lane.b32.xlu0 %v6120_v56, 256  ;;  %v12437_v56 = vadd.f32 %v6081_v12, %v5993_v13 }
0x13bb   : > { %6136 = vbcast.lane.b32.xlu0 %v6134_v35, 256  ;;  %v5761_v35 = vrot.slane %v12394_v32, %v11666_v44 }
0x13bd   : > { %9283 = vrcp.f32 %v5761_v35 }
0x13bf   : > { %6150 = vbcast.lane.b32.xlu0 %v6148_v5, 256 }
0x13c3   : > { %6164 = vbcast.lane.b32.xlu0 %v6162_v34, 256 }
0x13c7   : > { %6178 = vbcast.lane.b32.xlu0 %v6176_v38, 256 }
0x13cb   : > { %6192 = vbcast.lane.b32.xlu0 %v6190_v7, 256 }
0x13cf   : > { %6206 = vbcast.lane.b32.xlu0 %v6204_v21, 256  ;;  %v5528_v21 = vpop.permute.xlu1 %5527 }
0x13d3   : > { %6220 = vbcast.lane.b32.xlu0 %v6218_v36, 256  ;;  %v9282_v36 = vpop.eup %9281 }
0x13d7   : > { %6234 = vbcast.lane.b32.xlu0 %v6232_v6, 256  ;;  %v12461_v6 = vmul.f32 %v9282_v36, %v12067_v60 }
0x13d9   : > { %13787 = vst [vmem:[#allocation39_spill] sm:$0xff] %v12461_v6 }
0x13db   : > { %6248 = vbcast.lane.b32.xlu0 %v6246_v30, 256  ;;  %v9284_v30 = vpop.eup %9283 }
0x13dc   : > { %v12467_v0 = vmul.f32 %v9284_v30, %v12072_v25  ;;  %v5649_v25 = vrot.slane %v5528_v21, %v11384_v45 }
0x13de   : > { %13788 = vst [vmem:[#allocation32_spill] sm:$0xff] %v12467_v0  ;;  %v5961_v62 = vadd.f32 1e-10, %v12467_v0 }
0x13df   : > { %6262 = vbcast.lane.b32.xlu0 %v6260_v18, 256  ;;  %v5534_v18 = vpop.permute.xlu1 %5533 }
0x13e0   : > { %v5657_v21 = vrot.slane %v5534_v18, %v11384_v45 }
0x13e3   : > { %6276 = vbcast.lane.b32.xlu0 %v6274_v11, 256  ;;  %v5959_v11 = vadd.f32 1e-10, %v12461_v6  ;;  %v5540_v60 = vpop.permute.xlu1 %5539 }
0x13e7   : > { %6378 = vperm.xlu0 %8989, %v12434_v41  }
0x13eb   : > { %6384 = vperm.xlu0 %8989, %v12437_v56  }
0x1402   : > { %v5715_v5 = vpop.xlane.xlu0 %5714 }
0x1403   : > { %v12446_v34 = vadd.f32 1e-10, %v5715_v5 }
0x1405   : > { %v5769_v38 = vrot.slane %v12446_v34, %v13747_v46  ;;  %v5777_v7 = vrot.slane %v12446_v34, %v11499_v48  ;;  %v5785_v37 = vrot.slane %v12446_v34, %v11531_v8  ;;  %v5789_v17 = vrot.slane %v12446_v34, %v11542_v3 }
0x1407   : > { %9285 = vrcp.f32 %v5769_v38 }
0x1408   : > { %9287 = vrcp.f32 %v5777_v7  ;;  %v5757_v7 = vrot.slane %v12394_v32, %v11542_v3  ;;  %v5765_v32 = vrot.slane %v12446_v34, %v13746_v4 }
0x1409   : > { %9289 = vrcp.f32 %v5733_v24 }
0x140a   : > { %9291 = vrcp.f32 %v5785_v37 }
0x140b   : > { %9293 = vrcp.f32 %v5789_v17 }
0x140c   : > { %9295 = vrcp.f32 %v5741_v42 }
0x140d   : > { %9297 = vlog2.f32 %v5959_v11  ;;  %v5546_v11 = vpop.permute.xlu1 %5545 }
0x140e   : > { %9299 = vrcp.f32 %v5749_v22 }
0x140f   : > { %9301 = vlog2.f32 %v5961_v62 }
0x1410   : > { %9303 = vrcp.f32 %v5757_v7 }
0x1412   : > { %v5718_v15 = vpop.xlane.xlu0 %5717 }
0x1413   : > { %v12471_v12 = vadd.f32 1e-10, %v5718_v15 }
0x1414   : > { %v9286_v13 = vpop.eup %9285 }
0x1415   : > { %v12475_v35 = vmul.f32 %v9286_v13, %v12087_v51  ;;  %v9288_v5 = vpop.eup %9287  ;;  %v5813_v51 = vrot.slane %v12471_v12, %v11515_v54  ;;  %v5801_v13 = vrot.slane %v12471_v12, %v13747_v46  ;;  %v5809_v18 = vrot.slane %v12471_v12, %v11499_v48 }
0x1416   : > { %v9290_v36 = vpop.eup %9289  ;;  %v12486_v30 = vmul.f32 %v9288_v5, %v12095_v61 }
0x1417   : > { %13789 = vst [vmem:[#allocation33_spill] sm:$0xff] %v12475_v35  ;;  %v5963_v37 = vadd.f32 1e-10, %v12475_v35  ;;  %v9292_v42 = vpop.eup %9291 }
0x1418   : > { %13790 = vst [vmem:[#allocation34_spill] sm:$0xff] %v12486_v30  ;;  %v9294_v62 = vpop.eup %9293  ;;  %v12503_v7 = vmul.f32 %v9292_v42, %v12125_v14 }
0x1419   : > { %9305 = vlog2.f32 %v5963_v37 }
0x141a   : > { %v5531_v38 = vpop.permute.xlu0 %5530  ;;  %9307 = vrcp.f32 %v5813_v51  ;;  %13792 = vst [vmem:[#allocation36_spill] sm:$0xff] %v12503_v7  ;;  %v5967_v42 = vadd.f32 1e-10, %v12503_v7 }
0x141b   : > { %v5653_v24 = vrot.slane %v5531_v38, %v11384_v45  ;;  %v12495_v38 = vmul.f32 %v9290_v36, %v12026_v39  ;;  %9309 = vrcp.f32 %v5765_v32  ;;  %v5773_v39 = vrot.slane %v12446_v34, %v13748_v59 }
0x141c   : > { %9311 = vrcp.f32 %v5801_v13 }
0x141d   : > { %v5699_v17 = vsel %vm4318_vm2, %v5653_v24, %v5649_v25  ;;  %13791 = vst [vmem:[#allocation35_spill] sm:$0xff] %v12495_v38  ;;  %v5965_v25 = vadd.f32 1e-10, %v12486_v30  ;;  %v5665_v24 = vrot.slane %v5540_v60, %v11384_v45  ;;  %v5954_v51 = vadd.f32 1e-10, %v12495_v38 }
0x141e   : > { %v5537_v15 = vpop.permute.xlu0 %5536  ;;  %v5700_v61 = vsel %vm4320_vm3, %v5657_v21, %v5699_v17  ;;  %v12510_v17 = vmul.f32 %v9294_v62, %v12229_v47  ;;  %v9296_v21 = vpop.eup %9295  ;;  %9313 = vrcp.f32 %v5809_v18  ;;  %v5781_v47 = vrot.slane %v12446_v34, %v11515_v54 }
0x141f   : > { %v5661_v22 = vrot.slane %v5537_v15, %v11384_v45  ;;  %v12513_v15 = vpop.permute.xlu1 %6101  ;;  %9315 = vlog2.f32 %v5965_v25  ;;  %v9298_v32 = vpop.eup %9297  ;;  %v12522_v62 = vmul.f32 %v9296_v21, %v12031_v31 }
0x1420   : > { %13793 = vst [vmem:[#allocation37_spill] sm:$0xff] %v12510_v17  ;;  %9317 = vrcp.f32 %v5773_v39  ;;  %v5968_v18 = vadd.f32 1e-10, %v12510_v17 }
0x1421   : > { %v5701_v5 = vsel %vm4322_vm4, %v5661_v22, %v5700_v61  ;;  %v5673_v22 = vrot.slane %v5546_v11, %v11384_v45  ;;  %13794 = vst [vmem:[#allocation40_spill] sm:$0xff] %v12522_v62  ;;  %9319 = vlog2.f32 %v5954_v51  ;;  %v5956_v21 = vadd.f32 1e-10, %v12522_v62 }
0x1422   : > { %v5543_v36 = vpop.permute.xlu0 %5542  ;;  %v5702_v14 = vsel %vm4324_vm5, %v5665_v24, %v5701_v5  ;;  %v9300_v5 = vpop.eup %9299  ;;  %9321 = vlog2.f32 %v5967_v42 }
0x1423   : > { %v5669_v37 = vrot.slane %v5543_v36, %v11384_v45  ;;  %v12526_v25 = vpop.permute.xlu1 %6115  ;;  %v5997_v36 = vmul.f32 0.6931472, %v9298_v32  ;;  %v9302_v39 = vpop.eup %9301  ;;  %9323 = vrcp.f32 %v5781_v47 }
0x1424   : > { %9325 = vlog2.f32 %v5968_v18  ;;  %v6001_v42 = vmul.f32 0.6931472, %v9302_v39 }
0x1425   : > { %v5703_v60 = vsel %vm4326_vm6, %v5669_v37, %v5702_v14  ;;  %v12533_v14 = vmul.f32 %v9300_v5, %v12038_v49  ;;  %9327 = vlog2.f32 %v5956_v21 }
0x1426   : > { %v5549_v13 = vpop.permute.xlu0 %5548  ;;  %v5704_v24 = vsel %vm4328_vm7, %v5673_v22, %v5703_v60  ;;  %v5793_v60 = vrot.slane %v12446_v34, %v11666_v44 }
0x1427   : > { %v5677_v61 = vrot.slane %v5549_v13, %v11384_v45  ;;  %13795 = vst [vmem:[#allocation41_spill] sm:$0xff] %v12533_v14  ;;  %v9304_v13 = vpop.eup %9303  ;;  %v12540_v47 = vpop.permute.xlu1 %6129  ;;  %v5958_v18 = vadd.f32 1e-10, %v12533_v14 }
0x1428   : > { %v9306_v32 = vpop.eup %9305  ;;  %v12548_v34 = vmul.f32 %v9304_v13, %v12044_v43  ;;  %9329 = vrcp.f32 %v5793_v60 }
0x1429   : > { %v5705_v11 = vsel %vm4330_vm8, %v5677_v61, %v5704_v24  ;;  %v9308_v22 = vpop.eup %9307  ;;  %v5797_v61 = vrot.slane %v12471_v12, %v13746_v4 }
0x142a   : > { %v6095_v37 = vpop.permute.xlu0 %6094  ;;  %v5719_v31 = vsel %vm4357_vm9, %v5705_v11, 0.0  ;;  %v9310_v5 = vpop.eup %9309  ;;  %13796 = vst [vmem:[#allocation42_spill] sm:$0xff] %v12548_v34  ;;  %v5805_v11 = vrot.slane %v12471_v12, %v13748_v59 }
0x142b   : > { %v12535_v51 = vadd.f32 %v6095_v37, %v5997_v36  ;;  %5720 = vadd.xlane.f32.xlu1 %v5719_v31  ;;  %v9312_v36 = vpop.eup %9311  ;;  %v6005_v37 = vmul.f32 0.6931472, %v9306_v32  ;;  %v12554_v31 = vmul.f32 %v9308_v22, %v12250_v29  ;;  %9331 = vrcp.f32 %v5797_v61  ;;  %v12569_v22 = vpop.permute.xlu1 %6143 }
0x142c   : > { %v9314_v39 = vpop.eup %9313  ;;  %v12557_v21 = vmul.f32 %v9312_v36, %v12139_v27  ;;  %9333 = vlog2.f32 %v5958_v18  ;;  %v5960_v29 = vadd.f32 1e-10, %v12548_v34 }
0x142d   : > { %6390 = vperm.xlu0 %8989, %v12535_v51   ;;  %13797 = vst [vmem:[#allocation43_spill] sm:$0xff] %v12554_v31  ;;  %v12563_v13 = vmul.f32 %v9314_v39, %v12147_v50  ;;  %9335 = vrcp.f32 %v5805_v11  ;;  %v5974_v61 = vadd.f32 1e-10, %v12554_v31  ;;  %v6267_v31 = vrot.slane %v12327_v55, %v11542_v3 }
0x142e   : > { %v6109_v49 = vpop.permute.xlu0 %6108  ;;  %13798 = vst [vmem:[#allocation44_spill] sm:$0xff] %v12557_v21  ;;  %v5971_v32 = vadd.f32 1e-10, %v12557_v21 }
0x142f   : > { %v12545_v24 = vadd.f32 %v6109_v49, %v6001_v42  ;;  %v9316_v42 = vpop.eup %9315  ;;  %v12560_v49 = vmul.f32 %v9310_v5, %v12208_v53  ;;  %13800 = vst [vmem:[#allocation46_spill] sm:$0xff] %v12563_v13  ;;  %v5973_v27 = vadd.f32 1e-10, %v12563_v13 }
0x1430   : > { %v9318_v60 = vpop.eup %9317  ;;  %v6009_v50 = vmul.f32 0.6931472, %v9316_v42  ;;  %9337 = vlog2.f32 %v5971_v32  ;;  %v5817_v42 = vrot.slane %v12471_v12, %v11531_v8 }
0x1431   : > { %6396 = vperm.xlu0 %8989, %v12545_v24   ;;  %13799 = vst [vmem:[#allocation45_spill] sm:$0xff] %v12560_v49  ;;  %v9320_v53 = vpop.eup %9319  ;;  %v5962_v18 = vadd.f32 1e-10, %v12560_v49  ;;  %v12576_v36 = vmul.f32 %v9318_v60, %v12217_v19  ;;  %9339 = vlog2.f32 %v5973_v27  ;;  %v6158_v27 = vpop.permute.xlu1 %6157 }
0x1432   : > { %v6123_v43 = vpop.permute.xlu0 %6122  ;;  %v9322_v5 = vpop.eup %9321  ;;  %9341 = vlog2.f32 %v5960_v29  ;;  %v5987_v7 = vmul.f32 0.6931472, %v9320_v53 }
0x1433   : > { %v12565_v17 = vadd.f32 %v6123_v43, %v6005_v37  ;;  %13801 = vst [vmem:[#allocation47_spill] sm:$0xff] %v12576_v36  ;;  %v9324_v37 = vpop.eup %9323  ;;  %9343 = vlog2.f32 %v5974_v61  ;;  %v6013_v32 = vmul.f32 0.6931472, %v9322_v5  ;;  %v5964_v19 = vadd.f32 1e-10, %v12576_v36 }
0x1434   : > { %v9326_v11 = vpop.eup %9325  ;;  %9345 = vlog2.f32 %v5962_v18  ;;  %v12587_v60 = vmul.f32 %v9324_v37, %v12225_v23  ;;  %v12593_v61 = vadd.f32 %v12432_v2, %v5987_v7 }
0x1435   : > { %6402 = vperm.xlu0 %8989, %v12565_v17   ;;  %v6015_v29 = vmul.f32 0.6931472, %v9326_v11  ;;  %v9328_v55 = vpop.eup %9327  ;;  %9347 = vrcp.f32 %v5817_v42 }
0x1436   : > { %v6137_v39 = vpop.permute.xlu0 %6136  ;;  %13802 = vst [vmem:[#allocation48_spill] sm:$0xff] %v12587_v60  ;;  %v9330_v13 = vpop.eup %9329  ;;  %9349 = vlog2.f32 %v5964_v19  ;;  %v5966_v53 = vadd.f32 1e-10, %v12587_v60  ;;  %v5991_v11 = vmul.f32 0.6931472, %v9328_v55 }
0x1437   : > { %v12578_v43 = vadd.f32 %v6137_v39, %v6009_v50  ;;  %v12598_v18 = vadd.f32 %v6158_v27, %v6015_v29 }
0x1438   : > { %v9332_v23 = vpop.eup %9331  ;;  %v12606_v7 = vadd.f32 %v12444_v9, %v5991_v11  ;;  %9351 = vlog2.f32 %v5966_v53 }
0x1439   : > { %6408 = vperm.xlu0 %8989, %v12578_v43   ;;  %v9334_v37 = vpop.eup %9333  ;;  %v12609_v19 = vmul.f32 %v9332_v23, %v12236_v57 }
0x143a   : > { %v6151_v50 = vpop.permute.xlu0 %6150  ;;  %v9336_v42 = vpop.eup %9335  ;;  %v5995_v55 = vmul.f32 0.6931472, %v9334_v37 }
0x143b   : > { %v12589_v39 = vadd.f32 %v6151_v50, %v6013_v32  ;;  %v6172_v32 = vpop.permute.xlu1 %6171  ;;  %13804 = vst [vmem:[#allocation50_spill] sm:$0xff] %v12609_v19  ;;  %v5970_v53 = vadd.f32 1e-10, %v12609_v19  ;;  %v12620_v57 = vmul.f32 %v9336_v42, %v12243_v40  ;;  %v13806_v19 = vld [vmem:[#allocation25_spill] sm:$0xff] }
0x143c   : > { %6269 = vbcast.lane.b32.xlu1 %v6267_v31, 256  ;;  %v12601_v31 = vmul.f32 %v9330_v13, %v12131_v1  ;;  %v12616_v9 = vadd.f32 %v12450_v26, %v5995_v55 }
0x143d   : > { %6414 = vperm.xlu0 %8989, %v12589_v39   ;;  %v9338_v2 = vpop.eup %9337  ;;  %13805 = vst [vmem:[#allocation51_spill] sm:$0xff] %v12620_v57  ;;  %v5972_v40 = vadd.f32 1e-10, %v12620_v57 }
0x143e   : > { %v12596_v5 = vpop.permute.xlu0 %6164  ;;  %13803 = vst [vmem:[#allocation49_spill] sm:$0xff] %v12601_v31  ;;  %v9340_v50 = vpop.eup %9339  ;;  %v6021_v29 = vmul.f32 0.6931472, %v9338_v2  ;;  %v5969_v1 = vadd.f32 1e-10, %v12601_v31 }
0x143f   : > { %v9342_v13 = vpop.eup %9341  ;;  %v6025_v35 = vmul.f32 0.6931472, %v9340_v50  ;;  %v6186_v23 = vpop.permute.xlu1 %6185 }
0x1440   : > { %6375 = vperm.xlu1 %8990, %v12593_v61   ;;  %v9344_v0 = vpop.eup %9343  ;;  %v5999_v31 = vmul.f32 0.6931472, %v9342_v13  ;;  %9353 = vlog2.f32 %v5969_v1 }
0x1441   : > { %6417 = vperm.xlu0 %8989, %v12598_v18   ;;  %v9346_v37 = vpop.eup %9345  ;;  %v6027_v50 = vmul.f32 0.6931472, %v9344_v0  ;;  %9355 = vlog2.f32 %v5970_v53 }
0x1442   : > { %v6179_v27 = vpop.permute.xlu0 %6178  ;;  %v12627_v26 = vadd.f32 %v12513_v15, %v5999_v31  ;;  %9357 = vlog2.f32 %v5972_v40 }
0x1443   : > { %v12613_v30 = vadd.f32 %v6179_v27, %v6021_v29  ;;  %v9348_v27 = vpop.eup %9347  ;;  %v6003_v29 = vmul.f32 0.6931472, %v9346_v37  ;;  %v6200_v55 = vpop.permute.xlu1 %6199 }
0x1444   : > { %6381 = vperm.xlu1 %8990, %v12606_v7   ;;  %v9350_v42 = vpop.eup %9349  ;;  %v12635_v1 = vadd.f32 %v6200_v55, %v6027_v50 }
0x1445   : > { %6426 = vperm.xlu0 %8989, %v12613_v30   ;;  %v12638_v0 = vadd.f32 %v12526_v25, %v6003_v29  ;;  %v6007_v15 = vmul.f32 0.6931472, %v9350_v42  ;;  %v9352_v31 = vpop.eup %9351 }
0x1446   : > { %v6193_v11 = vpop.permute.xlu0 %6192 }
0x1447   : > { %v12623_v2 = vadd.f32 %v6193_v11, %v6025_v35  ;;  %v12632_v35 = vmul.f32 %v9348_v27, %v13806_v19  ;;  %v12644_v53 = vadd.f32 %v12540_v47, %v6007_v15  ;;  %v6011_v19 = vmul.f32 0.6931472, %v9352_v31 }
0x1448   : > { %6387 = vperm.xlu1 %8990, %v12616_v9  }
0x1449   : > { %6432 = vperm.xlu0 %8989, %v12623_v2   ;;  %13807 = vst [vmem:[#allocation25_spill] sm:$0xff] %v12632_v35  ;;  %v5975_v13 = vadd.f32 1e-10, %v12632_v35  ;;  %v12648_v25 = vadd.f32 %v12569_v22, %v6011_v19 }
0x144a   : > { %v6207_v22 = vpop.permute.xlu0 %6206 }
0x144b   : > { %9359 = vlog2.f32 %v5975_v13 }
0x144c   : > { %6393 = vperm.xlu1 %8990, %v12627_v26  }
0x144d   : > { %6435 = vperm.xlu0 %8989, %v12635_v1   ;;  %v9354_v11 = vpop.eup %9353 }
0x144e   : > { %v9356_v37 = vpop.eup %9355  ;;  %v6017_v27 = vmul.f32 0.6931472, %v9354_v11  ;;  %v12670_v11 = vpop.permute.xlu0 %6220 }
0x144f   : > { %v6019_v50 = vmul.f32 0.6931472, %v9356_v37  ;;  %v9358_v40 = vpop.eup %9357 }
0x1450   : > { %6399 = vperm.xlu1 %8990, %v12638_v0   ;;  %v12652_v29 = vadd.f32 %v12596_v5, %v6017_v27  ;;  %v6023_v42 = vmul.f32 0.6931472, %v9358_v40  ;;  %v12664_v5 = vpop.permute.xlu1 %6213 }
0x1451   : > { %v12655_v47 = vadd.f32 %v6172_v32, %v6019_v50 }
0x1452   : > { %13808 = vst [vmem:[#allocation52_spill] sm:$0xff] %v12652_v29  ;;  %v12658_v15 = vadd.f32 %v6186_v23, %v6023_v42  ;;  %v6235_v23 = vpop.permute.xlu0 %6234 }
0x1454   : > { %6405 = vperm.xlu1 %8990, %v12644_v53   ;;  %v12666_v19 = vpop.permute.xlu1 %6227 }
0x1458   : > { %6411 = vperm.xlu1 %8990, %v12648_v25   ;;  %v9360_v55 = vpop.eup %9359  ;;  %v12668_v32 = vpop.permute.xlu1 %6241 }
0x1459   : > { %v6029_v31 = vmul.f32 0.6931472, %v9360_v55  ;;  %v12680_v55 = vpop.permute.xlu0 %6248 }
0x145b   : > { %v12661_v13 = vadd.f32 %v6207_v22, %v6029_v31 }
0x145c   : > { %6420 = vperm.xlu1 %8990, %v12652_v29   ;;  %v12672_v37 = vpop.permute.xlu1 %6255 }
0x145d   : > { %v12690_v6 = vpop.permute.xlu0 %6262 }
0x1460   : > { %6423 = vperm.xlu1 %8990, %v12655_v47  }
0x1461   : > { %v12694_v38 = vpop.permute.xlu0 %6276 }
0x1464   : > { %6429 = vperm.xlu1 %8990, %v12658_v15  }
0x1468   : > { %6438 = vperm.xlu1 %8990, %v12661_v13  }
0x14b4   : > { %v5721_v27 = vpop.xlane.xlu1 %5720 }
0x14b5   : > { %v12674_v50 = vadd.f32 1e-10, %v5721_v27 }
0x14b7   : > { %v5833_v40 = vrot.slane %v12674_v50, %v13747_v46  ;;  %v5829_v42 = vrot.slane %v12674_v50, %v13746_v4  ;;  %v5837_v22 = vrot.slane %v12674_v50, %v13748_v59  ;;  %v5841_v31 = vrot.slane %v12674_v50, %v11499_v48 }
0x14b8   : > { %v5849_v35 = vrot.slane %v12674_v50, %v11531_v8  ;;  %v5853_v27 = vrot.slane %v12674_v50, %v11542_v3  ;;  %v12692_v33 = vpop.permute.xlu1 %6269 }
0x14b9   : > { %9361 = vrcp.f32 %v5833_v40 }
0x14ba   : > { %9363 = vrcp.f32 %v5829_v42 }
0x14bb   : > { %9365 = vrcp.f32 %v5837_v22 }
0x14bc   : > { %9367 = vrcp.f32 %v5841_v31  ;;  %v12696_v60 = vpop.permute.xlu1 %6375  ;;  %v12704_v31 = vpop.permute.xlu0 %6378 }
0x14bd   : > { %9369 = vrcp.f32 %v5849_v35 }
0x14be   : > { %9371 = vrcp.f32 %v5853_v27 }
0x14c6   : > { %v9362_v40 = vpop.eup %9361 }
0x14c7   : > { %v9364_v57 = vpop.eup %9363  ;;  %v12699_v21 = vmul.f32 %v9362_v40, %v12367_v52  ;;  %v12714_v52 = vpop.permute.xlu1 %6381 }
0x14c8   : > { %v9366_v42 = vpop.eup %9365  ;;  %v12702_v36 = vmul.f32 %v9364_v57, %v12272_v16 }
0x14c9   : > { %13809 = vst [vmem:[#allocation53_spill] sm:$0xff] %v12699_v21  ;;  %v9368_v22 = vpop.eup %9367  ;;  %v5979_v35 = vadd.f32 1e-10, %v12699_v21  ;;  %v12708_v27 = vmul.f32 %v9366_v42, %v12279_v58  ;;  %v12721_v58 = vpop.permute.xlu0 %6384  ;;  %v13814_v42 = vld [vmem:[#allocation30_spill] sm:$0xff] }
0x14ca   : > { %13810 = vst [vmem:[#allocation54_spill] sm:$0xff] %v12702_v36  ;;  %v9370_v49 = vpop.eup %9369  ;;  %v5978_v34 = vadd.f32 1e-10, %v12702_v36  ;;  %v12712_v14 = vmul.f32 %v9368_v22, %v12374_v63 }
0x14cb   : > { %13811 = vst [vmem:[#allocation55_spill] sm:$0xff] %v12708_v27  ;;  %9373 = vlog2.f32 %v5979_v35  ;;  %v5980_v16 = vadd.f32 1e-10, %v12708_v27  ;;  %v12718_v57 = vmul.f32 %v9370_v49, %v12381_v10  ;;  %v9372_v40 = vpop.eup %9371  ;;  %v12727_v22 = vpop.permute.xlu1 %6387 }
0x14cc   : > { %13812 = vst [vmem:[#allocation56_spill] sm:$0xff] %v12712_v14  ;;  %9375 = vlog2.f32 %v5978_v34  ;;  %v5981_v21 = vadd.f32 1e-10, %v12712_v14  ;;  %v12724_v36 = vmul.f32 %v9372_v40, %v13814_v42 }
0x14cd   : > { %13813 = vst [vmem:[#allocation57_spill] sm:$0xff] %v12718_v57  ;;  %9377 = vlog2.f32 %v5980_v16  ;;  %v5983_v63 = vadd.f32 1e-10, %v12718_v57  ;;  %v12729_v35 = vpop.permute.xlu0 %6390 }
0x14ce   : > { %13815 = vst [vmem:[#allocation30_spill] sm:$0xff] %v12724_v36  ;;  %9379 = vlog2.f32 %v5981_v21  ;;  %v5984_v10 = vadd.f32 1e-10, %v12724_v36 }
0x14cf   : > { %9381 = vlog2.f32 %v5983_v63  ;;  %v12732_v34 = vpop.permute.xlu1 %6393 }
0x14d0   : > { %9383 = vlog2.f32 %v5984_v10 }
0x14d1   : > { %v12734_v14 = vpop.permute.xlu0 %6396 }
0x14d3   : > { %v6400_v29 = vpop.permute.xlu1 %6399 }
0x14d5   : > { %v6403_v63 = vpop.permute.xlu0 %6402 }
0x14d8   : > { %v9374_v49 = vpop.eup %9373 }
0x14d9   : > { %v9376_v16 = vpop.eup %9375  ;;  %v6037_v27 = vmul.f32 0.6931472, %v9374_v49 }
0x14da   : > { %v9378_v40 = vpop.eup %9377  ;;  %v6035_v42 = vmul.f32 0.6931472, %v9376_v16 }
0x14db   : > { %v12736_v21 = vadd.f32 %v6235_v23, %v6037_v27  ;;  %v6039_v57 = vmul.f32 0.6931472, %v9378_v40  ;;  %v9380_v62 = vpop.eup %9379  ;;  %v5845_v23 = vrot.slane %v12674_v50, %v11515_v54  ;;  %v6406_v27 = vpop.permute.xlu1 %6405 }
0x14dc   : > { %v12739_v28 = vadd.f32 %v12666_v19, %v6035_v42  ;;  %v6041_v36 = vmul.f32 0.6931472, %v9380_v62  ;;  %v9382_v49 = vpop.eup %9381  ;;  %v5821_v42 = vrot.slane %v12471_v12, %v11542_v3 }
0x14dd   : > { %13816 = vst [vmem:[#allocation58_spill] sm:$0xff] %v12736_v21  ;;  %6450 = vperm.xlu1 %8990, %v12736_v21   ;;  %v12744_v10 = vadd.f32 %v12668_v32, %v6039_v57  ;;  %v6045_v16 = vmul.f32 0.6931472, %v9382_v49  ;;  %v9384_v40 = vpop.eup %9383  ;;  %v6409_v21 = vpop.permute.xlu0 %6408  ;;  %9385 = vrcp.f32 %v5845_v23  ;;  %v6505_v32 = vrot.slane %v6400_v29, %v11384_v45 }
0x14de   : > { %13817 = vst [vmem:[#allocation59_spill] sm:$0xff] %v12739_v28  ;;  %6447 = vperm.xlu0 %8989, %v12739_v28   ;;  %v12750_v19 = vadd.f32 %v12680_v55, %v6041_v36  ;;  %v6047_v62 = vmul.f32 0.6931472, %v9384_v40  ;;  %9387 = vrcp.f32 %v5821_v42  ;;  %v6509_v36 = vrot.slane %v6403_v63, %v11384_v45 }
0x14df   : > { %13818 = vst [vmem:[#allocation60_spill] sm:$0xff] %v12744_v10  ;;  %v12757_v57 = vadd.f32 %v12690_v6, %v6045_v16  ;;  %v6412_v55 = vpop.permute.xlu1 %6411  ;;  %v5825_v49 = vrot.slane %v12471_v12, %v11666_v44  ;;  %v5857_v63 = vrot.slane %v12674_v50, %v11666_v44 }
0x14e0   : > { %v12765_v23 = vadd.f32 %v12692_v33, %v6047_v62  ;;  %v6605_v29 = vsel %vm4318_vm2, %v6509_v36, %v6505_v32  ;;  %v6521_v16 = vrot.slane %v6412_v55, %v11384_v45  ;;  %v13819_v55 = vld [vmem:[#allocation29_spill] sm:$0xff] }
0x14e1   : > { %6453 = vperm.xlu1 %8990, %v12744_v10   ;;  %v6513_v10 = vrot.slane %v6406_v27, %v11384_v45  ;;  %v6415_v28 = vpop.permute.xlu0 %6414  ;;  %v6517_v27 = vrot.slane %v6409_v21, %v11384_v45  ;;  %9389 = vrcp.f32 %v5825_v49 }
0x14e2   : > { %v6525_v33 = vrot.slane %v6415_v28, %v11384_v45  ;;  %9391 = vrcp.f32 %v5857_v63 }
0x14e3   : > { %v6606_v6 = vsel %vm4320_vm3, %v6513_v10, %v6605_v29  ;;  %v6421_v10 = vpop.permute.xlu1 %6420 }
0x14e4   : > { %v6607_v12 = vsel %vm4322_vm4, %v6517_v27, %v6606_v6  ;;  %v6533_v36 = vrot.slane %v6421_v10, %v11384_v45  ;;  %v13820_v6 = vld [vmem:[#allocation28_spill] sm:$0xff]  ;;  %v13821_v10 = vld [vmem:[#allocation26_spill] sm:$0xff] }
0x14e5   : > { %6456 = vperm.xlu1 %8990, %v12750_v19   ;;  %v6608_v40 = vsel %vm4324_vm5, %v6521_v16, %v6607_v12  ;;  %v6418_v42 = vpop.permute.xlu0 %6417 }
0x14e6   : > { %v6609_v32 = vsel %vm4326_vm6, %v6525_v33, %v6608_v40  ;;  %v6529_v21 = vrot.slane %v6418_v42, %v11384_v45  ;;  %v6473_v33 = vrot.slane %v12696_v60, %v11384_v45 }
0x14e8   : > { %v6610_v49 = vsel %vm4328_vm7, %v6529_v21, %v6609_v32  ;;  %v6477_v21 = vrot.slane %v12704_v31, %v11384_v45 }
0x14e9   : > { %6462 = vperm.xlu1 %8990, %v12757_v57   ;;  %v6611_v28 = vsel %vm4330_vm8, %v6533_v36, %v6610_v49 }
0x14ea   : > { %v9386_v62 = vpop.eup %9385  ;;  %v6633_v12 = vsel %vm4357_vm9, %v6611_v28, -inf  ;;  %v6598_v36 = vsel %vm4318_vm2, %v6477_v21, %v6473_v33 }
0x14eb   : > { %v12781_v29 = vmul.f32 %v9386_v62, %v13819_v55  ;;  %v9388_v50 = vpop.eup %9387  ;;  %v6481_v62 = vrot.slane %v12714_v52, %v11384_v45  ;;  %v6485_v52 = vrot.slane %v12721_v58, %v11384_v45  ;;  %v6501_v58 = vrot.slane %v12734_v14, %v11384_v45 }
0x14ec   : > { %v12785_v16 = vmul.f32 %v9388_v50, %v13820_v6  ;;  %v6489_v50 = vrot.slane %v12727_v22, %v11384_v45 }
0x14ed   : > { %6465 = vperm.xlu1 %8990, %v12765_v23   ;;  %v5982_v27 = vadd.f32 1e-10, %v12781_v29  ;;  %v6599_v60 = vsel %vm4320_vm3, %v6481_v62, %v6598_v36 }
0x14ee   : > { %v9390_v63 = vpop.eup %9389  ;;  %v5976_v40 = vadd.f32 1e-10, %v12785_v16  ;;  %v6600_v6 = vsel %vm4322_vm4, %v6485_v52, %v6599_v60 }
0x14ef   : > { %9393 = vlog2.f32 %v5982_v27  ;;  %v9392_v42 = vpop.eup %9391  ;;  %v12796_v32 = vmul.f32 %v9390_v63, %v13821_v10  ;;  %v6601_v28 = vsel %vm4324_vm5, %v6489_v50, %v6600_v6  ;;  %v6493_v27 = vrot.slane %v12729_v35, %v11384_v45  ;;  %v6427_v6 = vpop.permute.xlu0 %6426 }
0x14f0   : > { %9395 = vlog2.f32 %v5976_v40  ;;  %v12802_v55 = vmul.f32 %v9392_v42, %v12386_v20  ;;  %v6497_v20 = vrot.slane %v12732_v34, %v11384_v45 }
0x14f1   : > { %v5977_v49 = vadd.f32 1e-10, %v12796_v32  ;;  %v6602_v22 = vsel %vm4326_vm6, %v6493_v27, %v6601_v28 }
0x14f2   : > { %13822 = vst [vmem:[#allocation29_spill] sm:$0xff] %v12802_v55  ;;  %v5985_v31 = vadd.f32 1e-10, %v12802_v55 }
0x14f3   : > { %9397 = vlog2.f32 %v5977_v49 }
0x14f4   : > { %9399 = vlog2.f32 %v5985_v31  ;;  %v6433_v31 = vpop.permute.xlu0 %6432 }
0x14fc   : > { %v9394_v63 = vpop.eup %9393 }
0x14fd   : > { %6634 = vmax.xlane.f32.xlu0 %v6633_v12  ;;  %v6603_v12 = vsel %vm4328_vm7, %v6497_v20, %v6602_v22  ;;  %v6043_v33 = vmul.f32 0.6931472, %v9394_v63  ;;  %v9396_v42 = vpop.eup %9395  ;;  %v6436_v20 = vpop.permute.xlu0 %6435 }
0x14fe   : > { %v6604_v40 = vsel %vm4330_vm8, %v6501_v58, %v6603_v12  ;;  %v6031_v34 = vmul.f32 0.6931472, %v9396_v42  ;;  %v6541_v58 = vrot.slane %v6427_v6, %v11384_v45 }
0x14ff   : > { %v6630_v62 = vsel %vm4357_vm9, %v6604_v40, -inf  ;;  %v12824_v10 = vadd.f32 %v12672_v37, %v6043_v33  ;;  %v6424_v37 = vpop.permute.xlu1 %6423 }
0x1500   : > { %v9398_v35 = vpop.eup %9397  ;;  %v12828_v21 = vadd.f32 %v12664_v5, %v6031_v34  ;;  %v6537_v22 = vrot.slane %v6424_v37, %v11384_v45 }
0x1501   : > { %v9400_v36 = vpop.eup %9399  ;;  %v6033_v60 = vmul.f32 0.6931472, %v9398_v35 }
0x1502   : > { %v6049_v50 = vmul.f32 0.6931472, %v9400_v36  ;;  %v6612_v40 = vsel %vm4318_vm2, %v6541_v58, %v6537_v22  ;;  %v6553_v36 = vrot.slane %v6436_v20, %v11384_v45 }
0x1503   : > { %v12832_v14 = vadd.f32 %v12670_v11, %v6033_v60  ;;  %v6430_v52 = vpop.permute.xlu1 %6429 }
0x1504   : > { %v12836_v49 = vadd.f32 %v12694_v38, %v6049_v50  ;;  %v6545_v63 = vrot.slane %v6430_v52, %v11384_v45 }
0x1506   : > { %v6613_v33 = vsel %vm4320_vm3, %v6545_v63, %v6612_v40 }
0x1507   : > { %v6439_v5 = vpop.permute.xlu1 %6438 }
0x1508   : > { %v6557_v50 = vrot.slane %v6439_v5, %v11384_v45 }
0x1511   : > { %6631 = vmax.xlane.f32.xlu1 %v6630_v62  ;;  %v6549_v62 = vrot.slane %v6433_v31, %v11384_v45 }
0x1513   : > { %6459 = vperm.xlu0 %8989, %v12824_v10   ;;  %v6614_v35 = vsel %vm4322_vm4, %v6549_v62, %v6613_v33 }
0x1514   : > { %v6615_v37 = vsel %vm4324_vm5, %v6553_v36, %v6614_v35 }
0x1515   : > { %v6616_v63 = vsel %vm4326_vm6, %v6557_v50, %v6615_v37 }
0x1517   : > { %6441 = vperm.xlu0 %8989, %v12828_v21  }
0x151b   : > { %6444 = vperm.xlu0 %8989, %v12832_v14  }
0x151f   : > { %6468 = vperm.xlu0 %8989, %v12836_v49  }
0x1558   : > { %v12839_v28 = vpop.permute.xlu1 %6450 }
0x1559   : > { %v12843_v11 = vpop.permute.xlu0 %6447 }
0x155c   : > { %v12841_v27 = vpop.permute.xlu1 %6453 }
0x1560   : > { %v12847_v38 = vpop.permute.xlu1 %6456 }
0x1564   : > { %v12857_v34 = vpop.permute.xlu1 %6462 }
0x1568   : > { %v12864_v6 = vpop.permute.xlu1 %6465 }
0x1586   : > { %v12849_v12 = vpop.xlane.xlu0 %6634 }
0x158e   : > { %v12854_v42 = vpop.permute.xlu0 %6459 }
0x1592   : > { %v6442_v60 = vpop.permute.xlu0 %6441 }
0x1593   : > { %v6561_v52 = vrot.slane %v6442_v60, %v11384_v45 }
0x1595   : > { %v6617_v58 = vsel %vm4328_vm7, %v6561_v52, %v6616_v63 }
0x1596   : > { %v6445_v22 = vpop.permute.xlu0 %6444 }
0x1597   : > { %v6565_v31 = vrot.slane %v6445_v22, %v11384_v45 }
0x1599   : > { %v6618_v40 = vsel %vm4330_vm8, %v6565_v31, %v6617_v58 }
0x159a   : > { %v6636_v20 = vsel %vm4357_vm9, %v6618_v40, -inf  ;;  %v6632_v33 = vpop.xlane.xlu1 %6631 }
0x159b   : > { %6637 = vmax.xlane.f32.xlu0 %v6636_v20  ;;  %v6649_v5 = vrot.slane %v6632_v33, %v13746_v4  ;;  %v6653_v62 = vrot.slane %v6632_v33, %v13747_v46  ;;  %v6657_v35 = vrot.slane %v6632_v33, %v13748_v59  ;;  %v6661_v36 = vrot.slane %v6632_v33, %v11499_v48 }
0x159c   : > { %v6665_v37 = vrot.slane %v6632_v33, %v11515_v54  ;;  %v6669_v22 = vrot.slane %v6632_v33, %v11531_v8  ;;  %v6673_v40 = vrot.slane %v6632_v33, %v11542_v3 }
0x159d   : > { %v6806_v60 = vsub.f32 %v12593_v61, %v6649_v5  ;;  %v6807_v50 = vsub.f32 %v12434_v41, %v6653_v62  ;;  %v6808_v52 = vsub.f32 %v12606_v7, %v6657_v35  ;;  %v6809_v63 = vsub.f32 %v12437_v56, %v6661_v36 }
0x159e   : > { %v6810_v20 = vsub.f32 %v12616_v9, %v6665_v37  ;;  %v6677_v61 = vrot.slane %v6632_v33, %v11666_v44  ;;  %v6811_v41 = vsub.f32 %v12535_v51, %v6669_v22  ;;  %v6812_v7 = vsub.f32 %v12627_v26, %v6673_v40 }
0x159f   : > { %v6838_v31 = vmul.f32 1.442695, %v6806_v60  ;;  %v6840_v58 = vmul.f32 1.442695, %v6807_v50  ;;  %v6842_v55 = vmul.f32 1.442695, %v6808_v52  ;;  %v6685_v56 = vrot.slane %v12849_v12, %v13747_v46 }
0x15a0   : > { %v6844_v5 = vmul.f32 1.442695, %v6809_v63  ;;  %v6846_v62 = vmul.f32 1.442695, %v6810_v20  ;;  %v6813_v35 = vsub.f32 %v12545_v24, %v6677_v61  ;;  %v6848_v36 = vmul.f32 1.442695, %v6811_v41 }
0x15a1   : > { %9401 = vpow2.f32 %v6838_v31  ;;  %v6850_v9 = vmul.f32 1.442695, %v6812_v7  ;;  %v6693_v60 = vrot.slane %v12849_v12, %v11499_v48  ;;  %v6815_v33 = vsub.f32 %v12565_v17, %v6685_v56 }
0x15a2   : > { %9403 = vpow2.f32 %v6840_v58  ;;  %v6852_v51 = vmul.f32 1.442695, %v6813_v35 }
0x15a3   : > { %9405 = vpow2.f32 %v6842_v55  ;;  %v6705_v55 = vrot.slane %v12849_v12, %v11542_v3  ;;  %v6817_v24 = vsub.f32 %v12578_v43, %v6693_v60  ;;  %v6856_v37 = vmul.f32 1.442695, %v6815_v33 }
0x15a4   : > { %9407 = vpow2.f32 %v6844_v5  ;;  %v12929_v5 = vpop.permute.xlu0 %6468 }
0x15a5   : > { %9409 = vpow2.f32 %v6846_v62  ;;  %v6820_v17 = vsub.f32 %v12598_v18, %v6705_v55  ;;  %v6860_v22 = vmul.f32 1.442695, %v6817_v24 }
0x15a6   : > { %9411 = vpow2.f32 %v6848_v36 }
0x15a7   : > { %9413 = vpow2.f32 %v6850_v9  ;;  %v6866_v43 = vmul.f32 1.442695, %v6820_v17 }
0x15a8   : > { %9415 = vpow2.f32 %v6852_v51 }
0x15a9   : > { %9417 = vpow2.f32 %v6856_v37 }
0x15aa   : > { %9419 = vpow2.f32 %v6860_v22 }
0x15ab   : > { %9421 = vpow2.f32 %v6866_v43  ;;  %v6569_v43 = vrot.slane %v12843_v11, %v11384_v45  ;;  %v6581_v11 = vrot.slane %v12847_v38, %v11384_v45 }
0x15ae   : > { %v12892_v50 = vpop.eup %9401 }
0x15af   : > { %v12894_v26 = vpop.eup %9403 }
0x15b0   : > { %6938 = vperm.xlu1 %8990, %v12894_v26   ;;  %v12901_v52 = vpop.eup %9405 }
0x15b1   : > { %6935 = vperm.xlu0 %8989, %v12892_v50   ;;  %v12904_v63 = vpop.eup %9407 }
0x15b2   : > { %v12908_v31 = vpop.eup %9409 }
0x15b3   : > { %v12910_v58 = vpop.eup %9411 }
0x15b4   : > { %6941 = vperm.xlu1 %8990, %v12901_v52   ;;  %v12914_v40 = vpop.eup %9413 }
0x15b5   : > { %6944 = vperm.xlu0 %8989, %v12904_v63   ;;  %v12916_v18 = vpop.eup %9415 }
0x15b6   : > { %v12920_v20 = vpop.eup %9417 }
0x15b7   : > { %v12923_v61 = vpop.eup %9419 }
0x15b8   : > { %6947 = vperm.xlu1 %8990, %v12908_v31   ;;  %v12926_v41 = vpop.eup %9421 }
0x15b9   : > { %6950 = vperm.xlu0 %8989, %v12910_v58  }
0x15bc   : > { %6953 = vperm.xlu1 %8990, %v12914_v40  }
0x15bd   : > { %6956 = vperm.xlu0 %8989, %v12916_v18  }
0x15c1   : > { %6962 = vperm.xlu0 %8989, %v12920_v20  }
0x15c5   : > { %6968 = vperm.xlu0 %8989, %v12923_v61  }
0x15c9   : > { %6977 = vperm.xlu0 %8989, %v12926_v41  }
0x1624   : > { %v12931_v7 = vpop.xlane.xlu0 %6637 }
0x1625   : > { %v6713_v62 = vrot.slane %v12931_v7, %v13746_v4  ;;  %v6721_v56 = vrot.slane %v12931_v7, %v13748_v59  ;;  %v6729_v35 = vrot.slane %v12931_v7, %v11515_v54  ;;  %v6737_v33 = vrot.slane %v12931_v7, %v11542_v3 }
0x1627   : > { %v6822_v36 = vsub.f32 %v12655_v47, %v6713_v62  ;;  %v6824_v9 = vsub.f32 %v12658_v15, %v6721_v56  ;;  %v6826_v51 = vsub.f32 %v12635_v1, %v6729_v35  ;;  %v6573_v47 = vrot.slane %v12839_v28, %v11384_v45 }
0x1628   : > { %v6741_v15 = vrot.slane %v12931_v7, %v11666_v44  ;;  %v6828_v62 = vsub.f32 %v12828_v21, %v6737_v33  ;;  %v6577_v35 = vrot.slane %v12841_v27, %v11384_v45 }
0x1629   : > { %v6870_v60 = vmul.f32 1.442695, %v6822_v36  ;;  %v6874_v55 = vmul.f32 1.442695, %v6824_v9  ;;  %v6878_v1 = vmul.f32 1.442695, %v6826_v51  ;;  %v6619_v33 = vsel %vm4318_vm2, %v6573_v47, %v6569_v43 }
0x162a   : > { %v6829_v51 = vsub.f32 %v12832_v14, %v6741_v15  ;;  %v6882_v27 = vmul.f32 1.442695, %v6828_v62  ;;  %v6589_v14 = vrot.slane %v12857_v34, %v11384_v45 }
0x162b   : > { %9423 = vpow2.f32 %v6870_v60  ;;  %v6939_v24 = vpop.permute.xlu1 %6938 }
0x162c   : > { %v6936_v37 = vpop.permute.xlu0 %6935  ;;  %v7037_v17 = vrot.slane %v6939_v24, %v11384_v45  ;;  %9425 = vpow2.f32 %v6874_v55  ;;  %v6585_v24 = vrot.slane %v12854_v42, %v11384_v45  ;;  %v6884_v47 = vmul.f32 1.442695, %v6829_v51 }
0x162d   : > { %v7033_v22 = vrot.slane %v6936_v37, %v11384_v45  ;;  %9427 = vpow2.f32 %v6878_v1  ;;  %v6620_v37 = vsel %vm4320_vm3, %v6577_v35, %v6619_v33  ;;  %v6681_v1 = vrot.slane %v12849_v12, %v13746_v4 }
0x162e   : > { %9429 = vpow2.f32 %v6882_v27 }
0x162f   : > { %v6942_v56 = vpop.permute.xlu1 %6941  ;;  %v7158_v60 = vsel %vm4318_vm2, %v7037_v17, %v7033_v22  ;;  %v6621_v17 = vsel %vm4322_vm4, %v6581_v11, %v6620_v37  ;;  %v6597_v11 = vrot.slane %v12929_v5, %v11384_v45  ;;  %9431 = vpow2.f32 %v6884_v47 }
0x1630   : > { %v7041_v36 = vrot.slane %v6942_v56, %v11384_v45  ;;  %v6945_v9 = vpop.permute.xlu0 %6944  ;;  %v6689_v5 = vrot.slane %v12849_v12, %v13748_v59  ;;  %v6814_v27 = vsub.f32 %v12638_v0, %v6681_v1 }
0x1631   : > { %v7045_v28 = vrot.slane %v6945_v9, %v11384_v45 }
0x1632   : > { %v7159_v21 = vsel %vm4320_vm3, %v7041_v36, %v7158_v60  ;;  %v6622_v36 = vsel %vm4324_vm5, %v6585_v24, %v6621_v17  ;;  %v6593_v24 = vrot.slane %v12864_v6, %v11384_v45  ;;  %v6816_v17 = vsub.f32 %v12644_v53, %v6689_v5 }
0x1633   : > { %v6948_v55 = vpop.permute.xlu1 %6947  ;;  %v7160_v22 = vsel %vm4322_vm4, %v7045_v28, %v7159_v21  ;;  %v6623_v34 = vsel %vm4326_vm6, %v6589_v14, %v6622_v36  ;;  %v6717_v14 = vrot.slane %v12931_v7, %v13747_v46 }
0x1634   : > { %v7049_v38 = vrot.slane %v6948_v55, %v11384_v45  ;;  %v6951_v56 = vpop.permute.xlu0 %6950  ;;  %v6624_v37 = vsel %vm4328_vm7, %v6593_v24, %v6623_v34 }
0x1635   : > { %v7053_v42 = vrot.slane %v6951_v56, %v11384_v45  ;;  %v6625_v6 = vsel %vm4330_vm8, %v6597_v11, %v6624_v37  ;;  %v6697_v56 = vrot.slane %v12849_v12, %v11515_v54  ;;  %v6823_v1 = vsub.f32 %v12613_v30, %v6717_v14  ;;  %v13824_v14 = vld [vmem:[#allocation59_spill] sm:$0xff] }
0x1636   : > { %v7161_v43 = vsel %vm4324_vm5, %v7049_v38, %v7160_v22  ;;  %v6854_v22 = vmul.f32 1.442695, %v6814_v27  ;;  %v6709_v30 = vrot.slane %v12849_v12, %v11666_v44 }
0x1637   : > { %v6954_v15 = vpop.permute.xlu1 %6953  ;;  %v7162_v60 = vsel %vm4326_vm6, %v7053_v42, %v7161_v43  ;;  %v6639_v42 = vsel %vm4357_vm9, %v6625_v6, -inf  ;;  %v6818_v36 = vsub.f32 %v12648_v25, %v6697_v56  ;;  %v6858_v43 = vmul.f32 1.442695, %v6816_v17 }
0x1638   : > { %v12974_v62 = vpop.eup %9423  ;;  %v7057_v35 = vrot.slane %v6954_v15, %v11384_v45  ;;  %v6957_v9 = vpop.permute.xlu0 %6956  ;;  %9433 = vpow2.f32 %v6854_v22  ;;  %v6725_v15 = vrot.slane %v12931_v7, %v11499_v48  ;;  %v6701_v25 = vrot.slane %v12849_v12, %v11531_v8 }
0x1639   : > { %v7061_v28 = vrot.slane %v6957_v9, %v11384_v45  ;;  %6983 = vperm.xlu0 %8989, %v12974_v62   ;;  %v12989_v51 = vpop.eup %9425  ;;  %9435 = vpow2.f32 %v6858_v43  ;;  %v6862_v53 = vmul.f32 1.442695, %v6818_v36  ;;  %v6872_v9 = vmul.f32 1.442695, %v6823_v1 }
0x163a   : > { %v7163_v21 = vsel %vm4328_vm7, %v7057_v35, %v7162_v60  ;;  %v12998_v38 = vpop.eup %9427  ;;  %v6825_v35 = vsub.f32 %v12623_v2, %v6725_v15  ;;  %v6819_v11 = vsub.f32 %v12589_v39, %v6701_v25  ;;  %v6733_v60 = vrot.slane %v12931_v7, %v11531_v8  ;;  %v13823_v39 = vld [vmem:[#allocation52_spill] sm:$0xff] }
0x163b   : > { %v7164_v33 = vsel %vm4330_vm8, %v7061_v28, %v7163_v21  ;;  %v13005_v0 = vpop.eup %9429  ;;  %9437 = vpow2.f32 %v6862_v53 }
0x163c   : > { %v7190_v55 = vsel %vm4357_vm9, %v7164_v33, 0.0  ;;  %v13011_v47 = vpop.eup %9431  ;;  %9439 = vpow2.f32 %v6872_v9  ;;  %v6876_v28 = vmul.f32 1.442695, %v6825_v35  ;;  %v6864_v24 = vmul.f32 1.442695, %v6819_v11  ;;  %v6963_v56 = vpop.permute.xlu0 %6962 }
0x163d   : > { %6989 = vperm.xlu0 %8989, %v12989_v51   ;;  %7191 = vadd.xlane.f32.xlu1 %v7190_v55  ;;  %v6827_v21 = vsub.f32 %v12661_v13, %v6733_v60  ;;  %v6821_v33 = vsub.f32 %v13823_v39, %v6709_v30 }
0x163e   : > { %9441 = vpow2.f32 %v6876_v28 }
0x163f   : > { %9443 = vpow2.f32 %v6864_v24  ;;  %v6880_v7 = vmul.f32 1.442695, %v6827_v21  ;;  %v6868_v27 = vmul.f32 1.442695, %v6821_v33 }
0x1641   : > { %6995 = vperm.xlu0 %8989, %v12998_v38   ;;  %6640 = vmax.xlane.f32.xlu1 %v6639_v42  ;;  %9445 = vpow2.f32 %v6880_v7  ;;  %v6969_v42 = vpop.permute.xlu0 %6968 }
0x1642   : > { %9447 = vpow2.f32 %v6868_v27 }
0x1645   : > { %7001 = vperm.xlu0 %8989, %v13005_v0   ;;  %v13023_v34 = vpop.eup %9433  ;;  %v6978_v9 = vpop.permute.xlu0 %6977 }
0x1646   : > { %v13029_v2 = vpop.eup %9435 }
0x1648   : > { %v13033_v5 = vpop.eup %9437 }
0x1649   : > { %7004 = vperm.xlu0 %8989, %v13011_v47   ;;  %v13036_v55 = vpop.eup %9439 }
0x164b   : > { %v13039_v13 = vpop.eup %9441 }
0x164c   : > { %v13042_v12 = vpop.eup %9443 }
0x164e   : > { %v13045_v37 = vpop.eup %9445 }
0x164f   : > { %v13048_v6 = vpop.eup %9447 }
0x1652   : > { %6959 = vperm.xlu1 %8990, %v13023_v34  }
0x1656   : > { %6965 = vperm.xlu1 %8990, %v13029_v2  }
0x165a   : > { %6971 = vperm.xlu1 %8990, %v13033_v5  }
0x165e   : > { %6986 = vperm.xlu1 %8990, %v13036_v55  }
0x1662   : > { %6992 = vperm.xlu1 %8990, %v13039_v13  }
0x1666   : > { %6974 = vperm.xlu1 %8990, %v13042_v12  }
0x166a   : > { %6998 = vperm.xlu1 %8990, %v13045_v37  }
0x166e   : > { %6980 = vperm.xlu1 %8990, %v13048_v6  }
0x16b4   : > { %v6984_v24 = vpop.permute.xlu0 %6983 }
0x16b5   : > { %v7097_v27 = vrot.slane %v6984_v24, %v11384_v45 }
0x16c6   : > { %v13051_v17 = vpop.xlane.xlu1 %7191 }
0x16ca   : > { %v13053_v22 = vpop.xlane.xlu1 %6640 }
0x16cb   : > { %v6745_v36 = vrot.slane %v13053_v22, %v13746_v4  ;;  %v6757_v43 = vrot.slane %v13053_v22, %v11499_v48  ;;  %v6765_v15 = vrot.slane %v13053_v22, %v11531_v8  ;;  %v6769_v11 = vrot.slane %v13053_v22, %v11542_v3 }
0x16cd   : > { %v6830_v53 = vsub.f32 %v13824_v14, %v6745_v36  ;;  %v6833_v1 = vsub.f32 %v12750_v19, %v6757_v43  ;;  %v6835_v60 = vsub.f32 %v12757_v57, %v6765_v15  ;;  %v6836_v21 = vsub.f32 %v12765_v23, %v6769_v11  ;;  %v6990_v36 = vpop.permute.xlu0 %6989 }
0x16ce   : > { %v6960_v25 = vpop.permute.xlu1 %6959  ;;  %v7105_v57 = vrot.slane %v6990_v36, %v11384_v45 }
0x16cf   : > { %v6886_v35 = vmul.f32 1.442695, %v6830_v53  ;;  %v6892_v28 = vmul.f32 1.442695, %v6833_v1  ;;  %v6896_v39 = vmul.f32 1.442695, %v6835_v60  ;;  %v7065_v23 = vrot.slane %v6960_v25, %v11384_v45 }
0x16d0   : > { %v6898_v7 = vmul.f32 1.442695, %v6836_v21  ;;  %v7069_v60 = vrot.slane %v6963_v56, %v11384_v45 }
0x16d1   : > { %9449 = vpow2.f32 %v6886_v35 }
0x16d2   : > { %v6966_v30 = vpop.permute.xlu1 %6965  ;;  %9451 = vpow2.f32 %v6892_v28 }
0x16d3   : > { %9453 = vpow2.f32 %v6896_v39  ;;  %v7073_v35 = vrot.slane %v6966_v30, %v11384_v45  ;;  %v6996_v39 = vpop.permute.xlu0 %6995  ;;  %v7077_v30 = vrot.slane %v6969_v42, %v11384_v45 }
0x16d4   : > { %9455 = vpow2.f32 %v6898_v7  ;;  %v7165_v7 = vsel %vm4318_vm2, %v7069_v60, %v7065_v23  ;;  %v7113_v56 = vrot.slane %v6996_v39, %v11384_v45  ;;  %v6749_v60 = vrot.slane %v13053_v22, %v13747_v46 }
0x16d5   : > { %v7166_v25 = vsel %vm4320_vm3, %v7073_v35, %v7165_v7 }
0x16d6   : > { %v6972_v33 = vpop.permute.xlu1 %6971 }
0x16da   : > { %v6987_v19 = vpop.permute.xlu1 %6986 }
0x16db   : > { %v7101_v43 = vrot.slane %v6987_v19, %v11384_v45  ;;  %v7081_v19 = vrot.slane %v6972_v33, %v11384_v45 }
0x16dd   : > { %v7172_v14 = vsel %vm4318_vm2, %v7101_v43, %v7097_v27 }
0x16de   : > { %v6993_v53 = vpop.permute.xlu1 %6992  ;;  %v13071_v15 = vpop.eup %9449  ;;  %v7173_v11 = vsel %vm4320_vm3, %v7105_v57, %v7172_v14  ;;  %v7167_v14 = vsel %vm4322_vm4, %v7077_v30, %v7166_v25  ;;  %v6753_v25 = vrot.slane %v13053_v22, %v13748_v59  ;;  %v13830_v30 = vld [vmem:[#allocation38_spill] sm:$0xff] }
0x16df   : > { %13825 = vst [vmem:[#allocation28_spill] sm:$0xff] %v13071_v15  ;;  %v7109_v1 = vrot.slane %v6993_v53, %v11384_v45  ;;  %7007 = vperm.xlu1 %8990, %v13071_v15   ;;  %v13080_v21 = vpop.eup %9451  ;;  %v7168_v53 = vsel %vm4324_vm5, %v7081_v19, %v7167_v14 }
0x16e0   : > { %13826 = vst [vmem:[#allocation26_spill] sm:$0xff] %v13080_v21  ;;  %v13089_v43 = vpop.eup %9453 }
0x16e1   : > { %v7174_v28 = vsel %vm4322_vm4, %v7109_v1, %v7173_v11  ;;  %13827 = vst [vmem:[#allocation52_spill] sm:$0xff] %v13089_v43  ;;  %v7089_v1 = vrot.slane %v6978_v9, %v11384_v45  ;;  %v13099_v11 = vpop.eup %9455  ;;  %v13829_v9 = vld [vmem:[#allocation58_spill] sm:$0xff] }
0x16e2   : > { %v6975_v24 = vpop.permute.xlu1 %6974  ;;  %v7175_v23 = vsel %vm4324_vm5, %v7113_v56, %v7174_v28  ;;  %13828 = vst [vmem:[#allocation59_spill] sm:$0xff] %v13099_v11  ;;  %v6831_v19 = vsub.f32 %v13829_v9, %v6749_v60  ;;  %v6761_v56 = vrot.slane %v13053_v22, %v11515_v54 }
0x16e3   : > { %7016 = vperm.xlu1 %8990, %v13080_v21   ;;  %v7085_v27 = vrot.slane %v6975_v24, %v11384_v45 }
0x16e5   : > { %v7169_v33 = vsel %vm4326_vm6, %v7085_v27, %v7168_v53  ;;  %v7213_v27 = vrot.slane %v13051_v17, %v13747_v46  ;;  %v13832_v53 = vld [vmem:[#allocation40_spill] sm:$0xff] }
0x16e6   : > { %v6999_v36 = vpop.permute.xlu1 %6998  ;;  %v7170_v28 = vsel %vm4328_vm7, %v7089_v1, %v7169_v33  ;;  %v6834_v33 = vsub.f32 %v12824_v10, %v6761_v56  ;;  %v13842_v56 = vld [vmem:[#allocation51_spill] sm:$0xff] }
0x16e7   : > { %v7117_v57 = vrot.slane %v6999_v36, %v11384_v45  ;;  %7022 = vperm.xlu1 %8990, %v13089_v43   ;;  %v13831_v36 = vld [vmem:[#allocation60_spill] sm:$0xff]  ;;  %9457 = vrcp.f32 %v7213_v27 }
0x16e8   : > { %v6832_v14 = vsub.f32 %v13831_v36, %v6753_v25  ;;  %v13843_v36 = vld [vmem:[#allocation53_spill] sm:$0xff] }
0x16e9   : > { %v7176_v42 = vsel %vm4326_vm6, %v7117_v57, %v7175_v23  ;;  %v6888_v57 = vmul.f32 1.442695, %v6831_v19  ;;  %v6773_v23 = vrot.slane %v13053_v22, %v11666_v44  ;;  %v13837_v22 = vld [vmem:[#allocation47_spill] sm:$0xff] }
0x16ea   : > { %v6981_v35 = vpop.permute.xlu1 %6980  ;;  %v6890_v1 = vmul.f32 1.442695, %v6832_v14  ;;  %v13845_v14 = vld [vmem:[#allocation55_spill] sm:$0xff] }
0x16eb   : > { %v7093_v24 = vrot.slane %v6981_v35, %v11384_v45  ;;  %7025 = vperm.xlu1 %8990, %v13099_v11   ;;  %9459 = vpow2.f32 %v6888_v57  ;;  %v13833_v35 = vld [vmem:[#allocation41_spill] sm:$0xff]  ;;  %v6837_v60 = vsub.f32 %v12836_v49, %v6773_v23  ;;  %v7002_v57 = vpop.permute.xlu0 %7001 }
0x16ec   : > { %9461 = vpow2.f32 %v6890_v1 }
0x16ed   : > { %v7171_v39 = vsel %vm4330_vm8, %v7093_v24, %v7170_v28  ;;  %v6894_v24 = vmul.f32 1.442695, %v6834_v33  ;;  %v13834_v28 = vld [vmem:[#allocation42_spill] sm:$0xff] }
0x16ee   : > { %v7193_v7 = vsel %vm4357_vm9, %v7171_v39, 0.0  ;;  %v6900_v39 = vmul.f32 1.442695, %v6837_v60 }
0x16ef   : > { %7194 = vadd.xlane.f32.xlu0 %v7193_v7  ;;  %7466 = vperm.xlu1 %8990, %v13830_v30   ;;  %9463 = vpow2.f32 %v6894_v24  ;;  %v13835_v7 = vld [vmem:[#allocation45_spill] sm:$0xff]  ;;  %v13840_v30 = vld [vmem:[#allocation44_spill] sm:$0xff]  ;;  %v7005_v23 = vpop.permute.xlu0 %7004  ;;  %v7209_v24 = vrot.slane %v13051_v17, %v13746_v4 }
0x16f0   : > { %9465 = vpow2.f32 %v6900_v39  ;;  %v7125_v1 = vrot.slane %v7005_v23, %v11384_v45  ;;  %v13847_v39 = vld [vmem:[#allocation31_spill] sm:$0xff] }
0x16f1   : > { %9467 = vrcp.f32 %v7209_v24 }
0x16f3   : > { %7469 = vperm.xlu1 %8990, %v13832_v53   ;;  %v7121_v53 = vrot.slane %v7002_v57, %v11384_v45 }
0x16f4   : > { %v9458_v25 = vpop.eup %9457 }
0x16f5   : > { %v7369_v10 = vmul.f32 %v9458_v25, %v12894_v26  ;;  %v13844_v26 = vld [vmem:[#allocation48_spill] sm:$0xff]  ;;  %v7177_v33 = vsel %vm4328_vm7, %v7121_v53, %v7176_v42  ;;  %v13848_v25 = vld [vmem:[#allocation39_spill] sm:$0xff]  ;;  %v13852_v53 = vld [vmem:[#allocation34_spill] sm:$0xff] }
0x16f6   : > { %v13849_v42 = vld [vmem:[#allocation32_spill] sm:$0xff] }
0x16f7   : > { %7475 = vperm.xlu1 %8990, %v13833_v35   ;;  %v7178_v35 = vsel %vm4330_vm8, %v7125_v1, %v7177_v33  ;;  %v13853_v33 = vld [vmem:[#allocation54_spill] sm:$0xff] }
0x16f8   : > { %v13125_v9 = vpop.eup %9459  ;;  %v7196_v60 = vsel %vm4357_vm9, %v7178_v35, 0.0  ;;  %v13854_v35 = vld [vmem:[#allocation46_spill] sm:$0xff] }
0x16f9   : > { %13836 = vst [vmem:[#allocation58_spill] sm:$0xff] %v13125_v9  ;;  %v13130_v19 = vpop.eup %9461 }
0x16fa   : > { %13838 = vst [vmem:[#allocation38_spill] sm:$0xff] %v13130_v19 }
0x16fb   : > { %7481 = vperm.xlu1 %8990, %v13834_v28   ;;  %v13846_v28 = vld [vmem:[#allocation35_spill] sm:$0xff] }
0x16fc   : > { %v13133_v49 = vpop.eup %9463 }
0x16fd   : > { %13839 = vst [vmem:[#allocation60_spill] sm:$0xff] %v13133_v49  ;;  %v13137_v27 = vpop.eup %9465 }
0x16fe   : > { %13841 = vst [vmem:[#allocation40_spill] sm:$0xff] %v13137_v27 }
0x16ff   : > { %7487 = vperm.xlu1 %8990, %v13835_v7   ;;  %v7217_v7 = vrot.slane %v13051_v17, %v13748_v59 }
0x1701   : > { %9469 = vrcp.f32 %v7217_v7 }
0x1703   : > { %7493 = vperm.xlu1 %8990, %v13837_v22   ;;  %v9468_v22 = vpop.eup %9467 }
0x1705   : > { %7010 = vperm.xlu0 %8989, %v13125_v9  }
0x1707   : > { %7768 = vperm.xlu1 %8990, %v7369_v10   ;;  %v13850_v10 = vld [vmem:[#allocation33_spill] sm:$0xff] }
0x1709   : > { %7013 = vperm.xlu0 %8989, %v13130_v19  }
0x170b   : > { %7514 = vperm.xlu1 %8990, %v13840_v30   ;;  %v7221_v30 = vrot.slane %v13051_v17, %v11499_v48 }
0x170d   : > { %7019 = vperm.xlu0 %8989, %v13133_v49   ;;  %9471 = vrcp.f32 %v7221_v30 }
0x170f   : > { %7517 = vperm.xlu1 %8990, %v13842_v56   ;;  %v7367_v56 = vmul.f32 %v9468_v22, %v12892_v50 }
0x1711   : > { %7028 = vperm.xlu0 %8989, %v13137_v27  }
0x1713   : > { %7538 = vperm.xlu1 %8990, %v13843_v36   ;;  %v9470_v36 = vpop.eup %9469 }
0x1714   : > { %v7371_v57 = vmul.f32 %v9470_v36, %v12901_v52 }
0x1717   : > { %7499 = vperm.xlu1 %8990, %v13844_v26   ;;  %v13851_v26 = vld [vmem:[#allocation50_spill] sm:$0xff] }
0x171a   : > { %v9472_v23 = vpop.eup %9471 }
0x171b   : > { %7541 = vperm.xlu1 %8990, %v13845_v14   ;;  %v7225_v14 = vrot.slane %v13051_v17, %v11515_v54  ;;  %v7373_v1 = vmul.f32 %v9472_v23, %v12904_v63 }
0x171d   : > { %9473 = vrcp.f32 %v7225_v14 }
0x172a   : > { %v9474_v50 = vpop.eup %9473 }
0x1730   : > { %7197 = vadd.xlane.f32.xlu0 %v7196_v60  ;;  %v7375_v60 = vmul.f32 %v9474_v50, %v12908_v31 }
0x1746   : > { %7463 = vperm.xlu0 %8989, %v13846_v28  }
0x174a   : > { %7472 = vperm.xlu0 %8989, %v13847_v39  }
0x174e   : > { %7478 = vperm.xlu0 %8989, %v13848_v25  }
0x1752   : > { %7484 = vperm.xlu0 %8989, %v13849_v42  }
0x1756   : > { %7490 = vperm.xlu0 %8989, %v13850_v10  }
0x175a   : > { %7765 = vperm.xlu0 %8989, %v7367_v56   ;;  %v13182_v10 = vpop.permute.xlu1 %7007 }
0x175e   : > { %7511 = vperm.xlu0 %8989, %v13851_v26   ;;  %v13185_v36 = vpop.permute.xlu1 %7016 }
0x1762   : > { %7771 = vperm.xlu0 %8989, %v7371_v57   ;;  %v13188_v14 = vpop.permute.xlu1 %7022 }
0x1766   : > { %7496 = vperm.xlu0 %8989, %v13852_v53   ;;  %v13190_v57 = vpop.permute.xlu1 %7025 }
0x176a   : > { %7535 = vperm.xlu0 %8989, %v13853_v33  }
0x176e   : > { %7774 = vperm.xlu0 %8989, %v7373_v1  }
0x1772   : > { %7520 = vperm.xlu0 %8989, %v13854_v35  }
0x1776   : > { %7777 = vperm.xlu0 %8989, %v7375_v60  }
0x1778   : > { %v13170_v24 = vpop.xlane.xlu0 %7194 }
0x1779   : > { %v7241_v52 = vrot.slane %v13170_v24, %v13746_v4  ;;  %v7245_v28 = vrot.slane %v13170_v24, %v13747_v46  ;;  %v7249_v39 = vrot.slane %v13170_v24, %v13748_v59  ;;  %v7253_v63 = vrot.slane %v13170_v24, %v11499_v48 }
0x177b   : > { %9475 = vrcp.f32 %v7241_v52 }
0x177c   : > { %9477 = vrcp.f32 %v7245_v28 }
0x177d   : > { %9479 = vrcp.f32 %v7249_v39 }
0x177e   : > { %9481 = vrcp.f32 %v7253_v63 }
0x1788   : > { %v9476_v31 = vpop.eup %9475 }
0x1789   : > { %v9478_v7 = vpop.eup %9477  ;;  %v7383_v25 = vmul.f32 %v9476_v31, %v13023_v34  ;;  %v13192_v34 = vpop.permute.xlu0 %7010 }
0x178a   : > { %v7385_v42 = vmul.f32 %v9478_v7, %v12920_v20  ;;  %v9480_v22 = vpop.eup %9479  ;;  %v7467_v20 = vpop.permute.xlu1 %7466 }
0x178b   : > { %7789 = vperm.xlu0 %8989, %v7383_v25   ;;  %v7387_v30 = vmul.f32 %v9480_v22, %v13029_v2  ;;  %v9482_v56 = vpop.eup %9481  ;;  %v13856_v25 = vld [vmem:[#allocation23_spill] sm:$0xff] }
0x178c   : > { %7792 = vperm.xlu1 %8990, %v7385_v42   ;;  %v7389_v26 = vmul.f32 %v9482_v56, %v12923_v61  ;;  %v13855_v61 = vld [vmem:[#allocation27_spill] sm:$0xff] }
0x178d   : > { %v13194_v53 = vpop.permute.xlu0 %7013  ;;  %v7562_v60 = vadd.s32 4294967288, %v13855_v61  ;;  %v7569_v63 = vadd.s32 4294967280, %v13855_v61  ;;  %v7576_v7 = vadd.s32 4294967272, %v13855_v61  ;;  %v7583_v56 = vadd.s32 4294967264, %v13855_v61 }
0x178e   : > { %v7470_v23 = vpop.permute.xlu1 %7469  ;;  %v7597_v43 = vadd.s32 4294967248, %v13855_v61 }
0x178f   : > { %v13214_v42 = vsub.s32 %v7562_v60, %v13856_v25  ;;  %v13232_v11 = vsub.s32 %v7583_v56, %v13856_v25 }
0x1790   : > { %7795 = vperm.xlu1 %8990, %v7387_v30   ;;  %v13219_v30 = vsub.s32 %v7569_v63, %v13856_v25  ;;  %v13244_v56 = vsub.s32 %v7597_v43, %v13856_v25 }
0x1791   : > { %v13196_v33 = vpop.permute.xlu0 %7019 }
0x1792   : > { %v7476_v2 = vpop.permute.xlu1 %7475  ;;  %v7573_v63 = vrot.slane %v7470_v23, %v13219_v30  ;;  %13857 = vst [vmem:[#allocation41_spill] sm:$0xff] %v13244_v56 }
0x1793   : > { %v7587_v23 = vrot.slane %v7476_v2, %v13232_v11 }
0x1794   : > { %7798 = vperm.xlu1 %8990, %v7389_v26  }
0x1795   : > { %v13198_v1 = vpop.permute.xlu0 %7028 }
0x1796   : > { %v7482_v50 = vpop.permute.xlu1 %7481 }
0x179a   : > { %v13210_v31 = vpop.permute.xlu1 %7487 }
0x179e   : > { %v13226_v27 = vpop.permute.xlu1 %7493 }
0x17a2   : > { %v7769_v19 = vpop.permute.xlu1 %7768 }
0x17b9   : > { %v13200_v35 = vpop.xlane.xlu0 %7197 }
0x17ba   : > { %v7273_v52 = vrot.slane %v13200_v35, %v13746_v4  ;;  %v7277_v28 = vrot.slane %v13200_v35, %v13747_v46  ;;  %v7281_v39 = vrot.slane %v13200_v35, %v13748_v59  ;;  %v7285_v22 = vrot.slane %v13200_v35, %v11499_v48 }
0x17bc   : > { %9483 = vrcp.f32 %v7273_v52  ;;  %v13223_v52 = vsub.s32 %v7576_v7, %v13856_v25 }
0x17bd   : > { %9485 = vrcp.f32 %v7277_v28  ;;  %v7566_v28 = vrot.slane %v7467_v20, %v13214_v42 }
0x17be   : > { %9487 = vrcp.f32 %v7281_v39  ;;  %v7590_v39 = vadd.s32 4294967256, %v13855_v61 }
0x17bf   : > { %9489 = vrcp.f32 %v7285_v22 }
0x17c0   : > { %v13239_v22 = vsub.s32 %v7590_v39, %v13856_v25  ;;  %v7261_v39 = vrot.slane %v13170_v24, %v11531_v8 }
0x17c1   : > { %v7464_v26 = vpop.permute.xlu0 %7463 }
0x17c2   : > { %v7561_v60 = vrot.slane %v7464_v26, %v11384_v45  ;;  %v7604_v26 = vadd.s32 4294967240, %v13855_v61  ;;  %9491 = vrcp.f32 %v7261_v39  ;;  %v7614_v39 = vrot.slane %v13210_v31, %v11384_v45 }
0x17c4   : > { %v7568_v49 = vsel %vm7567_vm10, %v7566_v28, %v7561_v60  ;;  %v13253_v43 = vsub.s32 %v7604_v26, %v13856_v25 }
0x17c5   : > { %v7575_v7 = vsel %vm7574_vm11, %v7573_v63, %v7568_v49  ;;  %v7473_v20 = vpop.permute.xlu0 %7472 }
0x17c6   : > { %v7580_v21 = vrot.slane %v7473_v20, %v13223_v52 }
0x17c8   : > { %v7582_v28 = vsel %vm7581_vm12, %v7580_v21, %v7575_v7  ;;  %v7601_v21 = vrot.slane %v7482_v50, %v13244_v56  ;;  %v7860_v50 = vadd.s32 4294967232, %v13855_v61 }
0x17c9   : > { %v9484_v60 = vpop.eup %9483  ;;  %v7589_v49 = vsel %vm7588_vm13, %v7587_v23, %v7582_v28  ;;  %v7479_v63 = vpop.permute.xlu0 %7478  ;;  %v7865_v28 = vadd.s32 4294967224, %v13855_v61 }
0x17ca   : > { %v9486_v20 = vpop.eup %9485  ;;  %v7594_v9 = vrot.slane %v7479_v63, %v13239_v22  ;;  %v7399_v2 = vmul.f32 %v9484_v60, %v12974_v62  ;;  %v7515_v62 = vpop.permute.xlu1 %7514 }
0x17cb   : > { %v9488_v15 = vpop.eup %9487  ;;  %v7401_v7 = vmul.f32 %v9486_v20, %v13036_v55 }
0x17cc   : > { %v7596_v23 = vsel %vm7595_vm14, %v7594_v9, %v7589_v49  ;;  %7813 = vperm.xlu0 %8989, %v7399_v2   ;;  %v7403_v60 = vmul.f32 %v9488_v15, %v12989_v51  ;;  %v9490_v56 = vpop.eup %9489  ;;  %v7233_v9 = vrot.slane %v13051_v17, %v11542_v3  ;;  %v13269_v49 = vsub.s32 %v7865_v28, %v13856_v25 }
0x17cd   : > { %7816 = vperm.xlu1 %8990, %v7401_v7   ;;  %v7603_v48 = vsel %vm7602_vm15, %v7601_v21, %v7596_v23  ;;  %v7485_v63 = vpop.permute.xlu0 %7484  ;;  %v7405_v51 = vmul.f32 %v9490_v56, %v13039_v13  ;;  %v13276_v15 = vsub.s32 %v7860_v50, %v13856_v25  ;;  %v7293_v13 = vrot.slane %v13200_v35, %v11531_v8 }
0x17ce   : > { %v7608_v26 = vrot.slane %v7485_v63, %v13253_v43  ;;  %v7518_v21 = vpop.permute.xlu1 %7517  ;;  %9493 = vrcp.f32 %v7233_v9  ;;  %v7869_v31 = vrot.slane %v7769_v19, %v13269_v49  ;;  %v7872_v63 = vadd.s32 4294967216, %v13855_v61 }
0x17cf   : > { %v7657_v50 = vrot.slane %v7515_v62, %v13214_v42  ;;  %9495 = vrcp.f32 %v7293_v13  ;;  %v7129_v62 = vrot.slane %v13182_v10, %v11384_v45  ;;  %v7141_v10 = vrot.slane %v13185_v36, %v11384_v45 }
0x17d0   : > { %v13264_v55 = vsel %vm13703_vm0, %v7608_v26, %v7603_v48  ;;  %7819 = vperm.xlu0 %8989, %v7403_v60   ;;  %v7623_v48 = vrot.slane %v13226_v27, %v13219_v30  ;;  %v13858_v26 = vld [vmem:[#allocation36_spill] sm:$0xff]  ;;  %v13292_v19 = vsub.s32 %v7872_v63, %v13856_v25  ;;  %vm7877_vm0 = vcmask 720512  }
0x17d1   : > { %v7491_v20 = vpop.permute.xlu0 %7490  ;;  %v7149_v36 = vrot.slane %v13188_v14, %v11384_v45  ;;  %v7153_v14 = vrot.slane %v13190_v57, %v11384_v45  ;;  %v7257_v57 = vrot.slane %v13170_v24, %v11515_v54 }
0x17d2   : > { %v7618_v2 = vrot.slane %v7491_v20, %v13214_v42  ;;  %v7539_v9 = vpop.permute.xlu1 %7538 }
0x17d4   : > { %v7619_v7 = vsel %vm7567_vm10, %v7618_v2, %v7614_v39  ;;  %7822 = vperm.xlu0 %8989, %v7405_v51   ;;  %v9492_v39 = vpop.eup %9491  ;;  %v7133_v2 = vrot.slane %v13192_v34, %v11384_v45  ;;  %v7662_v51 = vrot.slane %v7518_v21, %v13219_v30 }
0x17d5   : > { %v7766_v23 = vpop.permute.xlu0 %7765  ;;  %v7624_v28 = vsel %vm7574_vm11, %v7623_v48, %v7619_v7  ;;  %v7137_v48 = vrot.slane %v13194_v53, %v11384_v45  ;;  %v7393_v34 = vmul.f32 %v9492_v39, %v13042_v12  ;;  %v7145_v53 = vrot.slane %v13196_v33, %v11384_v45 }
0x17d6   : > { %v7864_v56 = vrot.slane %v7766_v23, %v13276_v15  ;;  %v13859_v23 = vld [vmem:[#allocation56_spill] sm:$0xff]  ;;  %v7179_v21 = vsel %vm4318_vm2, %v7133_v2, %v7129_v62  ;;  %v7879_v39 = vadd.s32 4294967208, %v13855_v61 }
0x17d7   : > { %v7180_v63 = vsel %vm4320_vm3, %v7137_v48, %v7179_v21 }
0x17d8   : > { %v7871_v27 = vsel %vm7870_vm1, %v7869_v31, %v7864_v56  ;;  %7502 = vperm.xlu0 %8989, %v13858_v26   ;;  %v7500_v26 = vpop.permute.xlu1 %7499  ;;  %v7181_v2 = vsel %vm4322_vm4, %v7141_v10, %v7180_v63  ;;  %v13331_v21 = vsub.s32 %v7879_v39, %v13856_v25 }
0x17d9   : > { %v7512_v60 = vpop.permute.xlu0 %7511  ;;  %v7633_v33 = vrot.slane %v7500_v26, %v13232_v11  ;;  %v7182_v48 = vsel %vm4324_vm5, %v7145_v53, %v7181_v2  ;;  %vm7884_vm5 = vcmask 786112   ;;  %v13861_v2 = vld [vmem:[#allocation49_spill] sm:$0xff] }
0x17da   : > { %v7653_v20 = vrot.slane %v7512_v60, %v11384_v45  ;;  %v7183_v63 = vsel %vm4326_vm6, %v7149_v36, %v7182_v48  ;;  %vm7891_vm6 = vcmask 851712   ;;  %v13862_v36 = vld [vmem:[#allocation57_spill] sm:$0xff] }
0x17db   : > { %v7184_v10 = vsel %vm4328_vm7, %v7153_v14, %v7183_v63  ;;  %v7265_v63 = vrot.slane %v13170_v24, %v11542_v3  ;;  %vm13872_vm7 = vcmask 523712  }
0x17dc   : > { %v7658_v7 = vsel %vm7567_vm10, %v7657_v50, %v7653_v20  ;;  %7544 = vperm.xlu0 %8989, %v13859_v23   ;;  %v9494_v20 = vpop.eup %9493 }
0x17dd   : > { %v7772_v31 = vpop.permute.xlu0 %7771  ;;  %v7663_v13 = vsel %vm7574_vm11, %v7662_v51, %v7658_v7  ;;  %v7269_v51 = vrot.slane %v13170_v24, %v11666_v44  ;;  %v13860_v7 = vld [vmem:[#allocation25_spill] sm:$0xff]  ;;  %v7379_v62 = vmul.f32 %v9494_v20, %v12914_v40  ;;  %v7157_v40 = vrot.slane %v13198_v1, %v11384_v45 }
0x17de   : > { %v7876_v56 = vrot.slane %v7772_v31, %v13292_v19  ;;  %v7237_v24 = vrot.slane %v13051_v17, %v11666_v44 }
0x17df   : > { %9497 = vrcp.f32 %v7269_v51 }
0x17e0   : > { %v7878_v60 = vsel %vm7877_vm0, %v7876_v56, %v7871_v27  ;;  %7804 = vperm.xlu0 %8989, %v7393_v34   ;;  %v7696_v56 = vrot.slane %v7539_v9, %v13214_v42  ;;  %9499 = vrcp.f32 %v7257_v57 }
0x17e1   : > { %v7497_v50 = vpop.permute.xlu0 %7496 }
0x17e2   : > { %v7628_v12 = vrot.slane %v7497_v50, %v13223_v52  ;;  %v7886_v50 = vadd.s32 4294967200, %v13855_v61 }
0x17e4   : > { %v7629_v27 = vsel %vm7581_vm12, %v7628_v12, %v7624_v28  ;;  %7526 = vperm.xlu0 %8989, %v13860_v7   ;;  %v9496_v28 = vpop.eup %9495  ;;  %v7185_v12 = vsel %vm4330_vm8, %v7157_v40, %v7184_v10  ;;  %v13351_v1 = vsub.s32 %v7886_v50, %v13856_v25  ;;  %v13864_v40 = vld [vmem:[#allocation43_spill] sm:$0xff]  ;;  %vm7898_vm8 = vcmask 917312  }
0x17e5   : > { %v7536_v23 = vpop.permute.xlu0 %7535  ;;  %v13326_v31 = vsel %vm7588_vm13, %v7633_v33, %v7629_v27  ;;  %v7409_v26 = vmul.f32 %v9496_v28, %v13045_v37  ;;  %v7199_v39 = vsel %vm4357_vm9, %v7185_v12, 0.0  ;;  %v7229_v27 = vrot.slane %v13051_v17, %v11531_v8  ;;  %v13370_v28 = vpop.permute.xlu1 %7541 }
0x17e6   : > { %v7692_v34 = vrot.slane %v7536_v23, %v11384_v45  ;;  %v7289_v23 = vrot.slane %v13200_v35, %v11515_v54  ;;  %vm7905_vm9 = vcmask 982912  }
0x17e7   : > { %9501 = vrcp.f32 %v7229_v27 }
0x17e8   : > { %v13337_v53 = vsel %vm7567_vm10, %v7696_v56, %v7692_v34  ;;  %7783 = vperm.xlu0 %8989, %v7379_v62   ;;  %9503 = vrcp.f32 %v7289_v23  ;;  %v13863_v62 = vld [vmem:[#allocation30_spill] sm:$0xff]  ;;  %vm7912_vm10 = vcmask 1048512  }
0x17e9   : > { %v7775_v42 = vpop.permute.xlu0 %7774  ;;  %9505 = vrcp.f32 %v7265_v63 }
0x17ea   : > { %v7883_v9 = vrot.slane %v7775_v42, %v13331_v21  ;;  %9507 = vrcp.f32 %v7237_v24 }
0x17ec   : > { %v7885_v20 = vsel %vm7884_vm5, %v7883_v9, %v7878_v60  ;;  %7828 = vperm.xlu0 %8989, %v7409_v26   ;;  %v9498_v48 = vpop.eup %9497 }
0x17ed   : > { %v7521_v51 = vpop.permute.xlu0 %7520  ;;  %v9500_v56 = vpop.eup %9499 }
0x17ee   : > { %v7667_v45 = vrot.slane %v7521_v51, %v13223_v52  ;;  %v7391_v34 = vmul.f32 %v9500_v56, %v13033_v5 }
0x17f0   : > { %v13354_v37 = vsel %vm7581_vm12, %v7667_v45, %v7663_v13  ;;  %7508 = vperm.xlu0 %8989, %v13861_v2   ;;  %v7397_v13 = vmul.f32 %v9498_v48, %v13048_v6 }
0x17f1   : > { %7200 = vadd.xlane.f32.xlu1 %v7199_v39  ;;  %v7778_v60 = vpop.permute.xlu0 %7777 }
0x17f2   : > { %v7890_v33 = vrot.slane %v7778_v60, %v13351_v1  ;;  %v13865_v60 = vld [vmem:[#allocation37_spill] sm:$0xff] }
0x17f4   : > { %v13362_v7 = vsel %vm7891_vm6, %v7890_v33, %v7885_v20  ;;  %7550 = vperm.xlu0 %8989, %v13862_v36   ;;  %v9502_v14 = vpop.eup %9501 }
0x17f5   : > { %v7377_v10 = vmul.f32 %v9502_v14, %v12910_v58  ;;  %v9504_v50 = vpop.eup %9503  ;;  %v7297_v58 = vrot.slane %v13200_v35, %v11542_v3 }
0x17f6   : > { %v7407_v51 = vmul.f32 %v9504_v50, %v12998_v38  ;;  %v9506_v17 = vpop.eup %9505  ;;  %v7301_v38 = vrot.slane %v13200_v35, %v11666_v44 }
0x17f7   : > { %9509 = vrcp.f32 %v7297_v58  ;;  %v7395_v33 = vmul.f32 %v9506_v17, %v12926_v41  ;;  %v9508_v48 = vpop.eup %9507  ;;  %v13869_v17 = vld [vmem:[#allocation41_spill] sm:$0xff] }
0x17f8   : > { %7810 = vperm.xlu0 %8989, %v7397_v13   ;;  %9511 = vrcp.f32 %v7301_v38  ;;  %v7381_v27 = vmul.f32 %v9508_v48, %v12916_v18  ;;  %v13870_v38 = vld [vmem:[#allocation38_spill] sm:$0xff] }
0x17fc   : > { %7553 = vperm.xlu0 %8989, %v13863_v62  }
0x1802   : > { %7801 = vperm.xlu1 %8990, %v7391_v34  }
0x1804   : > { %v9510_v36 = vpop.eup %9509 }
0x1805   : > { %v7411_v13 = vmul.f32 %v9510_v36, %v13005_v0  ;;  %v9512_v23 = vpop.eup %9511 }
0x1806   : > { %7523 = vperm.xlu1 %8990, %v13864_v40   ;;  %v7790_v6 = vpop.permute.xlu0 %7789  ;;  %v13866_v40 = vld [vmem:[#allocation24_spill] sm:$0xff] }
0x1807   : > { %v7793_v42 = vpop.permute.xlu1 %7792  ;;  %v7917_v9 = vrot.slane %v7790_v6, %v13276_v15 }
0x1808   : > { %v7921_v26 = vrot.slane %v7793_v42, %v13269_v49 }
0x180a   : > { %v7922_v5 = vsel %vm7870_vm1, %v7921_v26, %v7917_v9  ;;  %7780 = vperm.xlu1 %8990, %v7377_v10  }
0x180b   : > { %v7796_v57 = vpop.permute.xlu1 %7795 }
0x180c   : > { %v7926_v20 = vrot.slane %v7796_v57, %v13292_v19 }
0x180e   : > { %v7927_v12 = vsel %vm7877_vm0, %v7926_v20, %v7922_v5  ;;  %7825 = vperm.xlu1 %8990, %v7407_v51  }
0x180f   : > { %v7799_v45 = vpop.permute.xlu1 %7798 }
0x1810   : > { %v7931_v39 = vrot.slane %v7799_v45, %v13331_v21  ;;  %v13868_v45 = vld [vmem:[#allocation58_spill] sm:$0xff] }
0x1812   : > { %v13388_v2 = vsel %vm7884_vm5, %v7931_v39, %v7927_v12  ;;  %7505 = vperm.xlu1 %8990, %v13865_v60  }
0x1816   : > { %7547 = vperm.xlu1 %8990, %v12781_v29   ;;  %v7413_v29 = vmul.f32 %v9512_v23, %v13011_v47 }
0x181a   : > { %7807 = vperm.xlu1 %8990, %v7395_v33  }
0x181e   : > { %7529 = vperm.xlu1 %8990, %v12785_v16  }
0x1822   : > { %7786 = vperm.xlu1 %8990, %v7381_v27  }
0x1826   : > { %7831 = vperm.xlu1 %8990, %v7411_v13   ;;  %v13871_v13 = vld [vmem:[#allocation26_spill] sm:$0xff] }
0x182a   : > { %7532 = vperm.xlu1 %8990, %v12796_v32  }
0x182e   : > { %7834 = vperm.xlu1 %8990, %v7413_v29  }
0x1847   : > { %v13400_v35 = vpop.permute.xlu0 %7813 }
0x1848   : > { %v13410_v34 = vpop.permute.xlu1 %7816 }
0x184b   : > { %v13402_v41 = vpop.permute.xlu0 %7819 }
0x184f   : > { %v13404_v62 = vpop.permute.xlu0 %7822 }
0x1853   : > { %v7503_v16 = vpop.permute.xlu0 %7502 }
0x1854   : > { %v7638_v12 = vrot.slane %v7503_v16, %v13239_v22 }
0x1856   : > { %v7639_v27 = vsel %vm7595_vm14, %v7638_v12, %v13326_v31 }
0x1857   : > { %v13406_v56 = vpop.permute.xlu0 %7544 }
0x185b   : > { %v13408_v18 = vpop.permute.xlu0 %7804 }
0x185f   : > { %v13412_v63 = vpop.permute.xlu0 %7526 }
0x1863   : > { %v13420_v10 = vpop.permute.xlu0 %7783 }
0x187a   : > { %v7201_v0 = vpop.xlane.xlu1 %7200 }
0x187b   : > { %v7305_v32 = vrot.slane %v7201_v0, %v13746_v4  ;;  %v7309_v47 = vrot.slane %v7201_v0, %v13747_v46  ;;  %v7313_v14 = vrot.slane %v7201_v0, %v13748_v59  ;;  %v7317_v6 = vrot.slane %v7201_v0, %v13866_v40  ;;  %v13425_v59 = vpop.permute.xlu0 %7828 }
0x187c   : > { %v7321_v9 = vrot.slane %v7201_v0, %v11515_v54  ;;  %v7325_v26 = vrot.slane %v7201_v0, %v11531_v8  ;;  %v7329_v4 = vrot.slane %v7201_v0, %v11542_v3  ;;  %v7333_v5 = vrot.slane %v7201_v0, %v11666_v44  ;;  %v13867_v8 = vld [vmem:[#allocation28_spill] sm:$0xff] }
0x187d   : > { %9513 = vrcp.f32 %v7305_v32 }
0x187e   : > { %9515 = vrcp.f32 %v7309_v47  ;;  %v7802_v42 = vpop.permute.xlu1 %7801  ;;  %v7893_v47 = vadd.s32 4294967192, %v13855_v61 }
0x187f   : > { %9517 = vrcp.f32 %v7313_v14  ;;  %v7509_v39 = vpop.permute.xlu0 %7508  ;;  %v13873_v14 = vld [vmem:[#allocation60_spill] sm:$0xff] }
0x1880   : > { %9519 = vrcp.f32 %v7317_v6  ;;  %v7648_v36 = vrot.slane %v7509_v39, %v13253_v43  ;;  %v7900_v6 = vadd.s32 4294967184, %v13855_v61 }
0x1881   : > { %9521 = vrcp.f32 %v7321_v9  ;;  %v13874_v9 = vld [vmem:[#allocation52_spill] sm:$0xff] }
0x1882   : > { %v13422_v50 = vpop.permute.xlu1 %7523  ;;  %9523 = vrcp.f32 %v7325_v26 }
0x1883   : > { %9525 = vrcp.f32 %v7329_v4 }
0x1884   : > { %9527 = vrcp.f32 %v7333_v5  ;;  %v13449_v5 = vpop.permute.xlu0 %7550 }
0x1886   : > { %v7781_v46 = vpop.permute.xlu1 %7780 }
0x188a   : > { %v9514_v57 = vpop.eup %9513  ;;  %v13428_v54 = vpop.permute.xlu1 %7825 }
0x188b   : > { %v9516_v24 = vpop.eup %9515  ;;  %v7415_v20 = vmul.f32 %v9514_v57, %v13867_v8  ;;  %v7936_v57 = vrot.slane %v7802_v42, %v13351_v1  ;;  %v13453_v8 = vsub.s32 %v7893_v47, %v13856_v25  ;;  %v7965_v47 = vrot.slane %v13402_v41, %v13292_v19 }
0x188c   : > { %v9518_v51 = vpop.eup %9517  ;;  %v7417_v58 = vmul.f32 %v9516_v24, %v13868_v45 }
0x188d   : > { %v9520_v3 = vpop.eup %9519  ;;  %7837 = vperm.xlu1 %8990, %v7415_v20   ;;  %v7419_v33 = vmul.f32 %v9518_v51, %v13870_v38  ;;  %v7907_v20 = vadd.s32 4294967176, %v13855_v61  ;;  %v13457_v51 = vsub.s32 %v7900_v6, %v13856_v25  ;;  %v7937_v42 = vsel %vm7891_vm6, %v7936_v57, %v13388_v2  ;;  %v7811_v38 = vpop.permute.xlu0 %7810 }
0x188e   : > { %7840 = vperm.xlu0 %8989, %v7417_v58   ;;  %v7506_v60 = vpop.permute.xlu1 %7505  ;;  %v9522_v48 = vpop.eup %9521  ;;  %v7421_v23 = vmul.f32 %v9520_v3, %v13871_v13  ;;  %v7897_v58 = vrot.slane %v7781_v46, %v13453_v8  ;;  %v13876_v3 = vld [vmem:[#allocation29_spill] sm:$0xff]  ;;  %v7941_v61 = vrot.slane %v13408_v18, %v13453_v8 }
0x188f   : > { %v7643_v44 = vrot.slane %v7506_v60, %v13869_v17  ;;  %v9524_v29 = vpop.eup %9523  ;;  %v7423_v40 = vmul.f32 %v9522_v48, %v13873_v14 }
0x1890   : > { %v7425_v26 = vmul.f32 %v9524_v29, %v13874_v9  ;;  %v9526_v4 = vpop.eup %9525  ;;  %v7899_v46 = vsel %vm7898_vm8, %v7897_v58, %v13362_v7  ;;  %v7942_v2 = vsel %vm7898_vm8, %v7941_v61, %v7937_v42  ;;  %v7960_v29 = vrot.slane %v13410_v34, %v13269_v49 }
0x1891   : > { %v7644_v16 = vsel %vm7602_vm15, %v7643_v44, %v7639_v27  ;;  %7843 = vperm.xlu1 %8990, %v7419_v33   ;;  %v9528_v45 = vpop.eup %9527  ;;  %v13468_v44 = vsub.s32 %v7907_v20, %v13856_v25  ;;  %v13877_v33 = vld [vmem:[#allocation40_spill] sm:$0xff]  ;;  %v7904_v27 = vrot.slane %v13420_v10, %v13457_v51  ;;  %v7956_v10 = vrot.slane %v13400_v35, %v13276_v15  ;;  %v7554_v61 = vpop.permute.xlu0 %7553 }
0x1892   : > { %v7649_v0 = vsel %vm13872_vm7, %v7648_v36, %v7644_v16  ;;  %7846 = vperm.xlu0 %8989, %v7421_v23   ;;  %v13441_v32 = vpop.permute.xlu1 %7547  ;;  %v7429_v48 = vmul.f32 %v9528_v45, %v13877_v33  ;;  %v7672_v23 = vrot.slane %v13422_v50, %v13232_v11  ;;  %v7970_v50 = vrot.slane %v13404_v62, %v13331_v21 }
0x1893   : > { %v7728_v31 = vsel %vm4318_vm2, %v7649_v0, %v13264_v55  ;;  %v13875_v55 = vld [vmem:[#allocation59_spill] sm:$0xff]  ;;  %v7951_v25 = vrot.slane %v7811_v38, %v13468_v44  ;;  %v7906_v7 = vsel %vm7905_vm9, %v7904_v27, %v7899_v46  ;;  %v7975_v34 = vrot.slane %v13428_v54, %v13351_v1 }
0x1894   : > { %v7427_v12 = vmul.f32 %v9526_v4, %v13875_v55  ;;  %v7673_v6 = vsel %vm7588_vm13, %v7672_v23, %v13354_v37  ;;  %v7961_v9 = vsel %vm7870_vm1, %v7960_v29, %v7956_v10  ;;  %v7980_v55 = vrot.slane %v13425_v59, %v13453_v8 }
0x1895   : > { %7849 = vperm.xlu1 %8990, %v7423_v40   ;;  %v7966_v41 = vsel %vm7877_vm0, %v7965_v47, %v7961_v9  ;;  %v7706_v59 = vrot.slane %v13406_v56, %v13223_v52 }
0x1896   : > { %7852 = vperm.xlu0 %8989, %v7425_v26   ;;  %v7808_v24 = vpop.permute.xlu1 %7807  ;;  %v7677_v26 = vrot.slane %v13412_v63, %v13239_v22  ;;  %v7971_v57 = vsel %vm7884_vm5, %v7970_v50, %v7966_v41 }
0x1897   : > { %v7946_v39 = vrot.slane %v7808_v24, %v13457_v51  ;;  %v7976_v37 = vsel %vm7891_vm6, %v7975_v34, %v7971_v57 }
0x1898   : > { %v7678_v62 = vsel %vm7595_vm14, %v7677_v26, %v7673_v6  ;;  %v7981_v58 = vsel %vm7898_vm8, %v7980_v55, %v7976_v37 }
0x1899   : > { %7556 = vperm.xlu1 %8990, %v13876_v3   ;;  %v7947_v36 = vsel %vm7905_vm9, %v7946_v39, %v7942_v2 }
0x189a   : > { %7855 = vperm.xlu0 %8989, %v7427_v12   ;;  %v7530_v60 = vpop.permute.xlu1 %7529  ;;  %v7952_v16 = vsel %vm7912_vm10, %v7951_v25, %v7947_v36 }
0x189b   : > { %v7682_v35 = vrot.slane %v7530_v60, %v13869_v17 }
0x189d   : > { %v7683_v54 = vsel %vm7602_vm15, %v7682_v35, %v7678_v62 }
0x189e   : > { %7858 = vperm.xlu0 %8989, %v7429_v48   ;;  %v7787_v18 = vpop.permute.xlu1 %7786  ;;  %v7711_v48 = vrot.slane %v13441_v32, %v13232_v11  ;;  %v7716_v11 = vrot.slane %v13449_v5, %v13239_v22 }
0x189f   : > { %v7911_v13 = vrot.slane %v7787_v18, %v13468_v44 }
0x18a1   : > { %v7913_v0 = vsel %vm7912_vm10, %v7911_v13, %v7906_v7 }
0x18a2   : > { %v8031_v14 = vsel %vm4318_vm2, %v7952_v16, %v7913_v0  ;;  %v7832_v40 = vpop.permute.xlu1 %7831  ;;  %vm13878_vm2 = vmmov %vm13872_vm7 }
0x18a3   : > { %v7985_v20 = vrot.slane %v7832_v40, %v13457_v51 }
0x18a5   : > { %v7986_v42 = vsel %vm7905_vm9, %v7985_v20, %v7981_v58 }
0x18a6   : > { %v7533_v4 = vpop.permute.xlu1 %7532 }
0x18a7   : > { %v7687_v24 = vrot.slane %v7533_v4, %v13253_v43 }
0x18a9   : > { %v7688_v63 = vsel %vm13878_vm2, %v7687_v24, %v7683_v54 }
0x18aa   : > { %v7729_v12 = vsel %vm4320_vm3, %v7688_v63, %v7728_v31  ;;  %v7835_v45 = vpop.permute.xlu1 %7834  ;;  %v7701_v31 = vrot.slane %v13370_v28, %v13219_v30 }
0x18ab   : > { %v7990_v3 = vrot.slane %v7835_v45, %v13468_v44 }
0x18ac   : > { %v7702_v27 = vsel %vm7574_vm11, %v7701_v31, %v13337_v53 }
0x18ad   : > { %v7991_v39 = vsel %vm7912_vm10, %v7990_v3, %v7986_v42  ;;  %v7707_v25 = vsel %vm7581_vm12, %v7706_v59, %v7702_v27 }
0x18ae   : > { %v8032_v60 = vsel %vm4320_vm3, %v7991_v39, %v8031_v14  ;;  %v7712_v56 = vsel %vm7588_vm13, %v7711_v48, %v7707_v25  ;;  %vm13883_vm3 = vcmask 523264  }
0x18af   : > { %v7717_v13 = vsel %vm7595_vm14, %v7716_v11, %v7712_v56 }
0x1908   : > { %v7838_v38 = vpop.permute.xlu1 %7837 }
0x1909   : > { %v7841_v33 = vpop.permute.xlu0 %7840  ;;  %v7995_v36 = vrot.slane %v7838_v38, %v13276_v15 }
0x190a   : > { %v7999_v18 = vrot.slane %v7841_v33, %v13269_v49 }
0x190c   : > { %v7844_v46 = vpop.permute.xlu1 %7843  ;;  %v8000_v32 = vsel %vm7870_vm1, %v7999_v18, %v7995_v36  ;;  %vm13879_vm1 = vmmov %vm13878_vm2 }
0x190d   : > { %v7847_v2 = vpop.permute.xlu0 %7846  ;;  %v8004_v52 = vrot.slane %v7844_v46, %v13292_v19  ;;  %v7721_v19 = vrot.slane %v7554_v61, %v13869_v17 }
0x190e   : > { %v8009_v53 = vrot.slane %v7847_v2, %v13331_v21 }
0x190f   : > { %v8005_v15 = vsel %vm7877_vm0, %v8004_v52, %v8000_v32  ;;  %v7722_v21 = vsel %vm7602_vm15, %v7721_v19, %v7717_v13 }
0x1910   : > { %v7850_v30 = vpop.permute.xlu1 %7849  ;;  %v8010_v22 = vsel %vm7884_vm5, %v8009_v53, %v8005_v15 }
0x1911   : > { %v7853_v28 = vpop.permute.xlu0 %7852  ;;  %v8014_v49 = vrot.slane %v7850_v30, %v13351_v1 }
0x1912   : > { %v8019_v5 = vrot.slane %v7853_v28, %v13453_v8 }
0x1913   : > { %v8015_v10 = vsel %vm7891_vm6, %v8014_v49, %v8010_v22 }
0x1914   : > { %v7557_v23 = vpop.permute.xlu1 %7556 }
0x1915   : > { %v7726_v7 = vrot.slane %v7557_v23, %v13253_v43  ;;  %v7856_v29 = vpop.permute.xlu0 %7855  ;;  %v8020_v43 = vsel %vm7898_vm8, %v8019_v5, %v8015_v10 }
0x1916   : > { %v8024_v1 = vrot.slane %v7856_v29, %v13457_v51 }
0x1917   : > { %v7727_v16 = vsel %vm13879_vm1, %v7726_v7, %v7722_v21 }
0x1918   : > { %v7730_v17 = vsel %vm4322_vm4, %v7727_v16, %v7729_v12  ;;  %v8025_v8 = vsel %vm7905_vm9, %v8024_v1, %v8020_v43 }
0x1919   : > { %v7859_v0 = vpop.permute.xlu0 %7858 }
0x191a   : > { %v8029_v47 = vrot.slane %v7859_v0, %v13468_v44 }
0x191c   : > { %v8030_v14 = vsel %vm7912_vm10, %v8029_v47, %v8025_v8 }
0x191d   : > { %v8033_v40 = vsel %vm4322_vm4, %v8030_v14, %v8032_v60 }
0x191e   : > { %v8035_v51 = vsel %vm13883_vm3, %v7730_v17, %v8033_v40 }
0x191f   : > { %8036 = vst [vmem:[%s734_s2] sm:$0xf] %v8035_v51 }
0x1920   : > { %9658 = shalt.err (!%p9655_p2)
}
0x1921   : > { %s9659_s24 = scalar_lea.hbm %s13556_s21, 64  ;;  %s9663_s26 = scalar_lea.hbm %s13882_s18, 128 }
0x1922   : > { %p9660_p0 = scmp.ne.s32.totalorder %s13556_s21, %s9659_s24  ;;  %p9664_p10 = scmp.lt.s32.totalorder %s13556_s21, %s13882_s18 }
0x1923   : > { %p9665_p6 = scmp.lt.s32.totalorder %s9663_s26, %s9659_s24 }
0x1924   : > { %p9661_p8 = pnand %p9660_p0, %p13884_p9 }
0x1925   : > { %p9666_p12 = por %p9665_p6, %p9664_p10 }
0x1926   : > { %p9662_p11 = pneg %p9661_p8 }
0x1928   : > { %p9667_p3 = pnand %p9666_p12, %p9662_p11 }
0x192a   : > { %9670 = shalt.err (!%p9667_p3)
}
0x192b   : > { %8919 = dma.vmem_to_hbm [thread:$0]  (%p13884_p9), %s8052_s27, 64, %s13556_s21, %s8038_s6  }
0x192c PF: > { %s13885_s5 = sld [smem:[#allocation17_spill]]  ;;  %p13888_p5 = scmp.ge.s32.totalorder %s9721_s19, 2 }
0x192d   : > { %s13886_s14 = sld [smem:[#allocation19_spill]] }
0x1932   : > { %s8063_s29 = sand.u32 1, %s13885_s5  }
0x1933   : > { %p13887_p13 = scmp.ne.s32.totalorder %s13886_s14, 0  ;;  %s8064_s0 = scalar_lea.sflag [#allocation5], %s8063_s29 }
0x1935   : > { %p8936_p1 = pnand %p13888_p5, %p13887_p13 }
0x1937   : > { %p8937_p4 = pneg %p8936_p1 }
0x1939   : > { %9704 = dma.done.wait (%p8937_p4), %s8064_s0, 64  }
0x193a   : > { %9706 = vsyncadd (%p8937_p4), %s8064_s0, 4294967232  ;;  %s13889_s19 = sld [smem:[#allocation20_spill]]  ;;  %s13892_s29 = smov %s9713_s30 }
0x193b   : > { %s13890_s17 = sld [smem:[#allocation18_spill]] }
0x193c   : > { %s13891_s0 = sld [smem:[#allocation21_spill]] }
0x1940   : > { %p37_p7 = scmp.ge.s32.totalorder %s13889_s19, 4  }
0x1941   : > { %s13893_s30 = smov %s13890_s17 }
0x1942   :  { %39 = sbr.rel (!%p37_p7) target bundleno = 17 (0x11), region = 173 }
0x1947   :  { %8069 = vsyncpa [#allocation4], 1 }
0x1948   :  { %8071 = vsyncpa [#allocation4 + $0x1], 1 }
0x1949   :  { %8072 = vsyncpa [#allocation7], 1 }
0x194a   :  { %8074 = vsyncpa [#allocation7 + $0x1], 1 }
0x194b   :  { %8075 = vsyncpa [#allocation10], 1 }
0x194c   :  { %8076 = vsyncpa [#allocation5], 1 }
0x194d   :  { %8078 = vsyncpa [#allocation5 + $0x1], 1 }

</bundles_post_ra>
